<compile_context>
chip_gen: v6e
topology: v6e:2x2x1
jax: 0.10.0
libtpu: 0.0.40
codegen_flags: <defaults>
</compile_context>

<pallas_src>
import numpy as np
import jax
import jax.numpy as jnp
from jax import lax
from jax.experimental import pallas as pl
from jax.experimental.pallas import tpu as pltpu  # noqa: F401  (TPU backend)

LEAK = 0.2
BN_EPS = 0.8        # nn.BatchNorm2d(out_filters, 0.8) -> eps = 0.8
CPAD = 128          # lane-padded channel width used for every layer
K, STRIDE, PAD = 3, 2, 1


# ---------------------------------------------------------------------------
# Fused Pallas kernel: 4 conv blocks + linear + sigmoid, activations in VMEM.
# ---------------------------------------------------------------------------
def _discriminator_kernel(x_ref,
                          s1_ref, w1_ref, b1_ref, t1_ref,
                          s2_ref, w2_ref, b2_ref, t2_ref,
                          s3_ref, w3_ref, b3_ref, t3_ref,
                          s4_ref, w4_ref, b4_ref, t4_ref,
                          wl_ref, bl_ref,
                          out_ref):
    def conv_block(x_bf16, s_ref, w_ref, b_ref, t_ref):
        # s_ref: (9, Rout, Rin)  one-hot row-gather matrices (bf16)
        # w_ref: (9, CPAD, CPAD) per-tap weights with BN scale folded (bf16)
        # b_ref / t_ref: (1, CPAD) folded bias / BN shift (f32)
        n_taps, rout, _ = s_ref.shape
        acc = jnp.zeros((rout, CPAD), jnp.float32)
        for tap in range(n_taps):                      # static unroll (9 taps)
            # MXU one-hot gather == in-kernel im2col tap extraction (VMEM only).
            patch = jnp.dot(s_ref[tap], x_bf16,
                            preferred_element_type=jnp.float32)
            acc = acc + jnp.dot(patch.astype(jnp.bfloat16), w_ref[tap],
                                preferred_element_type=jnp.float32)
        y = acc + b_ref[...]                           # conv bias (BN scale folded in)
        y = jnp.where(y > 0.0, y, LEAK * y)            # LeakyReLU(0.2)
        # TODO(synk): Dropout2d(0.25) is identity in inference; training-mode
        # stochastic channel dropout is not implemented.
        y = y + t_ref[...]                             # BatchNorm shift (inference)
        return y.astype(jnp.bfloat16)

    x = x_ref[...]                                     # (N*H*W, CPAD) bf16
    x = conv_block(x, s1_ref, w1_ref, b1_ref, t1_ref)
    x = conv_block(x, s2_ref, w2_ref, b2_ref, t2_ref)
    x = conv_block(x, s3_ref, w3_ref, b3_ref, t3_ref)
    x = conv_block(x, s4_ref, w4_ref, b4_ref, t4_ref)  # (N*ds*ds, CPAD) bf16

    # Linear(128*ds^2 -> 1) with the NCHW flatten permutation folded into
    # wl_ref, followed by Sigmoid.  Contraction is done in f32.
    n_out = out_ref.shape[0]
    s_per = x.shape[0] // n_out                        # ds*ds (static)
    prod = x.astype(jnp.float32) * wl_ref[...]         # (N*S, CPAD)
    csum = jnp.sum(prod, axis=1, keepdims=True)        # (N*S, 1)
    if s_per == 1:
        pre = csum
    else:  # general ds > 1 path (not exercised at img_size=16)
        pre = jnp.concatenate(
            [jnp.sum(csum[i * s_per:(i + 1) * s_per, :], axis=0, keepdims=True)
             for i in range(n_out)], axis=0)
    pre = pre + bl_ref[...]
    out_ref[...] = pl.reciprocal(1.0 + jnp.exp(-pre), approx=True)   # Sigmoid


# ---------------------------------------------------------------------------
# Parameter / constant preparation (host side, done once)
# ---------------------------------------------------------------------------
def _selection_matrices(n, h, w, k=K, stride=STRIDE, pad=PAD):
    """One-hot row-gather matrices implementing im2col for a 3x3/s2/p1 conv."""
    ho = (h + 2 * pad - k) // stride + 1
    wo = (w + 2 * pad - k) // stride + 1
    sel = np.zeros((k * k, n * ho * wo, n * h * w), np.float32)
    for ky in range(k):
        for kx in range(k):
            tap = ky * k + kx
            for b in range(n):
                for oy in range(ho):
                    iy = stride * oy + ky - pad
                    if not (0 <= iy < h):
                        continue
                    for ox in range(wo):
                        ix = stride * ox + kx - pad
                        if 0 <= ix < w:
                            sel[tap, (b * ho + oy) * wo + ox,
                                (b * h + iy) * w + ix] = 1.0
    return jnp.asarray(sel, jnp.bfloat16), ho, wo


def _fold_conv_params(w_oihw, bias, scale, shift):
    w = np.asarray(w_oihw, np.float32)
    bias = np.asarray(bias, np.float32)
    scale = np.asarray(scale, np.float32)
    shift = np.asarray(shift, np.float32)
    # LeakyReLU commutes with a positive per-channel scale, so the fold is valid.
    assert np.all(scale > 0), "BN scale fold across LeakyReLU requires scale > 0"
    # TODO(synk): if gamma can be negative, apply the scale after LeakyReLU instead.
    cout, cin, kh, kw = w.shape
    wt = np.transpose(w, (2, 3, 1, 0)) * scale         # (kh, kw, cin, cout), scale folded
    w_taps = np.zeros((kh * kw, CPAD, CPAD), np.float32)
    w_taps[:, :cin, :cout] = wt.reshape(kh * kw, cin, cout)
    b_p = np.zeros((1, CPAD), np.float32)
    b_p[0, :cout] = bias * scale
    t_p = np.zeros((1, CPAD), np.float32)
    t_p[0, :cout] = shift
    return (jnp.asarray(w_taps, jnp.bfloat16), jnp.asarray(b_p), jnp.asarray(t_p))


def _fold_linear_params(wl, bl, n, ds, c_last):
    # PyTorch flatten order of NCHW: flat_idx = c*ds*ds + oy*ds + ox.  Fold that
    # permutation into the linear weight so the kernel consumes rows (n,oy,ox) x C.
    s = ds * ds
    wl = np.asarray(wl, np.float32).reshape(c_last, s)   # row c, col s
    wl_sc = np.zeros((s, CPAD), np.float32)
    wl_sc[:, :c_last] = wl.T                              # (S, CPAD)
    wl_big = np.tile(wl_sc, (n, 1))                       # (N*S, CPAD)
    bl_p = np.asarray(bl, np.float32).reshape(1, 1)
    return jnp.asarray(wl_big), jnp.asarray(bl_p)


def prepare_discriminator(params, batch, channels, img_size):
    """Build the constant kernel inputs (gather matrices + folded weights)."""
    args = []
    h = w = img_size
    c_last = channels
    for (wconv, b, scale, shift) in params["blocks"]:
        sel, ho, wo = _selection_matrices(batch, h, w)
        w_taps, b_p, t_p = _fold_conv_params(wconv, b, scale, shift)
        args += [sel, w_taps, b_p, t_p]
        h, w = ho, wo
        c_last = wconv.shape[0]
    ds = img_size // 2 ** 4
    assert h == ds and w == ds
    wl, bl = params["adv"]
    wl_big, bl_p = _fold_linear_params(wl, bl, batch, ds, c_last)
    args += [wl_big, bl_p]
    return tuple(args)


# ---------------------------------------------------------------------------
# Forward
# ---------------------------------------------------------------------------
@jax.jit
def discriminator_forward(img_nchw, prep_args):
    n, c, h, w = img_nchw.shape
    # NCHW -> NHWC -> row matrix (N*H*W, C), channel-pad to 128 lanes, bf16.
    x = jnp.transpose(img_nchw, (0, 2, 3, 1)).reshape(n * h * w, c)
    x = jnp.pad(x, ((0, 0), (0, CPAD - c))).astype(jnp.bfloat16)
    return pl.pallas_call(
        _discriminator_kernel,
        out_shape=jax.ShapeDtypeStruct((n, 1), jnp.float32),
    )(x, *prep_args)


def init_params(key, channels, img_size):
    cfg = [(channels, 16, False), (16, 32, True), (32, 64, True), (64, 128, True)]
    blocks = []
    for (cin, cout, bn) in cfg:
        key, kw, kb = jax.random.split(key, 3)
        w = jax.random.normal(kw, (cout, cin, 3, 3), jnp.float32) * 0.1
        b = jax.random.normal(kb, (cout,), jnp.float32) * 0.1
        if bn:
            # inference-mode BN, default init (gamma=1, beta=0, mean=0, var=1)
            scale = jnp.full((cout,), 1.0 / float(np.sqrt(1.0 + BN_EPS)), jnp.float32)
            shift = jnp.zeros((cout,), jnp.float32)
        else:
            scale = jnp.ones((cout,), jnp.float32)
            shift = jnp.zeros((cout,), jnp.float32)
        blocks.append((w, b, scale, shift))
    ds = img_size // 2 ** 4
    key, kw, kb = jax.random.split(key, 3)
    wl = jax.random.normal(kw, (128 * ds * ds, 1), jnp.float32) * 0.1
    bl = jax.random.normal(kb, (1, 1), jnp.float32) * 0.1
    return {"blocks": blocks, "adv": (wl, bl)}


# Pure-JAX f32 reference (exact PyTorch semantics, for correctness check only)
def reference_forward(img_nchw, params):
    x = jnp.transpose(img_nchw, (0, 2, 3, 1))
    for (w, b, scale, shift) in params["blocks"]:
        y = lax.conv_general_dilated(
            x, jnp.transpose(w, (2, 3, 1, 0)),
            window_strides=(2, 2), padding=((1, 1), (1, 1)),
            dimension_numbers=("NHWC", "HWIO", "NHWC"))
        y = y + b
        y = jnp.where(y > 0, y, LEAK * y)
        x = y * scale + shift
    flat = jnp.transpose(x, (0, 3, 1, 2)).reshape(x.shape[0], -1)
    wl, bl = params["adv"]
    return jax.nn.sigmoid(flat @ wl + bl)


if __name__ == "__main__":
    batch, channels, img_size = 2, 4, 16   # opt.channels=4, opt.img_size=16
    key = jax.random.PRNGKey(0)
    key, kimg = jax.random.split(key)
    img = jax.random.normal(kimg, (batch, channels, img_size, img_size), jnp.float32)

    params = init_params(key, channels, img_size)
    prep = prepare_discriminator(params, batch, channels, img_size)

    validity = jax.block_until_ready(discriminator_forward(img, prep))
    ref = jax.block_until_ready(reference_forward(img, params))

    assert validity.shape == (batch, 1), validity.shape
    # bf16 matmul operands + approx reciprocal vs. pure-f32 reference => relaxed tol
    assert jnp.allclose(validity, ref, atol=1e-2, rtol=1e-2), (validity, ref)
    print("KERNEL_OK")
</pallas_src>

<mosaic_0001>
module attributes {stable_mosaic.version = 11 : i64} {
  func.func @_discriminator_kernel(%arg0: memref<512x128xbf16, #tpu.memory_space<vmem>>, %arg1: memref<9x128x512xbf16, #tpu.memory_space<vmem>>, %arg2: memref<9x128x128xbf16, #tpu.memory_space<vmem>>, %arg3: memref<1x128xf32, #tpu.memory_space<vmem>>, %arg4: memref<1x128xf32, #tpu.memory_space<vmem>>, %arg5: memref<9x32x128xbf16, #tpu.memory_space<vmem>>, %arg6: memref<9x128x128xbf16, #tpu.memory_space<vmem>>, %arg7: memref<1x128xf32, #tpu.memory_space<vmem>>, %arg8: memref<1x128xf32, #tpu.memory_space<vmem>>, %arg9: memref<9x8x32xbf16, #tpu.memory_space<vmem>>, %arg10: memref<9x128x128xbf16, #tpu.memory_space<vmem>>, %arg11: memref<1x128xf32, #tpu.memory_space<vmem>>, %arg12: memref<1x128xf32, #tpu.memory_space<vmem>>, %arg13: memref<9x2x8xbf16, #tpu.memory_space<vmem>>, %arg14: memref<9x128x128xbf16, #tpu.memory_space<vmem>>, %arg15: memref<1x128xf32, #tpu.memory_space<vmem>>, %arg16: memref<1x128xf32, #tpu.memory_space<vmem>>, %arg17: memref<2x128xf32, #tpu.memory_space<vmem>>, %arg18: memref<1x1xf32, #tpu.memory_space<vmem>>, %arg19: memref<2x1xf32, #tpu.memory_space<vmem>>) attributes {dimension_semantics = [], scalar_prefetch = 0 : i64, scratch_operands = 0 : i64, tpu.core_type = #tpu.core_type<tc>} {
    %c0 = arith.constant 0 : index
    %c0_0 = arith.constant 0 : index
    %0 = vector.load %arg0[%c0, %c0_0] : memref<512x128xbf16, #tpu.memory_space<vmem>>, vector<512x128xbf16>
    %cst = arith.constant 0.000000e+00 : f32
    %1 = vector.broadcast %cst : f32 to vector<128x128xf32>
    %c0_1 = arith.constant 0 : index
    %c0_2 = arith.constant 0 : index
    %c0_3 = arith.constant 0 : index
    %2 = vector.load %arg1[%c0_1, %c0_2, %c0_3] : memref<9x128x512xbf16, #tpu.memory_space<vmem>>, vector<1x128x512xbf16>
    %3 = vector.shape_cast %2 : vector<1x128x512xbf16> to vector<128x512xbf16>
    %cst_4 = arith.constant dense<0.000000e+00> : vector<128x128xf32>
    %4 = tpu.matmul %3, %0, %cst_4 {dimension_numbers = #tpu.dot_dimension_numbers<[1], [0], [0], [1], [0, 0, 1, 1], [], []>} : vector<128x512xbf16>, vector<512x128xbf16>, vector<128x128xf32> -> vector<128x128xf32>
    %5 = arith.truncf %4 : vector<128x128xf32> to vector<128x128xbf16>
    %c0_5 = arith.constant 0 : index
    %c0_6 = arith.constant 0 : index
    %c0_7 = arith.constant 0 : index
    %6 = vector.load %arg2[%c0_5, %c0_6, %c0_7] : memref<9x128x128xbf16, #tpu.memory_space<vmem>>, vector<1x128x128xbf16>
    %7 = vector.shape_cast %6 : vector<1x128x128xbf16> to vector<128x128xbf16>
    %cst_8 = arith.constant dense<0.000000e+00> : vector<128x128xf32>
    %8 = tpu.matmul %5, %7, %cst_8 {dimension_numbers = #tpu.dot_dimension_numbers<[1], [0], [0], [1], [0, 0, 1, 1], [], []>} : vector<128x128xbf16>, vector<128x128xbf16>, vector<128x128xf32> -> vector<128x128xf32>
    %9 = arith.addf %1, %8 : vector<128x128xf32>
    %c1 = arith.constant 1 : index
    %c0_9 = arith.constant 0 : index
    %c0_10 = arith.constant 0 : index
    %10 = vector.load %arg1[%c1, %c0_9, %c0_10] : memref<9x128x512xbf16, #tpu.memory_space<vmem>>, vector<1x128x512xbf16>
    %11 = vector.shape_cast %10 : vector<1x128x512xbf16> to vector<128x512xbf16>
    %cst_11 = arith.constant dense<0.000000e+00> : vector<128x128xf32>
    %12 = tpu.matmul %11, %0, %cst_11 {dimension_numbers = #tpu.dot_dimension_numbers<[1], [0], [0], [1], [0, 0, 1, 1], [], []>} : vector<128x512xbf16>, vector<512x128xbf16>, vector<128x128xf32> -> vector<128x128xf32>
    %13 = arith.truncf %12 : vector<128x128xf32> to vector<128x128xbf16>
    %c1_12 = arith.constant 1 : index
    %c0_13 = arith.constant 0 : index
    %c0_14 = arith.constant 0 : index
    %14 = vector.load %arg2[%c1_12, %c0_13, %c0_14] : memref<9x128x128xbf16, #tpu.memory_space<vmem>>, vector<1x128x128xbf16>
    %15 = vector.shape_cast %14 : vector<1x128x128xbf16> to vector<128x128xbf16>
    %cst_15 = arith.constant dense<0.000000e+00> : vector<128x128xf32>
    %16 = tpu.matmul %13, %15, %cst_15 {dimension_numbers = #tpu.dot_dimension_numbers<[1], [0], [0], [1], [0, 0, 1, 1], [], []>} : vector<128x128xbf16>, vector<128x128xbf16>, vector<128x128xf32> -> vector<128x128xf32>
    %17 = arith.addf %9, %16 : vector<128x128xf32>
    %c2 = arith.constant 2 : index
    %c0_16 = arith.constant 0 : index
    %c0_17 = arith.constant 0 : index
    %18 = vector.load %arg1[%c2, %c0_16, %c0_17] : memref<9x128x512xbf16, #tpu.memory_space<vmem>>, vector<1x128x512xbf16>
    %19 = vector.shape_cast %18 : vector<1x128x512xbf16> to vector<128x512xbf16>
    %cst_18 = arith.constant dense<0.000000e+00> : vector<128x128xf32>
    %20 = tpu.matmul %19, %0, %cst_18 {dimension_numbers = #tpu.dot_dimension_numbers<[1], [0], [0], [1], [0, 0, 1, 1], [], []>} : vector<128x512xbf16>, vector<512x128xbf16>, vector<128x128xf32> -> vector<128x128xf32>
    %21 = arith.truncf %20 : vector<128x128xf32> to vector<128x128xbf16>
    %c2_19 = arith.constant 2 : index
    %c0_20 = arith.constant 0 : index
    %c0_21 = arith.constant 0 : index
    %22 = vector.load %arg2[%c2_19, %c0_20, %c0_21] : memref<9x128x128xbf16, #tpu.memory_space<vmem>>, vector<1x128x128xbf16>
    %23 = vector.shape_cast %22 : vector<1x128x128xbf16> to vector<128x128xbf16>
    %cst_22 = arith.constant dense<0.000000e+00> : vector<128x128xf32>
    %24 = tpu.matmul %21, %23, %cst_22 {dimension_numbers = #tpu.dot_dimension_numbers<[1], [0], [0], [1], [0, 0, 1, 1], [], []>} : vector<128x128xbf16>, vector<128x128xbf16>, vector<128x128xf32> -> vector<128x128xf32>
    %25 = arith.addf %17, %24 : vector<128x128xf32>
    %c3 = arith.constant 3 : index
    %c0_23 = arith.constant 0 : index
    %c0_24 = arith.constant 0 : index
    %26 = vector.load %arg1[%c3, %c0_23, %c0_24] : memref<9x128x512xbf16, #tpu.memory_space<vmem>>, vector<1x128x512xbf16>
    %27 = vector.shape_cast %26 : vector<1x128x512xbf16> to vector<128x512xbf16>
    %cst_25 = arith.constant dense<0.000000e+00> : vector<128x128xf32>
    %28 = tpu.matmul %27, %0, %cst_25 {dimension_numbers = #tpu.dot_dimension_numbers<[1], [0], [0], [1], [0, 0, 1, 1], [], []>} : vector<128x512xbf16>, vector<512x128xbf16>, vector<128x128xf32> -> vector<128x128xf32>
    %29 = arith.truncf %28 : vector<128x128xf32> to vector<128x128xbf16>
    %c3_26 = arith.constant 3 : index
    %c0_27 = arith.constant 0 : index
    %c0_28 = arith.constant 0 : index
    %30 = vector.load %arg2[%c3_26, %c0_27, %c0_28] : memref<9x128x128xbf16, #tpu.memory_space<vmem>>, vector<1x128x128xbf16>
    %31 = vector.shape_cast %30 : vector<1x128x128xbf16> to vector<128x128xbf16>
    %cst_29 = arith.constant dense<0.000000e+00> : vector<128x128xf32>
    %32 = tpu.matmul %29, %31, %cst_29 {dimension_numbers = #tpu.dot_dimension_numbers<[1], [0], [0], [1], [0, 0, 1, 1], [], []>} : vector<128x128xbf16>, vector<128x128xbf16>, vector<128x128xf32> -> vector<128x128xf32>
    %33 = arith.addf %25, %32 : vector<128x128xf32>
    %c4 = arith.constant 4 : index
    %c0_30 = arith.constant 0 : index
    %c0_31 = arith.constant 0 : index
    %34 = vector.load %arg1[%c4, %c0_30, %c0_31] : memref<9x128x512xbf16, #tpu.memory_space<vmem>>, vector<1x128x512xbf16>
    %35 = vector.shape_cast %34 : vector<1x128x512xbf16> to vector<128x512xbf16>
    %cst_32 = arith.constant dense<0.000000e+00> : vector<128x128xf32>
    %36 = tpu.matmul %35, %0, %cst_32 {dimension_numbers = #tpu.dot_dimension_numbers<[1], [0], [0], [1], [0, 0, 1, 1], [], []>} : vector<128x512xbf16>, vector<512x128xbf16>, vector<128x128xf32> -> vector<128x128xf32>
    %37 = arith.truncf %36 : vector<128x128xf32> to vector<128x128xbf16>
    %c4_33 = arith.constant 4 : index
    %c0_34 = arith.constant 0 : index
    %c0_35 = arith.constant 0 : index
    %38 = vector.load %arg2[%c4_33, %c0_34, %c0_35] : memref<9x128x128xbf16, #tpu.memory_space<vmem>>, vector<1x128x128xbf16>
    %39 = vector.shape_cast %38 : vector<1x128x128xbf16> to vector<128x128xbf16>
    %cst_36 = arith.constant dense<0.000000e+00> : vector<128x128xf32>
    %40 = tpu.matmul %37, %39, %cst_36 {dimension_numbers = #tpu.dot_dimension_numbers<[1], [0], [0], [1], [0, 0, 1, 1], [], []>} : vector<128x128xbf16>, vector<128x128xbf16>, vector<128x128xf32> -> vector<128x128xf32>
    %41 = arith.addf %33, %40 : vector<128x128xf32>
    %c5 = arith.constant 5 : index
    %c0_37 = arith.constant 0 : index
    %c0_38 = arith.constant 0 : index
    %42 = vector.load %arg1[%c5, %c0_37, %c0_38] : memref<9x128x512xbf16, #tpu.memory_space<vmem>>, vector<1x128x512xbf16>
    %43 = vector.shape_cast %42 : vector<1x128x512xbf16> to vector<128x512xbf16>
    %cst_39 = arith.constant dense<0.000000e+00> : vector<128x128xf32>
    %44 = tpu.matmul %43, %0, %cst_39 {dimension_numbers = #tpu.dot_dimension_numbers<[1], [0], [0], [1], [0, 0, 1, 1], [], []>} : vector<128x512xbf16>, vector<512x128xbf16>, vector<128x128xf32> -> vector<128x128xf32>
    %45 = arith.truncf %44 : vector<128x128xf32> to vector<128x128xbf16>
    %c5_40 = arith.constant 5 : index
    %c0_41 = arith.constant 0 : index
    %c0_42 = arith.constant 0 : index
    %46 = vector.load %arg2[%c5_40, %c0_41, %c0_42] : memref<9x128x128xbf16, #tpu.memory_space<vmem>>, vector<1x128x128xbf16>
    %47 = vector.shape_cast %46 : vector<1x128x128xbf16> to vector<128x128xbf16>
    %cst_43 = arith.constant dense<0.000000e+00> : vector<128x128xf32>
    %48 = tpu.matmul %45, %47, %cst_43 {dimension_numbers = #tpu.dot_dimension_numbers<[1], [0], [0], [1], [0, 0, 1, 1], [], []>} : vector<128x128xbf16>, vector<128x128xbf16>, vector<128x128xf32> -> vector<128x128xf32>
    %49 = arith.addf %41, %48 : vector<128x128xf32>
    %c6 = arith.constant 6 : index
    %c0_44 = arith.constant 0 : index
    %c0_45 = arith.constant 0 : index
    %50 = vector.load %arg1[%c6, %c0_44, %c0_45] : memref<9x128x512xbf16, #tpu.memory_space<vmem>>, vector<1x128x512xbf16>
    %51 = vector.shape_cast %50 : vector<1x128x512xbf16> to vector<128x512xbf16>
    %cst_46 = arith.constant dense<0.000000e+00> : vector<128x128xf32>
    %52 = tpu.matmul %51, %0, %cst_46 {dimension_numbers = #tpu.dot_dimension_numbers<[1], [0], [0], [1], [0, 0, 1, 1], [], []>} : vector<128x512xbf16>, vector<512x128xbf16>, vector<128x128xf32> -> vector<128x128xf32>
    %53 = arith.truncf %52 : vector<128x128xf32> to vector<128x128xbf16>
    %c6_47 = arith.constant 6 : index
    %c0_48 = arith.constant 0 : index
    %c0_49 = arith.constant 0 : index
    %54 = vector.load %arg2[%c6_47, %c0_48, %c0_49] : memref<9x128x128xbf16, #tpu.memory_space<vmem>>, vector<1x128x128xbf16>
    %55 = vector.shape_cast %54 : vector<1x128x128xbf16> to vector<128x128xbf16>
    %cst_50 = arith.constant dense<0.000000e+00> : vector<128x128xf32>
    %56 = tpu.matmul %53, %55, %cst_50 {dimension_numbers = #tpu.dot_dimension_numbers<[1], [0], [0], [1], [0, 0, 1, 1], [], []>} : vector<128x128xbf16>, vector<128x128xbf16>, vector<128x128xf32> -> vector<128x128xf32>
    %57 = arith.addf %49, %56 : vector<128x128xf32>
    %c7 = arith.constant 7 : index
    %c0_51 = arith.constant 0 : index
    %c0_52 = arith.constant 0 : index
    %58 = vector.load %arg1[%c7, %c0_51, %c0_52] : memref<9x128x512xbf16, #tpu.memory_space<vmem>>, vector<1x128x512xbf16>
    %59 = vector.shape_cast %58 : vector<1x128x512xbf16> to vector<128x512xbf16>
    %cst_53 = arith.constant dense<0.000000e+00> : vector<128x128xf32>
    %60 = tpu.matmul %59, %0, %cst_53 {dimension_numbers = #tpu.dot_dimension_numbers<[1], [0], [0], [1], [0, 0, 1, 1], [], []>} : vector<128x512xbf16>, vector<512x128xbf16>, vector<128x128xf32> -> vector<128x128xf32>
    %61 = arith.truncf %60 : vector<128x128xf32> to vector<128x128xbf16>
    %c7_54 = arith.constant 7 : index
    %c0_55 = arith.constant 0 : index
    %c0_56 = arith.constant 0 : index
    %62 = vector.load %arg2[%c7_54, %c0_55, %c0_56] : memref<9x128x128xbf16, #tpu.memory_space<vmem>>, vector<1x128x128xbf16>
    %63 = vector.shape_cast %62 : vector<1x128x128xbf16> to vector<128x128xbf16>
    %cst_57 = arith.constant dense<0.000000e+00> : vector<128x128xf32>
    %64 = tpu.matmul %61, %63, %cst_57 {dimension_numbers = #tpu.dot_dimension_numbers<[1], [0], [0], [1], [0, 0, 1, 1], [], []>} : vector<128x128xbf16>, vector<128x128xbf16>, vector<128x128xf32> -> vector<128x128xf32>
    %65 = arith.addf %57, %64 : vector<128x128xf32>
    %c8 = arith.constant 8 : index
    %c0_58 = arith.constant 0 : index
    %c0_59 = arith.constant 0 : index
    %66 = vector.load %arg1[%c8, %c0_58, %c0_59] : memref<9x128x512xbf16, #tpu.memory_space<vmem>>, vector<1x128x512xbf16>
    %67 = vector.shape_cast %66 : vector<1x128x512xbf16> to vector<128x512xbf16>
    %cst_60 = arith.constant dense<0.000000e+00> : vector<128x128xf32>
    %68 = tpu.matmul %67, %0, %cst_60 {dimension_numbers = #tpu.dot_dimension_numbers<[1], [0], [0], [1], [0, 0, 1, 1], [], []>} : vector<128x512xbf16>, vector<512x128xbf16>, vector<128x128xf32> -> vector<128x128xf32>
    %69 = arith.truncf %68 : vector<128x128xf32> to vector<128x128xbf16>
    %c8_61 = arith.constant 8 : index
    %c0_62 = arith.constant 0 : index
    %c0_63 = arith.constant 0 : index
    %70 = vector.load %arg2[%c8_61, %c0_62, %c0_63] : memref<9x128x128xbf16, #tpu.memory_space<vmem>>, vector<1x128x128xbf16>
    %71 = vector.shape_cast %70 : vector<1x128x128xbf16> to vector<128x128xbf16>
    %cst_64 = arith.constant dense<0.000000e+00> : vector<128x128xf32>
    %72 = tpu.matmul %69, %71, %cst_64 {dimension_numbers = #tpu.dot_dimension_numbers<[1], [0], [0], [1], [0, 0, 1, 1], [], []>} : vector<128x128xbf16>, vector<128x128xbf16>, vector<128x128xf32> -> vector<128x128xf32>
    %73 = arith.addf %65, %72 : vector<128x128xf32>
    %c0_65 = arith.constant 0 : index
    %c0_66 = arith.constant 0 : index
    %74 = vector.load %arg3[%c0_65, %c0_66] : memref<1x128xf32, #tpu.memory_space<vmem>>, vector<1x128xf32>
    %75 = vector.broadcast %74 : vector<1x128xf32> to vector<128x128xf32>
    %76 = arith.addf %73, %75 : vector<128x128xf32>
    %cst_67 = arith.constant 0.000000e+00 : f32
    %77 = vector.broadcast %cst_67 : f32 to vector<128x128xf32>
    %78 = arith.cmpf ogt, %76, %77 : vector<128x128xf32>
    %cst_68 = arith.constant 2.000000e-01 : f32
    %79 = vector.broadcast %cst_68 : f32 to vector<128x128xf32>
    %80 = arith.mulf %79, %76 : vector<128x128xf32>
    %81 = arith.select %78, %76, %80 : vector<128x128xi1>, vector<128x128xf32>
    %c0_69 = arith.constant 0 : index
    %c0_70 = arith.constant 0 : index
    %82 = vector.load %arg4[%c0_69, %c0_70] : memref<1x128xf32, #tpu.memory_space<vmem>>, vector<1x128xf32>
    %83 = vector.broadcast %82 : vector<1x128xf32> to vector<128x128xf32>
    %84 = arith.addf %81, %83 : vector<128x128xf32>
    %85 = arith.truncf %84 : vector<128x128xf32> to vector<128x128xbf16>
    %cst_71 = arith.constant 0.000000e+00 : f32
    %86 = vector.broadcast %cst_71 : f32 to vector<32x128xf32>
    %c0_72 = arith.constant 0 : index
    %c0_73 = arith.constant 0 : index
    %c0_74 = arith.constant 0 : index
    %87 = vector.load %arg5[%c0_72, %c0_73, %c0_74] : memref<9x32x128xbf16, #tpu.memory_space<vmem>>, vector<1x32x128xbf16>
    %88 = vector.shape_cast %87 : vector<1x32x128xbf16> to vector<32x128xbf16>
    %cst_75 = arith.constant dense<0.000000e+00> : vector<32x128xf32>
    %89 = tpu.matmul %88, %85, %cst_75 {dimension_numbers = #tpu.dot_dimension_numbers<[1], [0], [0], [1], [0, 0, 1, 1], [], []>} : vector<32x128xbf16>, vector<128x128xbf16>, vector<32x128xf32> -> vector<32x128xf32>
    %90 = arith.truncf %89 : vector<32x128xf32> to vector<32x128xbf16>
    %c0_76 = arith.constant 0 : index
    %c0_77 = arith.constant 0 : index
    %c0_78 = arith.constant 0 : index
    %91 = vector.load %arg6[%c0_76, %c0_77, %c0_78] : memref<9x128x128xbf16, #tpu.memory_space<vmem>>, vector<1x128x128xbf16>
    %92 = vector.shape_cast %91 : vector<1x128x128xbf16> to vector<128x128xbf16>
    %cst_79 = arith.constant dense<0.000000e+00> : vector<32x128xf32>
    %93 = tpu.matmul %90, %92, %cst_79 {dimension_numbers = #tpu.dot_dimension_numbers<[1], [0], [0], [1], [0, 0, 1, 1], [], []>} : vector<32x128xbf16>, vector<128x128xbf16>, vector<32x128xf32> -> vector<32x128xf32>
    %94 = arith.addf %86, %93 : vector<32x128xf32>
    %c1_80 = arith.constant 1 : index
    %c0_81 = arith.constant 0 : index
    %c0_82 = arith.constant 0 : index
    %95 = vector.load %arg5[%c1_80, %c0_81, %c0_82] : memref<9x32x128xbf16, #tpu.memory_space<vmem>>, vector<1x32x128xbf16>
    %96 = vector.shape_cast %95 : vector<1x32x128xbf16> to vector<32x128xbf16>
    %cst_83 = arith.constant dense<0.000000e+00> : vector<32x128xf32>
    %97 = tpu.matmul %96, %85, %cst_83 {dimension_numbers = #tpu.dot_dimension_numbers<[1], [0], [0], [1], [0, 0, 1, 1], [], []>} : vector<32x128xbf16>, vector<128x128xbf16>, vector<32x128xf32> -> vector<32x128xf32>
    %98 = arith.truncf %97 : vector<32x128xf32> to vector<32x128xbf16>
    %c1_84 = arith.constant 1 : index
    %c0_85 = arith.constant 0 : index
    %c0_86 = arith.constant 0 : index
    %99 = vector.load %arg6[%c1_84, %c0_85, %c0_86] : memref<9x128x128xbf16, #tpu.memory_space<vmem>>, vector<1x128x128xbf16>
    %100 = vector.shape_cast %99 : vector<1x128x128xbf16> to vector<128x128xbf16>
    %cst_87 = arith.constant dense<0.000000e+00> : vector<32x128xf32>
    %101 = tpu.matmul %98, %100, %cst_87 {dimension_numbers = #tpu.dot_dimension_numbers<[1], [0], [0], [1], [0, 0, 1, 1], [], []>} : vector<32x128xbf16>, vector<128x128xbf16>, vector<32x128xf32> -> vector<32x128xf32>
    %102 = arith.addf %94, %101 : vector<32x128xf32>
    %c2_88 = arith.constant 2 : index
    %c0_89 = arith.constant 0 : index
    %c0_90 = arith.constant 0 : index
    %103 = vector.load %arg5[%c2_88, %c0_89, %c0_90] : memref<9x32x128xbf16, #tpu.memory_space<vmem>>, vector<1x32x128xbf16>
    %104 = vector.shape_cast %103 : vector<1x32x128xbf16> to vector<32x128xbf16>
    %cst_91 = arith.constant dense<0.000000e+00> : vector<32x128xf32>
    %105 = tpu.matmul %104, %85, %cst_91 {dimension_numbers = #tpu.dot_dimension_numbers<[1], [0], [0], [1], [0, 0, 1, 1], [], []>} : vector<32x128xbf16>, vector<128x128xbf16>, vector<32x128xf32> -> vector<32x128xf32>
    %106 = arith.truncf %105 : vector<32x128xf32> to vector<32x128xbf16>
    %c2_92 = arith.constant 2 : index
    %c0_93 = arith.constant 0 : index
    %c0_94 = arith.constant 0 : index
    %107 = vector.load %arg6[%c2_92, %c0_93, %c0_94] : memref<9x128x128xbf16, #tpu.memory_space<vmem>>, vector<1x128x128xbf16>
    %108 = vector.shape_cast %107 : vector<1x128x128xbf16> to vector<128x128xbf16>
    %cst_95 = arith.constant dense<0.000000e+00> : vector<32x128xf32>
    %109 = tpu.matmul %106, %108, %cst_95 {dimension_numbers = #tpu.dot_dimension_numbers<[1], [0], [0], [1], [0, 0, 1, 1], [], []>} : vector<32x128xbf16>, vector<128x128xbf16>, vector<32x128xf32> -> vector<32x128xf32>
    %110 = arith.addf %102, %109 : vector<32x128xf32>
    %c3_96 = arith.constant 3 : index
    %c0_97 = arith.constant 0 : index
    %c0_98 = arith.constant 0 : index
    %111 = vector.load %arg5[%c3_96, %c0_97, %c0_98] : memref<9x32x128xbf16, #tpu.memory_space<vmem>>, vector<1x32x128xbf16>
    %112 = vector.shape_cast %111 : vector<1x32x128xbf16> to vector<32x128xbf16>
    %cst_99 = arith.constant dense<0.000000e+00> : vector<32x128xf32>
    %113 = tpu.matmul %112, %85, %cst_99 {dimension_numbers = #tpu.dot_dimension_numbers<[1], [0], [0], [1], [0, 0, 1, 1], [], []>} : vector<32x128xbf16>, vector<128x128xbf16>, vector<32x128xf32> -> vector<32x128xf32>
    %114 = arith.truncf %113 : vector<32x128xf32> to vector<32x128xbf16>
    %c3_100 = arith.constant 3 : index
    %c0_101 = arith.constant 0 : index
    %c0_102 = arith.constant 0 : index
    %115 = vector.load %arg6[%c3_100, %c0_101, %c0_102] : memref<9x128x128xbf16, #tpu.memory_space<vmem>>, vector<1x128x128xbf16>
    %116 = vector.shape_cast %115 : vector<1x128x128xbf16> to vector<128x128xbf16>
    %cst_103 = arith.constant dense<0.000000e+00> : vector<32x128xf32>
    %117 = tpu.matmul %114, %116, %cst_103 {dimension_numbers = #tpu.dot_dimension_numbers<[1], [0], [0], [1], [0, 0, 1, 1], [], []>} : vector<32x128xbf16>, vector<128x128xbf16>, vector<32x128xf32> -> vector<32x128xf32>
    %118 = arith.addf %110, %117 : vector<32x128xf32>
    %c4_104 = arith.constant 4 : index
    %c0_105 = arith.constant 0 : index
    %c0_106 = arith.constant 0 : index
    %119 = vector.load %arg5[%c4_104, %c0_105, %c0_106] : memref<9x32x128xbf16, #tpu.memory_space<vmem>>, vector<1x32x128xbf16>
    %120 = vector.shape_cast %119 : vector<1x32x128xbf16> to vector<32x128xbf16>
    %cst_107 = arith.constant dense<0.000000e+00> : vector<32x128xf32>
    %121 = tpu.matmul %120, %85, %cst_107 {dimension_numbers = #tpu.dot_dimension_numbers<[1], [0], [0], [1], [0, 0, 1, 1], [], []>} : vector<32x128xbf16>, vector<128x128xbf16>, vector<32x128xf32> -> vector<32x128xf32>
    %122 = arith.truncf %121 : vector<32x128xf32> to vector<32x128xbf16>
    %c4_108 = arith.constant 4 : index
    %c0_109 = arith.constant 0 : index
    %c0_110 = arith.constant 0 : index
    %123 = vector.load %arg6[%c4_108, %c0_109, %c0_110] : memref<9x128x128xbf16, #tpu.memory_space<vmem>>, vector<1x128x128xbf16>
    %124 = vector.shape_cast %123 : vector<1x128x128xbf16> to vector<128x128xbf16>
    %cst_111 = arith.constant dense<0.000000e+00> : vector<32x128xf32>
    %125 = tpu.matmul %122, %124, %cst_111 {dimension_numbers = #tpu.dot_dimension_numbers<[1], [0], [0], [1], [0, 0, 1, 1], [], []>} : vector<32x128xbf16>, vector<128x128xbf16>, vector<32x128xf32> -> vector<32x128xf32>
    %126 = arith.addf %118, %125 : vector<32x128xf32>
    %c5_112 = arith.constant 5 : index
    %c0_113 = arith.constant 0 : index
    %c0_114 = arith.constant 0 : index
    %127 = vector.load %arg5[%c5_112, %c0_113, %c0_114] : memref<9x32x128xbf16, #tpu.memory_space<vmem>>, vector<1x32x128xbf16>
    %128 = vector.shape_cast %127 : vector<1x32x128xbf16> to vector<32x128xbf16>
    %cst_115 = arith.constant dense<0.000000e+00> : vector<32x128xf32>
    %129 = tpu.matmul %128, %85, %cst_115 {dimension_numbers = #tpu.dot_dimension_numbers<[1], [0], [0], [1], [0, 0, 1, 1], [], []>} : vector<32x128xbf16>, vector<128x128xbf16>, vector<32x128xf32> -> vector<32x128xf32>
    %130 = arith.truncf %129 : vector<32x128xf32> to vector<32x128xbf16>
    %c5_116 = arith.constant 5 : index
    %c0_117 = arith.constant 0 : index
    %c0_118 = arith.constant 0 : index
    %131 = vector.load %arg6[%c5_116, %c0_117, %c0_118] : memref<9x128x128xbf16, #tpu.memory_space<vmem>>, vector<1x128x128xbf16>
    %132 = vector.shape_cast %131 : vector<1x128x128xbf16> to vector<128x128xbf16>
    %cst_119 = arith.constant dense<0.000000e+00> : vector<32x128xf32>
    %133 = tpu.matmul %130, %132, %cst_119 {dimension_numbers = #tpu.dot_dimension_numbers<[1], [0], [0], [1], [0, 0, 1, 1], [], []>} : vector<32x128xbf16>, vector<128x128xbf16>, vector<32x128xf32> -> vector<32x128xf32>
    %134 = arith.addf %126, %133 : vector<32x128xf32>
    %c6_120 = arith.constant 6 : index
    %c0_121 = arith.constant 0 : index
    %c0_122 = arith.constant 0 : index
    %135 = vector.load %arg5[%c6_120, %c0_121, %c0_122] : memref<9x32x128xbf16, #tpu.memory_space<vmem>>, vector<1x32x128xbf16>
    %136 = vector.shape_cast %135 : vector<1x32x128xbf16> to vector<32x128xbf16>
    %cst_123 = arith.constant dense<0.000000e+00> : vector<32x128xf32>
    %137 = tpu.matmul %136, %85, %cst_123 {dimension_numbers = #tpu.dot_dimension_numbers<[1], [0], [0], [1], [0, 0, 1, 1], [], []>} : vector<32x128xbf16>, vector<128x128xbf16>, vector<32x128xf32> -> vector<32x128xf32>
    %138 = arith.truncf %137 : vector<32x128xf32> to vector<32x128xbf16>
    %c6_124 = arith.constant 6 : index
    %c0_125 = arith.constant 0 : index
    %c0_126 = arith.constant 0 : index
    %139 = vector.load %arg6[%c6_124, %c0_125, %c0_126] : memref<9x128x128xbf16, #tpu.memory_space<vmem>>, vector<1x128x128xbf16>
    %140 = vector.shape_cast %139 : vector<1x128x128xbf16> to vector<128x128xbf16>
    %cst_127 = arith.constant dense<0.000000e+00> : vector<32x128xf32>
    %141 = tpu.matmul %138, %140, %cst_127 {dimension_numbers = #tpu.dot_dimension_numbers<[1], [0], [0], [1], [0, 0, 1, 1], [], []>} : vector<32x128xbf16>, vector<128x128xbf16>, vector<32x128xf32> -> vector<32x128xf32>
    %142 = arith.addf %134, %141 : vector<32x128xf32>
    %c7_128 = arith.constant 7 : index
    %c0_129 = arith.constant 0 : index
    %c0_130 = arith.constant 0 : index
    %143 = vector.load %arg5[%c7_128, %c0_129, %c0_130] : memref<9x32x128xbf16, #tpu.memory_space<vmem>>, vector<1x32x128xbf16>
    %144 = vector.shape_cast %143 : vector<1x32x128xbf16> to vector<32x128xbf16>
    %cst_131 = arith.constant dense<0.000000e+00> : vector<32x128xf32>
    %145 = tpu.matmul %144, %85, %cst_131 {dimension_numbers = #tpu.dot_dimension_numbers<[1], [0], [0], [1], [0, 0, 1, 1], [], []>} : vector<32x128xbf16>, vector<128x128xbf16>, vector<32x128xf32> -> vector<32x128xf32>
    %146 = arith.truncf %145 : vector<32x128xf32> to vector<32x128xbf16>
    %c7_132 = arith.constant 7 : index
    %c0_133 = arith.constant 0 : index
    %c0_134 = arith.constant 0 : index
    %147 = vector.load %arg6[%c7_132, %c0_133, %c0_134] : memref<9x128x128xbf16, #tpu.memory_space<vmem>>, vector<1x128x128xbf16>
    %148 = vector.shape_cast %147 : vector<1x128x128xbf16> to vector<128x128xbf16>
    %cst_135 = arith.constant dense<0.000000e+00> : vector<32x128xf32>
    %149 = tpu.matmul %146, %148, %cst_135 {dimension_numbers = #tpu.dot_dimension_numbers<[1], [0], [0], [1], [0, 0, 1, 1], [], []>} : vector<32x128xbf16>, vector<128x128xbf16>, vector<32x128xf32> -> vector<32x128xf32>
    %150 = arith.addf %142, %149 : vector<32x128xf32>
    %c8_136 = arith.constant 8 : index
    %c0_137 = arith.constant 0 : index
    %c0_138 = arith.constant 0 : index
    %151 = vector.load %arg5[%c8_136, %c0_137, %c0_138] : memref<9x32x128xbf16, #tpu.memory_space<vmem>>, vector<1x32x128xbf16>
    %152 = vector.shape_cast %151 : vector<1x32x128xbf16> to vector<32x128xbf16>
    %cst_139 = arith.constant dense<0.000000e+00> : vector<32x128xf32>
    %153 = tpu.matmul %152, %85, %cst_139 {dimension_numbers = #tpu.dot_dimension_numbers<[1], [0], [0], [1], [0, 0, 1, 1], [], []>} : vector<32x128xbf16>, vector<128x128xbf16>, vector<32x128xf32> -> vector<32x128xf32>
    %154 = arith.truncf %153 : vector<32x128xf32> to vector<32x128xbf16>
    %c8_140 = arith.constant 8 : index
    %c0_141 = arith.constant 0 : index
    %c0_142 = arith.constant 0 : index
    %155 = vector.load %arg6[%c8_140, %c0_141, %c0_142] : memref<9x128x128xbf16, #tpu.memory_space<vmem>>, vector<1x128x128xbf16>
    %156 = vector.shape_cast %155 : vector<1x128x128xbf16> to vector<128x128xbf16>
    %cst_143 = arith.constant dense<0.000000e+00> : vector<32x128xf32>
    %157 = tpu.matmul %154, %156, %cst_143 {dimension_numbers = #tpu.dot_dimension_numbers<[1], [0], [0], [1], [0, 0, 1, 1], [], []>} : vector<32x128xbf16>, vector<128x128xbf16>, vector<32x128xf32> -> vector<32x128xf32>
    %158 = arith.addf %150, %157 : vector<32x128xf32>
    %c0_144 = arith.constant 0 : index
    %c0_145 = arith.constant 0 : index
    %159 = vector.load %arg7[%c0_144, %c0_145] : memref<1x128xf32, #tpu.memory_space<vmem>>, vector<1x128xf32>
    %160 = vector.broadcast %159 : vector<1x128xf32> to vector<32x128xf32>
    %161 = arith.addf %158, %160 : vector<32x128xf32>
    %cst_146 = arith.constant 0.000000e+00 : f32
    %162 = vector.broadcast %cst_146 : f32 to vector<32x128xf32>
    %163 = arith.cmpf ogt, %161, %162 : vector<32x128xf32>
    %cst_147 = arith.constant 2.000000e-01 : f32
    %164 = vector.broadcast %cst_147 : f32 to vector<32x128xf32>
    %165 = arith.mulf %164, %161 : vector<32x128xf32>
    %166 = arith.select %163, %161, %165 : vector<32x128xi1>, vector<32x128xf32>
    %c0_148 = arith.constant 0 : index
    %c0_149 = arith.constant 0 : index
    %167 = vector.load %arg8[%c0_148, %c0_149] : memref<1x128xf32, #tpu.memory_space<vmem>>, vector<1x128xf32>
    %168 = vector.broadcast %167 : vector<1x128xf32> to vector<32x128xf32>
    %169 = arith.addf %166, %168 : vector<32x128xf32>
    %170 = arith.truncf %169 : vector<32x128xf32> to vector<32x128xbf16>
    %cst_150 = arith.constant 0.000000e+00 : f32
    %171 = vector.broadcast %cst_150 : f32 to vector<8x128xf32>
    %c0_151 = arith.constant 0 : index
    %c0_152 = arith.constant 0 : index
    %c0_153 = arith.constant 0 : index
    %172 = vector.load %arg9[%c0_151, %c0_152, %c0_153] : memref<9x8x32xbf16, #tpu.memory_space<vmem>>, vector<1x8x32xbf16>
    %173 = vector.shape_cast %172 : vector<1x8x32xbf16> to vector<8x32xbf16>
    %cst_154 = arith.constant dense<0.000000e+00> : vector<8x128xf32>
    %174 = tpu.matmul %173, %170, %cst_154 {dimension_numbers = #tpu.dot_dimension_numbers<[1], [0], [0], [1], [0, 0, 1, 1], [], []>} : vector<8x32xbf16>, vector<32x128xbf16>, vector<8x128xf32> -> vector<8x128xf32>
    %175 = arith.truncf %174 : vector<8x128xf32> to vector<8x128xbf16>
    %c0_155 = arith.constant 0 : index
    %c0_156 = arith.constant 0 : index
    %c0_157 = arith.constant 0 : index
    %176 = vector.load %arg10[%c0_155, %c0_156, %c0_157] : memref<9x128x128xbf16, #tpu.memory_space<vmem>>, vector<1x128x128xbf16>
    %177 = vector.shape_cast %176 : vector<1x128x128xbf16> to vector<128x128xbf16>
    %cst_158 = arith.constant dense<0.000000e+00> : vector<8x128xf32>
    %178 = tpu.matmul %175, %177, %cst_158 {dimension_numbers = #tpu.dot_dimension_numbers<[1], [0], [0], [1], [0, 0, 1, 1], [], []>} : vector<8x128xbf16>, vector<128x128xbf16>, vector<8x128xf32> -> vector<8x128xf32>
    %179 = arith.addf %171, %178 : vector<8x128xf32>
    %c1_159 = arith.constant 1 : index
    %c0_160 = arith.constant 0 : index
    %c0_161 = arith.constant 0 : index
    %180 = vector.load %arg9[%c1_159, %c0_160, %c0_161] : memref<9x8x32xbf16, #tpu.memory_space<vmem>>, vector<1x8x32xbf16>
    %181 = vector.shape_cast %180 : vector<1x8x32xbf16> to vector<8x32xbf16>
    %cst_162 = arith.constant dense<0.000000e+00> : vector<8x128xf32>
    %182 = tpu.matmul %181, %170, %cst_162 {dimension_numbers = #tpu.dot_dimension_numbers<[1], [0], [0], [1], [0, 0, 1, 1], [], []>} : vector<8x32xbf16>, vector<32x128xbf16>, vector<8x128xf32> -> vector<8x128xf32>
    %183 = arith.truncf %182 : vector<8x128xf32> to vector<8x128xbf16>
    %c1_163 = arith.constant 1 : index
    %c0_164 = arith.constant 0 : index
    %c0_165 = arith.constant 0 : index
    %184 = vector.load %arg10[%c1_163, %c0_164, %c0_165] : memref<9x128x128xbf16, #tpu.memory_space<vmem>>, vector<1x128x128xbf16>
    %185 = vector.shape_cast %184 : vector<1x128x128xbf16> to vector<128x128xbf16>
    %cst_166 = arith.constant dense<0.000000e+00> : vector<8x128xf32>
    %186 = tpu.matmul %183, %185, %cst_166 {dimension_numbers = #tpu.dot_dimension_numbers<[1], [0], [0], [1], [0, 0, 1, 1], [], []>} : vector<8x128xbf16>, vector<128x128xbf16>, vector<8x128xf32> -> vector<8x128xf32>
    %187 = arith.addf %179, %186 : vector<8x128xf32>
    %c2_167 = arith.constant 2 : index
    %c0_168 = arith.constant 0 : index
    %c0_169 = arith.constant 0 : index
    %188 = vector.load %arg9[%c2_167, %c0_168, %c0_169] : memref<9x8x32xbf16, #tpu.memory_space<vmem>>, vector<1x8x32xbf16>
    %189 = vector.shape_cast %188 : vector<1x8x32xbf16> to vector<8x32xbf16>
    %cst_170 = arith.constant dense<0.000000e+00> : vector<8x128xf32>
    %190 = tpu.matmul %189, %170, %cst_170 {dimension_numbers = #tpu.dot_dimension_numbers<[1], [0], [0], [1], [0, 0, 1, 1], [], []>} : vector<8x32xbf16>, vector<32x128xbf16>, vector<8x128xf32> -> vector<8x128xf32>
    %191 = arith.truncf %190 : vector<8x128xf32> to vector<8x128xbf16>
    %c2_171 = arith.constant 2 : index
    %c0_172 = arith.constant 0 : index
    %c0_173 = arith.constant 0 : index
    %192 = vector.load %arg10[%c2_171, %c0_172, %c0_173] : memref<9x128x128xbf16, #tpu.memory_space<vmem>>, vector<1x128x128xbf16>
    %193 = vector.shape_cast %192 : vector<1x128x128xbf16> to vector<128x128xbf16>
    %cst_174 = arith.constant dense<0.000000e+00> : vector<8x128xf32>
    %194 = tpu.matmul %191, %193, %cst_174 {dimension_numbers = #tpu.dot_dimension_numbers<[1], [0], [0], [1], [0, 0, 1, 1], [], []>} : vector<8x128xbf16>, vector<128x128xbf16>, vector<8x128xf32> -> vector<8x128xf32>
    %195 = arith.addf %187, %194 : vector<8x128xf32>
    %c3_175 = arith.constant 3 : index
    %c0_176 = arith.constant 0 : index
    %c0_177 = arith.constant 0 : index
    %196 = vector.load %arg9[%c3_175, %c0_176, %c0_177] : memref<9x8x32xbf16, #tpu.memory_space<vmem>>, vector<1x8x32xbf16>
    %197 = vector.shape_cast %196 : vector<1x8x32xbf16> to vector<8x32xbf16>
    %cst_178 = arith.constant dense<0.000000e+00> : vector<8x128xf32>
    %198 = tpu.matmul %197, %170, %cst_178 {dimension_numbers = #tpu.dot_dimension_numbers<[1], [0], [0], [1], [0, 0, 1, 1], [], []>} : vector<8x32xbf16>, vector<32x128xbf16>, vector<8x128xf32> -> vector<8x128xf32>
    %199 = arith.truncf %198 : vector<8x128xf32> to vector<8x128xbf16>
    %c3_179 = arith.constant 3 : index
    %c0_180 = arith.constant 0 : index
    %c0_181 = arith.constant 0 : index
    %200 = vector.load %arg10[%c3_179, %c0_180, %c0_181] : memref<9x128x128xbf16, #tpu.memory_space<vmem>>, vector<1x128x128xbf16>
    %201 = vector.shape_cast %200 : vector<1x128x128xbf16> to vector<128x128xbf16>
    %cst_182 = arith.constant dense<0.000000e+00> : vector<8x128xf32>
    %202 = tpu.matmul %199, %201, %cst_182 {dimension_numbers = #tpu.dot_dimension_numbers<[1], [0], [0], [1], [0, 0, 1, 1], [], []>} : vector<8x128xbf16>, vector<128x128xbf16>, vector<8x128xf32> -> vector<8x128xf32>
    %203 = arith.addf %195, %202 : vector<8x128xf32>
    %c4_183 = arith.constant 4 : index
    %c0_184 = arith.constant 0 : index
    %c0_185 = arith.constant 0 : index
    %204 = vector.load %arg9[%c4_183, %c0_184, %c0_185] : memref<9x8x32xbf16, #tpu.memory_space<vmem>>, vector<1x8x32xbf16>
    %205 = vector.shape_cast %204 : vector<1x8x32xbf16> to vector<8x32xbf16>
    %cst_186 = arith.constant dense<0.000000e+00> : vector<8x128xf32>
    %206 = tpu.matmul %205, %170, %cst_186 {dimension_numbers = #tpu.dot_dimension_numbers<[1], [0], [0], [1], [0, 0, 1, 1], [], []>} : vector<8x32xbf16>, vector<32x128xbf16>, vector<8x128xf32> -> vector<8x128xf32>
    %207 = arith.truncf %206 : vector<8x128xf32> to vector<8x128xbf16>
    %c4_187 = arith.constant 4 : index
    %c0_188 = arith.constant 0 : index
    %c0_189 = arith.constant 0 : index
    %208 = vector.load %arg10[%c4_187, %c0_188, %c0_189] : memref<9x128x128xbf16, #tpu.memory_space<vmem>>, vector<1x128x128xbf16>
    %209 = vector.shape_cast %208 : vector<1x128x128xbf16> to vector<128x128xbf16>
    %cst_190 = arith.constant dense<0.000000e+00> : vector<8x128xf32>
    %210 = tpu.matmul %207, %209, %cst_190 {dimension_numbers = #tpu.dot_dimension_numbers<[1], [0], [0], [1], [0, 0, 1, 1], [], []>} : vector<8x128xbf16>, vector<128x128xbf16>, vector<8x128xf32> -> vector<8x128xf32>
    %211 = arith.addf %203, %210 : vector<8x128xf32>
    %c5_191 = arith.constant 5 : index
    %c0_192 = arith.constant 0 : index
    %c0_193 = arith.constant 0 : index
    %212 = vector.load %arg9[%c5_191, %c0_192, %c0_193] : memref<9x8x32xbf16, #tpu.memory_space<vmem>>, vector<1x8x32xbf16>
    %213 = vector.shape_cast %212 : vector<1x8x32xbf16> to vector<8x32xbf16>
    %cst_194 = arith.constant dense<0.000000e+00> : vector<8x128xf32>
    %214 = tpu.matmul %213, %170, %cst_194 {dimension_numbers = #tpu.dot_dimension_numbers<[1], [0], [0], [1], [0, 0, 1, 1], [], []>} : vector<8x32xbf16>, vector<32x128xbf16>, vector<8x128xf32> -> vector<8x128xf32>
    %215 = arith.truncf %214 : vector<8x128xf32> to vector<8x128xbf16>
    %c5_195 = arith.constant 5 : index
    %c0_196 = arith.constant 0 : index
    %c0_197 = arith.constant 0 : index
    %216 = vector.load %arg10[%c5_195, %c0_196, %c0_197] : memref<9x128x128xbf16, #tpu.memory_space<vmem>>, vector<1x128x128xbf16>
    %217 = vector.shape_cast %216 : vector<1x128x128xbf16> to vector<128x128xbf16>
    %cst_198 = arith.constant dense<0.000000e+00> : vector<8x128xf32>
    %218 = tpu.matmul %215, %217, %cst_198 {dimension_numbers = #tpu.dot_dimension_numbers<[1], [0], [0], [1], [0, 0, 1, 1], [], []>} : vector<8x128xbf16>, vector<128x128xbf16>, vector<8x128xf32> -> vector<8x128xf32>
    %219 = arith.addf %211, %218 : vector<8x128xf32>
    %c6_199 = arith.constant 6 : index
    %c0_200 = arith.constant 0 : index
    %c0_201 = arith.constant 0 : index
    %220 = vector.load %arg9[%c6_199, %c0_200, %c0_201] : memref<9x8x32xbf16, #tpu.memory_space<vmem>>, vector<1x8x32xbf16>
    %221 = vector.shape_cast %220 : vector<1x8x32xbf16> to vector<8x32xbf16>
    %cst_202 = arith.constant dense<0.000000e+00> : vector<8x128xf32>
    %222 = tpu.matmul %221, %170, %cst_202 {dimension_numbers = #tpu.dot_dimension_numbers<[1], [0], [0], [1], [0, 0, 1, 1], [], []>} : vector<8x32xbf16>, vector<32x128xbf16>, vector<8x128xf32> -> vector<8x128xf32>
    %223 = arith.truncf %222 : vector<8x128xf32> to vector<8x128xbf16>
    %c6_203 = arith.constant 6 : index
    %c0_204 = arith.constant 0 : index
    %c0_205 = arith.constant 0 : index
    %224 = vector.load %arg10[%c6_203, %c0_204, %c0_205] : memref<9x128x128xbf16, #tpu.memory_space<vmem>>, vector<1x128x128xbf16>
    %225 = vector.shape_cast %224 : vector<1x128x128xbf16> to vector<128x128xbf16>
    %cst_206 = arith.constant dense<0.000000e+00> : vector<8x128xf32>
    %226 = tpu.matmul %223, %225, %cst_206 {dimension_numbers = #tpu.dot_dimension_numbers<[1], [0], [0], [1], [0, 0, 1, 1], [], []>} : vector<8x128xbf16>, vector<128x128xbf16>, vector<8x128xf32> -> vector<8x128xf32>
    %227 = arith.addf %219, %226 : vector<8x128xf32>
    %c7_207 = arith.constant 7 : index
    %c0_208 = arith.constant 0 : index
    %c0_209 = arith.constant 0 : index
    %228 = vector.load %arg9[%c7_207, %c0_208, %c0_209] : memref<9x8x32xbf16, #tpu.memory_space<vmem>>, vector<1x8x32xbf16>
    %229 = vector.shape_cast %228 : vector<1x8x32xbf16> to vector<8x32xbf16>
    %cst_210 = arith.constant dense<0.000000e+00> : vector<8x128xf32>
    %230 = tpu.matmul %229, %170, %cst_210 {dimension_numbers = #tpu.dot_dimension_numbers<[1], [0], [0], [1], [0, 0, 1, 1], [], []>} : vector<8x32xbf16>, vector<32x128xbf16>, vector<8x128xf32> -> vector<8x128xf32>
    %231 = arith.truncf %230 : vector<8x128xf32> to vector<8x128xbf16>
    %c7_211 = arith.constant 7 : index
    %c0_212 = arith.constant 0 : index
    %c0_213 = arith.constant 0 : index
    %232 = vector.load %arg10[%c7_211, %c0_212, %c0_213] : memref<9x128x128xbf16, #tpu.memory_space<vmem>>, vector<1x128x128xbf16>
    %233 = vector.shape_cast %232 : vector<1x128x128xbf16> to vector<128x128xbf16>
    %cst_214 = arith.constant dense<0.000000e+00> : vector<8x128xf32>
    %234 = tpu.matmul %231, %233, %cst_214 {dimension_numbers = #tpu.dot_dimension_numbers<[1], [0], [0], [1], [0, 0, 1, 1], [], []>} : vector<8x128xbf16>, vector<128x128xbf16>, vector<8x128xf32> -> vector<8x128xf32>
    %235 = arith.addf %227, %234 : vector<8x128xf32>
    %c8_215 = arith.constant 8 : index
    %c0_216 = arith.constant 0 : index
    %c0_217 = arith.constant 0 : index
    %236 = vector.load %arg9[%c8_215, %c0_216, %c0_217] : memref<9x8x32xbf16, #tpu.memory_space<vmem>>, vector<1x8x32xbf16>
    %237 = vector.shape_cast %236 : vector<1x8x32xbf16> to vector<8x32xbf16>
    %cst_218 = arith.constant dense<0.000000e+00> : vector<8x128xf32>
    %238 = tpu.matmul %237, %170, %cst_218 {dimension_numbers = #tpu.dot_dimension_numbers<[1], [0], [0], [1], [0, 0, 1, 1], [], []>} : vector<8x32xbf16>, vector<32x128xbf16>, vector<8x128xf32> -> vector<8x128xf32>
    %239 = arith.truncf %238 : vector<8x128xf32> to vector<8x128xbf16>
    %c8_219 = arith.constant 8 : index
    %c0_220 = arith.constant 0 : index
    %c0_221 = arith.constant 0 : index
    %240 = vector.load %arg10[%c8_219, %c0_220, %c0_221] : memref<9x128x128xbf16, #tpu.memory_space<vmem>>, vector<1x128x128xbf16>
    %241 = vector.shape_cast %240 : vector<1x128x128xbf16> to vector<128x128xbf16>
    %cst_222 = arith.constant dense<0.000000e+00> : vector<8x128xf32>
    %242 = tpu.matmul %239, %241, %cst_222 {dimension_numbers = #tpu.dot_dimension_numbers<[1], [0], [0], [1], [0, 0, 1, 1], [], []>} : vector<8x128xbf16>, vector<128x128xbf16>, vector<8x128xf32> -> vector<8x128xf32>
    %243 = arith.addf %235, %242 : vector<8x128xf32>
    %c0_223 = arith.constant 0 : index
    %c0_224 = arith.constant 0 : index
    %244 = vector.load %arg11[%c0_223, %c0_224] : memref<1x128xf32, #tpu.memory_space<vmem>>, vector<1x128xf32>
    %245 = vector.broadcast %244 : vector<1x128xf32> to vector<8x128xf32>
    %246 = arith.addf %243, %245 : vector<8x128xf32>
    %cst_225 = arith.constant 0.000000e+00 : f32
    %247 = vector.broadcast %cst_225 : f32 to vector<8x128xf32>
    %248 = arith.cmpf ogt, %246, %247 : vector<8x128xf32>
    %cst_226 = arith.constant 2.000000e-01 : f32
    %249 = vector.broadcast %cst_226 : f32 to vector<8x128xf32>
    %250 = arith.mulf %249, %246 : vector<8x128xf32>
    %251 = arith.select %248, %246, %250 : vector<8x128xi1>, vector<8x128xf32>
    %c0_227 = arith.constant 0 : index
    %c0_228 = arith.constant 0 : index
    %252 = vector.load %arg12[%c0_227, %c0_228] : memref<1x128xf32, #tpu.memory_space<vmem>>, vector<1x128xf32>
    %253 = vector.broadcast %252 : vector<1x128xf32> to vector<8x128xf32>
    %254 = arith.addf %251, %253 : vector<8x128xf32>
    %255 = arith.truncf %254 : vector<8x128xf32> to vector<8x128xbf16>
    %cst_229 = arith.constant 0.000000e+00 : f32
    %256 = vector.broadcast %cst_229 : f32 to vector<2x128xf32>
    %c0_230 = arith.constant 0 : index
    %c0_231 = arith.constant 0 : index
    %c0_232 = arith.constant 0 : index
    %257 = vector.load %arg13[%c0_230, %c0_231, %c0_232] : memref<9x2x8xbf16, #tpu.memory_space<vmem>>, vector<1x2x8xbf16>
    %258 = vector.shape_cast %257 : vector<1x2x8xbf16> to vector<2x8xbf16>
    %cst_233 = arith.constant dense<0.000000e+00> : vector<2x128xf32>
    %259 = tpu.matmul %258, %255, %cst_233 {dimension_numbers = #tpu.dot_dimension_numbers<[1], [0], [0], [1], [0, 0, 1, 1], [], []>} : vector<2x8xbf16>, vector<8x128xbf16>, vector<2x128xf32> -> vector<2x128xf32>
    %260 = arith.truncf %259 : vector<2x128xf32> to vector<2x128xbf16>
    %c0_234 = arith.constant 0 : index
    %c0_235 = arith.constant 0 : index
    %c0_236 = arith.constant 0 : index
    %261 = vector.load %arg14[%c0_234, %c0_235, %c0_236] : memref<9x128x128xbf16, #tpu.memory_space<vmem>>, vector<1x128x128xbf16>
    %262 = vector.shape_cast %261 : vector<1x128x128xbf16> to vector<128x128xbf16>
    %cst_237 = arith.constant dense<0.000000e+00> : vector<2x128xf32>
    %263 = tpu.matmul %260, %262, %cst_237 {dimension_numbers = #tpu.dot_dimension_numbers<[1], [0], [0], [1], [0, 0, 1, 1], [], []>} : vector<2x128xbf16>, vector<128x128xbf16>, vector<2x128xf32> -> vector<2x128xf32>
    %264 = arith.addf %256, %263 : vector<2x128xf32>
    %c1_238 = arith.constant 1 : index
    %c0_239 = arith.constant 0 : index
    %c0_240 = arith.constant 0 : index
    %265 = vector.load %arg13[%c1_238, %c0_239, %c0_240] : memref<9x2x8xbf16, #tpu.memory_space<vmem>>, vector<1x2x8xbf16>
    %266 = vector.shape_cast %265 : vector<1x2x8xbf16> to vector<2x8xbf16>
    %cst_241 = arith.constant dense<0.000000e+00> : vector<2x128xf32>
    %267 = tpu.matmul %266, %255, %cst_241 {dimension_numbers = #tpu.dot_dimension_numbers<[1], [0], [0], [1], [0, 0, 1, 1], [], []>} : vector<2x8xbf16>, vector<8x128xbf16>, vector<2x128xf32> -> vector<2x128xf32>
    %268 = arith.truncf %267 : vector<2x128xf32> to vector<2x128xbf16>
    %c1_242 = arith.constant 1 : index
    %c0_243 = arith.constant 0 : index
    %c0_244 = arith.constant 0 : index
    %269 = vector.load %arg14[%c1_242, %c0_243, %c0_244] : memref<9x128x128xbf16, #tpu.memory_space<vmem>>, vector<1x128x128xbf16>
    %270 = vector.shape_cast %269 : vector<1x128x128xbf16> to vector<128x128xbf16>
    %cst_245 = arith.constant dense<0.000000e+00> : vector<2x128xf32>
    %271 = tpu.matmul %268, %270, %cst_245 {dimension_numbers = #tpu.dot_dimension_numbers<[1], [0], [0], [1], [0, 0, 1, 1], [], []>} : vector<2x128xbf16>, vector<128x128xbf16>, vector<2x128xf32> -> vector<2x128xf32>
    %272 = arith.addf %264, %271 : vector<2x128xf32>
    %c2_246 = arith.constant 2 : index
    %c0_247 = arith.constant 0 : index
    %c0_248 = arith.constant 0 : index
    %273 = vector.load %arg13[%c2_246, %c0_247, %c0_248] : memref<9x2x8xbf16, #tpu.memory_space<vmem>>, vector<1x2x8xbf16>
    %274 = vector.shape_cast %273 : vector<1x2x8xbf16> to vector<2x8xbf16>
    %cst_249 = arith.constant dense<0.000000e+00> : vector<2x128xf32>
    %275 = tpu.matmul %274, %255, %cst_249 {dimension_numbers = #tpu.dot_dimension_numbers<[1], [0], [0], [1], [0, 0, 1, 1], [], []>} : vector<2x8xbf16>, vector<8x128xbf16>, vector<2x128xf32> -> vector<2x128xf32>
    %276 = arith.truncf %275 : vector<2x128xf32> to vector<2x128xbf16>
    %c2_250 = arith.constant 2 : index
    %c0_251 = arith.constant 0 : index
    %c0_252 = arith.constant 0 : index
    %277 = vector.load %arg14[%c2_250, %c0_251, %c0_252] : memref<9x128x128xbf16, #tpu.memory_space<vmem>>, vector<1x128x128xbf16>
    %278 = vector.shape_cast %277 : vector<1x128x128xbf16> to vector<128x128xbf16>
    %cst_253 = arith.constant dense<0.000000e+00> : vector<2x128xf32>
    %279 = tpu.matmul %276, %278, %cst_253 {dimension_numbers = #tpu.dot_dimension_numbers<[1], [0], [0], [1], [0, 0, 1, 1], [], []>} : vector<2x128xbf16>, vector<128x128xbf16>, vector<2x128xf32> -> vector<2x128xf32>
    %280 = arith.addf %272, %279 : vector<2x128xf32>
    %c3_254 = arith.constant 3 : index
    %c0_255 = arith.constant 0 : index
    %c0_256 = arith.constant 0 : index
    %281 = vector.load %arg13[%c3_254, %c0_255, %c0_256] : memref<9x2x8xbf16, #tpu.memory_space<vmem>>, vector<1x2x8xbf16>
    %282 = vector.shape_cast %281 : vector<1x2x8xbf16> to vector<2x8xbf16>
    %cst_257 = arith.constant dense<0.000000e+00> : vector<2x128xf32>
    %283 = tpu.matmul %282, %255, %cst_257 {dimension_numbers = #tpu.dot_dimension_numbers<[1], [0], [0], [1], [0, 0, 1, 1], [], []>} : vector<2x8xbf16>, vector<8x128xbf16>, vector<2x128xf32> -> vector<2x128xf32>
    %284 = arith.truncf %283 : vector<2x128xf32> to vector<2x128xbf16>
    %c3_258 = arith.constant 3 : index
    %c0_259 = arith.constant 0 : index
    %c0_260 = arith.constant 0 : index
    %285 = vector.load %arg14[%c3_258, %c0_259, %c0_260] : memref<9x128x128xbf16, #tpu.memory_space<vmem>>, vector<1x128x128xbf16>
    %286 = vector.shape_cast %285 : vector<1x128x128xbf16> to vector<128x128xbf16>
    %cst_261 = arith.constant dense<0.000000e+00> : vector<2x128xf32>
    %287 = tpu.matmul %284, %286, %cst_261 {dimension_numbers = #tpu.dot_dimension_numbers<[1], [0], [0], [1], [0, 0, 1, 1], [], []>} : vector<2x128xbf16>, vector<128x128xbf16>, vector<2x128xf32> -> vector<2x128xf32>
    %288 = arith.addf %280, %287 : vector<2x128xf32>
    %c4_262 = arith.constant 4 : index
    %c0_263 = arith.constant 0 : index
    %c0_264 = arith.constant 0 : index
    %289 = vector.load %arg13[%c4_262, %c0_263, %c0_264] : memref<9x2x8xbf16, #tpu.memory_space<vmem>>, vector<1x2x8xbf16>
    %290 = vector.shape_cast %289 : vector<1x2x8xbf16> to vector<2x8xbf16>
    %cst_265 = arith.constant dense<0.000000e+00> : vector<2x128xf32>
    %291 = tpu.matmul %290, %255, %cst_265 {dimension_numbers = #tpu.dot_dimension_numbers<[1], [0], [0], [1], [0, 0, 1, 1], [], []>} : vector<2x8xbf16>, vector<8x128xbf16>, vector<2x128xf32> -> vector<2x128xf32>
    %292 = arith.truncf %291 : vector<2x128xf32> to vector<2x128xbf16>
    %c4_266 = arith.constant 4 : index
    %c0_267 = arith.constant 0 : index
    %c0_268 = arith.constant 0 : index
    %293 = vector.load %arg14[%c4_266, %c0_267, %c0_268] : memref<9x128x128xbf16, #tpu.memory_space<vmem>>, vector<1x128x128xbf16>
    %294 = vector.shape_cast %293 : vector<1x128x128xbf16> to vector<128x128xbf16>
    %cst_269 = arith.constant dense<0.000000e+00> : vector<2x128xf32>
    %295 = tpu.matmul %292, %294, %cst_269 {dimension_numbers = #tpu.dot_dimension_numbers<[1], [0], [0], [1], [0, 0, 1, 1], [], []>} : vector<2x128xbf16>, vector<128x128xbf16>, vector<2x128xf32> -> vector<2x128xf32>
    %296 = arith.addf %288, %295 : vector<2x128xf32>
    %c5_270 = arith.constant 5 : index
    %c0_271 = arith.constant 0 : index
    %c0_272 = arith.constant 0 : index
    %297 = vector.load %arg13[%c5_270, %c0_271, %c0_272] : memref<9x2x8xbf16, #tpu.memory_space<vmem>>, vector<1x2x8xbf16>
    %298 = vector.shape_cast %297 : vector<1x2x8xbf16> to vector<2x8xbf16>
    %cst_273 = arith.constant dense<0.000000e+00> : vector<2x128xf32>
    %299 = tpu.matmul %298, %255, %cst_273 {dimension_numbers = #tpu.dot_dimension_numbers<[1], [0], [0], [1], [0, 0, 1, 1], [], []>} : vector<2x8xbf16>, vector<8x128xbf16>, vector<2x128xf32> -> vector<2x128xf32>
    %300 = arith.truncf %299 : vector<2x128xf32> to vector<2x128xbf16>
    %c5_274 = arith.constant 5 : index
    %c0_275 = arith.constant 0 : index
    %c0_276 = arith.constant 0 : index
    %301 = vector.load %arg14[%c5_274, %c0_275, %c0_276] : memref<9x128x128xbf16, #tpu.memory_space<vmem>>, vector<1x128x128xbf16>
    %302 = vector.shape_cast %301 : vector<1x128x128xbf16> to vector<128x128xbf16>
    %cst_277 = arith.constant dense<0.000000e+00> : vector<2x128xf32>
    %303 = tpu.matmul %300, %302, %cst_277 {dimension_numbers = #tpu.dot_dimension_numbers<[1], [0], [0], [1], [0, 0, 1, 1], [], []>} : vector<2x128xbf16>, vector<128x128xbf16>, vector<2x128xf32> -> vector<2x128xf32>
    %304 = arith.addf %296, %303 : vector<2x128xf32>
    %c6_278 = arith.constant 6 : index
    %c0_279 = arith.constant 0 : index
    %c0_280 = arith.constant 0 : index
    %305 = vector.load %arg13[%c6_278, %c0_279, %c0_280] : memref<9x2x8xbf16, #tpu.memory_space<vmem>>, vector<1x2x8xbf16>
    %306 = vector.shape_cast %305 : vector<1x2x8xbf16> to vector<2x8xbf16>
    %cst_281 = arith.constant dense<0.000000e+00> : vector<2x128xf32>
    %307 = tpu.matmul %306, %255, %cst_281 {dimension_numbers = #tpu.dot_dimension_numbers<[1], [0], [0], [1], [0, 0, 1, 1], [], []>} : vector<2x8xbf16>, vector<8x128xbf16>, vector<2x128xf32> -> vector<2x128xf32>
    %308 = arith.truncf %307 : vector<2x128xf32> to vector<2x128xbf16>
    %c6_282 = arith.constant 6 : index
    %c0_283 = arith.constant 0 : index
    %c0_284 = arith.constant 0 : index
    %309 = vector.load %arg14[%c6_282, %c0_283, %c0_284] : memref<9x128x128xbf16, #tpu.memory_space<vmem>>, vector<1x128x128xbf16>
    %310 = vector.shape_cast %309 : vector<1x128x128xbf16> to vector<128x128xbf16>
    %cst_285 = arith.constant dense<0.000000e+00> : vector<2x128xf32>
    %311 = tpu.matmul %308, %310, %cst_285 {dimension_numbers = #tpu.dot_dimension_numbers<[1], [0], [0], [1], [0, 0, 1, 1], [], []>} : vector<2x128xbf16>, vector<128x128xbf16>, vector<2x128xf32> -> vector<2x128xf32>
    %312 = arith.addf %304, %311 : vector<2x128xf32>
    %c7_286 = arith.constant 7 : index
    %c0_287 = arith.constant 0 : index
    %c0_288 = arith.constant 0 : index
    %313 = vector.load %arg13[%c7_286, %c0_287, %c0_288] : memref<9x2x8xbf16, #tpu.memory_space<vmem>>, vector<1x2x8xbf16>
    %314 = vector.shape_cast %313 : vector<1x2x8xbf16> to vector<2x8xbf16>
    %cst_289 = arith.constant dense<0.000000e+00> : vector<2x128xf32>
    %315 = tpu.matmul %314, %255, %cst_289 {dimension_numbers = #tpu.dot_dimension_numbers<[1], [0], [0], [1], [0, 0, 1, 1], [], []>} : vector<2x8xbf16>, vector<8x128xbf16>, vector<2x128xf32> -> vector<2x128xf32>
    %316 = arith.truncf %315 : vector<2x128xf32> to vector<2x128xbf16>
    %c7_290 = arith.constant 7 : index
    %c0_291 = arith.constant 0 : index
    %c0_292 = arith.constant 0 : index
    %317 = vector.load %arg14[%c7_290, %c0_291, %c0_292] : memref<9x128x128xbf16, #tpu.memory_space<vmem>>, vector<1x128x128xbf16>
    %318 = vector.shape_cast %317 : vector<1x128x128xbf16> to vector<128x128xbf16>
    %cst_293 = arith.constant dense<0.000000e+00> : vector<2x128xf32>
    %319 = tpu.matmul %316, %318, %cst_293 {dimension_numbers = #tpu.dot_dimension_numbers<[1], [0], [0], [1], [0, 0, 1, 1], [], []>} : vector<2x128xbf16>, vector<128x128xbf16>, vector<2x128xf32> -> vector<2x128xf32>
    %320 = arith.addf %312, %319 : vector<2x128xf32>
    %c8_294 = arith.constant 8 : index
    %c0_295 = arith.constant 0 : index
    %c0_296 = arith.constant 0 : index
    %321 = vector.load %arg13[%c8_294, %c0_295, %c0_296] : memref<9x2x8xbf16, #tpu.memory_space<vmem>>, vector<1x2x8xbf16>
    %322 = vector.shape_cast %321 : vector<1x2x8xbf16> to vector<2x8xbf16>
    %cst_297 = arith.constant dense<0.000000e+00> : vector<2x128xf32>
    %323 = tpu.matmul %322, %255, %cst_297 {dimension_numbers = #tpu.dot_dimension_numbers<[1], [0], [0], [1], [0, 0, 1, 1], [], []>} : vector<2x8xbf16>, vector<8x128xbf16>, vector<2x128xf32> -> vector<2x128xf32>
    %324 = arith.truncf %323 : vector<2x128xf32> to vector<2x128xbf16>
    %c8_298 = arith.constant 8 : index
    %c0_299 = arith.constant 0 : index
    %c0_300 = arith.constant 0 : index
    %325 = vector.load %arg14[%c8_298, %c0_299, %c0_300] : memref<9x128x128xbf16, #tpu.memory_space<vmem>>, vector<1x128x128xbf16>
    %326 = vector.shape_cast %325 : vector<1x128x128xbf16> to vector<128x128xbf16>
    %cst_301 = arith.constant dense<0.000000e+00> : vector<2x128xf32>
    %327 = tpu.matmul %324, %326, %cst_301 {dimension_numbers = #tpu.dot_dimension_numbers<[1], [0], [0], [1], [0, 0, 1, 1], [], []>} : vector<2x128xbf16>, vector<128x128xbf16>, vector<2x128xf32> -> vector<2x128xf32>
    %328 = arith.addf %320, %327 : vector<2x128xf32>
    %c0_302 = arith.constant 0 : index
    %c0_303 = arith.constant 0 : index
    %329 = vector.load %arg15[%c0_302, %c0_303] : memref<1x128xf32, #tpu.memory_space<vmem>>, vector<1x128xf32>
    %330 = vector.broadcast %329 : vector<1x128xf32> to vector<2x128xf32>
    %331 = arith.addf %328, %330 : vector<2x128xf32>
    %cst_304 = arith.constant 0.000000e+00 : f32
    %332 = vector.broadcast %cst_304 : f32 to vector<2x128xf32>
    %333 = arith.cmpf ogt, %331, %332 : vector<2x128xf32>
    %cst_305 = arith.constant 2.000000e-01 : f32
    %334 = vector.broadcast %cst_305 : f32 to vector<2x128xf32>
    %335 = arith.mulf %334, %331 : vector<2x128xf32>
    %336 = arith.select %333, %331, %335 : vector<2x128xi1>, vector<2x128xf32>
    %c0_306 = arith.constant 0 : index
    %c0_307 = arith.constant 0 : index
    %337 = vector.load %arg16[%c0_306, %c0_307] : memref<1x128xf32, #tpu.memory_space<vmem>>, vector<1x128xf32>
    %338 = vector.broadcast %337 : vector<1x128xf32> to vector<2x128xf32>
    %339 = arith.addf %336, %338 : vector<2x128xf32>
    %340 = arith.truncf %339 : vector<2x128xf32> to vector<2x128xbf16>
    %341 = arith.extf %340 : vector<2x128xbf16> to vector<2x128xf32>
    %c0_308 = arith.constant 0 : index
    %c0_309 = arith.constant 0 : index
    %342 = vector.load %arg17[%c0_308, %c0_309] : memref<2x128xf32, #tpu.memory_space<vmem>>, vector<2x128xf32>
    %343 = arith.mulf %341, %342 : vector<2x128xf32>
    %cst_310 = arith.constant dense<0.000000e+00> : vector<2xf32>
    %344 = vector.multi_reduction <add>, %343, %cst_310 [1] : vector<2x128xf32> to vector<2xf32>
    %345 = vector.shape_cast %344 : vector<2xf32> to vector<2x1xf32>
    %c0_311 = arith.constant 0 : index
    %c0_312 = arith.constant 0 : index
    %346 = vector.load %arg18[%c0_311, %c0_312] : memref<1x1xf32, #tpu.memory_space<vmem>>, vector<1x1xf32>
    %347 = vector.broadcast %346 : vector<1x1xf32> to vector<2x1xf32>
    %348 = arith.addf %345, %347 : vector<2x1xf32>
    %cst_313 = arith.constant 0.000000e+00 : f32
    %349 = vector.broadcast %cst_313 : f32 to vector<2x1xf32>
    %350 = arith.subf %349, %348 : vector<2x1xf32>
    %351 = math.exp %350 : vector<2x1xf32>
    %cst_314 = arith.constant 1.000000e+00 : f32
    %352 = vector.broadcast %cst_314 : f32 to vector<2x1xf32>
    %353 = arith.addf %352, %351 : vector<2x1xf32>
    %354 = tpu.reciprocal %353 {approx = true} : vector<2x1xf32> -> vector<2x1xf32>
    %c0_315 = arith.constant 0 : index
    %c0_316 = arith.constant 0 : index
    %355 = vector.load %arg19[%c0_315, %c0_316] : memref<2x1xf32, #tpu.memory_space<vmem>>, vector<2x1xf32>
    tpu.vector_store %arg19[%c0_315, %c0_316], %354 {strides = array<i32>} : memref<2x1xf32, #tpu.memory_space<vmem>>, vector<2x1xf32>,
    return
  }
}

</mosaic_0001>

<bundles_post_ra>
// kernel: discriminator_forward.1
= control target key start
LH: loop header
LB: loop body
LE: loop exit
PB: predicated region body
PF: predicated region fallthrough
CT: control target
= control target key end

     0   :  { %s17395_s0 = inlined_call_operand.vmem [shape: bf16[512,128], index: 0, kind: input, shape index: {}]   ;;  %s17396_s1 = inlined_call_operand.hbm [shape: bf16[9,128,512], index: 1, kind: input, shape index: {}]   ;;  %s17397_s2 = inlined_call_operand.hbm [shape: bf16[9,128,128], index: 2, kind: input, shape index: {}]   ;;  %s17398_s3 = inlined_call_operand.hbm [shape: f32[1,128], index: 3, kind: input, shape index: {}]   ;;  %s17399_s4 = inlined_call_operand.hbm [shape: f32[1,128], index: 4, kind: input, shape index: {}]   ;;  %s17400_s5 = inlined_call_operand.hbm [shape: bf16[9,32,128], index: 5, kind: input, shape index: {}]   ;;  %s17401_s6 = inlined_call_operand.hbm [shape: bf16[9,128,128], index: 6, kind: input, shape index: {}]   ;;  %s17402_s7 = inlined_call_operand.hbm [shape: f32[1,128], index: 7, kind: input, shape index: {}]   ;;  %s17403_s8 = inlined_call_operand.hbm [shape: f32[1,128], index: 8, kind: input, shape index: {}]   ;;  %s17404_s9 = inlined_call_operand.hbm [shape: bf16[9,8,32], index: 9, kind: input, shape index: {}]   ;;  %s17405_s10 = inlined_call_operand.hbm [shape: bf16[9,128,128], index: 10, kind: input, shape index: {}]   ;;  %s17406_s11 = inlined_call_operand.hbm [shape: f32[1,128], index: 11, kind: input, shape index: {}]   ;;  %s17407_s12 = inlined_call_operand.hbm [shape: f32[1,128], index: 12, kind: input, shape index: {}]   ;;  %s17408_s13 = inlined_call_operand.vmem [shape: bf16[9,2,8], index: 13, kind: input, shape index: {}]   ;;  %s17409_s14 = inlined_call_operand.hbm [shape: bf16[9,128,128], index: 14, kind: input, shape index: {}]   ;;  %s17410_s15 = inlined_call_operand.hbm [shape: f32[1,128], index: 15, kind: input, shape index: {}]   ;;  %s17411_s16 = inlined_call_operand.hbm [shape: f32[1,128], index: 16, kind: input, shape index: {}]   ;;  %s17412_s17 = inlined_call_operand.hbm [shape: f32[2,128], index: 17, kind: input, shape index: {}]   ;;  %s17413_s18 = inlined_call_operand.<no memory space> [shape: f32[1,1], index: 18, kind: input, shape index: {}]   ;;  %s17414_s19 = inlined_call_operand.vmem [shape: f32[2,1], index: 19, kind: output, shape index: {}]  }
   0x1   :  { %17416 = sst [smem:[#allocation68_spill]] %s17395_s0  ;;  %v24_v0 = vstv %s17413_s18 }
   0x2   :  { %17417 = sst [smem:[#allocation69_spill]] %s17396_s1  ;;  %25 = vst [vmem:[#allocation2] sm:$0x1] %v24_v0 }
   0x3   :  { %17418 = sst [smem:[#allocation70_spill]] %s17397_s2 }
   0x4   :  { %17419 = sst [smem:[#allocation71_spill]] %s17398_s3 }
   0x5   :  { %26 = vsyncpa [#allocation4], 0 }
   0x6   :  { %27 = vsyncpa [#allocation6], 0 }
   0x7   :  { %28 = vsyncpa [#allocation9], 0 }
   0x8   :  { %29 = vsyncpa [#allocation12], 0 }
   0x9   :  { %30 = vsyncpa [#allocation15], 0 }
   0xa   :  { %31 = vsyncpa [#allocation18], 0 }
   0xb   :  { %32 = vsyncpa [#allocation21], 0 }
   0xc   :  { %33 = vsyncpa [#allocation24], 0 }
   0xd   :  { %34 = vsyncpa [#allocation27], 0  ;;  %s14989_s20 = smov [#allocation5]  }
   0xe   :  { %s54_s21 = sshll.u32 %s14989_s20, 4  ;;  %s55_s21 = int_to_ptr.vmem [resolvable:$true] %s54_s21 }
   0xf   :  { %s14659_s1 = scalar_lea.vmem %s55_s21, 9216  ;;  %p14664_p1 = scmp.lt.s32.totalorder %s55_s21, %s55_s21 }
  0x10   :  { %p14660_p0 = scmp.ne.s32.totalorder %s55_s21, %s14659_s1  ;;  %p14665_p2 = scmp.lt.s32.totalorder %s14659_s1, %s14659_s1 }
  0x12   :  { %p14666_p3 = por %p14665_p2, %p14664_p1 }
  0x14   :  { %p14667_p4 = pnand %p14666_p3, %p14660_p0 }
  0x16   :  { %14670 = shalt.err (!%p14667_p4)
}
  0x17   :  { %s14990_s18 = smov 64   ;;  %s14991_s22 = smov 4  }
  0x18   :  { %s17420_s24 = sld [smem:[#allocation70_spill]]  ;;  %s14992_s25 = smov [#allocation8]  }
  0x19   :  { %s77_s3 = sshll.u32 %s14992_s25, 4  ;;  %s14993_s26 = smov [#allocation11]   ;;  %s78_s3 = int_to_ptr.vmem [resolvable:$true] %s77_s3 }
  0x1a   :  { %s98_s27 = sshll.u32 %s14993_s26, 4  ;;  %s14679_s28 = scalar_lea.vmem %s78_s3, 16  ;;  %s99_s27 = int_to_ptr.vmem [resolvable:$true] %s98_s27 }
  0x1b   :  { %p14680_p5 = scmp.ne.s32.totalorder %s78_s3, %s14679_s28  ;;  %s14683_s29 = scalar_lea.vmem %s78_s3, 32 }
  0x1c   :  { %p14684_p6 = scmp.lt.s32.totalorder %s78_s3, %s78_s3  ;;  %p14685_p7 = scmp.lt.s32.totalorder %s14683_s29, %s14679_s28 }
  0x1e   :  { %60 = dma.hbm_to_vmem [thread:$0]  %s17420_s24, 9216, %s55_s21, [#allocation6], %s14990_s18, %s14990_s18, %s14991_s22  }
  0x1f   :  { %p14686_p8 = por %p14685_p7, %p14684_p6 }
  0x21   :  { %p14687_p9 = pnand %p14686_p8, %p14680_p5 }
  0x23   :  { %14690 = shalt.err (!%p14687_p9)
}
  0x24   :  { %80 = dma.hbm_to_vmem [thread:$0]  %s17399_s4, 16, %s78_s3, [#allocation9]  }
  0x25   :  { %s14699_s20 = scalar_lea.vmem %s99_s27, 9216  ;;  %p14704_p11 = scmp.lt.s32.totalorder %s99_s27, %s99_s27 }
  0x26   :  { %p14700_p10 = scmp.ne.s32.totalorder %s99_s27, %s14699_s20  ;;  %p14705_p12 = scmp.lt.s32.totalorder %s14699_s20, %s14699_s20 }
  0x28   :  { %p14706_p13 = por %p14705_p12, %p14704_p11 }
  0x2a   :  { %p14707_p0 = pnand %p14706_p13, %p14700_p10 }
  0x2c   :  { %14710 = shalt.err (!%p14707_p0)
}
  0x2d   :  { %104 = dma.hbm_to_vmem [thread:$0]  %s17401_s6, 9216, %s99_s27, [#allocation12], %s14990_s18, %s14990_s18, %s14991_s22  }
  0x2e   :  { %s14994_s2 = smov [#allocation14]   ;;  %s14995_s24 = smov [#allocation17]  }
  0x2f   :  { %s121_s23 = sshll.u32 %s14994_s2, 4  ;;  %s142_s4 = sshll.u32 %s14995_s24, 4  ;;  %s122_s23 = int_to_ptr.vmem [resolvable:$true] %s121_s23  ;;  %s143_s4 = int_to_ptr.vmem [resolvable:$true] %s142_s4 }
  0x30   :  { %s14719_s25 = scalar_lea.vmem %s122_s23, 16  ;;  %s14723_s3 = scalar_lea.vmem %s122_s23, 32 }
  0x31   :  { %p14720_p1 = scmp.ne.s32.totalorder %s122_s23, %s14719_s25  ;;  %p14724_p2 = scmp.lt.s32.totalorder %s122_s23, %s122_s23 }
  0x32   :  { %p14725_p3 = scmp.lt.s32.totalorder %s14723_s3, %s14719_s25 }
  0x34   :  { %p14726_p4 = por %p14725_p3, %p14724_p2 }
  0x36   :  { %p14727_p5 = pnand %p14726_p4, %p14720_p1 }
  0x38   :  { %14730 = shalt.err (!%p14727_p5)
}
  0x39   :  { %124 = dma.hbm_to_vmem [thread:$0]  %s17403_s8, 16, %s122_s23, [#allocation15]  }
  0x3a   :  { %s14739_s29 = scalar_lea.vmem %s143_s4, 9216  ;;  %p14744_p7 = scmp.lt.s32.totalorder %s143_s4, %s143_s4 }
  0x3b   :  { %p14740_p6 = scmp.ne.s32.totalorder %s143_s4, %s14739_s29  ;;  %p14745_p8 = scmp.lt.s32.totalorder %s14739_s29, %s14739_s29 }
  0x3d   :  { %p14746_p9 = por %p14745_p8, %p14744_p7 }
  0x3f   :  { %p14747_p10 = pnand %p14746_p9, %p14740_p6 }
  0x41   :  { %14750 = shalt.err (!%p14747_p10)
}
  0x42   :  { %148 = dma.hbm_to_vmem [thread:$0]  %s17405_s10, 9216, %s143_s4, [#allocation18], %s14990_s18, %s14990_s18, %s14991_s22  }
  0x43   :  { %s14996_s0 = smov [#allocation20]   ;;  %s14997_s20 = smov [#allocation23]  }
  0x44   :  { %s165_s30 = sshll.u32 %s14996_s0, 4  ;;  %s189_s8 = sshll.u32 %s14997_s20, 4  ;;  %s166_s30 = int_to_ptr.vmem [resolvable:$true] %s165_s30  ;;  %s190_s8 = int_to_ptr.vmem [resolvable:$true] %s189_s8 }
  0x45   :  { %s14759_s21 = scalar_lea.vmem %s166_s30, 16  ;;  %s14763_s1 = scalar_lea.vmem %s166_s30, 32 }
  0x46   :  { %p14760_p11 = scmp.ne.s32.totalorder %s166_s30, %s14759_s21  ;;  %p14764_p12 = scmp.lt.s32.totalorder %s166_s30, %s166_s30 }
  0x47   :  { %p14765_p13 = scmp.lt.s32.totalorder %s14763_s1, %s14759_s21 }
  0x49   :  { %p14766_p0 = por %p14765_p13, %p14764_p12 }
  0x4b   :  { %p14767_p1 = pnand %p14766_p0, %p14760_p11 }
  0x4d   :  { %14770 = shalt.err (!%p14767_p1)
}
  0x4e   :  { %168 = dma.hbm_to_vmem [thread:$0]  %s17407_s12, 16, %s166_s30, [#allocation21]  }
  0x4f   :  { %s14779_s24 = scalar_lea.vmem %s190_s8, 16  ;;  %s14783_s10 = scalar_lea.vmem %s190_s8, 32 }
  0x50   :  { %p14780_p2 = scmp.ne.s32.totalorder %s190_s8, %s14779_s24  ;;  %p14784_p3 = scmp.lt.s32.totalorder %s190_s8, %s190_s8 }
  0x51   :  { %p14785_p4 = scmp.lt.s32.totalorder %s14783_s10, %s14779_s24 }
  0x53   :  { %p14786_p5 = por %p14785_p4, %p14784_p3 }
  0x55   :  { %p14787_p6 = pnand %p14786_p5, %p14780_p2 }
  0x57   :  { %14790 = shalt.err (!%p14787_p6)
}
  0x58   :  { %192 = dma.hbm_to_vmem [thread:$0]  %s17410_s15, 16, %s190_s8, [#allocation24]  }
  0x59   :  { %s14998_s3 = smov [#allocation3]  }
  0x5a   :  { %s42_s26 = sshll.u32 %s14998_s3, 4  ;;  %s43_s26 = int_to_ptr.vmem [resolvable:$true] %s42_s26 }
  0x5b   :  { %s14799_s28 = scalar_lea.vmem %s43_s26, 36864  ;;  %p14804_p8 = scmp.lt.s32.totalorder %s43_s26, %s43_s26 }
  0x5c   :  { %p14800_p7 = scmp.ne.s32.totalorder %s43_s26, %s14799_s28  ;;  %p14805_p9 = scmp.lt.s32.totalorder %s14799_s28, %s14799_s28 }
  0x5e   :  { %p14806_p10 = por %p14805_p9, %p14804_p8 }
  0x60   :  { %p14807_p11 = pnand %p14806_p10, %p14800_p7 }
  0x62   :  { %14810 = shalt.err (!%p14807_p11)
}
  0x63   :  { %s14999_s12 = smov 256   ;;  %s15000_s29 = smov 16  }
  0x64   :  { %s17421_s0 = sld [smem:[#allocation69_spill]]  ;;  %s15001_s30 = smov [#allocation7]  }
  0x65   :  { %s67_s20 = sshll.u32 %s15001_s30, 4  ;;  %s15002_s21 = smov [#allocation10]   ;;  %s68_s20 = int_to_ptr.vmem [resolvable:$true] %s67_s20 }
  0x66   :  { %s86_s15 = sshll.u32 %s15002_s21, 4  ;;  %s14819_s8 = scalar_lea.vmem %s68_s20, 16  ;;  %s87_s15 = int_to_ptr.vmem [resolvable:$true] %s86_s15 }
  0x67   :  { %p14820_p12 = scmp.ne.s32.totalorder %s68_s20, %s14819_s8  ;;  %s14823_s1 = scalar_lea.vmem %s68_s20, 32 }
  0x68   :  { %p14824_p13 = scmp.lt.s32.totalorder %s68_s20, %s68_s20  ;;  %p14825_p0 = scmp.lt.s32.totalorder %s14823_s1, %s14819_s8 }
  0x6a   :  { %48 = dma.hbm_to_vmem [thread:$0]  %s17421_s0, 36864, %s43_s26, [#allocation4], %s14999_s12, %s14999_s12, %s15000_s29  }
  0x6b   :  { %p14826_p1 = por %p14825_p0, %p14824_p13 }
  0x6d   :  { %p14827_p2 = pnand %p14826_p1, %p14820_p12 }
  0x6f   :  { %14830 = shalt.err (!%p14827_p2)
}
  0x70   :  { %s17422_s24 = sld [smem:[#allocation71_spill]]  ;;  %s14839_s10 = scalar_lea.vmem %s87_s15, 2304 }
  0x71   :  { %p14840_p3 = scmp.ne.s32.totalorder %s87_s15, %s14839_s10  ;;  %p14844_p4 = scmp.lt.s32.totalorder %s87_s15, %s87_s15 }
  0x72   :  { %p14845_p5 = scmp.lt.s32.totalorder %s14839_s10, %s14839_s10 }
  0x74   :  { %p14846_p6 = por %p14845_p5, %p14844_p4 }
  0x76   :  { %70 = dma.hbm_to_vmem [thread:$0]  %s17422_s24, 16, %s68_s20, [#allocation6]  }
  0x77   :  { %p14847_p7 = pnand %p14846_p6, %p14840_p3 }
  0x79   :  { %14850 = shalt.err (!%p14847_p7)
}
  0x7a   :  { %92 = dma.hbm_to_vmem [thread:$0]  %s17400_s5, 2304, %s87_s15, [#allocation9], %s14990_s18, %s14990_s18, %s14991_s22  }
  0x7b   :  { %s15003_s3 = smov [#allocation13]   ;;  %s15004_s28 = smov [#allocation16]  }
  0x7c   :  { %s111_s26 = sshll.u32 %s15003_s3, 4  ;;  %s130_s12 = sshll.u32 %s15004_s28, 4  ;;  %s112_s26 = int_to_ptr.vmem [resolvable:$true] %s111_s26  ;;  %s131_s12 = int_to_ptr.vmem [resolvable:$true] %s130_s12 }
  0x7d   :  { %s14859_s29 = scalar_lea.vmem %s112_s26, 16  ;;  %s14863_s6 = scalar_lea.vmem %s112_s26, 32 }
  0x7e   :  { %p14860_p8 = scmp.ne.s32.totalorder %s112_s26, %s14859_s29  ;;  %p14864_p9 = scmp.lt.s32.totalorder %s112_s26, %s112_s26 }
  0x7f   :  { %p14865_p10 = scmp.lt.s32.totalorder %s14863_s6, %s14859_s29 }
  0x81   :  { %p14866_p11 = por %p14865_p10, %p14864_p9 }
  0x83   :  { %p14867_p12 = pnand %p14866_p11, %p14860_p8 }
  0x85   :  { %14870 = shalt.err (!%p14867_p12)
}
  0x86   :  { %114 = dma.hbm_to_vmem [thread:$0]  %s17402_s7, 16, %s112_s26, [#allocation12]  }
  0x87   :  { %s14879_s30 = scalar_lea.vmem %s131_s12, 576  ;;  %p14884_p0 = scmp.lt.s32.totalorder %s131_s12, %s131_s12 }
  0x88   :  { %p14880_p13 = scmp.ne.s32.totalorder %s131_s12, %s14879_s30  ;;  %p14885_p1 = scmp.lt.s32.totalorder %s14879_s30, %s14879_s30 }
  0x8a   :  { %p14886_p2 = por %p14885_p1, %p14884_p0 }
  0x8c   :  { %p14887_p3 = pnand %p14886_p2, %p14880_p13 }
  0x8e   :  { %14890 = shalt.err (!%p14887_p3)
}
  0x8f   :  { %136 = dma.hbm_to_vmem [thread:$0]  %s17404_s9, 576, %s131_s12, [#allocation15], %s14990_s18, %s14990_s18, %s14991_s22  }
  0x90   :  { %s15005_s21 = smov [#allocation19]   ;;  %s15006_s8 = smov [#allocation22]  }
  0x91   :  { %s155_s15 = sshll.u32 %s15005_s21, 4  ;;  %s176_s1 = sshll.u32 %s15006_s8, 4  ;;  %s156_s15 = int_to_ptr.vmem [resolvable:$true] %s155_s15  ;;  %s177_s1 = int_to_ptr.vmem [resolvable:$true] %s176_s1 }
  0x92   :  { %s14899_s7 = scalar_lea.vmem %s156_s15, 16  ;;  %s14903_s2 = scalar_lea.vmem %s156_s15, 32 }
  0x93   :  { %p14900_p4 = scmp.ne.s32.totalorder %s156_s15, %s14899_s7  ;;  %p14904_p5 = scmp.lt.s32.totalorder %s156_s15, %s156_s15 }
  0x94   :  { %p14905_p6 = scmp.lt.s32.totalorder %s14903_s2, %s14899_s7 }
  0x96   :  { %p14906_p7 = por %p14905_p6, %p14904_p5 }
  0x98   :  { %p14907_p8 = pnand %p14906_p7, %p14900_p4 }
  0x9a   :  { %14910 = shalt.err (!%p14907_p8)
}
  0x9b   :  { %158 = dma.hbm_to_vmem [thread:$0]  %s17406_s11, 16, %s156_s15, [#allocation18]  }
  0x9c   :  { %s14919_s10 = scalar_lea.vmem %s177_s1, 9216  ;;  %p14924_p10 = scmp.lt.s32.totalorder %s177_s1, %s177_s1 }
  0x9d   :  { %p14920_p9 = scmp.ne.s32.totalorder %s177_s1, %s14919_s10  ;;  %p14925_p11 = scmp.lt.s32.totalorder %s14919_s10, %s14919_s10 }
  0x9f   :  { %p14926_p12 = por %p14925_p11, %p14924_p10 }
  0xa1   :  { %p14927_p13 = pnand %p14926_p12, %p14920_p9 }
  0xa3   :  { %14930 = shalt.err (!%p14927_p13)
}
  0xa4   :  { %182 = dma.hbm_to_vmem [thread:$0]  %s17409_s14, 9216, %s177_s1, [#allocation21], %s14990_s18, %s14990_s18, %s14991_s22  }
  0xa5   :  { %s15007_s25 = smov [#allocation25]   ;;  %s15008_s26 = smov [#allocation26]  }
  0xa6   :  { %s199_s3 = sshll.u32 %s15007_s25, 4  ;;  %s209_s28 = sshll.u32 %s15008_s26, 4  ;;  %s200_s3 = int_to_ptr.vmem [resolvable:$true] %s199_s3  ;;  %s210_s28 = int_to_ptr.vmem [resolvable:$true] %s209_s28 }
  0xa7   :  { %s14939_s11 = scalar_lea.vmem %s200_s3, 16  ;;  %s14943_s12 = scalar_lea.vmem %s200_s3, 32 }
  0xa8   :  { %p14940_p0 = scmp.ne.s32.totalorder %s200_s3, %s14939_s11  ;;  %p14944_p1 = scmp.lt.s32.totalorder %s200_s3, %s200_s3 }
  0xa9   :  { %p14945_p2 = scmp.lt.s32.totalorder %s14943_s12, %s14939_s11 }
  0xab   :  { %p14946_p3 = por %p14945_p2, %p14944_p1 }
  0xad   :  { %p14947_p4 = pnand %p14946_p3, %p14940_p0 }
  0xaf   :  { %14950 = shalt.err (!%p14947_p4)
}
  0xb0   :  { %202 = dma.hbm_to_vmem [thread:$0]  %s17411_s16, 16, %s200_s3, [#allocation24]  }
  0xb1   :  { %s14959_s27 = scalar_lea.vmem %s210_s28, 32  ;;  %p14964_p6 = scmp.lt.s32.totalorder %s210_s28, %s210_s28 }
  0xb2   :  { %p14960_p5 = scmp.ne.s32.totalorder %s210_s28, %s14959_s27  ;;  %p14965_p7 = scmp.lt.s32.totalorder %s14959_s27, %s14959_s27 }
  0xb4   :  { %p14966_p8 = por %p14965_p7, %p14964_p6 }
  0xb6   :  { %p14967_p9 = pnand %p14966_p8, %p14960_p5 }
  0xb8   :  { %14970 = shalt.err (!%p14967_p9)
}
  0xb9   :  { %212 = dma.hbm_to_vmem [thread:$0]  %s17412_s17, 32, %s210_s28, [#allocation27]  }
  0xba   :  { %14971 = dma.done.wait [#allocation4], 36864  }
  0xbb   :  { %14972 = vsyncadd [#allocation4], 4294930432 }
  0xbc   :  { %14973 = dma.done.wait [#allocation6], 9232  }
  0xbd   :  { %14974 = vsyncadd [#allocation6], 4294958064 }
  0xbe   :  { %14975 = dma.done.wait [#allocation9], 2320  }
  0xbf   :  { %14976 = vsyncadd [#allocation9], 4294964976 }
  0xc0   :  { %14977 = dma.done.wait [#allocation12], 9232  }
  0xc1   :  { %14978 = vsyncadd [#allocation12], 4294958064 }
  0xc2   :  { %14979 = dma.done.wait [#allocation15], 592  }
  0xc3   :  { %14980 = vsyncadd [#allocation15], 4294966704 }
  0xc4   :  { %14981 = dma.done.wait [#allocation18], 9232  }
  0xc5   :  { %14982 = vsyncadd [#allocation18], 4294958064 }
  0xc6   :  { %14983 = dma.done.wait [#allocation21], 9232  }
  0xc7   :  { %14984 = vsyncadd [#allocation21], 4294958064 }
  0xc8   :  { %14985 = dma.done.wait [#allocation24], 32  }
  0xc9   :  { %14986 = vsyncadd [#allocation24], 4294967264 }
  0xca   :  { %14987 = dma.done.wait [#allocation27], 32  }
  0xcb   :  { %14988 = vsyncadd [#allocation27], 4294967264  ;;  %s17423_s22 = sld [smem:[#allocation68_spill]]  ;;  %v13786_v33 = vld [vmem:[#allocation3] ss:$16 sps:$4 sm:$0xff]   ;;  %v13882_v59 = vld [vmem:[#allocation5 + $0x38] sm:$0xff]  }
  0xcc   :  { %v13788_v34 = vld [vmem:[#allocation3 + $0x4] ss:$16 sps:$4 sm:$0xff]   ;;  %v13789_v35 = vld [vmem:[#allocation3 + $0x8] ss:$16 sps:$4 sm:$0xff]   ;;  %v13791_v36 = vld [vmem:[#allocation3 + $0xc] ss:$16 sps:$4 sm:$0xff]  }
  0xcd   :  { %744 = vmatprep.mubr.bf16.mxu0 %v13788_v34  ;;  %v13792_v37 = vld [vmem:[#allocation3 + $0x24] ss:$16 sps:$4 sm:$0xff]   ;;  %841 = vmatprep.mubr.bf16.mxu1 %v13791_v36  ;;  %v13794_v38 = vld [vmem:[#allocation3 + $0x2c] ss:$16 sps:$4 sm:$0xff]   ;;  %v13796_v39 = vld [vmem:[#allocation3 + $0x20] ss:$16 sps:$4 sm:$0xff]  }
  0xce   :  { %v13797_v40 = vld [vmem:[#allocation3 + $0x28] ss:$16 sps:$4 sm:$0xff]   ;;  %v13798_v41 = vld [vmem:[#allocation3 + $0x44] ss:$16 sps:$4 sm:$0xff]   ;;  %v13800_v42 = vld [vmem:[#allocation3 + $0x4c] ss:$16 sps:$4 sm:$0xff]  }
  0xcf   :  { %v13802_v43 = vld [vmem:[#allocation3 + $0x40] ss:$16 sps:$4 sm:$0xff]   ;;  %v13803_v44 = vld [vmem:[#allocation3 + $0x48] ss:$16 sps:$4 sm:$0xff]   ;;  %v13804_v45 = vld [vmem:[#allocation3 + $0x64] ss:$16 sps:$4 sm:$0xff]  }
  0xd0   :  { %v13806_v46 = vld [vmem:[#allocation3 + $0x6c] ss:$16 sps:$4 sm:$0xff]   ;;  %v13808_v47 = vld [vmem:[#allocation3 + $0x60] ss:$16 sps:$4 sm:$0xff]   ;;  %v13809_v48 = vld [vmem:[#allocation3 + $0x68] ss:$16 sps:$4 sm:$0xff]  }
  0xd1   :  { %v15183_v1 = vld [vmem:[%s17423_s22 + $0x78] sm:$0xff]   ;;  %v15206_v5 = vld [vmem:[%s17423_s22 + $0x70] sm:$0xff]   ;;  %v15230_v9 = vld [vmem:[%s17423_s22 + $0x68] sm:$0xff]  }
  0xd2   :  { %v15188_v2 = vld [vmem:[%s17423_s22 + $0xf8] sm:$0xff]   ;;  %10915 = vmatprep.subr.bf16.mxu0 %v15183_v1  ;;  %v15212_v6 = vld [vmem:[%s17423_s22 + $0xf0] sm:$0xff]   ;;  %v15236_v10 = vld [vmem:[%s17423_s22 + $0xe8] sm:$0xff]  }
  0xd3   :  { %v15194_v3 = vld [vmem:[%s17423_s22 + $0x38] sm:$0xff]   ;;  %10979 = vmatprep.subr.bf16.mxu1 %v15188_v2  ;;  %v15218_v7 = vld [vmem:[%s17423_s22 + $0x30] sm:$0xff]   ;;  %v15242_v11 = vld [vmem:[%s17423_s22 + $0x28] sm:$0xff]  }
  0xd4   :  { %v15200_v4 = vld [vmem:[%s17423_s22 + $0xb8] sm:$0xff]   ;;  %10916 = vmatpush3.bf16.msra.mxu0 %v15194_v3  ;;  %v15224_v8 = vld [vmem:[%s17423_s22 + $0xb0] sm:$0xff]   ;;  %v15248_v12 = vld [vmem:[%s17423_s22 + $0xa8] sm:$0xff]  }
  0xd5   :  { %10980 = vmatpush3.bf16.msra.mxu1 %v15200_v4  ;;  %10917 = vmatprep.subr.bf16.mxu0 %v15206_v5  ;;  %v15254_v13 = vld [vmem:[%s17423_s22 + $0x60] sm:$0xff]   ;;  %v15278_v17 = vld [vmem:[%s17423_s22 + $0x58] sm:$0xff]   ;;  %v15302_v21 = vld [vmem:[%s17423_s22 + $0x50] sm:$0xff]  }
  0xd6   :  { %10981 = vmatprep.subr.bf16.mxu1 %v15212_v6  ;;  %v15260_v14 = vld [vmem:[%s17423_s22 + $0xe0] sm:$0xff]   ;;  %v15284_v18 = vld [vmem:[%s17423_s22 + $0xd8] sm:$0xff]   ;;  %v15308_v22 = vld [vmem:[%s17423_s22 + $0xd0] sm:$0xff]  }
  0xd7   :  { %v15266_v15 = vld [vmem:[%s17423_s22 + $0x20] sm:$0xff]   ;;  %v15290_v19 = vld [vmem:[%s17423_s22 + $0x18] sm:$0xff]   ;;  %v15314_v23 = vld [vmem:[%s17423_s22 + $0x10] sm:$0xff]  }
  0xd8   :  { %10918 = vmatpush3.bf16.msra.mxu0 %v15218_v7  ;;  %v15272_v16 = vld [vmem:[%s17423_s22 + $0xa0] sm:$0xff]   ;;  %v15296_v20 = vld [vmem:[%s17423_s22 + $0x98] sm:$0xff]   ;;  %v15320_v24 = vld [vmem:[%s17423_s22 + $0x90] sm:$0xff]  }
  0xd9   :  { %10982 = vmatpush3.bf16.msra.mxu1 %v15224_v8  ;;  %10919 = vmatprep.subr.bf16.mxu0 %v15230_v9  ;;  %v15326_v25 = vld [vmem:[%s17423_s22 + $0x48] sm:$0xff]   ;;  %v15350_v29 = vld [vmem:[%s17423_s22 + $0x40] sm:$0xff]  }
  0xda   :  { %10983 = vmatprep.subr.bf16.mxu1 %v15236_v10  ;;  %v15332_v26 = vld [vmem:[%s17423_s22 + $0xc8] sm:$0xff]   ;;  %v15356_v30 = vld [vmem:[%s17423_s22 + $0xc0] sm:$0xff]  }
  0xdb   :  { %v15338_v27 = vld [vmem:[%s17423_s22 + $0x8] sm:$0xff]   ;;  %v15362_v31 = vld [vmem:[%s17423_s22] sm:$0xff]  }
  0xdc   :  { %10920 = vmatpush3.bf16.msra.mxu0 %v15242_v11  ;;  %v15344_v28 = vld [vmem:[%s17423_s22 + $0x88] sm:$0xff]   ;;  %v15368_v32 = vld [vmem:[%s17423_s22 + $0x80] sm:$0xff]  }
  0xdd   :  { %10984 = vmatpush3.bf16.msra.mxu1 %v15248_v12  ;;  %10921 = vmatprep.subr.bf16.mxu0 %v15254_v13  ;;  %v13810_v49 = vld [vmem:[#allocation3 + $0x84] ss:$16 sps:$4 sm:$0xff]   ;;  %v13812_v50 = vld [vmem:[#allocation3 + $0x8c] ss:$16 sps:$4 sm:$0xff]   ;;  %v13814_v51 = vld [vmem:[#allocation3 + $0x80] ss:$16 sps:$4 sm:$0xff]  }
  0xde   :  { %10985 = vmatprep.subr.bf16.mxu1 %v15260_v14  ;;  %v13815_v52 = vld [vmem:[#allocation3 + $0x88] ss:$16 sps:$4 sm:$0xff]   ;;  %v13816_v53 = vld [vmem:[#allocation3 + $0xa4] ss:$16 sps:$4 sm:$0xff]   ;;  %v13818_v54 = vld [vmem:[#allocation3 + $0xac] ss:$16 sps:$4 sm:$0xff]  }
  0xdf   :  { %v13820_v55 = vld [vmem:[#allocation3 + $0xa0] ss:$16 sps:$4 sm:$0xff]   ;;  %v13821_v56 = vld [vmem:[#allocation3 + $0xa8] ss:$16 sps:$4 sm:$0xff]   ;;  %v13822_v57 = vld [vmem:[#allocation3 + $0xc4] ss:$16 sps:$4 sm:$0xff]  }
  0xe0   :  { %10922 = vmatpush3.bf16.msra.mxu0 %v15266_v15  ;;  %v13824_v58 = vld [vmem:[#allocation3 + $0xcc] ss:$16 sps:$4 sm:$0xff]   ;;  %v13826_v60 = vld [vmem:[#allocation3 + $0xc0] ss:$16 sps:$4 sm:$0xff]   ;;  %v13827_v61 = vld [vmem:[#allocation3 + $0xc8] ss:$16 sps:$4 sm:$0xff]  }
  0xe1   :  { %10986 = vmatpush3.bf16.msra.mxu1 %v15272_v16  ;;  %10923 = vmatprep.subr.bf16.mxu0 %v15278_v17  ;;  %v13828_v62 = vld [vmem:[#allocation3 + $0xe4] ss:$16 sps:$4 sm:$0xff]   ;;  %v13830_v63 = vld [vmem:[#allocation3 + $0xec] ss:$16 sps:$4 sm:$0xff]   ;;  %v13832_v0 = vld [vmem:[#allocation3 + $0xe0] ss:$16 sps:$4 sm:$0xff]  }
  0xe2   :  { %10987 = vmatprep.subr.bf16.mxu1 %v15284_v18  ;;  %v13870_v34 = vld [vmem:[#allocation3 + $0x1c4] ss:$16 sps:$4 sm:$0xff]   ;;  %v13874_v36 = vld [vmem:[#allocation3 + $0x1c0] ss:$16 sps:$4 sm:$0xff]  }
  0xe4   :  { %10924 = vmatpush3.bf16.msra.mxu0 %v15290_v19 }
  0xe5   :  { %10988 = vmatpush3.bf16.msra.mxu1 %v15296_v20  ;;  %10925 = vmatprep.subr.bf16.mxu0 %v15302_v21 }
  0xe6   :  { %10989 = vmatprep.subr.bf16.mxu1 %v15308_v22 }
  0xe8   :  { %10926 = vmatpush3.bf16.msra.mxu0 %v15314_v23 }
  0xe9   :  { %10990 = vmatpush3.bf16.msra.mxu1 %v15320_v24  ;;  %10927 = vmatprep.subr.bf16.mxu0 %v15326_v25 }
  0xea   :  { %10991 = vmatprep.subr.bf16.mxu1 %v15332_v26 }
  0xec   :  { %10928 = vmatpush3.bf16.msra.mxu0 %v15338_v27 }
  0xed   :  { %10992 = vmatpush3.bf16.msra.mxu1 %v15344_v28  ;;  %10929 = vmatprep.subr.bf16.mxu0 %v15350_v29 }
  0xee   :  { %10993 = vmatprep.subr.bf16.mxu1 %v15356_v30 }
  0xf0   :  { %10930 = vmatpush3.bf16.msra.mxu0 %v15362_v31 }
  0xf1   :  { %10994 = vmatpush3.bf16.msra.mxu1 %v15368_v32  ;;  %11043 = vmatprep.subr.bf16.mxu0 %v15183_v1  ;;  %v13833_v1 = vld [vmem:[#allocation3 + $0xe8] ss:$16 sps:$4 sm:$0xff]  }
  0xf2   :  { %11107 = vmatprep.subr.bf16.mxu1 %v15188_v2 }
  0xf3   :  { %745 = vmatmul.mubr.bf16.vlgmr.msra.gmra.mxu0 %v13786_v33  ;;  %v13869_v33 = vld [vmem:[#allocation3 + $0x1a8] ss:$16 sps:$4 sm:$0xff]  }
  0xf4   :  { %842 = vmatmul.mubr.bf16.vlgmr.msra.gmra.mxu1 %v13789_v35  ;;  %11044 = vmatpush3.bf16.msra.mxu0 %v15194_v3  ;;  %v13836_v3 = vld [vmem:[#allocation3 + $0x104] ss:$16 sps:$4 sm:$0xff]   ;;  %v13872_v35 = vld [vmem:[#allocation3 + $0x1cc] ss:$16 sps:$4 sm:$0xff]  }
  0xf5   :  { %11108 = vmatpush3.bf16.msra.mxu1 %v15200_v4  ;;  %752 = vmatprep.mubr.bf16.mxu0 %v13792_v37  ;;  %v13839_v4 = vld [vmem:[#allocation3 + $0x10c] ss:$16 sps:$4 sm:$0xff]   ;;  %v13875_v37 = vld [vmem:[#allocation3 + $0x1c8] ss:$16 sps:$4 sm:$0xff]  }
  0xf6   :  { %849 = vmatprep.mubr.bf16.mxu1 %v13794_v38  ;;  %11045 = vmatprep.subr.bf16.mxu0 %v15206_v5  ;;  %v13834_v5 = vld [vmem:[#allocation3 + $0x100] ss:$16 sps:$4 sm:$0xff]   ;;  %v13876_v38 = vld [vmem:[#allocation3 + $0x1e4] ss:$16 sps:$4 sm:$0xff]  }
  0xf7   :  { %11109 = vmatprep.subr.bf16.mxu1 %v15212_v6  ;;  %v13837_v6 = vld [vmem:[#allocation3 + $0x108] ss:$16 sps:$4 sm:$0xff]  }
  0xf8   :  { %11046 = vmatpush3.bf16.msra.mxu0 %v15218_v7  ;;  %v13840_v7 = vld [vmem:[#allocation3 + $0x124] ss:$16 sps:$4 sm:$0xff]  }
  0xf9   :  { %11110 = vmatpush3.bf16.msra.mxu1 %v15224_v8  ;;  %11047 = vmatprep.subr.bf16.mxu0 %v15230_v9  ;;  %v13842_v8 = vld [vmem:[#allocation3 + $0x12c] ss:$16 sps:$4 sm:$0xff]   ;;  %v13883_v9 = vld [vmem:[#allocation5 + $0x30] sm:$0xff]  }
  0xfa   :  { %11111 = vmatprep.subr.bf16.mxu1 %v15236_v10  ;;  %v13884_v10 = vld [vmem:[#allocation5 + $0x28] sm:$0xff]  }
  0xfb   :  { %753 = vmatmul.mubr.bf16.gmra.mxu0 %v13796_v39  ;;  %v13878_v39 = vld [vmem:[#allocation3 + $0x1ec] ss:$16 sps:$4 sm:$0xff]  }
  0xfc   :  { %850 = vmatmul.mubr.bf16.gmra.mxu1 %v13797_v40  ;;  %760 = vmatprep.mubr.bf16.mxu0 %v13798_v41  ;;  %v13890_v40 = vld [vmem:[#allocation5 + $0x78] sm:$0xff]  }
  0xfd   :  { %857 = vmatprep.mubr.bf16.mxu1 %v13800_v42  ;;  %11048 = vmatpush3.bf16.msra.mxu0 %v15242_v11  ;;  %v13844_v11 = vld [vmem:[#allocation3 + $0x120] ss:$16 sps:$4 sm:$0xff]   ;;  %v13881_v41 = vld [vmem:[#allocation3 + $0x1e8] ss:$16 sps:$4 sm:$0xff]  }
  0xfe   :  { %11112 = vmatpush3.bf16.msra.mxu1 %v15248_v12  ;;  %11049 = vmatprep.subr.bf16.mxu0 %v15254_v13  ;;  %v13845_v12 = vld [vmem:[#allocation3 + $0x128] ss:$16 sps:$4 sm:$0xff]   ;;  %v13846_v13 = vld [vmem:[#allocation3 + $0x144] ss:$16 sps:$4 sm:$0xff]  }
  0xff   :  { %11113 = vmatprep.subr.bf16.mxu1 %v15260_v14  ;;  %v13848_v14 = vld [vmem:[#allocation3 + $0x14c] ss:$16 sps:$4 sm:$0xff]   ;;  %v13891_v42 = vld [vmem:[#allocation5 + $0x70] sm:$0xff]  }
 0x101   :  { %11050 = vmatpush3.bf16.msra.mxu0 %v15266_v15  ;;  %v13885_v15 = vld [vmem:[#allocation5 + $0x20] sm:$0xff]  }
 0x102   :  { %11114 = vmatpush3.bf16.msra.mxu1 %v15272_v16  ;;  %11051 = vmatprep.subr.bf16.mxu0 %v15278_v17  ;;  %v13886_v16 = vld [vmem:[#allocation5 + $0x18] sm:$0xff]   ;;  %v13850_v17 = vld [vmem:[#allocation3 + $0x140] ss:$16 sps:$4 sm:$0xff]  }
 0x103   :  { %761 = vmatmul.mubr.bf16.gmra.mxu0 %v13802_v43  ;;  %11115 = vmatprep.subr.bf16.mxu1 %v15284_v18  ;;  %v13851_v18 = vld [vmem:[#allocation3 + $0x148] ss:$16 sps:$4 sm:$0xff]  }
 0x104   :  { %858 = vmatmul.mubr.bf16.gmra.mxu1 %v13803_v44  ;;  %768 = vmatprep.mubr.bf16.mxu0 %v13804_v45  ;;  %v13892_v43 = vld [vmem:[#allocation5 + $0x68] sm:$0xff]   ;;  %v13893_v44 = vld [vmem:[#allocation5 + $0x60] sm:$0xff]   ;;  %v13894_v45 = vld [vmem:[#allocation5 + $0x58] sm:$0xff]  }
 0x105   :  { %865 = vmatprep.mubr.bf16.mxu1 %v13806_v46  ;;  %11052 = vmatpush3.bf16.msra.mxu0 %v15290_v19  ;;  %v13852_v19 = vld [vmem:[#allocation3 + $0x164] ss:$16 sps:$4 sm:$0xff]  }
 0x106   :  { %11116 = vmatpush3.bf16.msra.mxu1 %v15296_v20  ;;  %11053 = vmatprep.subr.bf16.mxu0 %v15302_v21  ;;  %v13854_v20 = vld [vmem:[#allocation3 + $0x16c] ss:$16 sps:$4 sm:$0xff]   ;;  %v13887_v21 = vld [vmem:[#allocation5 + $0x10] sm:$0xff]  }
 0x107   :  { %11117 = vmatprep.subr.bf16.mxu1 %v15308_v22  ;;  %v13888_v22 = vld [vmem:[#allocation5 + $0x8] sm:$0xff]   ;;  %v13895_v46 = vld [vmem:[#allocation5 + $0x50] sm:$0xff]  }
 0x109   :  { %11054 = vmatpush3.bf16.msra.mxu0 %v15314_v23  ;;  %v13856_v23 = vld [vmem:[#allocation3 + $0x160] ss:$16 sps:$4 sm:$0xff]  }
 0x10a   :  { %11118 = vmatpush3.bf16.msra.mxu1 %v15320_v24  ;;  %11055 = vmatprep.subr.bf16.mxu0 %v15326_v25  ;;  %v13857_v24 = vld [vmem:[#allocation3 + $0x168] ss:$16 sps:$4 sm:$0xff]   ;;  %v13858_v25 = vld [vmem:[#allocation3 + $0x184] ss:$16 sps:$4 sm:$0xff]  }
 0x10b   :  { %769 = vmatmul.mubr.bf16.gmra.mxu0 %v13808_v47  ;;  %11119 = vmatprep.subr.bf16.mxu1 %v15332_v26  ;;  %v13860_v26 = vld [vmem:[#allocation3 + $0x18c] ss:$16 sps:$4 sm:$0xff]  }
 0x10c   :  { %866 = vmatmul.mubr.bf16.gmra.mxu1 %v13809_v48  ;;  %776 = vmatprep.mubr.bf16.mxu0 %v13810_v49  ;;  %v13896_v47 = vld [vmem:[#allocation5 + $0x48] sm:$0xff]   ;;  %v13897_v48 = vld [vmem:[#allocation5 + $0x40] sm:$0xff]   ;;  %v15408_v49 = vld [vmem:[%s17423_s22 + $0x78] sm:$0xff]  }
 0x10d   :  { %873 = vmatprep.mubr.bf16.mxu1 %v13812_v50  ;;  %11056 = vmatpush3.bf16.msra.mxu0 %v15338_v27  ;;  %v13889_v27 = vld [vmem:[#allocation5] sm:$0xff]  }
 0x10e   :  { %11120 = vmatpush3.bf16.msra.mxu1 %v15344_v28  ;;  %11057 = vmatprep.subr.bf16.mxu0 %v15350_v29  ;;  %v13862_v28 = vld [vmem:[#allocation3 + $0x180] ss:$16 sps:$4 sm:$0xff]   ;;  %v13863_v29 = vld [vmem:[#allocation3 + $0x188] ss:$16 sps:$4 sm:$0xff]  }
 0x10f   :  { %11121 = vmatprep.subr.bf16.mxu1 %v15356_v30  ;;  %v13864_v30 = vld [vmem:[#allocation3 + $0x1a4] ss:$16 sps:$4 sm:$0xff]  }
 0x111   :  { %11058 = vmatpush3.bf16.msra.mxu0 %v15362_v31  ;;  %v13866_v31 = vld [vmem:[#allocation3 + $0x1ac] ss:$16 sps:$4 sm:$0xff]  }
 0x112   :  { %11122 = vmatpush3.bf16.msra.mxu1 %v15368_v32  ;;  %v13868_v32 = vld [vmem:[#allocation3 + $0x1a0] ss:$16 sps:$4 sm:$0xff]   ;;  %12598 = vmatprep.subr.bf16.mxu0 %v13890_v40 }
 0x113   :  { %777 = vmatmul.mubr.bf16.gmra.mxu0 %v13814_v51  ;;  %12630 = vmatprep.subr.bf16.mxu1 %v13882_v59 }
 0x114   :  { %874 = vmatmul.mubr.bf16.gmra.mxu1 %v13815_v52  ;;  %784 = vmatprep.mubr.bf16.mxu0 %v13816_v53 }
 0x115   :  { %881 = vmatprep.mubr.bf16.mxu1 %v13818_v54 }
 0x11b   :  { %785 = vmatmul.mubr.bf16.gmra.mxu0 %v13820_v55 }
 0x11c   :  { %882 = vmatmul.mubr.bf16.gmra.mxu1 %v13821_v56  ;;  %792 = vmatprep.mubr.bf16.mxu0 %v13822_v57 }
 0x11d   :  { %889 = vmatprep.mubr.bf16.mxu1 %v13824_v58 }
 0x123   :  { %793 = vmatmul.mubr.bf16.gmra.mxu0 %v13826_v60 }
 0x124   :  { %890 = vmatmul.mubr.bf16.gmra.mxu1 %v13827_v61  ;;  %800 = vmatprep.mubr.bf16.mxu0 %v13828_v62 }
 0x125   :  { %897 = vmatprep.mubr.bf16.mxu1 %v13830_v63 }
 0x12b   :  { %801 = vmatmul.mubr.bf16.gmra.mxu0 %v13832_v0 }
 0x12c   :  { %898 = vmatmul.mubr.bf16.gmra.mxu1 %v13833_v1  ;;  %1155 = vmatprep.mubr.bf16.mxu0 %v13836_v3 }
 0x12d   :  { %1252 = vmatprep.mubr.bf16.mxu1 %v13839_v4 }
 0x133   :  { %1156 = vmatmul.mubr.bf16.vlgmr.msra.gmra.mxu0 %v13834_v5 }
 0x134   :  { %1253 = vmatmul.mubr.bf16.vlgmr.msra.gmra.mxu1 %v13837_v6  ;;  %1163 = vmatprep.mubr.bf16.mxu0 %v13840_v7 }
 0x135   :  { %1260 = vmatprep.mubr.bf16.mxu1 %v13842_v8  ;;  %12631 = vmatpush3.bf16.msra.mxu1 %v13882_v59 }
 0x136   :  { %12632 = vmatprep.subr.bf16.mxu1 %v13883_v9  ;;  %12599 = vmatpush3.bf16.msra.mxu0 %v13890_v40 }
 0x137   :  { %12600 = vmatprep.subr.bf16.mxu0 %v13891_v42 }
 0x139   :  { %12633 = vmatpush3.bf16.msra.mxu1 %v13883_v9 }
 0x13a   :  { %12634 = vmatprep.subr.bf16.mxu1 %v13884_v10  ;;  %12601 = vmatpush3.bf16.msra.mxu0 %v13891_v42 }
 0x13b   :  { %1164 = vmatmul.mubr.bf16.gmra.mxu0 %v13844_v11  ;;  %12602 = vmatprep.subr.bf16.mxu0 %v13892_v43 }
 0x13c   :  { %1261 = vmatmul.mubr.bf16.gmra.mxu1 %v13845_v12  ;;  %1171 = vmatprep.mubr.bf16.mxu0 %v13846_v13 }
 0x13d   :  { %1268 = vmatprep.mubr.bf16.mxu1 %v13848_v14  ;;  %12635 = vmatpush3.bf16.msra.mxu1 %v13884_v10 }
 0x13e   :  { %12636 = vmatprep.subr.bf16.mxu1 %v13885_v15  ;;  %12603 = vmatpush3.bf16.msra.mxu0 %v13892_v43 }
 0x13f   :  { %12604 = vmatprep.subr.bf16.mxu0 %v13893_v44 }
 0x141   :  { %12637 = vmatpush3.bf16.msra.mxu1 %v13885_v15 }
 0x142   :  { %12638 = vmatprep.subr.bf16.mxu1 %v13886_v16  ;;  %12605 = vmatpush3.bf16.msra.mxu0 %v13893_v44 }
 0x143   :  { %1172 = vmatmul.mubr.bf16.gmra.mxu0 %v13850_v17  ;;  %12606 = vmatprep.subr.bf16.mxu0 %v13894_v45 }
 0x144   :  { %1269 = vmatmul.mubr.bf16.gmra.mxu1 %v13851_v18  ;;  %1179 = vmatprep.mubr.bf16.mxu0 %v13852_v19 }
 0x145   :  { %1276 = vmatprep.mubr.bf16.mxu1 %v13854_v20  ;;  %12639 = vmatpush3.bf16.msra.mxu1 %v13886_v16 }
 0x146   :  { %12640 = vmatprep.subr.bf16.mxu1 %v13887_v21  ;;  %12607 = vmatpush3.bf16.msra.mxu0 %v13894_v45 }
 0x147   :  { %12608 = vmatprep.subr.bf16.mxu0 %v13895_v46 }
 0x149   :  { %12641 = vmatpush3.bf16.msra.mxu1 %v13887_v21 }
 0x14a   :  { %12642 = vmatprep.subr.bf16.mxu1 %v13888_v22  ;;  %12609 = vmatpush3.bf16.msra.mxu0 %v13895_v46  ;;  %v14533_v46 = vld [vmem:[%s17423_s22 + $0xa8] sm:$0xff]  }
 0x14b   :  { %1180 = vmatmul.mubr.bf16.gmra.mxu0 %v13856_v23  ;;  %12610 = vmatprep.subr.bf16.mxu0 %v13896_v47 }
 0x14c   :  { %1277 = vmatmul.mubr.bf16.gmra.mxu1 %v13857_v24  ;;  %1187 = vmatprep.mubr.bf16.mxu0 %v13858_v25 }
 0x14d   :  { %1284 = vmatprep.mubr.bf16.mxu1 %v13860_v26  ;;  %12643 = vmatpush3.bf16.msra.mxu1 %v13888_v22 }
 0x14e   :  { %12644 = vmatprep.subr.bf16.mxu1 %v13889_v27  ;;  %12611 = vmatpush3.bf16.msra.mxu0 %v13896_v47 }
 0x14f   :  { %12612 = vmatprep.subr.bf16.mxu0 %v13897_v48 }
 0x151   :  { %12645 = vmatpush3.bf16.msra.mxu1 %v13889_v27 }
 0x152   :  { %11267 = vmatprep.subr.bf16.mxu1 %v15188_v2  ;;  %v13880_v2 = vld [vmem:[#allocation3 + $0x1e0] ss:$16 sps:$4 sm:$0xff]   ;;  %12613 = vmatpush3.bf16.msra.mxu0 %v13897_v48 }
 0x153   :  { %1188 = vmatmul.mubr.bf16.gmra.mxu0 %v13862_v28  ;;  %11203 = vmatprep.subr.bf16.mxu0 %v15408_v49  ;;  %v14529_v28 = vld [vmem:[%s17423_s22 + $0xb8] sm:$0xff]  }
 0x154   :  { %1285 = vmatmul.mubr.bf16.gmra.mxu1 %v13863_v29  ;;  %1195 = vmatprep.mubr.bf16.mxu0 %v13864_v30 }
 0x155   :  { %1292 = vmatprep.mubr.bf16.mxu1 %v13866_v31  ;;  %v14530_v31 = vld [vmem:[%s17423_s22 + $0xf0] sm:$0xff]  }
 0x15b   :  { %1196 = vmatmul.mubr.bf16.gmra.mxu0 %v13868_v32 }
 0x15c   :  { %1293 = vmatmul.mubr.bf16.gmra.mxu1 %v13869_v33  ;;  %1203 = vmatprep.mubr.bf16.mxu0 %v13870_v34 }
 0x15d   :  { %1300 = vmatprep.mubr.bf16.mxu1 %v13872_v35 }
 0x163   :  { %1204 = vmatmul.mubr.bf16.gmra.mxu0 %v13874_v36 }
 0x164   :  { %1301 = vmatmul.mubr.bf16.gmra.mxu1 %v13875_v37  ;;  %1211 = vmatprep.mubr.bf16.mxu0 %v13876_v38  ;;  %v14531_v37 = vld [vmem:[%s17423_s22 + $0xb0] sm:$0xff]  }
 0x165   :  { %1308 = vmatprep.mubr.bf16.mxu1 %v13878_v39 }
 0x16b   :  { %1212 = vmatmul.mubr.bf16.gmra.mxu0 %v13880_v2  ;;  %v14532_v2 = vld [vmem:[%s17423_s22 + $0xe8] sm:$0xff]  }
 0x16c   :  { %1309 = vmatmul.mubr.bf16.gmra.mxu1 %v13881_v41 }
 0x1b3   :  { %v10931_v50 = vpop.f32.mrf.mxu0 }
 0x1b4   :  { %v10995_v51 = vpop.f32.mrf.mxu1 }
 0x1b5   :  { %v10932_v52 = vpop.f32.mrf.mxu0 }
 0x1b6   :  { %v10996_v53 = vpop.f32.mrf.mxu1  ;;  %v10933_v56 = vadd.f32 %v10932_v52, %v10931_v50  ;;  %v14534_v50 = vld [vmem:[%s17423_s22 + $0xe0] sm:$0xff]  }
 0x1b7   :  { %v10934_v54 = vpop.f32.mrf.mxu0  ;;  %v10997_v57 = vadd.f32 %v10996_v53, %v10995_v51 }
 0x1b8   :  { %v10998_v55 = vpop.f32.mrf.mxu1 }
 0x1b9   :  { %v10935_v58 = vpop.f32.mrf.mxu0  ;;  %v844_v0 = vadd.f32 %v10997_v57, %v10933_v56  ;;  %v14535_v56 = vld [vmem:[%s17423_s22 + $0xa0] sm:$0xff]  }
 0x1ba   :  { %v10936_v59 = vadd.f32 %v10935_v58, %v10934_v54  ;;  %v10999_v60 = vpop.f32.mrf.mxu1 }
 0x1bb   :  { %v11000_v61 = vadd.f32 %v10999_v60, %v10998_v55  ;;  %v10937_v62 = vpop.f32.mrf.mxu0 }
 0x1bc   :  { %v11001_v63 = vpop.f32.mrf.mxu1 }
 0x1bd   :  { %v847_v1 = vadd.f32 %v11000_v61, %v10936_v59  ;;  %v10938_v3 = vpop.f32.mrf.mxu0  ;;  %v14536_v59 = vld [vmem:[%s17423_s22 + $0xd8] sm:$0xff]  }
 0x1be   :  { %v11002_v4 = vpop.f32.mrf.mxu1  ;;  %v10939_v8 = vadd.f32 %v10938_v3, %v10937_v62  ;;  %v14537_v3 = vld [vmem:[%s17423_s22 + $0x98] sm:$0xff]  }
 0x1bf   :  { %v10940_v5 = vpop.f32.mrf.mxu0  ;;  %v906_v6 = vpack.c.bf16 %v847_v1, %v844_v0  ;;  %v11003_v9 = vadd.f32 %v11002_v4, %v11001_v63 }
 0x1c0   :  { %v11004_v7 = vpop.f32.mrf.mxu1 }
 0x1c1   :  { %12646 = vmatprep.mubr.bf16.mxu1 %v906_v6  ;;  %v10941_v10 = vpop.f32.mrf.mxu0  ;;  %v852_v16 = vadd.f32 %v11003_v9, %v10939_v8  ;;  %v14538_v6 = vld [vmem:[%s17423_s22 + $0xd0] sm:$0xff]  }
 0x1c2   :  { %v10942_v11 = vadd.f32 %v10941_v10, %v10940_v5  ;;  %v11005_v12 = vpop.f32.mrf.mxu1 }
 0x1c3   :  { %v11006_v13 = vadd.f32 %v11005_v12, %v11004_v7  ;;  %v10943_v14 = vpop.f32.mrf.mxu0  ;;  %v14539_v12 = vld [vmem:[%s17423_s22 + $0x90] sm:$0xff]  }
 0x1c4   :  { %v11007_v15 = vpop.f32.mrf.mxu1 }
 0x1c5   :  { %v855_v17 = vadd.f32 %v11006_v13, %v10942_v11  ;;  %v10944_v18 = vpop.f32.mrf.mxu0 }
 0x1c6   :  { %v11008_v19 = vpop.f32.mrf.mxu1  ;;  %v10945_v23 = vadd.f32 %v10944_v18, %v10943_v14 }
 0x1c7   :  { %v907_v20 = vpack.c.bf16 %v855_v17, %v852_v16  ;;  %v10946_v21 = vpop.f32.mrf.mxu0  ;;  %v11009_v24 = vadd.f32 %v11008_v19, %v11007_v15  ;;  %v14540_v15 = vld [vmem:[%s17423_s22 + $0xc8] sm:$0xff]  }
 0x1c8   :  { %v11010_v22 = vpop.f32.mrf.mxu1 }
 0x1c9   :  { %12647 = vmatmul.mubr.bf16.vlgmr.msra.gmra.mxu1 %v907_v20  ;;  %v10947_v25 = vpop.f32.mrf.mxu0  ;;  %v860_v33 = vadd.f32 %v11009_v24, %v10945_v23 }
 0x1ca   :  { %v10948_v26 = vadd.f32 %v10947_v25, %v10946_v21  ;;  %v11011_v27 = vpop.f32.mrf.mxu1  ;;  %11268 = vmatpush3.bf16.msra.mxu1 %v14529_v28  ;;  %v14542_v25 = vld [vmem:[%s17423_s22 + $0xc0] sm:$0xff]  }
 0x1cb   :  { %v11012_v29 = vadd.f32 %v11011_v27, %v11010_v22  ;;  %v10949_v30 = vpop.f32.mrf.mxu0  ;;  %11269 = vmatprep.subr.bf16.mxu1 %v14530_v31  ;;  %v14541_v22 = vld [vmem:[%s17423_s22 + $0x88] sm:$0xff]   ;;  %v14543_v31 = vld [vmem:[%s17423_s22 + $0x80] sm:$0xff]  }
 0x1cc   :  { %v11013_v32 = vpop.f32.mrf.mxu1 }
 0x1cd   :  { %v863_v34 = vadd.f32 %v11012_v29, %v10948_v26  ;;  %v10950_v35 = vpop.f32.mrf.mxu0 }
 0x1ce   :  { %v11014_v36 = vpop.f32.mrf.mxu1  ;;  %11270 = vmatpush3.bf16.msra.mxu1 %v14531_v37  ;;  %v10951_v41 = vadd.f32 %v10950_v35, %v10949_v30 }
 0x1cf   :  { %v10952_v38 = vpop.f32.mrf.mxu0  ;;  %v908_v39 = vpack.c.bf16 %v863_v34, %v860_v33  ;;  %11271 = vmatprep.subr.bf16.mxu1 %v14532_v2  ;;  %v11015_v42 = vadd.f32 %v11014_v36, %v11013_v32 }
 0x1d0   :  { %v11016_v40 = vpop.f32.mrf.mxu1 }
 0x1d1   :  { %12650 = vmatprep.mubr.bf16.mxu1 %v908_v39  ;;  %v10953_v43 = vpop.f32.mrf.mxu0  ;;  %v868_v52 = vadd.f32 %v11015_v42, %v10951_v41 }
 0x1d2   :  { %v10954_v44 = vadd.f32 %v10953_v43, %v10952_v38  ;;  %v11017_v45 = vpop.f32.mrf.mxu1  ;;  %11272 = vmatpush3.bf16.msra.mxu1 %v14533_v46 }
 0x1d3   :  { %v11018_v47 = vadd.f32 %v11017_v45, %v11016_v40  ;;  %v10955_v48 = vpop.f32.mrf.mxu0  ;;  %11273 = vmatprep.subr.bf16.mxu1 %v14534_v50 }
 0x1d4   :  { %v11019_v51 = vpop.f32.mrf.mxu1 }
 0x1d5   :  { %v871_v53 = vadd.f32 %v11018_v47, %v10954_v44  ;;  %v10956_v54 = vpop.f32.mrf.mxu0 }
 0x1d6   :  { %v11020_v55 = vpop.f32.mrf.mxu1  ;;  %11274 = vmatpush3.bf16.msra.mxu1 %v14535_v56  ;;  %v10957_v61 = vadd.f32 %v10956_v54, %v10955_v48 }
 0x1d7   :  { %v10958_v57 = vpop.f32.mrf.mxu0  ;;  %v909_v58 = vpack.c.bf16 %v871_v53, %v868_v52  ;;  %11275 = vmatprep.subr.bf16.mxu1 %v14536_v59  ;;  %v11021_v62 = vadd.f32 %v11020_v55, %v11019_v51 }
 0x1d8   :  { %v11022_v60 = vpop.f32.mrf.mxu1 }
 0x1d9   :  { %12651 = vmatmul.mubr.bf16.gmra.mxu1 %v909_v58  ;;  %v10959_v63 = vpop.f32.mrf.mxu0  ;;  %v876_v8 = vadd.f32 %v11021_v62, %v10957_v61 }
 0x1da   :  { %v10960_v0 = vadd.f32 %v10959_v63, %v10958_v57  ;;  %v11023_v1 = vpop.f32.mrf.mxu1  ;;  %11276 = vmatpush3.bf16.msra.mxu1 %v14537_v3  ;;  %v13900_v57 = vld [vmem:[#allocation3 + $0x20c] ss:$16 sps:$4 sm:$0xff]  }
 0x1db   :  { %v11024_v4 = vadd.f32 %v11023_v1, %v11022_v60  ;;  %v10961_v5 = vpop.f32.mrf.mxu0  ;;  %11277 = vmatprep.subr.bf16.mxu1 %v14538_v6 }
 0x1dc   :  { %v11025_v7 = vpop.f32.mrf.mxu1 }
 0x1dd   :  { %v879_v9 = vadd.f32 %v11024_v4, %v10960_v0  ;;  %v10962_v10 = vpop.f32.mrf.mxu0 }
 0x1de   :  { %v11026_v11 = vpop.f32.mrf.mxu1  ;;  %11278 = vmatpush3.bf16.msra.mxu1 %v14539_v12  ;;  %v10963_v17 = vadd.f32 %v10962_v10, %v10961_v5 }
 0x1df   :  { %v10964_v13 = vpop.f32.mrf.mxu0  ;;  %v910_v14 = vpack.c.bf16 %v879_v9, %v876_v8  ;;  %11279 = vmatprep.subr.bf16.mxu1 %v14540_v15  ;;  %v11027_v18 = vadd.f32 %v11026_v11, %v11025_v7  ;;  %v13898_v9 = vld [vmem:[#allocation3 + $0x208] ss:$16 sps:$4 sm:$0xff]   ;;  %v13904_v11 = vld [vmem:[#allocation3 + $0x22c] ss:$16 sps:$4 sm:$0xff]  }
 0x1e0   :  { %v11028_v16 = vpop.f32.mrf.mxu1 }
 0x1e1   :  { %12654 = vmatprep.mubr.bf16.mxu1 %v910_v14  ;;  %v10965_v19 = vpop.f32.mrf.mxu0  ;;  %v884_v27 = vadd.f32 %v11027_v18, %v10963_v17 }
 0x1e2   :  { %v10966_v20 = vadd.f32 %v10965_v19, %v10964_v13  ;;  %v11029_v21 = vpop.f32.mrf.mxu1  ;;  %11280 = vmatpush3.bf16.msra.mxu1 %v14541_v22 }
 0x1e3   :  { %v11030_v23 = vadd.f32 %v11029_v21, %v11028_v16  ;;  %v10967_v24 = vpop.f32.mrf.mxu0  ;;  %11281 = vmatprep.subr.bf16.mxu1 %v14542_v25 }
 0x1e4   :  { %v11031_v26 = vpop.f32.mrf.mxu1 }
 0x1e5   :  { %v887_v28 = vadd.f32 %v11030_v23, %v10966_v20  ;;  %v10968_v29 = vpop.f32.mrf.mxu0 }
 0x1e6   :  { %v11032_v30 = vpop.f32.mrf.mxu1  ;;  %11282 = vmatpush3.bf16.msra.mxu1 %v14543_v31  ;;  %v10969_v35 = vadd.f32 %v10968_v29, %v10967_v24  ;;  %v14544_v24 = vld [vmem:[%s17423_s22 + $0x38] sm:$0xff]  }
 0x1e7   :  { %v10970_v32 = vpop.f32.mrf.mxu0  ;;  %v911_v33 = vpack.c.bf16 %v887_v28, %v884_v27  ;;  %11347 = vmatprep.subr.bf16.mxu1 %v15408_v49  ;;  %v11033_v36 = vadd.f32 %v11032_v30, %v11031_v26  ;;  %v13906_v27 = vld [vmem:[#allocation3 + $0x228] ss:$16 sps:$4 sm:$0xff]   ;;  %v14545_v28 = vld [vmem:[%s17423_s22 + $0x70] sm:$0xff]  }
 0x1e8   :  { %v11034_v34 = vpop.f32.mrf.mxu1  ;;  %v13910_v30 = vld [vmem:[#allocation3 + $0x24c] ss:$16 sps:$4 sm:$0xff]  }
 0x1e9   :  { %12655 = vmatmul.mubr.bf16.gmra.mxu1 %v911_v33  ;;  %v10971_v37 = vpop.f32.mrf.mxu0  ;;  %v892_v42 = vadd.f32 %v11033_v36, %v10969_v35  ;;  %v14546_v35 = vld [vmem:[%s17423_s22 + $0x30] sm:$0xff]  }
 0x1ea   :  { %v10972_v38 = vadd.f32 %v10971_v37, %v10970_v32  ;;  %v11035_v39 = vpop.f32.mrf.mxu1 }
 0x1eb   :  { %v11036_v2 = vadd.f32 %v11035_v39, %v11034_v34  ;;  %v10973_v40 = vpop.f32.mrf.mxu0 }
 0x1ec   :  { %v11037_v41 = vpop.f32.mrf.mxu1 }
 0x1ed   :  { %v895_v43 = vadd.f32 %v11036_v2, %v10972_v38  ;;  %v10974_v44 = vpop.f32.mrf.mxu0  ;;  %v14547_v38 = vld [vmem:[%s17423_s22 + $0x68] sm:$0xff]  }
 0x1ee   :  { %v11038_v45 = vpop.f32.mrf.mxu1  ;;  %v10975_v50 = vadd.f32 %v10974_v44, %v10973_v40 }
 0x1ef   :  { %v10976_v46 = vpop.f32.mrf.mxu0  ;;  %v912_v47 = vpack.c.bf16 %v895_v43, %v892_v42  ;;  %v11039_v51 = vadd.f32 %v11038_v45, %v11037_v41 }
 0x1f0   :  { %v11040_v48 = vpop.f32.mrf.mxu1 }
 0x1f1   :  { %12658 = vmatprep.mubr.bf16.mxu1 %v912_v47  ;;  %v10977_v49 = vpop.f32.mrf.mxu0  ;;  %v900_v58 = vadd.f32 %v11039_v51, %v10975_v50  ;;  %v14548_v47 = vld [vmem:[%s17423_s22 + $0x28] sm:$0xff]   ;;  %v14549_v51 = vld [vmem:[%s17423_s22 + $0x60] sm:$0xff]  }
 0x1f2   :  { %v10978_v52 = vadd.f32 %v10977_v49, %v10976_v46  ;;  %v11041_v53 = vpop.f32.mrf.mxu1  ;;  %v13912_v46 = vld [vmem:[#allocation3 + $0x248] ss:$16 sps:$4 sm:$0xff]   ;;  %v13916_v50 = vld [vmem:[#allocation3 + $0x26c] ss:$16 sps:$4 sm:$0xff]  }
 0x1f3   :  { %v11042_v54 = vadd.f32 %v11041_v53, %v11040_v48  ;;  %v11059_v55 = vpop.f32.mrf.mxu0 }
 0x1f4   :  { %v11123_v56 = vpop.f32.mrf.mxu1 }
 0x1f5   :  { %v903_v59 = vadd.f32 %v11042_v54, %v10978_v52  ;;  %v11060_v60 = vpop.f32.mrf.mxu0 }
 0x1f6   :  { %v11124_v61 = vpop.f32.mrf.mxu1  ;;  %v11061_v1 = vadd.f32 %v11060_v60, %v11059_v55 }
 0x1f7   :  { %v11062_v62 = vpop.f32.mrf.mxu0  ;;  %v913_v63 = vpack.c.bf16 %v903_v59, %v900_v58  ;;  %v11125_v3 = vadd.f32 %v11124_v61, %v11123_v56  ;;  %v14551_v59 = vld [vmem:[%s17423_s22 + $0x58] sm:$0xff]  }
 0x1f8   :  { %v11126_v0 = vpop.f32.mrf.mxu1 }
 0x1f9   :  { %12659 = vmatmul.mubr.bf16.gmra.mxu1 %v913_v63  ;;  %v11063_v4 = vpop.f32.mrf.mxu0  ;;  %v1255_v12 = vadd.f32 %v11125_v3, %v11061_v1 }
 0x1fa   :  { %v11064_v5 = vadd.f32 %v11063_v4, %v11062_v62  ;;  %v11127_v6 = vpop.f32.mrf.mxu1  ;;  %1954 = vmatprep.mubr.bf16.mxu1 %v13900_v57  ;;  %v14550_v57 = vld [vmem:[%s17423_s22 + $0x20] sm:$0xff]   ;;  %v13918_v4 = vld [vmem:[#allocation3 + $0x268] ss:$16 sps:$4 sm:$0xff]  }
 0x1fb   :  { %v11128_v7 = vadd.f32 %v11127_v6, %v11126_v0  ;;  %v11065_v8 = vpop.f32.mrf.mxu0 }
 0x1fc   :  { %v11129_v10 = vpop.f32.mrf.mxu1 }
 0x1fd   :  { %v1258_v13 = vadd.f32 %v11128_v7, %v11064_v5  ;;  %v11066_v14 = vpop.f32.mrf.mxu0  ;;  %v14552_v5 = vld [vmem:[%s17423_s22 + $0x18] sm:$0xff]  }
 0x1fe   :  { %v11130_v15 = vpop.f32.mrf.mxu1  ;;  %v11067_v19 = vadd.f32 %v11066_v14, %v11065_v8  ;;  %v13922_v7 = vld [vmem:[#allocation3 + $0x28c] ss:$16 sps:$4 sm:$0xff]  }
 0x1ff   :  { %v11068_v16 = vpop.f32.mrf.mxu0  ;;  %v1317_v17 = vpack.c.bf16 %v1258_v13, %v1255_v12  ;;  %v11131_v20 = vadd.f32 %v11130_v15, %v11129_v10  ;;  %v14553_v8 = vld [vmem:[%s17423_s22 + $0x50] sm:$0xff]  }
 0x200   :  { %v11132_v18 = vpop.f32.mrf.mxu1  ;;  %v14554_v15 = vld [vmem:[%s17423_s22 + $0x10] sm:$0xff]  }
 0x201   :  { %12614 = vmatprep.mubr.bf16.mxu0 %v1317_v17  ;;  %v11069_v21 = vpop.f32.mrf.mxu0  ;;  %1955 = vmatmul.mubr.bf16.vlgmr.msra.gmra.mxu1 %v13898_v9  ;;  %v1263_v31 = vadd.f32 %v11131_v20, %v11067_v19  ;;  %v15493_v17 = vld [vmem:[%s17423_s22 + $0x48] sm:$0xff]  }
 0x202   :  { %v11070_v22 = vadd.f32 %v11069_v21, %v11068_v16  ;;  %v11133_v23 = vpop.f32.mrf.mxu1  ;;  %1962 = vmatprep.mubr.bf16.mxu1 %v13904_v11  ;;  %11348 = vmatpush3.bf16.msra.mxu1 %v14544_v24 }
 0x203   :  { %v11134_v25 = vadd.f32 %v11133_v23, %v11132_v18  ;;  %v11071_v26 = vpop.f32.mrf.mxu0  ;;  %11349 = vmatprep.subr.bf16.mxu1 %v14545_v28 }
 0x204   :  { %v11135_v29 = vpop.f32.mrf.mxu1 }
 0x205   :  { %v1266_v32 = vadd.f32 %v11134_v25, %v11070_v22  ;;  %v11072_v33 = vpop.f32.mrf.mxu0  ;;  %v13924_v25 = vld [vmem:[#allocation3 + $0x288] ss:$16 sps:$4 sm:$0xff]  }
 0x206   :  { %v11136_v34 = vpop.f32.mrf.mxu1  ;;  %11350 = vmatpush3.bf16.msra.mxu1 %v14546_v35  ;;  %v11073_v2 = vadd.f32 %v11072_v33, %v11071_v26  ;;  %v15499_v26 = vld [vmem:[%s17423_s22 + $0x8] sm:$0xff]  }
 0x207   :  { %v1318_v36 = vpack.c.bf16 %v1266_v32, %v1263_v31  ;;  %v11074_v37 = vpop.f32.mrf.mxu0  ;;  %11351 = vmatprep.subr.bf16.mxu1 %v14547_v38  ;;  %v11137_v40 = vadd.f32 %v11136_v34, %v11135_v29  ;;  %v15505_v29 = vld [vmem:[%s17423_s22 + $0x40] sm:$0xff]  }
 0x208   :  { %v11138_v39 = vpop.f32.mrf.mxu1 }
 0x209   :  { %12615 = vmatmul.mubr.bf16.vlgmr.msra.gmra.mxu0 %v1318_v36  ;;  %v11075_v41 = vpop.f32.mrf.mxu0  ;;  %1963 = vmatmul.mubr.bf16.gmra.mxu1 %v13906_v27  ;;  %v1271_v49 = vadd.f32 %v11137_v40, %v11073_v2  ;;  %v15512_v36 = vld [vmem:[%s17423_s22] sm:$0xff]  }
 0x20a   :  { %v11076_v42 = vadd.f32 %v11075_v41, %v11074_v37  ;;  %v11139_v43 = vpop.f32.mrf.mxu1  ;;  %11204 = vmatpush3.bf16.msra.mxu0 %v14544_v24  ;;  %1970 = vmatprep.mubr.bf16.mxu1 %v13910_v30 }
 0x20b   :  { %v11140_v44 = vadd.f32 %v11139_v43, %v11138_v39  ;;  %v11077_v45 = vpop.f32.mrf.mxu0  ;;  %11205 = vmatprep.subr.bf16.mxu0 %v14545_v28  ;;  %11352 = vmatpush3.bf16.msra.mxu1 %v14548_v47  ;;  %v13928_v28 = vld [vmem:[#allocation3 + $0x2ac] ss:$16 sps:$4 sm:$0xff]  }
 0x20c   :  { %v11141_v48 = vpop.f32.mrf.mxu1  ;;  %11353 = vmatprep.subr.bf16.mxu1 %v14549_v51 }
 0x20d   :  { %v1274_v52 = vadd.f32 %v11140_v44, %v11076_v42  ;;  %v11078_v53 = vpop.f32.mrf.mxu0  ;;  %v13930_v44 = vld [vmem:[#allocation3 + $0x2a8] ss:$16 sps:$4 sm:$0xff]  }
 0x20e   :  { %v11142_v54 = vpop.f32.mrf.mxu1  ;;  %11206 = vmatpush3.bf16.msra.mxu0 %v14546_v35  ;;  %v11079_v60 = vadd.f32 %v11078_v53, %v11077_v45 }
 0x20f   :  { %v11080_v55 = vpop.f32.mrf.mxu0  ;;  %v1319_v56 = vpack.c.bf16 %v1274_v52, %v1271_v49  ;;  %11207 = vmatprep.subr.bf16.mxu0 %v14547_v38  ;;  %11354 = vmatpush3.bf16.msra.mxu1 %v14550_v57  ;;  %v11143_v61 = vadd.f32 %v11142_v54, %v11141_v48 }
 0x210   :  { %v11144_v58 = vpop.f32.mrf.mxu1  ;;  %11355 = vmatprep.subr.bf16.mxu1 %v14551_v59 }
 0x211   :  { %12618 = vmatprep.mubr.bf16.mxu0 %v1319_v56  ;;  %v11081_v62 = vpop.f32.mrf.mxu0  ;;  %1971 = vmatmul.mubr.bf16.gmra.mxu1 %v13912_v46  ;;  %v1279_v9 = vadd.f32 %v11143_v61, %v11079_v60  ;;  %v13934_v46 = vld [vmem:[#allocation3 + $0x2cc] ss:$16 sps:$4 sm:$0xff]   ;;  %v13936_v61 = vld [vmem:[#allocation3 + $0x2c8] ss:$16 sps:$4 sm:$0xff]  }
 0x212   :  { %v11082_v63 = vadd.f32 %v11081_v62, %v11080_v55  ;;  %v11145_v0 = vpop.f32.mrf.mxu1  ;;  %11208 = vmatpush3.bf16.msra.mxu0 %v14548_v47  ;;  %1978 = vmatprep.mubr.bf16.mxu1 %v13916_v50 }
 0x213   :  { %v11146_v1 = vadd.f32 %v11145_v0, %v11144_v58  ;;  %v11083_v3 = vpop.f32.mrf.mxu0  ;;  %11209 = vmatprep.subr.bf16.mxu0 %v14549_v51  ;;  %11356 = vmatpush3.bf16.msra.mxu1 %v14552_v5 }
 0x214   :  { %v11147_v6 = vpop.f32.mrf.mxu1  ;;  %11357 = vmatprep.subr.bf16.mxu1 %v14553_v8 }
 0x215   :  { %v1282_v10 = vadd.f32 %v11146_v1, %v11082_v63  ;;  %v11084_v11 = vpop.f32.mrf.mxu0  ;;  %v13940_v63 = vld [vmem:[#allocation3 + $0x2ec] ss:$16 sps:$4 sm:$0xff]  }
 0x216   :  { %v11148_v12 = vpop.f32.mrf.mxu1  ;;  %11210 = vmatpush3.bf16.msra.mxu0 %v14550_v57  ;;  %v11085_v18 = vadd.f32 %v11084_v11, %v11083_v3 }
 0x217   :  { %v11086_v13 = vpop.f32.mrf.mxu0  ;;  %v1320_v14 = vpack.c.bf16 %v1282_v10, %v1279_v9  ;;  %11211 = vmatprep.subr.bf16.mxu0 %v14551_v59  ;;  %11358 = vmatpush3.bf16.msra.mxu1 %v14554_v15  ;;  %v11149_v19 = vadd.f32 %v11148_v12, %v11147_v6 }
 0x218   :  { %v11150_v16 = vpop.f32.mrf.mxu1  ;;  %11359 = vmatprep.subr.bf16.mxu1 %v15493_v17 }
 0x219   :  { %12619 = vmatmul.mubr.bf16.gmra.mxu0 %v1320_v14  ;;  %v11087_v20 = vpop.f32.mrf.mxu0  ;;  %1979 = vmatmul.mubr.bf16.gmra.mxu1 %v13918_v4  ;;  %v1287_v30 = vadd.f32 %v11149_v19, %v11085_v18  ;;  %v13942_v14 = vld [vmem:[#allocation3 + $0x2e8] ss:$16 sps:$4 sm:$0xff]  }
 0x21a   :  { %v11088_v21 = vadd.f32 %v11087_v20, %v11086_v13  ;;  %v11151_v22 = vpop.f32.mrf.mxu1  ;;  %11212 = vmatpush3.bf16.msra.mxu0 %v14552_v5  ;;  %1986 = vmatprep.mubr.bf16.mxu1 %v13922_v7  ;;  %v13901_v20 = vld [vmem:[#allocation3 + $0x200] ss:$16 sps:$4 sm:$0xff]  }
 0x21b   :  { %v11152_v23 = vadd.f32 %v11151_v22, %v11150_v16  ;;  %v11089_v24 = vpop.f32.mrf.mxu0  ;;  %11213 = vmatprep.subr.bf16.mxu0 %v14553_v8  ;;  %11360 = vmatpush3.bf16.msra.mxu1 %v15499_v26  ;;  %v13909_v22 = vld [vmem:[#allocation3 + $0x220] ss:$16 sps:$4 sm:$0xff]  }
 0x21c   :  { %v11153_v27 = vpop.f32.mrf.mxu1  ;;  %11361 = vmatprep.subr.bf16.mxu1 %v15505_v29 }
 0x21d   :  { %v1290_v31 = vadd.f32 %v11152_v23, %v11088_v21  ;;  %v11090_v32 = vpop.f32.mrf.mxu0  ;;  %v13907_v21 = vld [vmem:[#allocation3 + $0x224] ss:$16 sps:$4 sm:$0xff]  }
 0x21e   :  { %v11154_v33 = vpop.f32.mrf.mxu1  ;;  %11214 = vmatpush3.bf16.msra.mxu0 %v14554_v15  ;;  %v11091_v38 = vadd.f32 %v11090_v32, %v11089_v24  ;;  %v13903_v15 = vld [vmem:[#allocation3 + $0x204] ss:$16 sps:$4 sm:$0xff]   ;;  %v13915_v24 = vld [vmem:[#allocation3 + $0x240] ss:$16 sps:$4 sm:$0xff]  }
 0x21f   :  { %v11092_v34 = vpop.f32.mrf.mxu0  ;;  %v1321_v35 = vpack.c.bf16 %v1290_v31, %v1287_v30  ;;  %11215 = vmatprep.subr.bf16.mxu0 %v15493_v17  ;;  %11362 = vmatpush3.bf16.msra.mxu1 %v15512_v36  ;;  %v11155_v39 = vadd.f32 %v11154_v33, %v11153_v27  ;;  %v13913_v23 = vld [vmem:[#allocation3 + $0x244] ss:$16 sps:$4 sm:$0xff]   ;;  %v13921_v27 = vld [vmem:[#allocation3 + $0x260] ss:$16 sps:$4 sm:$0xff]  }
 0x220   :  { %v11156_v37 = vpop.f32.mrf.mxu1  ;;  %v13927_v30 = vld [vmem:[#allocation3 + $0x280] ss:$16 sps:$4 sm:$0xff]   ;;  %v13931_v31 = vld [vmem:[#allocation3 + $0x2a4] ss:$16 sps:$4 sm:$0xff]  }
 0x221   :  { %12622 = vmatprep.mubr.bf16.mxu0 %v1321_v35  ;;  %v11093_v2 = vpop.f32.mrf.mxu0  ;;  %1987 = vmatmul.mubr.bf16.gmra.mxu1 %v13924_v25  ;;  %v1295_v47 = vadd.f32 %v11155_v39, %v11091_v38  ;;  %v13919_v25 = vld [vmem:[#allocation3 + $0x264] ss:$16 sps:$4 sm:$0xff]   ;;  %v13933_v32 = vld [vmem:[#allocation3 + $0x2a0] ss:$16 sps:$4 sm:$0xff]  }
 0x222   :  { %v11094_v40 = vadd.f32 %v11093_v2, %v11092_v34  ;;  %v11157_v41 = vpop.f32.mrf.mxu1  ;;  %11216 = vmatpush3.bf16.msra.mxu0 %v15499_v26  ;;  %1994 = vmatprep.mubr.bf16.mxu1 %v13928_v28  ;;  %v13925_v28 = vld [vmem:[#allocation3 + $0x284] ss:$16 sps:$4 sm:$0xff]   ;;  %v13939_v34 = vld [vmem:[#allocation3 + $0x2c0] ss:$16 sps:$4 sm:$0xff]   ;;  %v13948_v2 = vld [vmem:[#allocation5 + $0xa8] sm:$0xff]  }
 0x223   :  { %v11158_v42 = vadd.f32 %v11157_v41, %v11156_v37  ;;  %v11095_v43 = vpop.f32.mrf.mxu0  ;;  %11217 = vmatprep.subr.bf16.mxu0 %v15505_v29  ;;  %v13937_v33 = vld [vmem:[#allocation3 + $0x2c4] ss:$16 sps:$4 sm:$0xff]   ;;  %v13946_v37 = vld [vmem:[#allocation5 + $0xb8] sm:$0xff]   ;;  %v13945_v38 = vld [vmem:[#allocation3 + $0x2e0] ss:$16 sps:$4 sm:$0xff]  }
 0x224   :  { %v11159_v45 = vpop.f32.mrf.mxu1  ;;  %v13943_v35 = vld [vmem:[#allocation3 + $0x2e4] ss:$16 sps:$4 sm:$0xff]   ;;  %v13950_v41 = vld [vmem:[#allocation5 + $0x98] sm:$0xff]  }
 0x225   :  { %v1298_v48 = vadd.f32 %v11158_v42, %v11094_v40  ;;  %v11096_v50 = vpop.f32.mrf.mxu0  ;;  %v13947_v39 = vld [vmem:[#allocation5 + $0xb0] sm:$0xff]   ;;  %v13949_v40 = vld [vmem:[#allocation5 + $0xa0] sm:$0xff]  }
 0x226   :  { %v11160_v51 = vpop.f32.mrf.mxu1  ;;  %11218 = vmatpush3.bf16.msra.mxu0 %v15512_v36  ;;  %v11097_v54 = vadd.f32 %v11096_v50, %v11095_v43  ;;  %v13951_v42 = vld [vmem:[#allocation5 + $0x90] sm:$0xff]   ;;  %v13952_v43 = vld [vmem:[#allocation5 + $0x88] sm:$0xff]  }
 0x227   :  { %v11098_v49 = vpop.f32.mrf.mxu0  ;;  %v1322_v52 = vpack.c.bf16 %v1298_v48, %v1295_v47  ;;  %v11161_v55 = vadd.f32 %v11160_v51, %v11159_v45  ;;  %12662 = vmatprep.subr.bf16.mxu0 %v13946_v37  ;;  %v13953_v45 = vld [vmem:[#allocation5 + $0x80] sm:$0xff]   ;;  %v15521_v47 = vld [vmem:[%s17423_s22 + $0xf8] sm:$0xff]  }
 0x228   :  { %v11162_v53 = vpop.f32.mrf.mxu1 }
 0x229   :  { %12623 = vmatmul.mubr.bf16.gmra.mxu0 %v1322_v52  ;;  %v11099_v56 = vpop.f32.mrf.mxu0  ;;  %1995 = vmatmul.mubr.bf16.gmra.mxu1 %v13930_v44  ;;  %v1303_v0 = vadd.f32 %v11161_v55, %v11097_v54 }
 0x22a   :  { %v11100_v57 = vadd.f32 %v11099_v56, %v11098_v49  ;;  %v11163_v58 = vpop.f32.mrf.mxu1  ;;  %2002 = vmatprep.mubr.bf16.mxu1 %v13934_v46 }
 0x22b   :  { %v11164_v59 = vadd.f32 %v11163_v58, %v11162_v53  ;;  %v11101_v60 = vpop.f32.mrf.mxu0 }
 0x22c   :  { %v11165_v62 = vpop.f32.mrf.mxu1 }
 0x22d   :  { %v1306_v1 = vadd.f32 %v11164_v59, %v11100_v57  ;;  %v11102_v3 = vpop.f32.mrf.mxu0 }
 0x22e   :  { %v11166_v4 = vpop.f32.mrf.mxu1  ;;  %v11103_v8 = vadd.f32 %v11102_v3, %v11101_v60 }
 0x22f   :  { %v11104_v5 = vpop.f32.mrf.mxu0  ;;  %v1323_v6 = vpack.c.bf16 %v1306_v1, %v1303_v0  ;;  %v11167_v9 = vadd.f32 %v11166_v4, %v11165_v62  ;;  %v13956_v0 = vld [vmem:[#allocation3 + $0x304] ss:$16 sps:$4 sm:$0xff]   ;;  %v13954_v1 = vld [vmem:[#allocation3 + $0x300] ss:$16 sps:$4 sm:$0xff]  }
 0x230   :  { %v11168_v7 = vpop.f32.mrf.mxu1 }
 0x231   :  { %12626 = vmatprep.mubr.bf16.mxu0 %v1323_v6  ;;  %v11105_v10 = vpop.f32.mrf.mxu0  ;;  %2003 = vmatmul.mubr.bf16.gmra.mxu1 %v13936_v61  ;;  %v1311_v16 = vadd.f32 %v11167_v9, %v11103_v8 }
 0x232   :  { %v11106_v11 = vadd.f32 %v11105_v10, %v11104_v5  ;;  %v11169_v12 = vpop.f32.mrf.mxu1  ;;  %2010 = vmatprep.mubr.bf16.mxu1 %v13940_v63  ;;  %v13962_v10 = vld [vmem:[#allocation3 + $0x324] ss:$16 sps:$4 sm:$0xff]  }
 0x233   :  { %v11170_v13 = vadd.f32 %v11169_v12, %v11168_v7  ;;  %v13960_v12 = vld [vmem:[#allocation3 + $0x320] ss:$16 sps:$4 sm:$0xff]  }
 0x235   :  { %v1314_v18 = vadd.f32 %v11170_v13, %v11106_v11 }
 0x237   :  { %v1324_v19 = vpack.c.bf16 %v1314_v18, %v1311_v16  ;;  %v13966_v16 = vld [vmem:[#allocation3 + $0x340] ss:$16 sps:$4 sm:$0xff]  }
 0x239   :  { %12627 = vmatmul.mubr.bf16.gmra.mxu0 %v1324_v19  ;;  %2011 = vmatmul.mubr.bf16.gmra.mxu1 %v13942_v14 }
 0x23a   :  { %1857 = vmatprep.mubr.bf16.mxu0 %v13903_v15  ;;  %2430 = vmatprep.mubr.bf16.mxu1 %v13956_v0  ;;  %v13968_v15 = vld [vmem:[#allocation3 + $0x344] ss:$16 sps:$4 sm:$0xff]  }
 0x241   :  { %1858 = vmatmul.mubr.bf16.vlgmr.msra.gmra.mxu0 %v13901_v20  ;;  %2431 = vmatmul.mubr.bf16.vlgmr.msra.gmra.mxu1 %v13954_v1 }
 0x242   :  { %1865 = vmatprep.mubr.bf16.mxu0 %v13907_v21  ;;  %12663 = vmatpush3.bf16.msra.mxu0 %v13946_v37 }
 0x243   :  { %12664 = vmatprep.subr.bf16.mxu0 %v13947_v39  ;;  %2438 = vmatprep.mubr.bf16.mxu1 %v13962_v10 }
 0x246   :  { %12665 = vmatpush3.bf16.msra.mxu0 %v13947_v39 }
 0x247   :  { %12666 = vmatprep.subr.bf16.mxu0 %v13948_v2 }
 0x249   :  { %1866 = vmatmul.mubr.bf16.gmra.mxu0 %v13909_v22  ;;  %2439 = vmatmul.mubr.bf16.gmra.mxu1 %v13960_v12  ;;  %v13996_v12 = vld [vmem:[#allocation3 + $0x3e0] ss:$16 sps:$4 sm:$0xff]  }
 0x24a   :  { %1873 = vmatprep.mubr.bf16.mxu0 %v13913_v23  ;;  %12667 = vmatpush3.bf16.msra.mxu0 %v13948_v2 }
 0x24b   :  { %12668 = vmatprep.subr.bf16.mxu0 %v13949_v40  ;;  %2446 = vmatprep.mubr.bf16.mxu1 %v13968_v15 }
 0x24e   :  { %12669 = vmatpush3.bf16.msra.mxu0 %v13949_v40 }
 0x24f   :  { %12670 = vmatprep.subr.bf16.mxu0 %v13950_v41 }
 0x251   :  { %1874 = vmatmul.mubr.bf16.gmra.mxu0 %v13915_v24  ;;  %2447 = vmatmul.mubr.bf16.gmra.mxu1 %v13966_v16 }
 0x252   :  { %1881 = vmatprep.mubr.bf16.mxu0 %v13919_v25  ;;  %12671 = vmatpush3.bf16.msra.mxu0 %v13950_v41 }
 0x253   :  { %12672 = vmatprep.subr.bf16.mxu0 %v13951_v42 }
 0x256   :  { %12673 = vmatpush3.bf16.msra.mxu0 %v13951_v42 }
 0x257   :  { %12674 = vmatprep.subr.bf16.mxu0 %v13952_v43 }
 0x259   :  { %1882 = vmatmul.mubr.bf16.gmra.mxu0 %v13921_v27  ;;  %v13974_v27 = vld [vmem:[#allocation3 + $0x364] ss:$16 sps:$4 sm:$0xff]  }
 0x25a   :  { %1889 = vmatprep.mubr.bf16.mxu0 %v13925_v28  ;;  %12675 = vmatpush3.bf16.msra.mxu0 %v13952_v43  ;;  %v13986_v43 = vld [vmem:[#allocation3 + $0x3a4] ss:$16 sps:$4 sm:$0xff]  }
 0x25b   :  { %12676 = vmatprep.subr.bf16.mxu0 %v13953_v45  ;;  %2454 = vmatprep.mubr.bf16.mxu1 %v13974_v27 }
 0x25e   :  { %12677 = vmatpush3.bf16.msra.mxu0 %v13953_v45  ;;  %v13984_v45 = vld [vmem:[#allocation3 + $0x3a0] ss:$16 sps:$4 sm:$0xff]  }
 0x25f   :  { %11411 = vmatprep.subr.bf16.mxu0 %v15521_v47 }
 0x261   :  { %1890 = vmatmul.mubr.bf16.gmra.mxu0 %v13927_v30  ;;  %v13972_v30 = vld [vmem:[#allocation3 + $0x360] ss:$16 sps:$4 sm:$0xff]  }
 0x262   :  { %1897 = vmatprep.mubr.bf16.mxu0 %v13931_v31  ;;  %2455 = vmatmul.mubr.bf16.gmra.mxu1 %v13972_v30 }
 0x269   :  { %1898 = vmatmul.mubr.bf16.gmra.mxu0 %v13933_v32 }
 0x26a   :  { %1905 = vmatprep.mubr.bf16.mxu0 %v13937_v33  ;;  %v13980_v33 = vld [vmem:[#allocation3 + $0x384] ss:$16 sps:$4 sm:$0xff]  }
 0x26b   :  { %2462 = vmatprep.mubr.bf16.mxu1 %v13980_v33 }
 0x271   :  { %1906 = vmatmul.mubr.bf16.gmra.mxu0 %v13939_v34  ;;  %v13978_v34 = vld [vmem:[#allocation3 + $0x380] ss:$16 sps:$4 sm:$0xff]  }
 0x272   :  { %1913 = vmatprep.mubr.bf16.mxu0 %v13943_v35  ;;  %2463 = vmatmul.mubr.bf16.gmra.mxu1 %v13978_v34 }
 0x273   :  { %2470 = vmatprep.mubr.bf16.mxu1 %v13986_v43 }
 0x279   :  { %1914 = vmatmul.mubr.bf16.gmra.mxu0 %v13945_v38 }
 0x27a   :  { %2471 = vmatmul.mubr.bf16.gmra.mxu1 %v13984_v45 }
 0x289   :  { %v12648_v44 = vpop.f32.mrf.mxu1 }
 0x28b   :  { %v1569_v46 = vpop.f32.mrf.mxu1 }
 0x28d   :  { %v12649_v48 = vpop.f32.mrf.mxu1 }
 0x28f   :  { %v15524_v50 = vpop.f32.mrf.mxu1 }
 0x290   :  { %17424 = vst [vmem:[#allocation37_spill] sm:$0xff] %v15524_v50 }
 0x299   :  { %v12652_v51 = vpop.f32.mrf.mxu1 }
 0x29b   :  { %v1585_v49 = vpop.f32.mrf.mxu1 }
 0x29d   :  { %v12653_v52 = vpop.f32.mrf.mxu1 }
 0x29f   :  { %v15526_v53 = vpop.f32.mrf.mxu1 }
 0x2a0   :  { %17425 = vst [vmem:[#allocation38_spill] sm:$0xff] %v15526_v53 }
 0x2a9   :  { %v12656_v54 = vpop.f32.mrf.mxu1 }
 0x2ab   :  { %v1601_v55 = vpop.f32.mrf.mxu1 }
 0x2ad   :  { %v12657_v56 = vpop.f32.mrf.mxu1 }
 0x2af   :  { %v15528_v57 = vpop.f32.mrf.mxu1 }
 0x2b0   :  { %17426 = vst [vmem:[#allocation39_spill] sm:$0xff] %v15528_v57 }
 0x2b9   :  { %v15530_v58 = vpop.f32.mrf.mxu1 }
 0x2bb   :  { %v15532_v59 = vpop.f32.mrf.mxu1 }
 0x2bd   :  { %v15534_v60 = vpop.f32.mrf.mxu1 }
 0x2bf   :  { %v15536_v61 = vpop.f32.mrf.mxu1 }
 0x2c0   :  { %17427 = vst [vmem:[#allocation40_spill] sm:$0xff] %v15536_v61 }
 0x2c1   :  { %v15538_v62 = vpop.f32.mrf.mxu1 }
 0x2c3   :  { %v15540_v63 = vpop.f32.mrf.mxu1 }
 0x2c4   :  { %v11285_v30 = vadd.f32 %v15540_v63, %v15538_v62 }
 0x2c5   :  { %v15542_v4 = vpop.f32.mrf.mxu1 }
 0x2c7   :  { %v15548_v9 = vpop.f32.mrf.mxu1 }
 0x2c9   :  { %v12616_v3 = vpop.f32.mrf.mxu0  ;;  %v15552_v13 = vpop.f32.mrf.mxu1 }
 0x2ca   :  { %v15544_v5 = vadd.f32 %v12648_v44, %v12616_v3 }
 0x2cb   :  { %v1424_v6 = vpop.f32.mrf.mxu0  ;;  %v15554_v14 = vpop.f32.mrf.mxu1 }
 0x2cc   :  { %v15546_v7 = vadd.f32 %v1569_v46, %v1424_v6  ;;  %v11291_v62 = vadd.f32 %v15554_v14, %v15552_v13  ;;  %v15628_v13 = vld [vmem:[%s17423_s22 + $0xb8] sm:$0xff]  }
 0x2cd   :  { %v12617_v8 = vpop.f32.mrf.mxu0  ;;  %v15558_v20 = vpop.f32.mrf.mxu1 }
 0x2ce   :  { %v15550_v11 = vadd.f32 %v12649_v48, %v12617_v8  ;;  %v13998_v8 = vld [vmem:[#allocation3 + $0x3e4] ss:$16 sps:$4 sm:$0xff]  }
 0x2cf   :  { %v15556_v18 = vpop.f32.mrf.mxu0  ;;  %v15564_v25 = vpop.f32.mrf.mxu1 }
 0x2d0   :  { %17428 = vst [vmem:[#allocation41_spill] sm:$0xff] %v15556_v18  ;;  %v11294_v63 = vadd.f32 %v15564_v25, %v15558_v20 }
 0x2d1   :  { %v15568_v31 = vpop.f32.mrf.mxu1 }
 0x2d3   :  { %v15570_v32 = vpop.f32.mrf.mxu1 }
 0x2d4   :  { %v11297_v14 = vadd.f32 %v15570_v32, %v15568_v31  ;;  %v15644_v31 = vld [vmem:[%s17423_s22 + $0xb0] sm:$0xff]  }
 0x2d5   :  { %v15574_v38 = vpop.f32.mrf.mxu1 }
 0x2d7   :  { %v15580_v42 = vpop.f32.mrf.mxu1 }
 0x2d8   :  { %v11300_v20 = vadd.f32 %v15580_v42, %v15574_v38  ;;  %v15650_v38 = vld [vmem:[%s17423_s22 + $0xe8] sm:$0xff]  }
 0x2d9   :  { %v12620_v19 = vpop.f32.mrf.mxu0  ;;  %v15584_v46 = vpop.f32.mrf.mxu1 }
 0x2da   :  { %v15560_v21 = vadd.f32 %v12652_v51, %v12620_v19  ;;  %v13992_v51 = vld [vmem:[#allocation3 + $0x3c4] ss:$16 sps:$4 sm:$0xff]  }
 0x2db   :  { %v1440_v22 = vpop.f32.mrf.mxu0  ;;  %v15586_v48 = vpop.f32.mrf.mxu1  ;;  %2478 = vmatprep.mubr.bf16.mxu1 %v13992_v51 }
 0x2dc   :  { %v15562_v23 = vadd.f32 %v1585_v49, %v1440_v22  ;;  %v13990_v49 = vld [vmem:[#allocation3 + $0x3c0] ss:$16 sps:$4 sm:$0xff]  }
 0x2dd   :  { %v12621_v24 = vpop.f32.mrf.mxu0  ;;  %2479 = vmatmul.mubr.bf16.gmra.mxu1 %v13990_v49 }
 0x2de   :  { %v15566_v28 = vadd.f32 %v12653_v52, %v12621_v24  ;;  %2486 = vmatprep.mubr.bf16.mxu1 %v13998_v8 }
 0x2df   :  { %v15572_v35 = vpop.f32.mrf.mxu0 }
 0x2e0   :  { %17429 = vst [vmem:[#allocation42_spill] sm:$0xff] %v15572_v35 }
 0x2e5   :  { %2487 = vmatmul.mubr.bf16.gmra.mxu1 %v13996_v12 }
 0x2e9   :  { %v12624_v37 = vpop.f32.mrf.mxu0 }
 0x2ea   :  { %v15576_v39 = vadd.f32 %v12656_v54, %v12624_v37 }
 0x2eb   :  { %v1456_v2 = vpop.f32.mrf.mxu0 }
 0x2ec   :  { %v15578_v40 = vadd.f32 %v1601_v55, %v1456_v2  ;;  %v15590_v55 = vpop.f32.mrf.mxu1 }
 0x2ed   :  { %v12625_v41 = vpop.f32.mrf.mxu0 }
 0x2ee   :  { %v15582_v44 = vadd.f32 %v12657_v56, %v12625_v41  ;;  %v15598_v6 = vpop.f32.mrf.mxu1 }
 0x2ef   :  { %v15588_v52 = vpop.f32.mrf.mxu0 }
 0x2f0   :  { %17430 = vst [vmem:[#allocation43_spill] sm:$0xff] %v15588_v52  ;;  %v15605_v19 = vpop.f32.mrf.mxu1  ;;  %v14054_v52 = vld [vmem:[#allocation3 + $0x4e4] ss:$16 sps:$4 sm:$0xff]  }
 0x2f2   :  { %v15607_v24 = vpop.f32.mrf.mxu1 }
 0x2f4   :  { %v15613_v37 = vpop.f32.mrf.mxu1 }
 0x2f6   :  { %v15615_v49 = vpop.f32.mrf.mxu1 }
 0x2f9   :  { %v12628_v54 = vpop.f32.mrf.mxu0 }
 0x2fa   :  { %v15593_v0 = vadd.f32 %v15530_v58, %v12628_v54 }
 0x2fb   :  { %v1472_v56 = vpop.f32.mrf.mxu0 }
 0x2fc   :  { %v15596_v1 = vadd.f32 %v15532_v59, %v1472_v56 }
 0x2fd   :  { %v12629_v3 = vpop.f32.mrf.mxu0 }
 0x2fe   :  { %v15601_v10 = vadd.f32 %v15534_v60, %v12629_v3  ;;  %v11288_v60 = vadd.f32 %v15548_v9, %v15542_v4  ;;  %v15621_v3 = vpop.f32.mrf.mxu1 }
 0x2ff   :  { %v15603_v15 = vpop.f32.mrf.mxu0 }
 0x300   :  { %17431 = vst [vmem:[#allocation44_spill] sm:$0xff] %v15603_v15 }
 0x301   :  { %v11219_v16 = vpop.f32.mrf.mxu0 }
 0x303   :  { %v11220_v58 = vpop.f32.mrf.mxu0 }
 0x304   :  { %v11221_v59 = vadd.f32 %v11220_v58, %v11219_v16 }
 0x305   :  { %v11222_v22 = vpop.f32.mrf.mxu0 }
 0x306   :  { %v1957_v2 = vadd.f32 %v11285_v30, %v11221_v59  ;;  %v15623_v59 = vpop.f32.mrf.mxu1 }
 0x307   :  { %v11223_v27 = vpop.f32.mrf.mxu0 }
 0x308   :  { %v11224_v33 = vadd.f32 %v11223_v27, %v11222_v22 }
 0x309   :  { %v11225_v34 = vpop.f32.mrf.mxu0 }
 0x30a   :  { %v1960_v41 = vadd.f32 %v11288_v60, %v11224_v33  ;;  %v15638_v60 = vld [vmem:[%s17423_s22 + $0xf0] sm:$0xff]  }
 0x30b   :  { %v11226_v43 = vpop.f32.mrf.mxu0 }
 0x30c   :  { %v2019_v45 = vpack.c.bf16 %v1960_v41, %v1957_v2  ;;  %v11227_v54 = vadd.f32 %v11226_v43, %v11225_v34  ;;  %v11316_v34 = vpop.f32.mrf.mxu1 }
 0x30d   :  { %v11228_v51 = vpop.f32.mrf.mxu0 }
 0x30e   :  { %12678 = vmatprep.mubr.bf16.mxu0 %v2019_v45  ;;  %v1965_v8 = vadd.f32 %v11291_v62, %v11227_v54  ;;  %v11317_v45 = vpop.f32.mrf.mxu1  ;;  %v11303_v62 = vadd.f32 %v15586_v48, %v15584_v46  ;;  %v15672_v46 = vld [vmem:[%s17423_s22 + $0xa0] sm:$0xff]  }
 0x30f   :  { %v11229_v56 = vpop.f32.mrf.mxu0 }
 0x310   :  { %v11230_v4 = vadd.f32 %v11229_v56, %v11228_v51  ;;  %v15656_v56 = vld [vmem:[%s17423_s22 + $0xa8] sm:$0xff]  }
 0x311   :  { %v11231_v9 = vpop.f32.mrf.mxu0 }
 0x312   :  { %v1968_v12 = vadd.f32 %v11294_v63, %v11230_v4  ;;  %v11306_v63 = vadd.f32 %v15598_v6, %v15590_v55  ;;  %v15678_v55 = vld [vmem:[%s17423_s22 + $0xd8] sm:$0xff]  }
 0x313   :  { %v11232_v16 = vpop.f32.mrf.mxu0 }
 0x314   :  { %v2020_v58 = vpack.c.bf16 %v1968_v12, %v1965_v8  ;;  %v11233_v27 = vadd.f32 %v11232_v16, %v11231_v9  ;;  %v15666_v9 = vld [vmem:[%s17423_s22 + $0xe0] sm:$0xff]   ;;  %v11319_v12 = vpop.f32.mrf.mxu1 }
 0x315   :  { %v11234_v22 = vpop.f32.mrf.mxu0 }
 0x316   :  { %12679 = vmatmul.mubr.bf16.vlgmr.msra.gmra.mxu0 %v2020_v58  ;;  %v1973_v2 = vadd.f32 %v11297_v14, %v11233_v27  ;;  %v11320_v27 = vpop.f32.mrf.mxu1 }
 0x317   :  { %v11235_v30 = vpop.f32.mrf.mxu0  ;;  %11412 = vmatpush3.bf16.msra.mxu0 %v15628_v13 }
 0x318   :  { %v11236_v25 = vadd.f32 %v11235_v30, %v11234_v22  ;;  %11413 = vmatprep.subr.bf16.mxu0 %v15638_v60 }
 0x319   :  { %v11237_v33 = vpop.f32.mrf.mxu0 }
 0x31a   :  { %v1976_v41 = vadd.f32 %v11300_v20, %v11236_v25  ;;  %v15684_v20 = vld [vmem:[%s17423_s22 + $0x98] sm:$0xff]   ;;  %v11309_v25 = vadd.f32 %v15607_v24, %v15605_v19  ;;  %v15700_v19 = vld [vmem:[%s17423_s22 + $0x90] sm:$0xff]  }
 0x31b   :  { %v11238_v43 = vpop.f32.mrf.mxu0  ;;  %11414 = vmatpush3.bf16.msra.mxu0 %v15644_v31 }
 0x31c   :  { %v2021_v32 = vpack.c.bf16 %v1976_v41, %v1973_v2  ;;  %11415 = vmatprep.subr.bf16.mxu0 %v15650_v38  ;;  %v11239_v51 = vadd.f32 %v11238_v43, %v11237_v33  ;;  %v11312_v33 = vadd.f32 %v15615_v49, %v15613_v37  ;;  %v15694_v41 = vld [vmem:[%s17423_s22 + $0xd0] sm:$0xff]   ;;  %v15706_v37 = vld [vmem:[%s17423_s22 + $0xc8] sm:$0xff]  }
 0x31d   :  { %v11240_v42 = vpop.f32.mrf.mxu0 }
 0x31e   :  { %12682 = vmatprep.mubr.bf16.mxu0 %v2021_v32  ;;  %v1981_v16 = vadd.f32 %v11303_v62, %v11239_v51  ;;  %v11322_v32 = vpop.f32.mrf.mxu1 }
 0x31f   :  { %v11241_v54 = vpop.f32.mrf.mxu0  ;;  %11416 = vmatpush3.bf16.msra.mxu0 %v15656_v56 }
 0x320   :  { %v11242_v4 = vadd.f32 %v11241_v54, %v11240_v42  ;;  %11417 = vmatprep.subr.bf16.mxu0 %v15666_v9  ;;  %v11323_v62 = vpop.f32.mrf.mxu1 }
 0x321   :  { %v11243_v8 = vpop.f32.mrf.mxu0 }
 0x322   :  { %v1984_v58 = vadd.f32 %v11306_v63, %v11242_v4 }
 0x323   :  { %v11244_v22 = vpop.f32.mrf.mxu0  ;;  %11418 = vmatpush3.bf16.msra.mxu0 %v15672_v46 }
 0x324   :  { %v2022_v48 = vpack.c.bf16 %v1984_v58, %v1981_v16  ;;  %11419 = vmatprep.subr.bf16.mxu0 %v15678_v55  ;;  %v11245_v30 = vadd.f32 %v11244_v22, %v11243_v8  ;;  %v15712_v8 = vld [vmem:[%s17423_s22 + $0x88] sm:$0xff]   ;;  %v11315_v16 = vadd.f32 %v15623_v59, %v15621_v3  ;;  %v11318_v58 = vadd.f32 %v11317_v45, %v11316_v34  ;;  %v15732_v59 = vld [vmem:[%s17423_s22 + $0x78] sm:$0xff]  }
 0x325   :  { %v11246_v6 = vpop.f32.mrf.mxu0 }
 0x326   :  { %12683 = vmatmul.mubr.bf16.gmra.mxu0 %v2022_v48  ;;  %v1989_v42 = vadd.f32 %v11309_v25, %v11245_v30  ;;  %v15720_v48 = vld [vmem:[%s17423_s22 + $0xc0] sm:$0xff]   ;;  %v11325_v30 = vpop.f32.mrf.mxu1 }
 0x327   :  { %v11247_v14 = vpop.f32.mrf.mxu0  ;;  %11420 = vmatpush3.bf16.msra.mxu0 %v15684_v20 }
 0x328   :  { %v11248_v2 = vadd.f32 %v11247_v14, %v11246_v6  ;;  %11421 = vmatprep.subr.bf16.mxu0 %v15694_v41  ;;  %v11326_v45 = vpop.f32.mrf.mxu1 }
 0x329   :  { %v11249_v43 = vpop.f32.mrf.mxu0  ;;  %v11327_v53 = vadd.f32 %v11326_v45, %v11325_v30  ;;  %v15762_v30 = vld [vmem:[%s17423_s22 + $0x28] sm:$0xff]  }
 0x32a   :  { %v1992_v51 = vadd.f32 %v11312_v33, %v11248_v2  ;;  %v15726_v2 = vld [vmem:[%s17423_s22 + $0x80] sm:$0xff]   ;;  %v13969_v45 = vld [vmem:[#allocation3 + $0x348] ss:$16 sps:$4 sm:$0xff]  }
 0x32b   :  { %v11250_v54 = vpop.f32.mrf.mxu0  ;;  %11422 = vmatpush3.bf16.msra.mxu0 %v15700_v19 }
 0x32c   :  { %v2023_v24 = vpack.c.bf16 %v1992_v51, %v1989_v42  ;;  %11423 = vmatprep.subr.bf16.mxu0 %v15706_v37  ;;  %v11251_v63 = vadd.f32 %v11250_v54, %v11249_v43  ;;  %v11321_v51 = vadd.f32 %v11320_v27, %v11319_v12  ;;  %v11324_v54 = vadd.f32 %v11323_v62, %v11322_v32  ;;  %v13957_v27 = vld [vmem:[#allocation3 + $0x308] ss:$16 sps:$4 sm:$0xff]   ;;  %v13965_v32 = vld [vmem:[#allocation3 + $0x32c] ss:$16 sps:$4 sm:$0xff]  }
 0x32d   :  { %v11252_v49 = vpop.f32.mrf.mxu0  ;;  %v15738_v62 = vld [vmem:[%s17423_s22 + $0x38] sm:$0xff]  }
 0x32e   :  { %12686 = vmatprep.mubr.bf16.mxu0 %v2023_v24  ;;  %v1997_v14 = vadd.f32 %v11315_v16, %v11251_v63 }
 0x32f   :  { %v11253_v4 = vpop.f32.mrf.mxu0  ;;  %11424 = vmatpush3.bf16.msra.mxu0 %v15712_v8 }
 0x330   :  { %v11254_v22 = vadd.f32 %v11253_v4, %v11252_v49  ;;  %11425 = vmatprep.subr.bf16.mxu0 %v15720_v48  ;;  %v11328_v49 = vpop.f32.mrf.mxu1 }
 0x331   :  { %v11255_v6 = vpop.f32.mrf.mxu0 }
 0x332   :  { %v2000_v25 = vadd.f32 %v11318_v58, %v11254_v22 }
 0x333   :  { %v11256_v33 = vpop.f32.mrf.mxu0  ;;  %11426 = vmatpush3.bf16.msra.mxu0 %v15726_v2 }
 0x334   :  { %v2024_v3 = vpack.c.bf16 %v2000_v25, %v1997_v14  ;;  %11491 = vmatprep.subr.bf16.mxu0 %v15732_v59  ;;  %v11257_v43 = vadd.f32 %v11256_v33, %v11255_v6  ;;  %v11329_v14 = vpop.f32.mrf.mxu1 }
 0x335   :  { %v11258_v34 = vpop.f32.mrf.mxu0  ;;  %v11330_v35 = vadd.f32 %v11329_v14, %v11328_v49  ;;  %v13975_v49 = vld [vmem:[#allocation3 + $0x368] ss:$16 sps:$4 sm:$0xff]   ;;  %v13995_v14 = vld [vmem:[#allocation3 + $0x3cc] ss:$16 sps:$4 sm:$0xff]  }
 0x336   :  { %12687 = vmatmul.mubr.bf16.gmra.mxu0 %v2024_v3  ;;  %v2005_v4 = vadd.f32 %v11321_v51, %v11257_v43  ;;  %v13959_v3 = vld [vmem:[#allocation3 + $0x30c] ss:$16 sps:$4 sm:$0xff]  }
 0x337   :  { %v11259_v42 = vpop.f32.mrf.mxu0  ;;  %v13977_v43 = vld [vmem:[#allocation3 + $0x36c] ss:$16 sps:$4 sm:$0xff]  }
 0x338   :  { %v11260_v24 = vadd.f32 %v11259_v42, %v11258_v34  ;;  %v15768_v34 = vld [vmem:[%s17423_s22 + $0x60] sm:$0xff]   ;;  %v15780_v51 = vld [vmem:[%s17423_s22 + $0x58] sm:$0xff]  }
 0x339   :  { %v11261_v63 = vpop.f32.mrf.mxu0  ;;  %v15774_v42 = vld [vmem:[%s17423_s22 + $0x20] sm:$0xff]  }
 0x33a   :  { %v2008_v16 = vadd.f32 %v11324_v54, %v11260_v24  ;;  %v15786_v54 = vld [vmem:[%s17423_s22 + $0x18] sm:$0xff]   ;;  %v15792_v24 = vld [vmem:[%s17423_s22 + $0x50] sm:$0xff]  }
 0x33b   :  { %v11262_v58 = vpop.f32.mrf.mxu0 }
 0x33c   :  { %v2025_v22 = vpack.c.bf16 %v2008_v16, %v2005_v4  ;;  %v11263_v50 = vadd.f32 %v11262_v58, %v11261_v63  ;;  %v13983_v63 = vld [vmem:[#allocation3 + $0x38c] ss:$16 sps:$4 sm:$0xff]   ;;  %v13981_v16 = vld [vmem:[#allocation3 + $0x388] ss:$16 sps:$4 sm:$0xff]  }
 0x33d   :  { %v11264_v25 = vpop.f32.mrf.mxu0  ;;  %v15798_v4 = vld [vmem:[%s17423_s22 + $0x10] sm:$0xff]  }
 0x33e   :  { %12690 = vmatprep.mubr.bf16.mxu0 %v2025_v22  ;;  %v2013_v6 = vadd.f32 %v11327_v53, %v11263_v50  ;;  %v15744_v50 = vld [vmem:[%s17423_s22 + $0x70] sm:$0xff]   ;;  %v13963_v53 = vld [vmem:[#allocation3 + $0x328] ss:$16 sps:$4 sm:$0xff]  }
 0x33f   :  { %v11265_v18 = vpop.f32.mrf.mxu0  ;;  %v13989_v58 = vld [vmem:[#allocation3 + $0x3ac] ss:$16 sps:$4 sm:$0xff]   ;;  %v13987_v22 = vld [vmem:[#allocation3 + $0x3a8] ss:$16 sps:$4 sm:$0xff]  }
 0x340   :  { %v11266_v61 = vadd.f32 %v11265_v18, %v11264_v25  ;;  %v15750_v18 = vld [vmem:[%s17423_s22 + $0x30] sm:$0xff]   ;;  %v13993_v25 = vld [vmem:[#allocation3 + $0x3c8] ss:$16 sps:$4 sm:$0xff]  }
 0x342   :  { %v2016_v33 = vadd.f32 %v11330_v35, %v11266_v61  ;;  %v13971_v61 = vld [vmem:[#allocation3 + $0x34c] ss:$16 sps:$4 sm:$0xff]  }
 0x343   :  { %v15756_v35 = vld [vmem:[%s17423_s22 + $0x68] sm:$0xff]  }
 0x344   :  { %v2026_v12 = vpack.c.bf16 %v2016_v33, %v2013_v6  ;;  %v14001_v6 = vld [vmem:[#allocation3 + $0x3ec] ss:$16 sps:$4 sm:$0xff]  }
 0x345   :  { %v14002_v33 = vld [vmem:[#allocation5 + $0xf8] sm:$0xff]  }
 0x346   :  { %12691 = vmatmul.mubr.bf16.gmra.mxu0 %v2026_v12  ;;  %12694 = vmatprep.subr.bf16.mxu1 %v14002_v33  ;;  %v14007_v12 = vld [vmem:[#allocation5 + $0xd0] sm:$0xff]  }
 0x347   :  { %2527 = vmatprep.mubr.bf16.mxu0 %v13959_v3  ;;  %12695 = vmatpush3.bf16.msra.mxu1 %v14002_v33  ;;  %v14006_v3 = vld [vmem:[#allocation5 + $0xd8] sm:$0xff]   ;;  %v14016_v33 = vld [vmem:[#allocation3 + $0x420] ss:$16 sps:$4 sm:$0xff]  }
 0x34e   :  { %2528 = vmatmul.mubr.bf16.vlgmr.msra.gmra.mxu0 %v13957_v27  ;;  %v14008_v27 = vld [vmem:[#allocation5 + $0xc8] sm:$0xff]  }
 0x34f   :  { %2535 = vmatprep.mubr.bf16.mxu0 %v13965_v32  ;;  %11492 = vmatpush3.bf16.msra.mxu0 %v15738_v62  ;;  %v14009_v32 = vld [vmem:[#allocation5 + $0xc0] sm:$0xff]  }
 0x350   :  { %11493 = vmatprep.subr.bf16.mxu0 %v15744_v50 }
 0x353   :  { %11494 = vmatpush3.bf16.msra.mxu0 %v15750_v18 }
 0x354   :  { %11495 = vmatprep.subr.bf16.mxu0 %v15756_v35 }
 0x356   :  { %2536 = vmatmul.mubr.bf16.gmra.mxu0 %v13963_v53  ;;  %v15806_v53 = vpop.f32.mrf.mxu1 }
 0x357   :  { %2543 = vmatprep.mubr.bf16.mxu0 %v13971_v61  ;;  %11496 = vmatpush3.bf16.msra.mxu0 %v15762_v30 }
 0x358   :  { %11497 = vmatprep.subr.bf16.mxu0 %v15768_v34  ;;  %v15808_v61 = vpop.f32.mrf.mxu1 }
 0x35b   :  { %11498 = vmatpush3.bf16.msra.mxu0 %v15774_v42 }
 0x35c   :  { %11499 = vmatprep.subr.bf16.mxu0 %v15780_v51 }
 0x35e   :  { %2544 = vmatmul.mubr.bf16.gmra.mxu0 %v13969_v45  ;;  %v14012_v45 = vld [vmem:[#allocation3 + $0x404] ss:$16 sps:$4 sm:$0xff]  }
 0x35f   :  { %2551 = vmatprep.mubr.bf16.mxu0 %v13977_v43  ;;  %11500 = vmatpush3.bf16.msra.mxu0 %v15786_v54  ;;  %v14010_v43 = vld [vmem:[#allocation3 + $0x400] ss:$16 sps:$4 sm:$0xff]  }
 0x360   :  { %11501 = vmatprep.subr.bf16.mxu0 %v15792_v24 }
 0x363   :  { %11502 = vmatpush3.bf16.msra.mxu0 %v15798_v4 }
 0x364   :  { %11503 = vmatprep.subr.bf16.mxu0 %v15493_v17  ;;  %v13999_v17 = vld [vmem:[#allocation3 + $0x3e8] ss:$16 sps:$4 sm:$0xff]  }
 0x366   :  { %2552 = vmatmul.mubr.bf16.gmra.mxu0 %v13975_v49 }
 0x367   :  { %2559 = vmatprep.mubr.bf16.mxu0 %v13983_v63  ;;  %11504 = vmatpush3.bf16.msra.mxu0 %v15499_v26  ;;  %v14003_v26 = vld [vmem:[#allocation5 + $0xf0] sm:$0xff]   ;;  %v15810_v63 = vpop.f32.mrf.mxu1 }
 0x368   :  { %11505 = vmatprep.subr.bf16.mxu0 %v15505_v29  ;;  %12696 = vmatprep.subr.bf16.mxu1 %v14003_v26  ;;  %v14004_v29 = vld [vmem:[#allocation5 + $0xe8] sm:$0xff]  }
 0x369   :  { %12697 = vmatpush3.bf16.msra.mxu1 %v14003_v26 }
 0x36a   :  { %12698 = vmatprep.subr.bf16.mxu1 %v14004_v29 }
 0x36b   :  { %11506 = vmatpush3.bf16.msra.mxu0 %v15512_v36  ;;  %v14005_v36 = vld [vmem:[#allocation5 + $0xe0] sm:$0xff]  }
 0x36d   :  { %12699 = vmatpush3.bf16.msra.mxu1 %v14004_v29  ;;  %v14022_v29 = vld [vmem:[#allocation3 + $0x440] ss:$16 sps:$4 sm:$0xff]  }
 0x36e   :  { %2560 = vmatmul.mubr.bf16.gmra.mxu0 %v13981_v16  ;;  %12700 = vmatprep.subr.bf16.mxu1 %v14005_v36 }
 0x36f   :  { %2567 = vmatprep.mubr.bf16.mxu0 %v13989_v58 }
 0x371   :  { %12701 = vmatpush3.bf16.msra.mxu1 %v14005_v36 }
 0x372   :  { %12702 = vmatprep.subr.bf16.mxu1 %v14006_v3 }
 0x375   :  { %12703 = vmatpush3.bf16.msra.mxu1 %v14006_v3 }
 0x376   :  { %2568 = vmatmul.mubr.bf16.gmra.mxu0 %v13987_v22  ;;  %12704 = vmatprep.subr.bf16.mxu1 %v14007_v12 }
 0x377   :  { %2575 = vmatprep.mubr.bf16.mxu0 %v13995_v14 }
 0x379   :  { %12705 = vmatpush3.bf16.msra.mxu1 %v14007_v12 }
 0x37a   :  { %12706 = vmatprep.subr.bf16.mxu1 %v14008_v27 }
 0x37d   :  { %12707 = vmatpush3.bf16.msra.mxu1 %v14008_v27 }
 0x37e   :  { %2576 = vmatmul.mubr.bf16.gmra.mxu0 %v13993_v25  ;;  %12708 = vmatprep.subr.bf16.mxu1 %v14009_v32  ;;  %v14018_v25 = vld [vmem:[#allocation3 + $0x424] ss:$16 sps:$4 sm:$0xff]  }
 0x37f   :  { %2583 = vmatprep.mubr.bf16.mxu0 %v14001_v6 }
 0x381   :  { %12709 = vmatpush3.bf16.msra.mxu1 %v14009_v32 }
 0x382   :  { %11555 = vmatprep.subr.bf16.mxu1 %v15521_v47  ;;  %v15818_v47 = vpop.f32.mrf.mxu1 }
 0x386   :  { %2584 = vmatmul.mubr.bf16.gmra.mxu0 %v13999_v17  ;;  %v15823_v17 = vpop.f32.mrf.mxu1 }
 0x387   :  { %3003 = vmatprep.mubr.bf16.mxu0 %v14012_v45 }
 0x388   :  { %v15825_v26 = vpop.f32.mrf.mxu1 }
 0x38a   :  { %v15829_v3 = vpop.f32.mrf.mxu1 }
 0x38c   :  { %v15837_v45 = vpop.f32.mrf.mxu1 }
 0x38e   :  { %3004 = vmatmul.mubr.bf16.vlgmr.msra.gmra.mxu0 %v14010_v43  ;;  %v14030_v43 = vld [vmem:[#allocation3 + $0x464] ss:$16 sps:$4 sm:$0xff]  }
 0x38f   :  { %3011 = vmatprep.mubr.bf16.mxu0 %v14018_v25 }
 0x396   :  { %3012 = vmatmul.mubr.bf16.gmra.mxu0 %v14016_v33  ;;  %v14034_v33 = vld [vmem:[#allocation3 + $0x480] ss:$16 sps:$4 sm:$0xff]  }
 0x3d6   :  { %v12680_v49 = vpop.f32.mrf.mxu0 }
 0x3d7   :  { %v15813_v16 = vadd.f32 %v12680_v49, %v15544_v5  ;;  %v14024_v5 = vld [vmem:[#allocation3 + $0x444] ss:$16 sps:$4 sm:$0xff]  }
 0x3d8   :  { %v2126_v58 = vpop.f32.mrf.mxu0  ;;  %3019 = vmatprep.mubr.bf16.mxu0 %v14024_v5 }
 0x3d9   :  { %v15816_v22 = vadd.f32 %v2126_v58, %v15546_v7  ;;  %3020 = vmatmul.mubr.bf16.gmra.mxu0 %v14022_v29  ;;  %v14028_v58 = vld [vmem:[#allocation3 + $0x460] ss:$16 sps:$4 sm:$0xff]  }
 0x3da   :  { %v12681_v14 = vpop.f32.mrf.mxu0  ;;  %3027 = vmatprep.mubr.bf16.mxu0 %v14030_v43 }
 0x3db   :  { %17432 = vst [vmem:[#allocation45_spill] sm:$0xff] %v15816_v22  ;;  %v15821_v6 = vadd.f32 %v12681_v14, %v15550_v11  ;;  %v15842_v14 = vpop.f32.mrf.mxu1 }
 0x3dc   :  { %v15827_v36 = vpop.f32.mrf.mxu0 }
 0x3dd   :  { %17433 = vst [vmem:[#allocation46_spill] sm:$0xff] %v15821_v6  ;;  %17434 = vst [vmem:[#allocation47_spill] sm:$0xff] %v15827_v36  ;;  %v15844_v25 = vpop.f32.mrf.mxu1 }
 0x3df   :  { %v15848_v29 = vpop.f32.mrf.mxu1 }
 0x3e1   :  { %3028 = vmatmul.mubr.bf16.gmra.mxu0 %v14028_v58  ;;  %v15856_v43 = vpop.f32.mrf.mxu1  ;;  %v14042_v58 = vld [vmem:[#allocation3 + $0x4a4] ss:$16 sps:$4 sm:$0xff]  }
 0x3e6   :  { %v12684_v7 = vpop.f32.mrf.mxu0 }
 0x3e7   :  { %v15832_v12 = vadd.f32 %v12684_v7, %v15560_v21  ;;  %v14036_v21 = vld [vmem:[#allocation3 + $0x484] ss:$16 sps:$4 sm:$0xff]  }
 0x3e8   :  { %v2142_v11 = vpop.f32.mrf.mxu0  ;;  %3035 = vmatprep.mubr.bf16.mxu0 %v14036_v21  ;;  %v15861_v21 = vpop.f32.mrf.mxu1 }
 0x3e9   :  { %17435 = vst [vmem:[#allocation48_spill] sm:$0xff] %v15832_v12  ;;  %v15835_v27 = vadd.f32 %v2142_v11, %v15562_v23  ;;  %3036 = vmatmul.mubr.bf16.gmra.mxu0 %v14034_v33 }
 0x3ea   :  { %v12685_v32 = vpop.f32.mrf.mxu0  ;;  %3043 = vmatprep.mubr.bf16.mxu0 %v14042_v58  ;;  %v15863_v33 = vpop.f32.mrf.mxu1 }
 0x3eb   :  { %17436 = vst [vmem:[#allocation49_spill] sm:$0xff] %v15835_v27  ;;  %v15840_v49 = vadd.f32 %v12685_v32, %v15566_v28 }
 0x3ec   :  { %v15846_v5 = vpop.f32.mrf.mxu0 }
 0x3ed   :  { %17437 = vst [vmem:[#allocation50_spill] sm:$0xff] %v15840_v49  ;;  %17438 = vst [vmem:[#allocation51_spill] sm:$0xff] %v15846_v5  ;;  %v14040_v5 = vld [vmem:[#allocation3 + $0x4a0] ss:$16 sps:$4 sm:$0xff]  }
 0x3f1   :  { %3044 = vmatmul.mubr.bf16.gmra.mxu0 %v14040_v5 }
 0x3f6   :  { %v12688_v23 = vpop.f32.mrf.mxu0 }
 0x3f7   :  { %v15851_v7 = vadd.f32 %v12688_v23, %v15576_v39  ;;  %v14048_v39 = vld [vmem:[#allocation3 + $0x4c4] ss:$16 sps:$4 sm:$0xff]   ;;  %v14046_v23 = vld [vmem:[#allocation3 + $0x4c0] ss:$16 sps:$4 sm:$0xff]  }
 0x3f8   :  { %v2158_v28 = vpop.f32.mrf.mxu0  ;;  %3051 = vmatprep.mubr.bf16.mxu0 %v14048_v39 }
 0x3f9   :  { %17439 = vst [vmem:[#allocation52_spill] sm:$0xff] %v15851_v7  ;;  %v15854_v11 = vadd.f32 %v2158_v28, %v15578_v40  ;;  %3052 = vmatmul.mubr.bf16.gmra.mxu0 %v14046_v23  ;;  %v15867_v28 = vpop.f32.mrf.mxu1 }
 0x3fa   :  { %v12689_v32 = vpop.f32.mrf.mxu0  ;;  %3059 = vmatprep.mubr.bf16.mxu0 %v14054_v52 }
 0x3fb   :  { %17440 = vst [vmem:[#allocation53_spill] sm:$0xff] %v15854_v11  ;;  %v15859_v36 = vadd.f32 %v12689_v32, %v15582_v44  ;;  %v11385_v58 = vpop.f32.mrf.mxu1  ;;  %v14052_v11 = vld [vmem:[#allocation3 + $0x4e0] ss:$16 sps:$4 sm:$0xff]  }
 0x3fc   :  { %v15865_v15 = vpop.f32.mrf.mxu0 }
 0x3fd   :  { %17441 = vst [vmem:[#allocation54_spill] sm:$0xff] %v15859_v36  ;;  %17442 = vst [vmem:[#allocation55_spill] sm:$0xff] %v15865_v15  ;;  %v15880_v23 = vpop.f32.mrf.mxu1 }
 0x401   :  { %3060 = vmatmul.mubr.bf16.gmra.mxu0 %v14052_v11 }
 0x406   :  { %v12692_v40 = vpop.f32.mrf.mxu0 }
 0x407   :  { %v15870_v57 = vadd.f32 %v12692_v40, %v15593_v0 }
 0x408   :  { %v2174_v44 = vpop.f32.mrf.mxu0 }
 0x409   :  { %17443 = vst [vmem:[#allocation56_spill] sm:$0xff] %v15870_v57  ;;  %v15873_v32 = vadd.f32 %v2174_v44, %v15596_v1  ;;  %v15882_v57 = vpop.f32.mrf.mxu1 }
 0x40a   :  { %v12693_v5 = vpop.f32.mrf.mxu0 }
 0x40b   :  { %17444 = vst [vmem:[#allocation57_spill] sm:$0xff] %v15873_v32  ;;  %v15876_v36 = vadd.f32 %v12693_v5, %v15601_v10  ;;  %v11365_v32 = vadd.f32 %v15808_v61, %v15806_v53  ;;  %v11368_v10 = vadd.f32 %v15818_v47, %v15810_v63  ;;  %v11374_v53 = vadd.f32 %v15837_v45, %v15829_v3 }
 0x40c   :  { %v15878_v15 = vpop.f32.mrf.mxu0 }
 0x40d   :  { %17445 = vst [vmem:[#allocation58_spill] sm:$0xff] %v15876_v36  ;;  %17446 = vst [vmem:[#allocation59_spill] sm:$0xff] %v15878_v15  ;;  %v11390_v15 = vpop.f32.mrf.mxu1 }
 0x40e   :  { %v11427_v39 = vpop.f32.mrf.mxu0 }
 0x40f   :  { %v11391_v12 = vpop.f32.mrf.mxu1 }
 0x410   :  { %v11428_v0 = vpop.f32.mrf.mxu0 }
 0x411   :  { %v11429_v1 = vadd.f32 %v11428_v0, %v11427_v39  ;;  %v11371_v39 = vadd.f32 %v15825_v26, %v15823_v17  ;;  %v15892_v47 = vpop.f32.mrf.mxu1  ;;  %v11377_v17 = vadd.f32 %v15844_v25, %v15842_v14  ;;  %v11386_v25 = vadd.f32 %v11385_v58, %v15867_v28 }
 0x412   :  { %v11430_v40 = vpop.f32.mrf.mxu0 }
 0x413   :  { %v2530_v52 = vadd.f32 %v11429_v1, %v11365_v32 }
 0x414   :  { %v11431_v44 = vpop.f32.mrf.mxu0 }
 0x415   :  { %v11432_v5 = vadd.f32 %v11431_v44, %v11430_v40 }
 0x416   :  { %v11433_v36 = vpop.f32.mrf.mxu0 }
 0x417   :  { %v2533_v11 = vadd.f32 %v11432_v5, %v11368_v10  ;;  %v11394_v10 = vpop.f32.mrf.mxu1 }
 0x418   :  { %v11434_v7 = vpop.f32.mrf.mxu0 }
 0x419   :  { %v2592_v49 = vpack.c.bf16 %v2533_v11, %v2530_v52  ;;  %v11435_v6 = vadd.f32 %v11434_v7, %v11433_v36  ;;  %v11396_v3 = vpop.f32.mrf.mxu1 }
 0x41a   :  { %v11436_v27 = vpop.f32.mrf.mxu0 }
 0x41b   :  { %12710 = vmatprep.mubr.bf16.mxu1 %v2592_v49  ;;  %v2538_v0 = vadd.f32 %v11435_v6, %v11371_v39  ;;  %v11397_v52 = vpop.f32.mrf.mxu1 }
 0x41c   :  { %v11437_v22 = vpop.f32.mrf.mxu0 }
 0x41d   :  { %v11438_v61 = vadd.f32 %v11437_v22, %v11436_v27  ;;  %v11380_v22 = vadd.f32 %v15856_v43, %v15848_v29 }
 0x41e   :  { %v11439_v63 = vpop.f32.mrf.mxu0 }
 0x41f   :  { %v2541_v32 = vadd.f32 %v11438_v61, %v11374_v53 }
 0x420   :  { %v11440_v40 = vpop.f32.mrf.mxu0 }
 0x421   :  { %v2593_v1 = vpack.c.bf16 %v2541_v32, %v2538_v0  ;;  %v11441_v5 = vadd.f32 %v11440_v40, %v11439_v63 }
 0x422   :  { %v11442_v44 = vpop.f32.mrf.mxu0 }
 0x423   :  { %12711 = vmatmul.mubr.bf16.vlgmr.msra.gmra.mxu1 %v2593_v1  ;;  %v2546_v27 = vadd.f32 %v11441_v5, %v11377_v17 }
 0x424   :  { %v11443_v36 = vpop.f32.mrf.mxu0  ;;  %11556 = vmatpush3.bf16.msra.mxu1 %v15628_v13 }
 0x425   :  { %v11444_v26 = vadd.f32 %v11443_v36, %v11442_v44  ;;  %11557 = vmatprep.subr.bf16.mxu1 %v15638_v60  ;;  %v11383_v60 = vadd.f32 %v15863_v33, %v15861_v21  ;;  %v11392_v33 = vadd.f32 %v11391_v12, %v11390_v15  ;;  %v11398_v15 = vadd.f32 %v11397_v52, %v11396_v3 }
 0x426   :  { %v11445_v6 = vpop.f32.mrf.mxu0 }
 0x427   :  { %v2549_v45 = vadd.f32 %v11444_v26, %v11380_v22 }
 0x428   :  { %v11446_v49 = vpop.f32.mrf.mxu0  ;;  %11558 = vmatpush3.bf16.msra.mxu1 %v15644_v31  ;;  %v11399_v31 = vpop.f32.mrf.mxu1 }
 0x429   :  { %v2594_v7 = vpack.c.bf16 %v2549_v45, %v2546_v27  ;;  %11559 = vmatprep.subr.bf16.mxu1 %v15650_v38  ;;  %v11447_v11 = vadd.f32 %v11446_v49, %v11445_v6 }
 0x42a   :  { %v11448_v13 = vpop.f32.mrf.mxu0 }
 0x42b   :  { %12714 = vmatprep.mubr.bf16.mxu1 %v2594_v7  ;;  %v2554_v39 = vadd.f32 %v11447_v11, %v11383_v60 }
 0x42c   :  { %v11449_v14 = vpop.f32.mrf.mxu0  ;;  %11560 = vmatpush3.bf16.msra.mxu1 %v15656_v56  ;;  %v11400_v56 = vpop.f32.mrf.mxu1 }
 0x42d   :  { %v11450_v29 = vadd.f32 %v11449_v14, %v11448_v13  ;;  %11561 = vmatprep.subr.bf16.mxu1 %v15666_v9  ;;  %v11389_v9 = vadd.f32 %v15882_v57, %v15880_v23  ;;  %v11395_v57 = vadd.f32 %v11394_v10, %v15892_v47  ;;  %v11401_v47 = vadd.f32 %v11400_v56, %v11399_v31  ;;  %v14027_v56 = vld [vmem:[#allocation3 + $0x44c] ss:$16 sps:$4 sm:$0xff]  }
 0x42e   :  { %v11451_v43 = vpop.f32.mrf.mxu0  ;;  %v11402_v32 = vpop.f32.mrf.mxu1 }
 0x42f   :  { %v2557_v53 = vadd.f32 %v11450_v29, %v11386_v25 }
 0x430   :  { %v11452_v38 = vpop.f32.mrf.mxu0  ;;  %11562 = vmatpush3.bf16.msra.mxu1 %v15672_v46  ;;  %v11403_v5 = vpop.f32.mrf.mxu1 }
 0x431   :  { %v2595_v61 = vpack.c.bf16 %v2557_v53, %v2554_v39  ;;  %11563 = vmatprep.subr.bf16.mxu1 %v15678_v55  ;;  %v11453_v0 = vadd.f32 %v11452_v38, %v11451_v43  ;;  %v11404_v10 = vadd.f32 %v11403_v5, %v11402_v32  ;;  %v14015_v53 = vld [vmem:[#allocation3 + $0x40c] ss:$16 sps:$4 sm:$0xff]   ;;  %v14013_v38 = vld [vmem:[#allocation3 + $0x408] ss:$16 sps:$4 sm:$0xff]  }
 0x432   :  { %v11454_v63 = vpop.f32.mrf.mxu0  ;;  %v11405_v23 = vpop.f32.mrf.mxu1  ;;  %v14060_v32 = vld [vmem:[#allocation5 + $0x128] sm:$0xff]   ;;  %v15958_v5 = vld [vmem:[%s17423_s22 + $0xf8] sm:$0xff]  }
 0x433   :  { %12715 = vmatmul.mubr.bf16.gmra.mxu1 %v2595_v61  ;;  %v2562_v46 = vadd.f32 %v11453_v0, %v11389_v9  ;;  %v14021_v61 = vld [vmem:[#allocation3 + $0x42c] ss:$16 sps:$4 sm:$0xff]   ;;  %v14025_v0 = vld [vmem:[#allocation3 + $0x448] ss:$16 sps:$4 sm:$0xff]  }
 0x434   :  { %v11455_v21 = vpop.f32.mrf.mxu0  ;;  %11564 = vmatpush3.bf16.msra.mxu1 %v15684_v20  ;;  %v11406_v26 = vpop.f32.mrf.mxu1  ;;  %v14057_v9 = vld [vmem:[#allocation3 + $0x4ec] ss:$16 sps:$4 sm:$0xff]  }
 0x435   :  { %v11456_v28 = vadd.f32 %v11455_v21, %v11454_v63  ;;  %11565 = vmatprep.subr.bf16.mxu1 %v15694_v41  ;;  %v14019_v63 = vld [vmem:[#allocation3 + $0x428] ss:$16 sps:$4 sm:$0xff]   ;;  %v14033_v21 = vld [vmem:[#allocation3 + $0x46c] ss:$16 sps:$4 sm:$0xff]  }
 0x436   :  { %v11457_v58 = vpop.f32.mrf.mxu0  ;;  %v11408_v45 = vpop.f32.mrf.mxu1 }
 0x437   :  { %v2565_v40 = vadd.f32 %v11456_v28, %v11392_v33  ;;  %v14058_v33 = vld [vmem:[#allocation5 + $0x138] sm:$0xff]  }
 0x438   :  { %v11458_v1 = vpop.f32.mrf.mxu0  ;;  %11566 = vmatpush3.bf16.msra.mxu1 %v15700_v19  ;;  %v11409_v11 = vpop.f32.mrf.mxu1  ;;  %12726 = vmatprep.subr.bf16.mxu0 %v14058_v33  ;;  %v14055_v28 = vld [vmem:[#allocation3 + $0x4e8] ss:$16 sps:$4 sm:$0xff]  }
 0x439   :  { %v2596_v55 = vpack.c.bf16 %v2565_v40, %v2562_v46  ;;  %11567 = vmatprep.subr.bf16.mxu1 %v15706_v37  ;;  %v11459_v20 = vadd.f32 %v11458_v1, %v11457_v58  ;;  %v11410_v25 = vadd.f32 %v11409_v11, %v11408_v45  ;;  %12727 = vmatpush3.bf16.msra.mxu0 %v14058_v33  ;;  %v14059_v58 = vld [vmem:[#allocation5 + $0x130] sm:$0xff]   ;;  %v14061_v46 = vld [vmem:[#allocation5 + $0x120] sm:$0xff]   ;;  %v14062_v40 = vld [vmem:[#allocation5 + $0x118] sm:$0xff]  }
 0x43a   :  { %v11460_v44 = vpop.f32.mrf.mxu0  ;;  %12728 = vmatprep.subr.bf16.mxu0 %v14059_v58  ;;  %v14063_v1 = vld [vmem:[#allocation5 + $0x110] sm:$0xff]  }
 0x43b   :  { %12718 = vmatprep.mubr.bf16.mxu1 %v2596_v55  ;;  %v2570_v17 = vadd.f32 %v11459_v20, %v11395_v57  ;;  %v14064_v55 = vld [vmem:[#allocation5 + $0x108] sm:$0xff]   ;;  %v14068_v57 = vld [vmem:[#allocation3 + $0x504] ss:$16 sps:$4 sm:$0xff]   ;;  %v14078_v45 = vld [vmem:[#allocation3 + $0x540] ss:$16 sps:$4 sm:$0xff]  }
 0x43c   :  { %v11461_v36 = vpop.f32.mrf.mxu0  ;;  %11568 = vmatpush3.bf16.msra.mxu1 %v15712_v8 }
 0x43d   :  { %v11462_v41 = vadd.f32 %v11461_v36, %v11460_v44  ;;  %11569 = vmatprep.subr.bf16.mxu1 %v15720_v48  ;;  %12729 = vmatpush3.bf16.msra.mxu0 %v14059_v58  ;;  %v14065_v44 = vld [vmem:[#allocation5 + $0x100] sm:$0xff]  }
 0x43e   :  { %v11463_v12 = vpop.f32.mrf.mxu0  ;;  %12730 = vmatprep.subr.bf16.mxu0 %v14060_v32 }
 0x43f   :  { %v2573_v19 = vadd.f32 %v11462_v41, %v11398_v15  ;;  %v14066_v15 = vld [vmem:[#allocation3 + $0x500] ss:$16 sps:$4 sm:$0xff]  }
 0x440   :  { %v11464_v22 = vpop.f32.mrf.mxu0  ;;  %11570 = vmatpush3.bf16.msra.mxu1 %v15726_v2 }
 0x441   :  { %v2597_v37 = vpack.c.bf16 %v2573_v19, %v2570_v17  ;;  %11635 = vmatprep.subr.bf16.mxu1 %v15732_v59  ;;  %v11465_v27 = vadd.f32 %v11464_v22, %v11463_v12  ;;  %v11407_v59 = vadd.f32 %v11406_v26, %v11405_v23  ;;  %12731 = vmatpush3.bf16.msra.mxu0 %v14060_v32  ;;  %v17447_v19 = vld [vmem:[#allocation45_spill] sm:$0xff] }
 0x442   :  { %v11466_v6 = vpop.f32.mrf.mxu0  ;;  %12732 = vmatprep.subr.bf16.mxu0 %v14061_v46 }
 0x443   :  { %12719 = vmatmul.mubr.bf16.gmra.mxu1 %v2597_v37  ;;  %v2578_v49 = vadd.f32 %v11465_v27, %v11401_v47  ;;  %v17448_v27 = vld [vmem:[#allocation46_spill] sm:$0xff] }
 0x444   :  { %v11467_v8 = vpop.f32.mrf.mxu0  ;;  %v14072_v47 = vld [vmem:[#allocation3 + $0x520] ss:$16 sps:$4 sm:$0xff]  }
 0x445   :  { %v11468_v3 = vadd.f32 %v11467_v8, %v11466_v6  ;;  %12733 = vmatpush3.bf16.msra.mxu0 %v14061_v46  ;;  %v14074_v6 = vld [vmem:[#allocation3 + $0x524] ss:$16 sps:$4 sm:$0xff]  }
 0x446   :  { %v11469_v48 = vpop.f32.mrf.mxu0  ;;  %12734 = vmatprep.subr.bf16.mxu0 %v14062_v40  ;;  %v14104_v46 = vld [vmem:[#allocation3 + $0x5c4] ss:$16 sps:$4 sm:$0xff]  }
 0x447   :  { %v2581_v7 = vadd.f32 %v11468_v3, %v11404_v10 }
 0x448   :  { %v11470_v13 = vpop.f32.mrf.mxu0 }
 0x449   :  { %v2598_v52 = vpack.c.bf16 %v2581_v7, %v2578_v49  ;;  %v11471_v2 = vadd.f32 %v11470_v13, %v11469_v48  ;;  %12735 = vmatpush3.bf16.msra.mxu0 %v14062_v40  ;;  %v17450_v13 = vld [vmem:[#allocation48_spill] sm:$0xff] }
 0x44a   :  { %v11472_v14 = vpop.f32.mrf.mxu0  ;;  %12736 = vmatprep.subr.bf16.mxu0 %v14063_v1  ;;  %v14102_v40 = vld [vmem:[#allocation3 + $0x5c0] ss:$16 sps:$4 sm:$0xff]  }
 0x44b   :  { %12722 = vmatprep.mubr.bf16.mxu1 %v2598_v52  ;;  %v2586_v43 = vadd.f32 %v11471_v2, %v11407_v59 }
 0x44c   :  { %v11473_v60 = vpop.f32.mrf.mxu0 }
 0x44d   :  { %v11474_v29 = vadd.f32 %v11473_v60, %v11472_v14  ;;  %12737 = vmatpush3.bf16.msra.mxu0 %v14063_v1  ;;  %v17451_v14 = vld [vmem:[#allocation49_spill] sm:$0xff] }
 0x44e   :  { %12738 = vmatprep.subr.bf16.mxu0 %v14064_v55  ;;  %v15961_v20 = vpop.f32.mrf.mxu0 }
 0x44f   :  { %v2589_v39 = vadd.f32 %v11474_v29, %v11410_v25  ;;  %v14086_v25 = vld [vmem:[#allocation3 + $0x564] ss:$16 sps:$4 sm:$0xff]  }
 0x450   :  { %v15963_v36 = vpop.f32.mrf.mxu0  ;;  %v17452_v29 = vld [vmem:[#allocation50_spill] sm:$0xff] }
 0x451   :  { %v2599_v31 = vpack.c.bf16 %v2589_v39, %v2586_v43  ;;  %12739 = vmatpush3.bf16.msra.mxu0 %v14064_v55  ;;  %v14084_v39 = vld [vmem:[#allocation3 + $0x560] ss:$16 sps:$4 sm:$0xff]  }
 0x452   :  { %12740 = vmatprep.subr.bf16.mxu0 %v14065_v44  ;;  %v15965_v12 = vpop.f32.mrf.mxu0 }
 0x453   :  { %12723 = vmatmul.mubr.bf16.gmra.mxu1 %v2599_v31 }
 0x454   :  { %3100 = vmatprep.mubr.bf16.mxu1 %v14015_v53  ;;  %v15973_v26 = vpop.f32.mrf.mxu0 }
 0x455   :  { %12741 = vmatpush3.bf16.msra.mxu0 %v14065_v44 }
 0x456   :  { %11699 = vmatprep.subr.bf16.mxu0 %v15958_v5  ;;  %v15978_v10 = vpop.f32.mrf.mxu0 }
 0x458   :  { %v15980_v3 = vpop.f32.mrf.mxu0 }
 0x45a   :  { %v15984_v7 = vpop.f32.mrf.mxu0 }
 0x45b   :  { %3101 = vmatmul.mubr.bf16.vlgmr.msra.gmra.mxu1 %v14013_v38  ;;  %v14092_v38 = vld [vmem:[#allocation3 + $0x584] ss:$16 sps:$4 sm:$0xff]  }
 0x45c   :  { %3108 = vmatprep.mubr.bf16.mxu1 %v14021_v61  ;;  %11636 = vmatpush3.bf16.msra.mxu1 %v15738_v62  ;;  %v14031_v62 = vld [vmem:[#allocation3 + $0x468] ss:$16 sps:$4 sm:$0xff]   ;;  %v15992_v59 = vpop.f32.mrf.mxu0  ;;  %v14090_v61 = vld [vmem:[#allocation3 + $0x580] ss:$16 sps:$4 sm:$0xff]  }
 0x45d   :  { %11637 = vmatprep.subr.bf16.mxu1 %v15744_v50  ;;  %v14039_v50 = vld [vmem:[#allocation3 + $0x48c] ss:$16 sps:$4 sm:$0xff]  }
 0x460   :  { %11638 = vmatpush3.bf16.msra.mxu1 %v15750_v18  ;;  %v15934_v18 = vld [vmem:[%s17423_s22 + $0x48] sm:$0xff]  }
 0x461   :  { %11639 = vmatprep.subr.bf16.mxu1 %v15756_v35  ;;  %v15940_v35 = vld [vmem:[%s17423_s22 + $0x8] sm:$0xff]  }
 0x463   :  { %3109 = vmatmul.mubr.bf16.gmra.mxu1 %v14019_v63 }
 0x464   :  { %3116 = vmatprep.mubr.bf16.mxu1 %v14027_v56  ;;  %11640 = vmatpush3.bf16.msra.mxu1 %v15762_v30  ;;  %v15946_v30 = vld [vmem:[%s17423_s22 + $0x40] sm:$0xff]  }
 0x465   :  { %11641 = vmatprep.subr.bf16.mxu1 %v15768_v34  ;;  %v14037_v34 = vld [vmem:[#allocation3 + $0x488] ss:$16 sps:$4 sm:$0xff]  }
 0x468   :  { %11642 = vmatpush3.bf16.msra.mxu1 %v15774_v42  ;;  %v14045_v42 = vld [vmem:[#allocation3 + $0x4ac] ss:$16 sps:$4 sm:$0xff]  }
 0x469   :  { %11643 = vmatprep.subr.bf16.mxu1 %v15780_v51  ;;  %v15952_v51 = vld [vmem:[%s17423_s22] sm:$0xff]  }
 0x46b   :  { %3117 = vmatmul.mubr.bf16.gmra.mxu1 %v14025_v0 }
 0x46c   :  { %3124 = vmatprep.mubr.bf16.mxu1 %v14033_v21  ;;  %11644 = vmatpush3.bf16.msra.mxu1 %v15786_v54  ;;  %v14043_v54 = vld [vmem:[#allocation3 + $0x4a8] ss:$16 sps:$4 sm:$0xff]   ;;  %v17454_v21 = vld [vmem:[#allocation52_spill] sm:$0xff] }
 0x46d   :  { %11645 = vmatprep.subr.bf16.mxu1 %v15792_v24  ;;  %v14051_v24 = vld [vmem:[#allocation3 + $0x4cc] ss:$16 sps:$4 sm:$0xff]  }
 0x470   :  { %11646 = vmatpush3.bf16.msra.mxu1 %v15798_v4  ;;  %v14049_v4 = vld [vmem:[#allocation3 + $0x4c8] ss:$16 sps:$4 sm:$0xff]  }
 0x471   :  { %11647 = vmatprep.subr.bf16.mxu1 %v15934_v18 }
 0x473   :  { %3125 = vmatmul.mubr.bf16.gmra.mxu1 %v14031_v62 }
 0x474   :  { %3132 = vmatprep.mubr.bf16.mxu1 %v14039_v50  ;;  %11648 = vmatpush3.bf16.msra.mxu1 %v15940_v35 }
 0x475   :  { %11649 = vmatprep.subr.bf16.mxu1 %v15946_v30 }
 0x478   :  { %11650 = vmatpush3.bf16.msra.mxu1 %v15952_v51 }
 0x47b   :  { %3133 = vmatmul.mubr.bf16.gmra.mxu1 %v14037_v34  ;;  %v17455_v34 = vld [vmem:[#allocation53_spill] sm:$0xff] }
 0x47c   :  { %3140 = vmatprep.mubr.bf16.mxu1 %v14045_v42 }
 0x483   :  { %3141 = vmatmul.mubr.bf16.gmra.mxu1 %v14043_v54 }
 0x484   :  { %3148 = vmatprep.mubr.bf16.mxu1 %v14051_v24 }
 0x48b   :  { %3149 = vmatmul.mubr.bf16.gmra.mxu1 %v14049_v4  ;;  %v14098_v4 = vld [vmem:[#allocation3 + $0x5a4] ss:$16 sps:$4 sm:$0xff]  }
 0x48c   :  { %3156 = vmatprep.mubr.bf16.mxu1 %v14057_v9  ;;  %v17456_v9 = vld [vmem:[#allocation54_spill] sm:$0xff] }
 0x493   :  { %3157 = vmatmul.mubr.bf16.gmra.mxu1 %v14055_v28  ;;  %v14096_v28 = vld [vmem:[#allocation3 + $0x5a0] ss:$16 sps:$4 sm:$0xff]  }
 0x494   :  { %3576 = vmatprep.mubr.bf16.mxu1 %v14068_v57  ;;  %v17458_v57 = vld [vmem:[#allocation56_spill] sm:$0xff] }
 0x499   :  { %v15997_v53 = vpop.f32.mrf.mxu0 }
 0x49b   :  { %3577 = vmatmul.mubr.bf16.vlgmr.msra.gmra.mxu1 %v14066_v15  ;;  %v15999_v31 = vpop.f32.mrf.mxu0 }
 0x49c   :  { %3584 = vmatprep.mubr.bf16.mxu1 %v14074_v6 }
 0x49d   :  { %v16003_v0 = vpop.f32.mrf.mxu0 }
 0x49f   :  { %v16011_v24 = vpop.f32.mrf.mxu0 }
 0x4a1   :  { %v16016_v58 = vpop.f32.mrf.mxu0 }
 0x4a3   :  { %3585 = vmatmul.mubr.bf16.gmra.mxu1 %v14072_v47  ;;  %v16018_v32 = vpop.f32.mrf.mxu0  ;;  %v17460_v47 = vld [vmem:[#allocation58_spill] sm:$0xff] }
 0x4a5   :  { %v16022_v44 = vpop.f32.mrf.mxu0 }
 0x4a7   :  { %v16030_v6 = vpop.f32.mrf.mxu0 }
 0x4e3   :  { %v12712_v41 = vpop.f32.mrf.mxu1 }
 0x4e4   :  { %v15968_v23 = vadd.f32 %v12712_v41, %v15813_v16  ;;  %v14080_v16 = vld [vmem:[#allocation3 + $0x544] ss:$16 sps:$4 sm:$0xff]  }
 0x4e5   :  { %v2699_v17 = vpop.f32.mrf.mxu1  ;;  %3592 = vmatprep.mubr.bf16.mxu1 %v14080_v16 }
 0x4e6   :  { %v15971_v22 = vadd.f32 %v2699_v17, %v17447_v19  ;;  %3593 = vmatmul.mubr.bf16.gmra.mxu1 %v14078_v45  ;;  %v17459_v17 = vld [vmem:[#allocation57_spill] sm:$0xff]  ;;  %v14108_v45 = vld [vmem:[#allocation3 + $0x5e0] ss:$16 sps:$4 sm:$0xff]  }
 0x4e7   :  { %v12713_v37 = vpop.f32.mrf.mxu1  ;;  %3600 = vmatprep.mubr.bf16.mxu1 %v14086_v25 }
 0x4e8   :  { %v15976_v8 = vadd.f32 %v12713_v37, %v17448_v27  ;;  %v14110_v27 = vld [vmem:[#allocation3 + $0x5e4] ss:$16 sps:$4 sm:$0xff]  }
 0x4e9   :  { %v15982_v48 = vpop.f32.mrf.mxu1 }
 0x4ea   :  { %17449 = vst [vmem:[#allocation45_spill] sm:$0xff] %v15982_v48 }
 0x4ee   :  { %3601 = vmatmul.mubr.bf16.gmra.mxu1 %v14084_v39 }
 0x4ef   :  { %3608 = vmatprep.mubr.bf16.mxu1 %v14092_v38  ;;  %v11509_v38 = vadd.f32 %v15963_v36, %v15961_v20  ;;  %v11515_v20 = vadd.f32 %v15980_v3, %v15978_v10  ;;  %v11518_v36 = vadd.f32 %v15992_v59, %v15984_v7  ;;  %v16060_v10 = vld [vmem:[%s17423_s22 + $0xb8] sm:$0xff]   ;;  %v11521_v3 = vadd.f32 %v15999_v31, %v15997_v53  ;;  %v16076_v53 = vld [vmem:[%s17423_s22 + $0xb0] sm:$0xff]  }
 0x4f0   :  { %v11524_v7 = vadd.f32 %v16011_v24, %v16003_v0  ;;  %v16082_v0 = vld [vmem:[%s17423_s22 + $0xe8] sm:$0xff]  }
 0x4f3   :  { %v12716_v49 = vpop.f32.mrf.mxu1 }
 0x4f4   :  { %v15987_v52 = vadd.f32 %v12716_v49, %v17450_v13 }
 0x4f5   :  { %v2715_v11 = vpop.f32.mrf.mxu1 }
 0x4f6   :  { %v15990_v2 = vadd.f32 %v2715_v11, %v17451_v14  ;;  %3609 = vmatmul.mubr.bf16.gmra.mxu1 %v14090_v61  ;;  %v16037_v11 = vpop.f32.mrf.mxu0  ;;  %v11512_v61 = vadd.f32 %v15973_v26, %v15965_v12 }
 0x4f7   :  { %v12717_v60 = vpop.f32.mrf.mxu1  ;;  %3616 = vmatprep.mubr.bf16.mxu1 %v14098_v4 }
 0x4f8   :  { %v15995_v43 = vadd.f32 %v12717_v60, %v17452_v29  ;;  %v16039_v25 = vpop.f32.mrf.mxu0 }
 0x4f9   :  { %v16001_v63 = vpop.f32.mrf.mxu1 }
 0x4fa   :  { %17453 = vst [vmem:[#allocation46_spill] sm:$0xff] %v16001_v63 }
 0x4fe   :  { %3617 = vmatmul.mubr.bf16.gmra.mxu1 %v14096_v28 }
 0x4ff   :  { %3624 = vmatprep.mubr.bf16.mxu1 %v14104_v46 }
 0x503   :  { %v12720_v56 = vpop.f32.mrf.mxu1 }
 0x504   :  { %v16006_v62 = vadd.f32 %v12720_v56, %v17454_v21 }
 0x505   :  { %v2731_v50 = vpop.f32.mrf.mxu1 }
 0x506   :  { %v16009_v42 = vadd.f32 %v2731_v50, %v17455_v34  ;;  %3625 = vmatmul.mubr.bf16.gmra.mxu1 %v14102_v40  ;;  %v16045_v50 = vpop.f32.mrf.mxu0 }
 0x507   :  { %v12721_v54 = vpop.f32.mrf.mxu1  ;;  %3632 = vmatprep.mubr.bf16.mxu1 %v14110_v27 }
 0x508   :  { %v16014_v33 = vadd.f32 %v12721_v54, %v17456_v9  ;;  %v16047_v46 = vpop.f32.mrf.mxu0 }
 0x509   :  { %v16020_v1 = vpop.f32.mrf.mxu1 }
 0x50a   :  { %17457 = vst [vmem:[#allocation48_spill] sm:$0xff] %v16020_v1  ;;  %v14166_v1 = vld [vmem:[#allocation3 + $0x6e4] ss:$16 sps:$4 sm:$0xff]  }
 0x50e   :  { %3633 = vmatmul.mubr.bf16.gmra.mxu1 %v14108_v45 }
 0x513   :  { %v12724_v55 = vpop.f32.mrf.mxu1 }
 0x514   :  { %v16025_v15 = vadd.f32 %v12724_v55, %v17458_v57  ;;  %v16053_v57 = vpop.f32.mrf.mxu0 }
 0x515   :  { %v2747_v41 = vpop.f32.mrf.mxu1 }
 0x516   :  { %v16028_v19 = vadd.f32 %v2747_v41, %v17459_v17  ;;  %v16055_v45 = vpop.f32.mrf.mxu0 }
 0x517   :  { %v12725_v37 = vpop.f32.mrf.mxu1 }
 0x518   :  { %v16033_v16 = vadd.f32 %v12725_v37, %v17460_v47 }
 0x519   :  { %v16035_v49 = vpop.f32.mrf.mxu1 }
 0x51a   :  { %17461 = vst [vmem:[#allocation49_spill] sm:$0xff] %v16035_v49 }
 0x51b   :  { %v11571_v13 = vpop.f32.mrf.mxu1 }
 0x51d   :  { %v11572_v14 = vpop.f32.mrf.mxu1 }
 0x51e   :  { %v11573_v29 = vadd.f32 %v11572_v14, %v11571_v13 }
 0x51f   :  { %v11574_v60 = vpop.f32.mrf.mxu1 }
 0x520   :  { %v3103_v34 = vadd.f32 %v11573_v29, %v11509_v38 }
 0x521   :  { %v11575_v39 = vpop.f32.mrf.mxu1 }
 0x522   :  { %v11576_v56 = vadd.f32 %v11575_v39, %v11574_v60  ;;  %v16070_v60 = vld [vmem:[%s17423_s22 + $0xf0] sm:$0xff]   ;;  %v11540_v39 = vpop.f32.mrf.mxu0 }
 0x523   :  { %v11577_v21 = vpop.f32.mrf.mxu1 }
 0x524   :  { %v3106_v54 = vadd.f32 %v11576_v56, %v11512_v61 }
 0x525   :  { %v11578_v4 = vpop.f32.mrf.mxu1 }
 0x526   :  { %v3165_v9 = vpack.c.bf16 %v3106_v54, %v3103_v34  ;;  %v11579_v40 = vadd.f32 %v11578_v4, %v11577_v21  ;;  %v11541_v21 = vpop.f32.mrf.mxu0  ;;  %v16088_v4 = vld [vmem:[%s17423_s22 + $0xa8] sm:$0xff]  }
 0x527   :  { %v11580_v28 = vpop.f32.mrf.mxu1 }
 0x528   :  { %12742 = vmatprep.mubr.bf16.mxu0 %v3165_v9  ;;  %v3111_v41 = vadd.f32 %v11579_v40, %v11515_v20  ;;  %v11527_v9 = vadd.f32 %v16018_v32, %v16016_v58  ;;  %v16104_v58 = vld [vmem:[%s17423_s22 + $0xa0] sm:$0xff]  }
 0x529   :  { %v11581_v55 = vpop.f32.mrf.mxu1 }
 0x52a   :  { %v11582_v12 = vadd.f32 %v11581_v55, %v11580_v28  ;;  %v11530_v28 = vadd.f32 %v16030_v6, %v16022_v44  ;;  %v16098_v55 = vld [vmem:[%s17423_s22 + $0xe0] sm:$0xff]   ;;  %v16110_v44 = vld [vmem:[%s17423_s22 + $0xd8] sm:$0xff]  }
 0x52b   :  { %v11583_v26 = vpop.f32.mrf.mxu1 }
 0x52c   :  { %v3114_v17 = vadd.f32 %v11582_v12, %v11518_v36  ;;  %v11543_v36 = vpop.f32.mrf.mxu0 }
 0x52d   :  { %v11584_v37 = vpop.f32.mrf.mxu1 }
 0x52e   :  { %v3166_v27 = vpack.c.bf16 %v3114_v17, %v3111_v41  ;;  %v11585_v13 = vadd.f32 %v11584_v37, %v11583_v26  ;;  %v11544_v17 = vpop.f32.mrf.mxu0 }
 0x52f   :  { %v11586_v47 = vpop.f32.mrf.mxu1 }
 0x530   :  { %12743 = vmatmul.mubr.bf16.vlgmr.msra.gmra.mxu0 %v3166_v27  ;;  %v3119_v38 = vadd.f32 %v11585_v13, %v11521_v3  ;;  %v11533_v13 = vadd.f32 %v16039_v25, %v16037_v11  ;;  %v16132_v11 = vld [vmem:[%s17423_s22 + $0x90] sm:$0xff]  }
 0x531   :  { %v11587_v14 = vpop.f32.mrf.mxu1  ;;  %11700 = vmatpush3.bf16.msra.mxu0 %v16060_v10 }
 0x532   :  { %v11588_v59 = vadd.f32 %v11587_v14, %v11586_v47  ;;  %11701 = vmatprep.subr.bf16.mxu0 %v16070_v60  ;;  %v16116_v47 = vld [vmem:[%s17423_s22 + $0x98] sm:$0xff]   ;;  %v11536_v14 = vadd.f32 %v16047_v46, %v16045_v50  ;;  %v16138_v50 = vld [vmem:[%s17423_s22 + $0xc8] sm:$0xff]  }
 0x533   :  { %v11589_v29 = vpop.f32.mrf.mxu1 }
 0x534   :  { %v3122_v61 = vadd.f32 %v11588_v59, %v11524_v7  ;;  %v16126_v7 = vld [vmem:[%s17423_s22 + $0xd0] sm:$0xff]  }
 0x535   :  { %v11590_v56 = vpop.f32.mrf.mxu1  ;;  %11702 = vmatpush3.bf16.msra.mxu0 %v16076_v53 }
 0x536   :  { %v3167_v31 = vpack.c.bf16 %v3122_v61, %v3119_v38  ;;  %11703 = vmatprep.subr.bf16.mxu0 %v16082_v0  ;;  %v11591_v34 = vadd.f32 %v11590_v56, %v11589_v29  ;;  %v11546_v29 = vpop.f32.mrf.mxu0 }
 0x537   :  { %v11592_v24 = vpop.f32.mrf.mxu1 }
 0x538   :  { %12746 = vmatprep.mubr.bf16.mxu0 %v3167_v31  ;;  %v3127_v12 = vadd.f32 %v11591_v34, %v11527_v9  ;;  %v11547_v31 = vpop.f32.mrf.mxu0  ;;  %v11539_v9 = vadd.f32 %v16055_v45, %v16053_v57  ;;  %v16164_v45 = vld [vmem:[%s17423_s22 + $0x78] sm:$0xff]  }
 0x539   :  { %v11593_v54 = vpop.f32.mrf.mxu1  ;;  %11704 = vmatpush3.bf16.msra.mxu0 %v16088_v4 }
 0x53a   :  { %v11594_v40 = vadd.f32 %v11593_v54, %v11592_v24  ;;  %11705 = vmatprep.subr.bf16.mxu0 %v16098_v55  ;;  %v16144_v54 = vld [vmem:[%s17423_s22 + $0x88] sm:$0xff]  }
 0x53b   :  { %v11595_v20 = vpop.f32.mrf.mxu1 }
 0x53c   :  { %v3130_v26 = vadd.f32 %v11594_v40, %v11530_v28  ;;  %v11542_v28 = vadd.f32 %v11541_v21, %v11540_v39 }
 0x53d   :  { %v11596_v41 = vpop.f32.mrf.mxu1  ;;  %11706 = vmatpush3.bf16.msra.mxu0 %v16104_v58 }
 0x53e   :  { %v3168_v32 = vpack.c.bf16 %v3130_v26, %v3127_v12  ;;  %11707 = vmatprep.subr.bf16.mxu0 %v16110_v44  ;;  %v11597_v37 = vadd.f32 %v11596_v41, %v11595_v20  ;;  %v16152_v20 = vld [vmem:[%s17423_s22 + $0xc0] sm:$0xff]   ;;  %v11549_v26 = vpop.f32.mrf.mxu0 }
 0x53f   :  { %v11598_v6 = vpop.f32.mrf.mxu1 }
 0x540   :  { %12747 = vmatmul.mubr.bf16.gmra.mxu0 %v3168_v32  ;;  %v3135_v38 = vadd.f32 %v11597_v37, %v11533_v13  ;;  %v16158_v37 = vld [vmem:[%s17423_s22 + $0x80] sm:$0xff]   ;;  %v11550_v39 = vpop.f32.mrf.mxu0 }
 0x541   :  { %v11599_v27 = vpop.f32.mrf.mxu1  ;;  %11708 = vmatpush3.bf16.msra.mxu0 %v16116_v47 }
 0x542   :  { %v11600_v3 = vadd.f32 %v11599_v27, %v11598_v6  ;;  %11709 = vmatprep.subr.bf16.mxu0 %v16126_v7 }
 0x543   :  { %v11601_v59 = vpop.f32.mrf.mxu1 }
 0x544   :  { %v3138_v61 = vadd.f32 %v11600_v3, %v11536_v14  ;;  %v11545_v14 = vadd.f32 %v11544_v17, %v11543_v36  ;;  %v11548_v3 = vadd.f32 %v11547_v31, %v11546_v29  ;;  %v14069_v17 = vld [vmem:[#allocation3 + $0x508] ss:$16 sps:$4 sm:$0xff]   ;;  %v14077_v29 = vld [vmem:[#allocation3 + $0x52c] ss:$16 sps:$4 sm:$0xff]  }
 0x545   :  { %v11602_v56 = vpop.f32.mrf.mxu1  ;;  %11710 = vmatpush3.bf16.msra.mxu0 %v16132_v11  ;;  %v16170_v31 = vld [vmem:[%s17423_s22 + $0x38] sm:$0xff]  }
 0x546   :  { %v3169_v25 = vpack.c.bf16 %v3138_v61, %v3135_v38  ;;  %11711 = vmatprep.subr.bf16.mxu0 %v16138_v50  ;;  %v11603_v24 = vadd.f32 %v11602_v56, %v11601_v59  ;;  %v11552_v38 = vpop.f32.mrf.mxu0 }
 0x547   :  { %v11604_v46 = vpop.f32.mrf.mxu1 }
 0x548   :  { %12750 = vmatprep.mubr.bf16.mxu0 %v3169_v25  ;;  %v3143_v41 = vadd.f32 %v11603_v24, %v11539_v9 }
 0x549   :  { %v11605_v34 = vpop.f32.mrf.mxu1  ;;  %11712 = vmatpush3.bf16.msra.mxu0 %v16144_v54 }
 0x54a   :  { %v11606_v40 = vadd.f32 %v11605_v34, %v11604_v46  ;;  %11713 = vmatprep.subr.bf16.mxu0 %v16152_v20  ;;  %v11553_v34 = vpop.f32.mrf.mxu0 }
 0x54b   :  { %v11607_v12 = vpop.f32.mrf.mxu1 }
 0x54c   :  { %v3146_v32 = vadd.f32 %v11606_v40, %v11542_v28 }
 0x54d   :  { %v11608_v6 = vpop.f32.mrf.mxu1  ;;  %11714 = vmatpush3.bf16.msra.mxu0 %v16158_v37 }
 0x54e   :  { %v3170_v57 = vpack.c.bf16 %v3146_v32, %v3143_v41  ;;  %11779 = vmatprep.subr.bf16.mxu0 %v16164_v45  ;;  %v11609_v27 = vadd.f32 %v11608_v6, %v11607_v12  ;;  %v11551_v41 = vadd.f32 %v11550_v39, %v11549_v26  ;;  %v11554_v32 = vadd.f32 %v11553_v34, %v11552_v38  ;;  %v16176_v26 = vld [vmem:[%s17423_s22 + $0x70] sm:$0xff]   ;;  %v16206_v38 = vld [vmem:[%s17423_s22 + $0x20] sm:$0xff]  }
 0x54f   :  { %v11610_v21 = vpop.f32.mrf.mxu1  ;;  %v14083_v39 = vld [vmem:[#allocation3 + $0x54c] ss:$16 sps:$4 sm:$0xff]  }
 0x550   :  { %12751 = vmatmul.mubr.bf16.gmra.mxu0 %v3170_v57  ;;  %v3151_v56 = vadd.f32 %v11609_v27, %v11545_v14  ;;  %v14071_v57 = vld [vmem:[#allocation3 + $0x50c] ss:$16 sps:$4 sm:$0xff]  }
 0x551   :  { %v11611_v13 = vpop.f32.mrf.mxu1  ;;  %v16188_v27 = vld [vmem:[%s17423_s22 + $0x68] sm:$0xff]   ;;  %v16200_v14 = vld [vmem:[%s17423_s22 + $0x60] sm:$0xff]   ;;  %v16230_v34 = vld [vmem:[%s17423_s22 + $0x10] sm:$0xff]  }
 0x552   :  { %v11612_v59 = vadd.f32 %v11611_v13, %v11610_v21  ;;  %v16182_v21 = vld [vmem:[%s17423_s22 + $0x30] sm:$0xff]   ;;  %v16194_v13 = vld [vmem:[%s17423_s22 + $0x28] sm:$0xff]  }
 0x553   :  { %v11613_v61 = vpop.f32.mrf.mxu1 }
 0x554   :  { %v3154_v25 = vadd.f32 %v11612_v59, %v11548_v3  ;;  %v14081_v3 = vld [vmem:[#allocation3 + $0x548] ss:$16 sps:$4 sm:$0xff]   ;;  %v14089_v59 = vld [vmem:[#allocation3 + $0x56c] ss:$16 sps:$4 sm:$0xff]  }
 0x555   :  { %v11614_v46 = vpop.f32.mrf.mxu1 }
 0x556   :  { %v3171_v24 = vpack.c.bf16 %v3154_v25, %v3151_v56  ;;  %v11615_v28 = vadd.f32 %v11614_v46, %v11613_v61  ;;  %v16212_v61 = vld [vmem:[%s17423_s22 + $0x58] sm:$0xff]   ;;  %v16224_v25 = vld [vmem:[%s17423_s22 + $0x50] sm:$0xff]  }
 0x557   :  { %v11616_v9 = vpop.f32.mrf.mxu1  ;;  %v16218_v56 = vld [vmem:[%s17423_s22 + $0x18] sm:$0xff]  }
 0x558   :  { %12754 = vmatprep.mubr.bf16.mxu0 %v3171_v24  ;;  %v3159_v12 = vadd.f32 %v11615_v28, %v11551_v41  ;;  %v14087_v46 = vld [vmem:[#allocation3 + $0x568] ss:$16 sps:$4 sm:$0xff]   ;;  %v14095_v24 = vld [vmem:[#allocation3 + $0x58c] ss:$16 sps:$4 sm:$0xff]  }
 0x559   :  { %v11617_v40 = vpop.f32.mrf.mxu1  ;;  %v14101_v28 = vld [vmem:[#allocation3 + $0x5ac] ss:$16 sps:$4 sm:$0xff]  }
 0x55a   :  { %v11618_v48 = vadd.f32 %v11617_v40, %v11616_v9  ;;  %v14093_v9 = vld [vmem:[#allocation3 + $0x588] ss:$16 sps:$4 sm:$0xff]   ;;  %v14107_v41 = vld [vmem:[#allocation3 + $0x5cc] ss:$16 sps:$4 sm:$0xff]  }
 0x55b   :  { %v14099_v40 = vld [vmem:[#allocation3 + $0x5a8] ss:$16 sps:$4 sm:$0xff]  }
 0x55c   :  { %v3162_v6 = vadd.f32 %v11618_v48, %v11554_v32  ;;  %v14075_v48 = vld [vmem:[#allocation3 + $0x528] ss:$16 sps:$4 sm:$0xff]  }
 0x55d   :  { %v14105_v32 = vld [vmem:[#allocation3 + $0x5c8] ss:$16 sps:$4 sm:$0xff]  }
 0x55e   :  { %v3172_v36 = vpack.c.bf16 %v3162_v6, %v3159_v12  ;;  %v14113_v12 = vld [vmem:[#allocation3 + $0x5ec] ss:$16 sps:$4 sm:$0xff]  }
 0x55f   :  { %v14114_v6 = vld [vmem:[#allocation5 + $0x178] sm:$0xff]  }
 0x560   :  { %12755 = vmatmul.mubr.bf16.gmra.mxu0 %v3172_v36  ;;  %12758 = vmatprep.subr.bf16.mxu1 %v14114_v6  ;;  %v14119_v36 = vld [vmem:[#allocation5 + $0x150] sm:$0xff]  }
 0x561   :  { %3673 = vmatprep.mubr.bf16.mxu0 %v14071_v57  ;;  %12759 = vmatpush3.bf16.msra.mxu1 %v14114_v6  ;;  %v14118_v57 = vld [vmem:[#allocation5 + $0x158] sm:$0xff]   ;;  %v14128_v6 = vld [vmem:[#allocation3 + $0x620] ss:$16 sps:$4 sm:$0xff]  }
 0x568   :  { %3674 = vmatmul.mubr.bf16.vlgmr.msra.gmra.mxu0 %v14069_v17  ;;  %v14120_v17 = vld [vmem:[#allocation5 + $0x148] sm:$0xff]  }
 0x569   :  { %3681 = vmatprep.mubr.bf16.mxu0 %v14077_v29  ;;  %11780 = vmatpush3.bf16.msra.mxu0 %v16170_v31  ;;  %v14121_v29 = vld [vmem:[#allocation5 + $0x140] sm:$0xff]  }
 0x56a   :  { %11781 = vmatprep.subr.bf16.mxu0 %v16176_v26 }
 0x56d   :  { %11782 = vmatpush3.bf16.msra.mxu0 %v16182_v21 }
 0x56e   :  { %11783 = vmatprep.subr.bf16.mxu0 %v16188_v27 }
 0x570   :  { %3682 = vmatmul.mubr.bf16.gmra.mxu0 %v14075_v48  ;;  %v16238_v48 = vpop.f32.mrf.mxu1 }
 0x571   :  { %3689 = vmatprep.mubr.bf16.mxu0 %v14083_v39  ;;  %11784 = vmatpush3.bf16.msra.mxu0 %v16194_v13 }
 0x572   :  { %11785 = vmatprep.subr.bf16.mxu0 %v16200_v14  ;;  %v16240_v39 = vpop.f32.mrf.mxu1 }
 0x575   :  { %11786 = vmatpush3.bf16.msra.mxu0 %v16206_v38 }
 0x576   :  { %11787 = vmatprep.subr.bf16.mxu0 %v16212_v61 }
 0x578   :  { %3690 = vmatmul.mubr.bf16.gmra.mxu0 %v14081_v3  ;;  %v14124_v3 = vld [vmem:[#allocation3 + $0x604] ss:$16 sps:$4 sm:$0xff]  }
 0x579   :  { %3697 = vmatprep.mubr.bf16.mxu0 %v14089_v59  ;;  %11788 = vmatpush3.bf16.msra.mxu0 %v16218_v56  ;;  %v14122_v59 = vld [vmem:[#allocation3 + $0x600] ss:$16 sps:$4 sm:$0xff]  }
 0x57a   :  { %11789 = vmatprep.subr.bf16.mxu0 %v16224_v25 }
 0x57d   :  { %11790 = vmatpush3.bf16.msra.mxu0 %v16230_v34 }
 0x57e   :  { %11791 = vmatprep.subr.bf16.mxu0 %v15934_v18  ;;  %v14111_v18 = vld [vmem:[#allocation3 + $0x5e8] ss:$16 sps:$4 sm:$0xff]  }
 0x580   :  { %3698 = vmatmul.mubr.bf16.gmra.mxu0 %v14087_v46 }
 0x581   :  { %3705 = vmatprep.mubr.bf16.mxu0 %v14095_v24  ;;  %11792 = vmatpush3.bf16.msra.mxu0 %v15940_v35  ;;  %v14115_v35 = vld [vmem:[#allocation5 + $0x170] sm:$0xff]   ;;  %v16242_v24 = vpop.f32.mrf.mxu1 }
 0x582   :  { %11793 = vmatprep.subr.bf16.mxu0 %v15946_v30  ;;  %12760 = vmatprep.subr.bf16.mxu1 %v14115_v35  ;;  %v14116_v30 = vld [vmem:[#allocation5 + $0x168] sm:$0xff]  }
 0x583   :  { %12761 = vmatpush3.bf16.msra.mxu1 %v14115_v35 }
 0x584   :  { %12762 = vmatprep.subr.bf16.mxu1 %v14116_v30 }
 0x585   :  { %11794 = vmatpush3.bf16.msra.mxu0 %v15952_v51  ;;  %v14117_v51 = vld [vmem:[#allocation5 + $0x160] sm:$0xff]  }
 0x587   :  { %12763 = vmatpush3.bf16.msra.mxu1 %v14116_v30  ;;  %v14134_v30 = vld [vmem:[#allocation3 + $0x640] ss:$16 sps:$4 sm:$0xff]  }
 0x588   :  { %3706 = vmatmul.mubr.bf16.gmra.mxu0 %v14093_v9  ;;  %12764 = vmatprep.subr.bf16.mxu1 %v14117_v51 }
 0x589   :  { %3713 = vmatprep.mubr.bf16.mxu0 %v14101_v28 }
 0x58b   :  { %12765 = vmatpush3.bf16.msra.mxu1 %v14117_v51 }
 0x58c   :  { %12766 = vmatprep.subr.bf16.mxu1 %v14118_v57 }
 0x58f   :  { %12767 = vmatpush3.bf16.msra.mxu1 %v14118_v57 }
 0x590   :  { %3714 = vmatmul.mubr.bf16.gmra.mxu0 %v14099_v40  ;;  %12768 = vmatprep.subr.bf16.mxu1 %v14119_v36 }
 0x591   :  { %3721 = vmatprep.mubr.bf16.mxu0 %v14107_v41 }
 0x593   :  { %12769 = vmatpush3.bf16.msra.mxu1 %v14119_v36 }
 0x594   :  { %12770 = vmatprep.subr.bf16.mxu1 %v14120_v17 }
 0x597   :  { %12771 = vmatpush3.bf16.msra.mxu1 %v14120_v17 }
 0x598   :  { %3722 = vmatmul.mubr.bf16.gmra.mxu0 %v14105_v32  ;;  %12772 = vmatprep.subr.bf16.mxu1 %v14121_v29  ;;  %v14130_v32 = vld [vmem:[#allocation3 + $0x624] ss:$16 sps:$4 sm:$0xff]  }
 0x599   :  { %3729 = vmatprep.mubr.bf16.mxu0 %v14113_v12 }
 0x59b   :  { %12773 = vmatpush3.bf16.msra.mxu1 %v14121_v29 }
 0x59c   :  { %11843 = vmatprep.subr.bf16.mxu1 %v15958_v5  ;;  %v16250_v5 = vpop.f32.mrf.mxu1 }
 0x5a0   :  { %3730 = vmatmul.mubr.bf16.gmra.mxu0 %v14111_v18  ;;  %v16255_v18 = vpop.f32.mrf.mxu1 }
 0x5a1   :  { %4149 = vmatprep.mubr.bf16.mxu0 %v14124_v3 }
 0x5a2   :  { %v16257_v35 = vpop.f32.mrf.mxu1 }
 0x5a4   :  { %v16261_v57 = vpop.f32.mrf.mxu1 }
 0x5a6   :  { %v16269_v3 = vpop.f32.mrf.mxu1 }
 0x5a8   :  { %4150 = vmatmul.mubr.bf16.vlgmr.msra.gmra.mxu0 %v14122_v59  ;;  %v14142_v59 = vld [vmem:[#allocation3 + $0x664] ss:$16 sps:$4 sm:$0xff]  }
 0x5a9   :  { %4157 = vmatprep.mubr.bf16.mxu0 %v14130_v32 }
 0x5b0   :  { %4158 = vmatmul.mubr.bf16.gmra.mxu0 %v14128_v6  ;;  %v14146_v6 = vld [vmem:[#allocation3 + $0x680] ss:$16 sps:$4 sm:$0xff]  }
 0x5f0   :  { %v12744_v46 = vpop.f32.mrf.mxu0 }
 0x5f1   :  { %v16245_v9 = vadd.f32 %v12744_v46, %v15968_v23  ;;  %v14136_v23 = vld [vmem:[#allocation3 + $0x644] ss:$16 sps:$4 sm:$0xff]  }
 0x5f2   :  { %v3272_v28 = vpop.f32.mrf.mxu0  ;;  %4165 = vmatprep.mubr.bf16.mxu0 %v14136_v23 }
 0x5f3   :  { %v16248_v40 = vadd.f32 %v3272_v28, %v15971_v22  ;;  %4166 = vmatmul.mubr.bf16.gmra.mxu0 %v14134_v30  ;;  %v14140_v28 = vld [vmem:[#allocation3 + $0x660] ss:$16 sps:$4 sm:$0xff]  }
 0x5f4   :  { %v12745_v41 = vpop.f32.mrf.mxu0  ;;  %4173 = vmatprep.mubr.bf16.mxu0 %v14142_v59 }
 0x5f5   :  { %17462 = vst [vmem:[#allocation50_spill] sm:$0xff] %v16248_v40  ;;  %v16253_v12 = vadd.f32 %v12745_v41, %v15976_v8  ;;  %v16274_v41 = vpop.f32.mrf.mxu1 }
 0x5f6   :  { %v16259_v51 = vpop.f32.mrf.mxu0 }
 0x5f7   :  { %17463 = vst [vmem:[#allocation52_spill] sm:$0xff] %v16253_v12  ;;  %17464 = vst [vmem:[#allocation53_spill] sm:$0xff] %v16259_v51  ;;  %v16276_v32 = vpop.f32.mrf.mxu1 }
 0x5f9   :  { %v16280_v30 = vpop.f32.mrf.mxu1 }
 0x5fb   :  { %4174 = vmatmul.mubr.bf16.gmra.mxu0 %v14140_v28  ;;  %v16288_v59 = vpop.f32.mrf.mxu1  ;;  %v14154_v28 = vld [vmem:[#allocation3 + $0x6a4] ss:$16 sps:$4 sm:$0xff]  }
 0x600   :  { %v12748_v22 = vpop.f32.mrf.mxu0 }
 0x601   :  { %v16264_v36 = vadd.f32 %v12748_v22, %v15987_v52  ;;  %v14148_v52 = vld [vmem:[#allocation3 + $0x684] ss:$16 sps:$4 sm:$0xff]  }
 0x602   :  { %v3288_v8 = vpop.f32.mrf.mxu0  ;;  %4181 = vmatprep.mubr.bf16.mxu0 %v14148_v52  ;;  %v16293_v52 = vpop.f32.mrf.mxu1 }
 0x603   :  { %17465 = vst [vmem:[#allocation54_spill] sm:$0xff] %v16264_v36  ;;  %v16267_v17 = vadd.f32 %v3288_v8, %v15990_v2  ;;  %4182 = vmatmul.mubr.bf16.gmra.mxu0 %v14146_v6 }
 0x604   :  { %v12749_v29 = vpop.f32.mrf.mxu0  ;;  %4189 = vmatprep.mubr.bf16.mxu0 %v14154_v28  ;;  %v16295_v6 = vpop.f32.mrf.mxu1 }
 0x605   :  { %17466 = vst [vmem:[#allocation56_spill] sm:$0xff] %v16267_v17  ;;  %v16272_v46 = vadd.f32 %v12749_v29, %v15995_v43 }
 0x606   :  { %v16278_v23 = vpop.f32.mrf.mxu0 }
 0x607   :  { %17467 = vst [vmem:[#allocation57_spill] sm:$0xff] %v16272_v46  ;;  %17468 = vst [vmem:[#allocation58_spill] sm:$0xff] %v16278_v23  ;;  %v14152_v23 = vld [vmem:[#allocation3 + $0x6a0] ss:$16 sps:$4 sm:$0xff]  }
 0x60b   :  { %4190 = vmatmul.mubr.bf16.gmra.mxu0 %v14152_v23 }
 0x610   :  { %v12752_v2 = vpop.f32.mrf.mxu0 }
 0x611   :  { %v16283_v22 = vadd.f32 %v12752_v2, %v16006_v62  ;;  %v14160_v62 = vld [vmem:[#allocation3 + $0x6c4] ss:$16 sps:$4 sm:$0xff]   ;;  %v14158_v2 = vld [vmem:[#allocation3 + $0x6c0] ss:$16 sps:$4 sm:$0xff]  }
 0x612   :  { %v3304_v43 = vpop.f32.mrf.mxu0  ;;  %4197 = vmatprep.mubr.bf16.mxu0 %v14160_v62 }
 0x613   :  { %17469 = vst [vmem:[#allocation60_spill] sm:$0xff] %v16283_v22  ;;  %v16286_v8 = vadd.f32 %v3304_v43, %v16009_v42  ;;  %4198 = vmatmul.mubr.bf16.gmra.mxu0 %v14158_v2  ;;  %v16299_v43 = vpop.f32.mrf.mxu1 }
 0x614   :  { %v12753_v29 = vpop.f32.mrf.mxu0  ;;  %4205 = vmatprep.mubr.bf16.mxu0 %v14166_v1 }
 0x615   :  { %17470 = vst [vmem:[#allocation61_spill] sm:$0xff] %v16286_v8  ;;  %v16291_v51 = vadd.f32 %v12753_v29, %v16014_v33  ;;  %v11673_v28 = vpop.f32.mrf.mxu1  ;;  %v14164_v8 = vld [vmem:[#allocation3 + $0x6e0] ss:$16 sps:$4 sm:$0xff]  }
 0x616   :  { %v16297_v63 = vpop.f32.mrf.mxu0 }
 0x617   :  { %17471 = vst [vmem:[#allocation62_spill] sm:$0xff] %v16291_v51  ;;  %17472 = vst [vmem:[#allocation63_spill] sm:$0xff] %v16297_v63  ;;  %v16312_v2 = vpop.f32.mrf.mxu1 }
 0x61b   :  { %4206 = vmatmul.mubr.bf16.gmra.mxu0 %v14164_v8 }
 0x620   :  { %v12756_v42 = vpop.f32.mrf.mxu0 }
 0x621   :  { %v16302_v49 = vadd.f32 %v12756_v42, %v16025_v15 }
 0x622   :  { %v3320_v33 = vpop.f32.mrf.mxu0 }
 0x623   :  { %17473 = vst [vmem:[#allocation64_spill] sm:$0xff] %v16302_v49  ;;  %v16305_v29 = vadd.f32 %v3320_v33, %v16028_v19  ;;  %v16314_v49 = vpop.f32.mrf.mxu1 }
 0x624   :  { %v12757_v23 = vpop.f32.mrf.mxu0 }
 0x625   :  { %17474 = vst [vmem:[#allocation65_spill] sm:$0xff] %v16305_v29  ;;  %v16308_v51 = vadd.f32 %v12757_v23, %v16033_v16  ;;  %v11653_v29 = vadd.f32 %v16240_v39, %v16238_v48  ;;  %v11656_v16 = vadd.f32 %v16250_v5, %v16242_v24  ;;  %v11662_v48 = vadd.f32 %v16269_v3, %v16261_v57 }
 0x626   :  { %v16310_v63 = vpop.f32.mrf.mxu0 }
 0x627   :  { %17475 = vst [vmem:[#allocation66_spill] sm:$0xff] %v16308_v51  ;;  %17476 = vst [vmem:[#allocation67_spill] sm:$0xff] %v16310_v63  ;;  %v11678_v63 = vpop.f32.mrf.mxu1 }
 0x628   :  { %v11715_v62 = vpop.f32.mrf.mxu0 }
 0x629   :  { %v11679_v36 = vpop.f32.mrf.mxu1 }
 0x62a   :  { %v11716_v15 = vpop.f32.mrf.mxu0 }
 0x62b   :  { %v11717_v19 = vadd.f32 %v11716_v15, %v11715_v62  ;;  %v11659_v62 = vadd.f32 %v16257_v35, %v16255_v18  ;;  %v16324_v5 = vpop.f32.mrf.mxu1  ;;  %v11665_v18 = vadd.f32 %v16276_v32, %v16274_v41  ;;  %v11674_v32 = vadd.f32 %v11673_v28, %v16299_v43 }
 0x62c   :  { %v11718_v42 = vpop.f32.mrf.mxu0 }
 0x62d   :  { %v3676_v1 = vadd.f32 %v11717_v19, %v11653_v29 }
 0x62e   :  { %v11719_v33 = vpop.f32.mrf.mxu0 }
 0x62f   :  { %v11720_v23 = vadd.f32 %v11719_v33, %v11718_v42 }
 0x630   :  { %v11721_v51 = vpop.f32.mrf.mxu0 }
 0x631   :  { %v3679_v8 = vadd.f32 %v11720_v23, %v11656_v16  ;;  %v11682_v16 = vpop.f32.mrf.mxu1 }
 0x632   :  { %v11722_v22 = vpop.f32.mrf.mxu0 }
 0x633   :  { %v3738_v46 = vpack.c.bf16 %v3679_v8, %v3676_v1  ;;  %v11723_v12 = vadd.f32 %v11722_v22, %v11721_v51  ;;  %v11684_v57 = vpop.f32.mrf.mxu1 }
 0x634   :  { %v11724_v17 = vpop.f32.mrf.mxu0 }
 0x635   :  { %12774 = vmatprep.mubr.bf16.mxu1 %v3738_v46  ;;  %v3684_v15 = vadd.f32 %v11723_v12, %v11659_v62  ;;  %v11685_v1 = vpop.f32.mrf.mxu1 }
 0x636   :  { %v11725_v40 = vpop.f32.mrf.mxu0 }
 0x637   :  { %v11726_v39 = vadd.f32 %v11725_v40, %v11724_v17  ;;  %v11668_v40 = vadd.f32 %v16288_v59, %v16280_v30 }
 0x638   :  { %v11727_v24 = vpop.f32.mrf.mxu0 }
 0x639   :  { %v3687_v29 = vadd.f32 %v11726_v39, %v11662_v48 }
 0x63a   :  { %v11728_v42 = vpop.f32.mrf.mxu0 }
 0x63b   :  { %v3739_v19 = vpack.c.bf16 %v3687_v29, %v3684_v15  ;;  %v11729_v23 = vadd.f32 %v11728_v42, %v11727_v24 }
 0x63c   :  { %v11730_v33 = vpop.f32.mrf.mxu0 }
 0x63d   :  { %12775 = vmatmul.mubr.bf16.vlgmr.msra.gmra.mxu1 %v3739_v19  ;;  %v3692_v17 = vadd.f32 %v11729_v23, %v11665_v18 }
 0x63e   :  { %v11731_v51 = vpop.f32.mrf.mxu0  ;;  %11844 = vmatpush3.bf16.msra.mxu1 %v16060_v10 }
 0x63f   :  { %v11732_v35 = vadd.f32 %v11731_v51, %v11730_v33  ;;  %11845 = vmatprep.subr.bf16.mxu1 %v16070_v60  ;;  %v11671_v60 = vadd.f32 %v16295_v6, %v16293_v52  ;;  %v11680_v6 = vadd.f32 %v11679_v36, %v11678_v63  ;;  %v11683_v63 = vadd.f32 %v11682_v16, %v16324_v5 }
 0x640   :  { %v11733_v12 = vpop.f32.mrf.mxu0 }
 0x641   :  { %v3695_v3 = vadd.f32 %v11732_v35, %v11668_v40 }
 0x642   :  { %v11734_v46 = vpop.f32.mrf.mxu0  ;;  %11846 = vmatpush3.bf16.msra.mxu1 %v16076_v53  ;;  %v11687_v53 = vpop.f32.mrf.mxu1 }
 0x643   :  { %v3740_v22 = vpack.c.bf16 %v3695_v3, %v3692_v17  ;;  %11847 = vmatprep.subr.bf16.mxu1 %v16082_v0  ;;  %v11735_v8 = vadd.f32 %v11734_v46, %v11733_v12 }
 0x644   :  { %v11736_v10 = vpop.f32.mrf.mxu0 }
 0x645   :  { %12778 = vmatprep.mubr.bf16.mxu1 %v3740_v22  ;;  %v3700_v62 = vadd.f32 %v11735_v8, %v11671_v60 }
 0x646   :  { %v11737_v41 = vpop.f32.mrf.mxu0  ;;  %11848 = vmatpush3.bf16.msra.mxu1 %v16088_v4  ;;  %v11688_v4 = vpop.f32.mrf.mxu1 }
 0x647   :  { %v11738_v30 = vadd.f32 %v11737_v41, %v11736_v10  ;;  %11849 = vmatprep.subr.bf16.mxu1 %v16098_v55  ;;  %v11677_v55 = vadd.f32 %v16314_v49, %v16312_v2  ;;  %v11686_v49 = vadd.f32 %v11685_v1, %v11684_v57  ;;  %v11689_v5 = vadd.f32 %v11688_v4, %v11687_v53  ;;  %v14139_v4 = vld [vmem:[#allocation3 + $0x64c] ss:$16 sps:$4 sm:$0xff]  }
 0x648   :  { %v11739_v59 = vpop.f32.mrf.mxu0  ;;  %v11690_v29 = vpop.f32.mrf.mxu1 }
 0x649   :  { %v3703_v48 = vadd.f32 %v11738_v30, %v11674_v32 }
 0x64a   :  { %v11740_v0 = vpop.f32.mrf.mxu0  ;;  %11850 = vmatpush3.bf16.msra.mxu1 %v16104_v58  ;;  %v11691_v23 = vpop.f32.mrf.mxu1 }
 0x64b   :  { %v3741_v39 = vpack.c.bf16 %v3703_v48, %v3700_v62  ;;  %11851 = vmatprep.subr.bf16.mxu1 %v16110_v44  ;;  %v11741_v15 = vadd.f32 %v11740_v0, %v11739_v59  ;;  %v11692_v16 = vadd.f32 %v11691_v23, %v11690_v29  ;;  %v14127_v48 = vld [vmem:[#allocation3 + $0x60c] ss:$16 sps:$4 sm:$0xff]   ;;  %v14125_v0 = vld [vmem:[#allocation3 + $0x608] ss:$16 sps:$4 sm:$0xff]  }
 0x64c   :  { %v11742_v24 = vpop.f32.mrf.mxu0  ;;  %v11693_v2 = vpop.f32.mrf.mxu1  ;;  %v14172_v29 = vld [vmem:[#allocation5 + $0x1a8] sm:$0xff]   ;;  %v16390_v23 = vld [vmem:[%s17423_s22 + $0xf8] sm:$0xff]  }
 0x64d   :  { %12779 = vmatmul.mubr.bf16.gmra.mxu1 %v3741_v39  ;;  %v3708_v58 = vadd.f32 %v11741_v15, %v11677_v55  ;;  %v14133_v39 = vld [vmem:[#allocation3 + $0x62c] ss:$16 sps:$4 sm:$0xff]   ;;  %v14137_v15 = vld [vmem:[#allocation3 + $0x648] ss:$16 sps:$4 sm:$0xff]  }
 0x64e   :  { %v11743_v52 = vpop.f32.mrf.mxu0  ;;  %11852 = vmatpush3.bf16.msra.mxu1 %v16116_v47  ;;  %v11694_v35 = vpop.f32.mrf.mxu1  ;;  %v14169_v55 = vld [vmem:[#allocation3 + $0x6ec] ss:$16 sps:$4 sm:$0xff]  }
 0x64f   :  { %v11744_v43 = vadd.f32 %v11743_v52, %v11742_v24  ;;  %11853 = vmatprep.subr.bf16.mxu1 %v16126_v7  ;;  %v14131_v24 = vld [vmem:[#allocation3 + $0x628] ss:$16 sps:$4 sm:$0xff]   ;;  %v14145_v52 = vld [vmem:[#allocation3 + $0x66c] ss:$16 sps:$4 sm:$0xff]  }
 0x650   :  { %v11745_v28 = vpop.f32.mrf.mxu0  ;;  %v11696_v3 = vpop.f32.mrf.mxu1 }
 0x651   :  { %v3711_v42 = vadd.f32 %v11744_v43, %v11680_v6  ;;  %v14170_v6 = vld [vmem:[#allocation5 + $0x1b8] sm:$0xff]  }
 0x652   :  { %v11746_v19 = vpop.f32.mrf.mxu0  ;;  %11854 = vmatpush3.bf16.msra.mxu1 %v16132_v11  ;;  %v11697_v8 = vpop.f32.mrf.mxu1  ;;  %12790 = vmatprep.subr.bf16.mxu0 %v14170_v6  ;;  %v14167_v43 = vld [vmem:[#allocation3 + $0x6e8] ss:$16 sps:$4 sm:$0xff]  }
 0x653   :  { %v3742_v44 = vpack.c.bf16 %v3711_v42, %v3708_v58  ;;  %11855 = vmatprep.subr.bf16.mxu1 %v16138_v50  ;;  %v11747_v47 = vadd.f32 %v11746_v19, %v11745_v28  ;;  %v11698_v32 = vadd.f32 %v11697_v8, %v11696_v3  ;;  %12791 = vmatpush3.bf16.msra.mxu0 %v14170_v6  ;;  %v14171_v28 = vld [vmem:[#allocation5 + $0x1b0] sm:$0xff]   ;;  %v14173_v58 = vld [vmem:[#allocation5 + $0x1a0] sm:$0xff]   ;;  %v14174_v42 = vld [vmem:[#allocation5 + $0x198] sm:$0xff]  }
 0x654   :  { %v11748_v33 = vpop.f32.mrf.mxu0  ;;  %12792 = vmatprep.subr.bf16.mxu0 %v14171_v28  ;;  %v14175_v19 = vld [vmem:[#allocation5 + $0x190] sm:$0xff]  }
 0x655   :  { %12782 = vmatprep.mubr.bf16.mxu1 %v3742_v44  ;;  %v3716_v18 = vadd.f32 %v11747_v47, %v11683_v63  ;;  %v14176_v44 = vld [vmem:[#allocation5 + $0x188] sm:$0xff]   ;;  %v14180_v63 = vld [vmem:[#allocation3 + $0x704] ss:$16 sps:$4 sm:$0xff]   ;;  %v14190_v3 = vld [vmem:[#allocation3 + $0x740] ss:$16 sps:$4 sm:$0xff]  }
 0x656   :  { %v11749_v51 = vpop.f32.mrf.mxu0  ;;  %11856 = vmatpush3.bf16.msra.mxu1 %v16144_v54 }
 0x657   :  { %v11750_v7 = vadd.f32 %v11749_v51, %v11748_v33  ;;  %11857 = vmatprep.subr.bf16.mxu1 %v16152_v20  ;;  %12793 = vmatpush3.bf16.msra.mxu0 %v14171_v28  ;;  %v14177_v33 = vld [vmem:[#allocation5 + $0x180] sm:$0xff]  }
 0x658   :  { %v11751_v36 = vpop.f32.mrf.mxu0  ;;  %12794 = vmatprep.subr.bf16.mxu0 %v14172_v29 }
 0x659   :  { %v3719_v11 = vadd.f32 %v11750_v7, %v11686_v49  ;;  %v14178_v49 = vld [vmem:[#allocation3 + $0x700] ss:$16 sps:$4 sm:$0xff]  }
 0x65a   :  { %v11752_v40 = vpop.f32.mrf.mxu0  ;;  %11858 = vmatpush3.bf16.msra.mxu1 %v16158_v37 }
 0x65b   :  { %v3743_v50 = vpack.c.bf16 %v3719_v11, %v3716_v18  ;;  %11923 = vmatprep.subr.bf16.mxu1 %v16164_v45  ;;  %v11753_v17 = vadd.f32 %v11752_v40, %v11751_v36  ;;  %v11695_v45 = vadd.f32 %v11694_v35, %v11693_v2  ;;  %12795 = vmatpush3.bf16.msra.mxu0 %v14172_v29  ;;  %v17477_v11 = vld [vmem:[#allocation50_spill] sm:$0xff] }
 0x65c   :  { %v11754_v12 = vpop.f32.mrf.mxu0  ;;  %12796 = vmatprep.subr.bf16.mxu0 %v14173_v58 }
 0x65d   :  { %12783 = vmatmul.mubr.bf16.gmra.mxu1 %v3743_v50  ;;  %v3724_v46 = vadd.f32 %v11753_v17, %v11689_v5  ;;  %v17478_v17 = vld [vmem:[#allocation52_spill] sm:$0xff] }
 0x65e   :  { %v11755_v54 = vpop.f32.mrf.mxu0  ;;  %v14184_v5 = vld [vmem:[#allocation3 + $0x720] ss:$16 sps:$4 sm:$0xff]  }
 0x65f   :  { %v11756_v57 = vadd.f32 %v11755_v54, %v11754_v12  ;;  %12797 = vmatpush3.bf16.msra.mxu0 %v14173_v58  ;;  %v14186_v12 = vld [vmem:[#allocation3 + $0x724] ss:$16 sps:$4 sm:$0xff]  }
 0x660   :  { %v11757_v20 = vpop.f32.mrf.mxu0  ;;  %12798 = vmatprep.subr.bf16.mxu0 %v14174_v42  ;;  %v14216_v58 = vld [vmem:[#allocation3 + $0x7c4] ss:$16 sps:$4 sm:$0xff]  }
 0x661   :  { %v3727_v22 = vadd.f32 %v11756_v57, %v11692_v16 }
 0x662   :  { %v11758_v10 = vpop.f32.mrf.mxu0 }
 0x663   :  { %v3744_v1 = vpack.c.bf16 %v3727_v22, %v3724_v46  ;;  %v11759_v37 = vadd.f32 %v11758_v10, %v11757_v20  ;;  %12799 = vmatpush3.bf16.msra.mxu0 %v14174_v42  ;;  %v17480_v10 = vld [vmem:[#allocation54_spill] sm:$0xff] }
 0x664   :  { %v11760_v41 = vpop.f32.mrf.mxu0  ;;  %12800 = vmatprep.subr.bf16.mxu0 %v14175_v19  ;;  %v14214_v42 = vld [vmem:[#allocation3 + $0x7c0] ss:$16 sps:$4 sm:$0xff]  }
 0x665   :  { %12786 = vmatprep.mubr.bf16.mxu1 %v3744_v1  ;;  %v3732_v59 = vadd.f32 %v11759_v37, %v11695_v45 }
 0x666   :  { %v11761_v60 = vpop.f32.mrf.mxu0 }
 0x667   :  { %v11762_v30 = vadd.f32 %v11761_v60, %v11760_v41  ;;  %12801 = vmatpush3.bf16.msra.mxu0 %v14175_v19  ;;  %v17481_v41 = vld [vmem:[#allocation56_spill] sm:$0xff] }
 0x668   :  { %12802 = vmatprep.subr.bf16.mxu0 %v14176_v44  ;;  %v16393_v47 = vpop.f32.mrf.mxu0 }
 0x669   :  { %v3735_v62 = vadd.f32 %v11762_v30, %v11698_v32  ;;  %v14198_v32 = vld [vmem:[#allocation3 + $0x764] ss:$16 sps:$4 sm:$0xff]  }
 0x66a   :  { %v16395_v51 = vpop.f32.mrf.mxu0  ;;  %v17482_v30 = vld [vmem:[#allocation57_spill] sm:$0xff] }
 0x66b   :  { %v3745_v53 = vpack.c.bf16 %v3735_v62, %v3732_v59  ;;  %12803 = vmatpush3.bf16.msra.mxu0 %v14176_v44  ;;  %v14196_v62 = vld [vmem:[#allocation3 + $0x760] ss:$16 sps:$4 sm:$0xff]  }
 0x66c   :  { %12804 = vmatprep.subr.bf16.mxu0 %v14177_v33  ;;  %v16397_v36 = vpop.f32.mrf.mxu0 }
 0x66d   :  { %12787 = vmatmul.mubr.bf16.gmra.mxu1 %v3745_v53 }
 0x66e   :  { %4246 = vmatprep.mubr.bf16.mxu1 %v14127_v48  ;;  %v16405_v35 = vpop.f32.mrf.mxu0 }
 0x66f   :  { %12805 = vmatpush3.bf16.msra.mxu0 %v14177_v33 }
 0x670   :  { %11987 = vmatprep.subr.bf16.mxu0 %v16390_v23  ;;  %v16410_v16 = vpop.f32.mrf.mxu0 }
 0x672   :  { %v16412_v57 = vpop.f32.mrf.mxu0 }
 0x674   :  { %v16416_v22 = vpop.f32.mrf.mxu0 }
 0x675   :  { %4247 = vmatmul.mubr.bf16.vlgmr.msra.gmra.mxu1 %v14125_v0  ;;  %v14204_v0 = vld [vmem:[#allocation3 + $0x784] ss:$16 sps:$4 sm:$0xff]  }
 0x676   :  { %4254 = vmatprep.mubr.bf16.mxu1 %v14133_v39  ;;  %11924 = vmatpush3.bf16.msra.mxu1 %v16170_v31  ;;  %v14143_v31 = vld [vmem:[#allocation3 + $0x668] ss:$16 sps:$4 sm:$0xff]   ;;  %v16424_v45 = vpop.f32.mrf.mxu0  ;;  %v14202_v39 = vld [vmem:[#allocation3 + $0x780] ss:$16 sps:$4 sm:$0xff]  }
 0x677   :  { %11925 = vmatprep.subr.bf16.mxu1 %v16176_v26  ;;  %v14151_v26 = vld [vmem:[#allocation3 + $0x68c] ss:$16 sps:$4 sm:$0xff]  }
 0x67a   :  { %11926 = vmatpush3.bf16.msra.mxu1 %v16182_v21  ;;  %v16366_v21 = vld [vmem:[%s17423_s22 + $0x48] sm:$0xff]  }
 0x67b   :  { %11927 = vmatprep.subr.bf16.mxu1 %v16188_v27  ;;  %v16372_v27 = vld [vmem:[%s17423_s22 + $0x8] sm:$0xff]  }
 0x67d   :  { %4255 = vmatmul.mubr.bf16.gmra.mxu1 %v14131_v24 }
 0x67e   :  { %4262 = vmatprep.mubr.bf16.mxu1 %v14139_v4  ;;  %11928 = vmatpush3.bf16.msra.mxu1 %v16194_v13  ;;  %v16378_v13 = vld [vmem:[%s17423_s22 + $0x40] sm:$0xff]  }
 0x67f   :  { %11929 = vmatprep.subr.bf16.mxu1 %v16200_v14  ;;  %v14149_v14 = vld [vmem:[#allocation3 + $0x688] ss:$16 sps:$4 sm:$0xff]  }
 0x682   :  { %11930 = vmatpush3.bf16.msra.mxu1 %v16206_v38  ;;  %v14157_v38 = vld [vmem:[#allocation3 + $0x6ac] ss:$16 sps:$4 sm:$0xff]  }
 0x683   :  { %11931 = vmatprep.subr.bf16.mxu1 %v16212_v61  ;;  %v16384_v61 = vld [vmem:[%s17423_s22] sm:$0xff]  }
 0x685   :  { %4263 = vmatmul.mubr.bf16.gmra.mxu1 %v14137_v15 }
 0x686   :  { %4270 = vmatprep.mubr.bf16.mxu1 %v14145_v52  ;;  %11932 = vmatpush3.bf16.msra.mxu1 %v16218_v56  ;;  %v14155_v56 = vld [vmem:[#allocation3 + $0x6a8] ss:$16 sps:$4 sm:$0xff]   ;;  %v17484_v52 = vld [vmem:[#allocation60_spill] sm:$0xff] }
 0x687   :  { %11933 = vmatprep.subr.bf16.mxu1 %v16224_v25  ;;  %v14163_v25 = vld [vmem:[#allocation3 + $0x6cc] ss:$16 sps:$4 sm:$0xff]  }
 0x68a   :  { %11934 = vmatpush3.bf16.msra.mxu1 %v16230_v34  ;;  %v14161_v34 = vld [vmem:[#allocation3 + $0x6c8] ss:$16 sps:$4 sm:$0xff]  }
 0x68b   :  { %11935 = vmatprep.subr.bf16.mxu1 %v16366_v21 }
 0x68d   :  { %4271 = vmatmul.mubr.bf16.gmra.mxu1 %v14143_v31 }
 0x68e   :  { %4278 = vmatprep.mubr.bf16.mxu1 %v14151_v26  ;;  %11936 = vmatpush3.bf16.msra.mxu1 %v16372_v27 }
 0x68f   :  { %11937 = vmatprep.subr.bf16.mxu1 %v16378_v13 }
 0x692   :  { %11938 = vmatpush3.bf16.msra.mxu1 %v16384_v61 }
 0x695   :  { %4279 = vmatmul.mubr.bf16.gmra.mxu1 %v14149_v14  ;;  %v17485_v14 = vld [vmem:[#allocation61_spill] sm:$0xff] }
 0x696   :  { %4286 = vmatprep.mubr.bf16.mxu1 %v14157_v38 }
 0x69d   :  { %4287 = vmatmul.mubr.bf16.gmra.mxu1 %v14155_v56 }
 0x69e   :  { %4294 = vmatprep.mubr.bf16.mxu1 %v14163_v25 }
 0x6a5   :  { %4295 = vmatmul.mubr.bf16.gmra.mxu1 %v14161_v34  ;;  %v14210_v34 = vld [vmem:[#allocation3 + $0x7a4] ss:$16 sps:$4 sm:$0xff]  }
 0x6a6   :  { %4302 = vmatprep.mubr.bf16.mxu1 %v14169_v55  ;;  %v17486_v55 = vld [vmem:[#allocation62_spill] sm:$0xff] }
 0x6ad   :  { %4303 = vmatmul.mubr.bf16.gmra.mxu1 %v14167_v43  ;;  %v14208_v43 = vld [vmem:[#allocation3 + $0x7a0] ss:$16 sps:$4 sm:$0xff]  }
 0x6ae   :  { %4722 = vmatprep.mubr.bf16.mxu1 %v14180_v63  ;;  %v17487_v63 = vld [vmem:[#allocation64_spill] sm:$0xff] }
 0x6b3   :  { %v16429_v48 = vpop.f32.mrf.mxu0 }
 0x6b5   :  { %4723 = vmatmul.mubr.bf16.vlgmr.msra.gmra.mxu1 %v14178_v49  ;;  %v16431_v53 = vpop.f32.mrf.mxu0 }
 0x6b6   :  { %4730 = vmatprep.mubr.bf16.mxu1 %v14186_v12 }
 0x6b7   :  { %v16435_v15 = vpop.f32.mrf.mxu0 }
 0x6b9   :  { %v16443_v25 = vpop.f32.mrf.mxu0 }
 0x6bb   :  { %v16448_v28 = vpop.f32.mrf.mxu0 }
 0x6bd   :  { %4731 = vmatmul.mubr.bf16.gmra.mxu1 %v14184_v5  ;;  %v16450_v29 = vpop.f32.mrf.mxu0  ;;  %v17489_v5 = vld [vmem:[#allocation66_spill] sm:$0xff] }
 0x6bf   :  { %v16454_v33 = vpop.f32.mrf.mxu0 }
 0x6c1   :  { %v16462_v12 = vpop.f32.mrf.mxu0 }
 0x6fd   :  { %v12776_v7 = vpop.f32.mrf.mxu1 }
 0x6fe   :  { %v16400_v2 = vadd.f32 %v12776_v7, %v16245_v9  ;;  %v14192_v9 = vld [vmem:[#allocation3 + $0x744] ss:$16 sps:$4 sm:$0xff]  }
 0x6ff   :  { %v3845_v18 = vpop.f32.mrf.mxu1  ;;  %4738 = vmatprep.mubr.bf16.mxu1 %v14192_v9 }
 0x700   :  { %v16403_v40 = vadd.f32 %v3845_v18, %v17477_v11  ;;  %4739 = vmatmul.mubr.bf16.gmra.mxu1 %v14190_v3  ;;  %v17488_v18 = vld [vmem:[#allocation65_spill] sm:$0xff]  ;;  %v14220_v3 = vld [vmem:[#allocation3 + $0x7e0] ss:$16 sps:$4 sm:$0xff]  }
 0x701   :  { %v12777_v50 = vpop.f32.mrf.mxu1  ;;  %4746 = vmatprep.mubr.bf16.mxu1 %v14198_v32 }
 0x702   :  { %v16408_v54 = vadd.f32 %v12777_v50, %v17478_v17  ;;  %v14222_v17 = vld [vmem:[#allocation3 + $0x7e4] ss:$16 sps:$4 sm:$0xff]  }
 0x703   :  { %v16414_v20 = vpop.f32.mrf.mxu1 }
 0x704   :  { %17479 = vst [vmem:[#allocation50_spill] sm:$0xff] %v16414_v20 }
 0x708   :  { %4747 = vmatmul.mubr.bf16.gmra.mxu1 %v14196_v62 }
 0x709   :  { %4754 = vmatprep.mubr.bf16.mxu1 %v14204_v0  ;;  %v11797_v0 = vadd.f32 %v16395_v51, %v16393_v47  ;;  %v11803_v47 = vadd.f32 %v16412_v57, %v16410_v16  ;;  %v11806_v51 = vadd.f32 %v16424_v45, %v16416_v22  ;;  %v16492_v16 = vld [vmem:[%s17423_s22 + $0xb8] sm:$0xff]   ;;  %v11809_v57 = vadd.f32 %v16431_v53, %v16429_v48  ;;  %v16508_v48 = vld [vmem:[%s17423_s22 + $0xb0] sm:$0xff]  }
 0x70a   :  { %v11812_v22 = vadd.f32 %v16443_v25, %v16435_v15  ;;  %v16514_v15 = vld [vmem:[%s17423_s22 + $0xe8] sm:$0xff]  }
 0x70d   :  { %v12780_v46 = vpop.f32.mrf.mxu1 }
 0x70e   :  { %v16419_v1 = vadd.f32 %v12780_v46, %v17480_v10 }
 0x70f   :  { %v3861_v8 = vpop.f32.mrf.mxu1 }
 0x710   :  { %v16422_v37 = vadd.f32 %v3861_v8, %v17481_v41  ;;  %4755 = vmatmul.mubr.bf16.gmra.mxu1 %v14202_v39  ;;  %v16469_v8 = vpop.f32.mrf.mxu0  ;;  %v11800_v39 = vadd.f32 %v16405_v35, %v16397_v36 }
 0x711   :  { %v12781_v60 = vpop.f32.mrf.mxu1  ;;  %4762 = vmatprep.mubr.bf16.mxu1 %v14210_v34 }
 0x712   :  { %v16427_v59 = vadd.f32 %v12781_v60, %v17482_v30  ;;  %v16471_v32 = vpop.f32.mrf.mxu0 }
 0x713   :  { %v16433_v24 = vpop.f32.mrf.mxu1 }
 0x714   :  { %17483 = vst [vmem:[#allocation52_spill] sm:$0xff] %v16433_v24 }
 0x718   :  { %4763 = vmatmul.mubr.bf16.gmra.mxu1 %v14208_v43 }
 0x719   :  { %4770 = vmatprep.mubr.bf16.mxu1 %v14216_v58 }
 0x71d   :  { %v12784_v4 = vpop.f32.mrf.mxu1 }
 0x71e   :  { %v16438_v31 = vadd.f32 %v12784_v4, %v17484_v52 }
 0x71f   :  { %v3877_v26 = vpop.f32.mrf.mxu1 }
 0x720   :  { %v16441_v38 = vadd.f32 %v3877_v26, %v17485_v14  ;;  %4771 = vmatmul.mubr.bf16.gmra.mxu1 %v14214_v42  ;;  %v16477_v26 = vpop.f32.mrf.mxu0 }
 0x721   :  { %v12785_v56 = vpop.f32.mrf.mxu1  ;;  %4778 = vmatprep.mubr.bf16.mxu1 %v14222_v17 }
 0x722   :  { %v16446_v6 = vadd.f32 %v12785_v56, %v17486_v55  ;;  %v16479_v58 = vpop.f32.mrf.mxu0 }
 0x723   :  { %v16452_v19 = vpop.f32.mrf.mxu1 }
 0x728   :  { %4779 = vmatmul.mubr.bf16.gmra.mxu1 %v14220_v3 }
 0x72d   :  { %v12788_v44 = vpop.f32.mrf.mxu1 }
 0x72e   :  { %v16457_v49 = vadd.f32 %v12788_v44, %v17487_v63  ;;  %v16485_v63 = vpop.f32.mrf.mxu0 }
 0x72f   :  { %v3893_v7 = vpop.f32.mrf.mxu1 }
 0x730   :  { %v16460_v11 = vadd.f32 %v3893_v7, %v17488_v18  ;;  %v16487_v3 = vpop.f32.mrf.mxu0 }
 0x731   :  { %v12789_v50 = vpop.f32.mrf.mxu1 }
 0x732   :  { %v16465_v9 = vadd.f32 %v12789_v50, %v17489_v5 }
 0x733   :  { %v16467_v46 = vpop.f32.mrf.mxu1 }
 0x734   :  { %17490 = vst [vmem:[#allocation54_spill] sm:$0xff] %v16467_v46 }
 0x735   :  { %v11859_v10 = vpop.f32.mrf.mxu1 }
 0x737   :  { %v11860_v41 = vpop.f32.mrf.mxu1 }
 0x738   :  { %v11861_v30 = vadd.f32 %v11860_v41, %v11859_v10 }
 0x739   :  { %v11862_v60 = vpop.f32.mrf.mxu1 }
 0x73a   :  { %v4249_v14 = vadd.f32 %v11861_v30, %v11797_v0 }
 0x73b   :  { %v11863_v62 = vpop.f32.mrf.mxu1 }
 0x73c   :  { %v11864_v4 = vadd.f32 %v11863_v62, %v11862_v60  ;;  %v16502_v60 = vld [vmem:[%s17423_s22 + $0xf0] sm:$0xff]   ;;  %v11828_v62 = vpop.f32.mrf.mxu0 }
 0x73d   :  { %v11865_v52 = vpop.f32.mrf.mxu1 }
 0x73e   :  { %v4252_v56 = vadd.f32 %v11864_v4, %v11800_v39 }
 0x73f   :  { %v11866_v34 = vpop.f32.mrf.mxu1 }
 0x740   :  { %v4311_v55 = vpack.c.bf16 %v4252_v56, %v4249_v14  ;;  %v11867_v42 = vadd.f32 %v11866_v34, %v11865_v52  ;;  %v11829_v52 = vpop.f32.mrf.mxu0  ;;  %v16520_v34 = vld [vmem:[%s17423_s22 + $0xa8] sm:$0xff]  }
 0x741   :  { %v11868_v43 = vpop.f32.mrf.mxu1 }
 0x742   :  { %12806 = vmatprep.mubr.bf16.mxu0 %v4311_v55  ;;  %v4257_v7 = vadd.f32 %v11867_v42, %v11803_v47  ;;  %v11815_v55 = vadd.f32 %v16450_v29, %v16448_v28  ;;  %v16536_v28 = vld [vmem:[%s17423_s22 + $0xa0] sm:$0xff]  }
 0x743   :  { %v11869_v44 = vpop.f32.mrf.mxu1 }
 0x744   :  { %v11870_v36 = vadd.f32 %v11869_v44, %v11868_v43  ;;  %v11818_v43 = vadd.f32 %v16462_v12, %v16454_v33  ;;  %v16530_v44 = vld [vmem:[%s17423_s22 + $0xe0] sm:$0xff]   ;;  %v16542_v33 = vld [vmem:[%s17423_s22 + $0xd8] sm:$0xff]  }
 0x745   :  { %v11871_v35 = vpop.f32.mrf.mxu1 }
 0x746   :  { %v4260_v18 = vadd.f32 %v11870_v36, %v11806_v51  ;;  %v11831_v51 = vpop.f32.mrf.mxu0 }
 0x747   :  { %v11872_v50 = vpop.f32.mrf.mxu1 }
 0x748   :  { %v4312_v17 = vpack.c.bf16 %v4260_v18, %v4257_v7  ;;  %v11873_v10 = vadd.f32 %v11872_v50, %v11871_v35  ;;  %v11832_v18 = vpop.f32.mrf.mxu0 }
 0x749   :  { %v11874_v5 = vpop.f32.mrf.mxu1 }
 0x74a   :  { %12807 = vmatmul.mubr.bf16.vlgmr.msra.gmra.mxu0 %v4312_v17  ;;  %v4265_v0 = vadd.f32 %v11873_v10, %v11809_v57  ;;  %v11821_v10 = vadd.f32 %v16471_v32, %v16469_v8  ;;  %v16564_v8 = vld [vmem:[%s17423_s22 + $0x90] sm:$0xff]  }
 0x74b   :  { %v11875_v41 = vpop.f32.mrf.mxu1  ;;  %11988 = vmatpush3.bf16.msra.mxu0 %v16492_v16 }
 0x74c   :  { %v11876_v45 = vadd.f32 %v11875_v41, %v11874_v5  ;;  %11989 = vmatprep.subr.bf16.mxu0 %v16502_v60  ;;  %v16548_v5 = vld [vmem:[%s17423_s22 + $0x98] sm:$0xff]   ;;  %v11824_v41 = vadd.f32 %v16479_v58, %v16477_v26  ;;  %v16570_v26 = vld [vmem:[%s17423_s22 + $0xc8] sm:$0xff]  }
 0x74d   :  { %v11877_v30 = vpop.f32.mrf.mxu1 }
 0x74e   :  { %v4268_v39 = vadd.f32 %v11876_v45, %v11812_v22  ;;  %v16558_v22 = vld [vmem:[%s17423_s22 + $0xd0] sm:$0xff]  }
 0x74f   :  { %v11878_v4 = vpop.f32.mrf.mxu1  ;;  %11990 = vmatpush3.bf16.msra.mxu0 %v16508_v48 }
 0x750   :  { %v4313_v53 = vpack.c.bf16 %v4268_v39, %v4265_v0  ;;  %11991 = vmatprep.subr.bf16.mxu0 %v16514_v15  ;;  %v11879_v14 = vadd.f32 %v11878_v4, %v11877_v30  ;;  %v11834_v30 = vpop.f32.mrf.mxu0 }
 0x751   :  { %v11880_v25 = vpop.f32.mrf.mxu1 }
 0x752   :  { %12810 = vmatprep.mubr.bf16.mxu0 %v4313_v53  ;;  %v4273_v36 = vadd.f32 %v11879_v14, %v11815_v55  ;;  %v11835_v53 = vpop.f32.mrf.mxu0  ;;  %v11827_v55 = vadd.f32 %v16487_v3, %v16485_v63  ;;  %v14639_v3 = vld [vmem:[%s17423_s22 + $0x78] sm:$0xff]  }
 0x753   :  { %v11881_v56 = vpop.f32.mrf.mxu1  ;;  %11992 = vmatpush3.bf16.msra.mxu0 %v16520_v34 }
 0x754   :  { %v11882_v42 = vadd.f32 %v11881_v56, %v11880_v25  ;;  %11993 = vmatprep.subr.bf16.mxu0 %v16530_v44  ;;  %v16576_v56 = vld [vmem:[%s17423_s22 + $0x88] sm:$0xff]  }
 0x755   :  { %v11883_v47 = vpop.f32.mrf.mxu1 }
 0x756   :  { %v4276_v35 = vadd.f32 %v11882_v42, %v11818_v43  ;;  %v11830_v43 = vadd.f32 %v11829_v52, %v11828_v62 }
 0x757   :  { %v11884_v7 = vpop.f32.mrf.mxu1  ;;  %11994 = vmatpush3.bf16.msra.mxu0 %v16536_v28 }
 0x758   :  { %v4314_v29 = vpack.c.bf16 %v4276_v35, %v4273_v36  ;;  %11995 = vmatprep.subr.bf16.mxu0 %v16542_v33  ;;  %v11885_v50 = vadd.f32 %v11884_v7, %v11883_v47  ;;  %v16584_v47 = vld [vmem:[%s17423_s22 + $0xc0] sm:$0xff]   ;;  %v11837_v35 = vpop.f32.mrf.mxu0 }
 0x759   :  { %v11886_v12 = vpop.f32.mrf.mxu1 }
 0x75a   :  { %12811 = vmatmul.mubr.bf16.gmra.mxu0 %v4314_v29  ;;  %v4281_v0 = vadd.f32 %v11885_v50, %v11821_v10  ;;  %v16590_v50 = vld [vmem:[%s17423_s22 + $0x80] sm:$0xff]   ;;  %v11838_v62 = vpop.f32.mrf.mxu0 }
 0x75b   :  { %v11887_v17 = vpop.f32.mrf.mxu1  ;;  %11996 = vmatpush3.bf16.msra.mxu0 %v16548_v5 }
 0x75c   :  { %v11888_v57 = vadd.f32 %v11887_v17, %v11886_v12  ;;  %11997 = vmatprep.subr.bf16.mxu0 %v16558_v22 }
 0x75d   :  { %v11889_v45 = vpop.f32.mrf.mxu1 }
 0x75e   :  { %v4284_v39 = vadd.f32 %v11888_v57, %v11824_v41  ;;  %v11833_v41 = vadd.f32 %v11832_v18, %v11831_v51  ;;  %v11836_v57 = vadd.f32 %v11835_v53, %v11834_v30  ;;  %v14181_v18 = vld [vmem:[#allocation3 + $0x708] ss:$16 sps:$4 sm:$0xff]   ;;  %v14189_v30 = vld [vmem:[#allocation3 + $0x72c] ss:$16 sps:$4 sm:$0xff]  }
 0x75f   :  { %v11890_v4 = vpop.f32.mrf.mxu1  ;;  %11998 = vmatpush3.bf16.msra.mxu0 %v16564_v8  ;;  %v14640_v53 = vld [vmem:[%s17423_s22 + $0x38] sm:$0xff]  }
 0x760   :  { %v4315_v32 = vpack.c.bf16 %v4284_v39, %v4281_v0  ;;  %11999 = vmatprep.subr.bf16.mxu0 %v16570_v26  ;;  %v11891_v25 = vadd.f32 %v11890_v4, %v11889_v45  ;;  %v11840_v0 = vpop.f32.mrf.mxu0 }
 0x761   :  { %v11892_v58 = vpop.f32.mrf.mxu1 }
 0x762   :  { %12814 = vmatprep.mubr.bf16.mxu0 %v4315_v32  ;;  %v4289_v7 = vadd.f32 %v11891_v25, %v11827_v55 }
 0x763   :  { %v11893_v14 = vpop.f32.mrf.mxu1  ;;  %12000 = vmatpush3.bf16.msra.mxu0 %v16576_v56 }
 0x764   :  { %v11894_v42 = vadd.f32 %v11893_v14, %v11892_v58  ;;  %12001 = vmatprep.subr.bf16.mxu0 %v16584_v47  ;;  %v11841_v14 = vpop.f32.mrf.mxu0 }
 0x765   :  { %v11895_v36 = vpop.f32.mrf.mxu1 }
 0x766   :  { %v4292_v29 = vadd.f32 %v11894_v42, %v11830_v43 }
 0x767   :  { %v11896_v12 = vpop.f32.mrf.mxu1  ;;  %12002 = vmatpush3.bf16.msra.mxu0 %v16590_v50 }
 0x768   :  { %v4316_v63 = vpack.c.bf16 %v4292_v29, %v4289_v7  ;;  %12067 = vmatprep.subr.bf16.mxu0 %v14639_v3  ;;  %v11897_v17 = vadd.f32 %v11896_v12, %v11895_v36  ;;  %v11839_v7 = vadd.f32 %v11838_v62, %v11837_v35  ;;  %v11842_v29 = vadd.f32 %v11841_v14, %v11840_v0  ;;  %v14641_v35 = vld [vmem:[%s17423_s22 + $0x70] sm:$0xff]   ;;  %v14187_v62 = vld [vmem:[#allocation3 + $0x728] ss:$16 sps:$4 sm:$0xff]  }
 0x769   :  { %v11898_v52 = vpop.f32.mrf.mxu1  ;;  %v14201_v0 = vld [vmem:[#allocation3 + $0x76c] ss:$16 sps:$4 sm:$0xff]  }
 0x76a   :  { %12815 = vmatmul.mubr.bf16.gmra.mxu0 %v4316_v63  ;;  %v4297_v4 = vadd.f32 %v11897_v17, %v11833_v41  ;;  %v14183_v63 = vld [vmem:[#allocation3 + $0x70c] ss:$16 sps:$4 sm:$0xff]  }
 0x76b   :  { %v11899_v10 = vpop.f32.mrf.mxu1  ;;  %v14642_v17 = vld [vmem:[%s17423_s22 + $0x30] sm:$0xff]   ;;  %v14644_v41 = vld [vmem:[%s17423_s22 + $0x28] sm:$0xff]  }
 0x76c   :  { %v11900_v45 = vadd.f32 %v11899_v10, %v11898_v52  ;;  %v14195_v52 = vld [vmem:[#allocation3 + $0x74c] ss:$16 sps:$4 sm:$0xff]  }
 0x76d   :  { %v11901_v39 = vpop.f32.mrf.mxu1  ;;  %v14643_v10 = vld [vmem:[%s17423_s22 + $0x68] sm:$0xff]  }
 0x76e   :  { %v4300_v32 = vadd.f32 %v11900_v45, %v11836_v57  ;;  %v14645_v57 = vld [vmem:[%s17423_s22 + $0x60] sm:$0xff]   ;;  %v14193_v45 = vld [vmem:[#allocation3 + $0x748] ss:$16 sps:$4 sm:$0xff]  }
 0x76f   :  { %v11902_v58 = vpop.f32.mrf.mxu1  ;;  %v14207_v14 = vld [vmem:[#allocation3 + $0x78c] ss:$16 sps:$4 sm:$0xff]  }
 0x770   :  { %v4317_v25 = vpack.c.bf16 %v4300_v32, %v4297_v4  ;;  %v11903_v43 = vadd.f32 %v11902_v58, %v11901_v39  ;;  %v14646_v39 = vld [vmem:[%s17423_s22 + $0x20] sm:$0xff]   ;;  %v14647_v4 = vld [vmem:[%s17423_s22 + $0x58] sm:$0xff]   ;;  %v14649_v58 = vld [vmem:[%s17423_s22 + $0x50] sm:$0xff]  }
 0x771   :  { %v11904_v55 = vpop.f32.mrf.mxu1  ;;  %v14648_v32 = vld [vmem:[%s17423_s22 + $0x18] sm:$0xff]  }
 0x772   :  { %12818 = vmatprep.mubr.bf16.mxu0 %v4317_v25  ;;  %v4305_v36 = vadd.f32 %v11903_v43, %v11839_v7  ;;  %v14199_v25 = vld [vmem:[#allocation3 + $0x768] ss:$16 sps:$4 sm:$0xff]  }
 0x773   :  { %v11905_v42 = vpop.f32.mrf.mxu1  ;;  %v14205_v43 = vld [vmem:[#allocation3 + $0x788] ss:$16 sps:$4 sm:$0xff]  }
 0x774   :  { %v11906_v3 = vadd.f32 %v11905_v42, %v11904_v55  ;;  %v14650_v55 = vld [vmem:[%s17423_s22 + $0x10] sm:$0xff]   ;;  %v14211_v7 = vld [vmem:[#allocation3 + $0x7a8] ss:$16 sps:$4 sm:$0xff]  }
 0x775   :  { %v14213_v42 = vld [vmem:[#allocation3 + $0x7ac] ss:$16 sps:$4 sm:$0xff]  }
 0x776   :  { %v4308_v12 = vadd.f32 %v11906_v3, %v11842_v29  ;;  %v14219_v29 = vld [vmem:[#allocation3 + $0x7cc] ss:$16 sps:$4 sm:$0xff]   ;;  %v14217_v3 = vld [vmem:[#allocation3 + $0x7c8] ss:$16 sps:$4 sm:$0xff]  }
 0x778   :  { %v4318_v51 = vpack.c.bf16 %v4308_v12, %v4305_v36  ;;  %v14225_v36 = vld [vmem:[#allocation3 + $0x7ec] ss:$16 sps:$4 sm:$0xff]  }
 0x779   :  { %v14226_v12 = vld [vmem:[#allocation5 + $0x1f8] sm:$0xff]  }
 0x77a   :  { %12819 = vmatmul.mubr.bf16.gmra.mxu0 %v4318_v51  ;;  %12822 = vmatprep.subr.bf16.mxu1 %v14226_v12  ;;  %v14231_v51 = vld [vmem:[#allocation5 + $0x1d0] sm:$0xff]  }
 0x77b   :  { %4819 = vmatprep.mubr.bf16.mxu0 %v14183_v63  ;;  %12823 = vmatpush3.bf16.msra.mxu1 %v14226_v12  ;;  %v14230_v63 = vld [vmem:[#allocation5 + $0x1d8] sm:$0xff]  }
 0x782   :  { %4820 = vmatmul.mubr.bf16.vlgmr.msra.gmra.mxu0 %v14181_v18  ;;  %v14232_v18 = vld [vmem:[#allocation5 + $0x1c8] sm:$0xff]  }
 0x783   :  { %4827 = vmatprep.mubr.bf16.mxu0 %v14189_v30  ;;  %12068 = vmatpush3.bf16.msra.mxu0 %v14640_v53  ;;  %v14233_v30 = vld [vmem:[#allocation5 + $0x1c0] sm:$0xff]   ;;  %v16634_v53 = vpop.f32.mrf.mxu1 }
 0x784   :  { %12069 = vmatprep.subr.bf16.mxu0 %v14641_v35 }
 0x785   :  { %v16636_v35 = vpop.f32.mrf.mxu1 }
 0x787   :  { %12070 = vmatpush3.bf16.msra.mxu0 %v14642_v17 }
 0x788   :  { %12071 = vmatprep.subr.bf16.mxu0 %v14643_v10  ;;  %v16638_v10 = vpop.f32.mrf.mxu1 }
 0x78a   :  { %4828 = vmatmul.mubr.bf16.gmra.mxu0 %v14187_v62  ;;  %v14236_v62 = vld [vmem:[#allocation3 + $0x804] ss:$16 sps:$4 sm:$0xff]  }
 0x78b   :  { %4835 = vmatprep.mubr.bf16.mxu0 %v14195_v52  ;;  %12072 = vmatpush3.bf16.msra.mxu0 %v14644_v41  ;;  %v14234_v52 = vld [vmem:[#allocation3 + $0x800] ss:$16 sps:$4 sm:$0xff]  }
 0x78c   :  { %12073 = vmatprep.subr.bf16.mxu0 %v14645_v57 }
 0x78f   :  { %12074 = vmatpush3.bf16.msra.mxu0 %v14646_v39  ;;  %v14242_v39 = vld [vmem:[#allocation3 + $0x824] ss:$16 sps:$4 sm:$0xff]  }
 0x790   :  { %12075 = vmatprep.subr.bf16.mxu0 %v14647_v4 }
 0x792   :  { %4836 = vmatmul.mubr.bf16.gmra.mxu0 %v14193_v45 }
 0x793   :  { %4843 = vmatprep.mubr.bf16.mxu0 %v14201_v0  ;;  %12076 = vmatpush3.bf16.msra.mxu0 %v14648_v32  ;;  %v14240_v32 = vld [vmem:[#allocation3 + $0x820] ss:$16 sps:$4 sm:$0xff]  }
 0x794   :  { %12077 = vmatprep.subr.bf16.mxu0 %v14649_v58 }
 0x797   :  { %12078 = vmatpush3.bf16.msra.mxu0 %v14650_v55 }
 0x798   :  { %12079 = vmatprep.subr.bf16.mxu0 %v16366_v21  ;;  %v14223_v21 = vld [vmem:[#allocation3 + $0x7e8] ss:$16 sps:$4 sm:$0xff]  }
 0x79a   :  { %4844 = vmatmul.mubr.bf16.gmra.mxu0 %v14199_v25 }
 0x79b   :  { %4851 = vmatprep.mubr.bf16.mxu0 %v14207_v14  ;;  %12080 = vmatpush3.bf16.msra.mxu0 %v16372_v27  ;;  %v14227_v27 = vld [vmem:[#allocation5 + $0x1f0] sm:$0xff]  }
 0x79c   :  { %12081 = vmatprep.subr.bf16.mxu0 %v16378_v13  ;;  %12824 = vmatprep.subr.bf16.mxu1 %v14227_v27  ;;  %v14228_v13 = vld [vmem:[#allocation5 + $0x1e8] sm:$0xff]   ;;  %v14246_v14 = vld [vmem:[#allocation3 + $0x840] ss:$16 sps:$4 sm:$0xff]  }
 0x79d   :  { %12825 = vmatpush3.bf16.msra.mxu1 %v14227_v27 }
 0x79e   :  { %12826 = vmatprep.subr.bf16.mxu1 %v14228_v13 }
 0x79f   :  { %12082 = vmatpush3.bf16.msra.mxu0 %v16384_v61  ;;  %v14229_v61 = vld [vmem:[#allocation5 + $0x1e0] sm:$0xff]  }
 0x7a1   :  { %12827 = vmatpush3.bf16.msra.mxu1 %v14228_v13 }
 0x7a2   :  { %4852 = vmatmul.mubr.bf16.gmra.mxu0 %v14205_v43  ;;  %12828 = vmatprep.subr.bf16.mxu1 %v14229_v61 }
 0x7a3   :  { %4859 = vmatprep.mubr.bf16.mxu0 %v14213_v42 }
 0x7a5   :  { %12829 = vmatpush3.bf16.msra.mxu1 %v14229_v61  ;;  %v14258_v61 = vld [vmem:[#allocation3 + $0x880] ss:$16 sps:$4 sm:$0xff]  }
 0x7a6   :  { %12830 = vmatprep.subr.bf16.mxu1 %v14230_v63 }
 0x7a9   :  { %12831 = vmatpush3.bf16.msra.mxu1 %v14230_v63 }
 0x7aa   :  { %4860 = vmatmul.mubr.bf16.gmra.mxu0 %v14211_v7  ;;  %12832 = vmatprep.subr.bf16.mxu1 %v14231_v51 }
 0x7ab   :  { %4867 = vmatprep.mubr.bf16.mxu0 %v14219_v29 }
 0x7ad   :  { %12833 = vmatpush3.bf16.msra.mxu1 %v14231_v51 }
 0x7ae   :  { %12834 = vmatprep.subr.bf16.mxu1 %v14232_v18 }
 0x7b1   :  { %12835 = vmatpush3.bf16.msra.mxu1 %v14232_v18 }
 0x7b2   :  { %4868 = vmatmul.mubr.bf16.gmra.mxu0 %v14217_v3  ;;  %12836 = vmatprep.subr.bf16.mxu1 %v14233_v30 }
 0x7b3   :  { %4875 = vmatprep.mubr.bf16.mxu0 %v14225_v36  ;;  %v14254_v36 = vld [vmem:[#allocation3 + $0x864] ss:$16 sps:$4 sm:$0xff]  }
 0x7b5   :  { %12837 = vmatpush3.bf16.msra.mxu1 %v14233_v30 }
 0x7b6   :  { %12131 = vmatprep.subr.bf16.mxu1 %v16390_v23  ;;  %v16646_v23 = vpop.f32.mrf.mxu1 }
 0x7b8   :  { %v16651_v58 = vpop.f32.mrf.mxu1 }
 0x7ba   :  { %4876 = vmatmul.mubr.bf16.gmra.mxu0 %v14223_v21  ;;  %v16653_v25 = vpop.f32.mrf.mxu1  ;;  %v14252_v21 = vld [vmem:[#allocation3 + $0x860] ss:$16 sps:$4 sm:$0xff]  }
 0x7bb   :  { %5295 = vmatprep.mubr.bf16.mxu0 %v14236_v62 }
 0x7bc   :  { %v16657_v43 = vpop.f32.mrf.mxu1 }
 0x7be   :  { %v16665_v3 = vpop.f32.mrf.mxu1 }
 0x7c0   :  { %v16670_v27 = vpop.f32.mrf.mxu1 }
 0x7c2   :  { %5296 = vmatmul.mubr.bf16.vlgmr.msra.gmra.mxu0 %v14234_v52  ;;  %v16672_v13 = vpop.f32.mrf.mxu1 }
 0x7c3   :  { %5303 = vmatprep.mubr.bf16.mxu0 %v14242_v39 }
 0x7c4   :  { %v16676_v51 = vpop.f32.mrf.mxu1 }
 0x7c6   :  { %v16684_v52 = vpop.f32.mrf.mxu1 }
 0x7c8   :  { %v16689_v39 = vpop.f32.mrf.mxu1 }
 0x7ca   :  { %5304 = vmatmul.mubr.bf16.gmra.mxu0 %v14240_v32  ;;  %v16691_v32 = vpop.f32.mrf.mxu1 }
 0x80a   :  { %v12808_v17 = vpop.f32.mrf.mxu0 }
 0x80b   :  { %v16641_v41 = vadd.f32 %v12808_v17, %v16400_v2  ;;  %v14248_v2 = vld [vmem:[#allocation3 + $0x844] ss:$16 sps:$4 sm:$0xff]  }
 0x80c   :  { %v4418_v57 = vpop.f32.mrf.mxu0  ;;  %5311 = vmatprep.mubr.bf16.mxu0 %v14248_v2  ;;  %v14266_v17 = vld [vmem:[#allocation3 + $0x8a4] ss:$16 sps:$4 sm:$0xff]   ;;  %v14270_v2 = vld [vmem:[#allocation3 + $0x8c0] ss:$16 sps:$4 sm:$0xff]  }
 0x80d   :  { %v16644_v45 = vadd.f32 %v4418_v57, %v16403_v40  ;;  %5312 = vmatmul.mubr.bf16.gmra.mxu0 %v14246_v14 }
 0x80e   :  { %v12809_v0 = vpop.f32.mrf.mxu0  ;;  %5319 = vmatprep.mubr.bf16.mxu0 %v14254_v36 }
 0x80f   :  { %v16649_v4 = vadd.f32 %v12809_v0, %v16408_v54  ;;  %v14264_v0 = vld [vmem:[#allocation3 + $0x8a0] ss:$16 sps:$4 sm:$0xff]  }
 0x810   :  { %v16655_v55 = vpop.f32.mrf.mxu0 }
 0x811   :  { %17491 = vst [vmem:[#allocation56_spill] sm:$0xff] %v16655_v55 }
 0x815   :  { %5320 = vmatmul.mubr.bf16.gmra.mxu0 %v14252_v21 }
 0x81a   :  { %v12812_v40 = vpop.f32.mrf.mxu0 }
 0x81b   :  { %v16660_v42 = vadd.f32 %v12812_v40, %v16419_v1  ;;  %v14260_v1 = vld [vmem:[#allocation3 + $0x884] ss:$16 sps:$4 sm:$0xff]   ;;  %v16695_v40 = vpop.f32.mrf.mxu1 }
 0x81c   :  { %v4434_v54 = vpop.f32.mrf.mxu0  ;;  %5327 = vmatprep.mubr.bf16.mxu0 %v14260_v1  ;;  %v14278_v1 = vld [vmem:[#allocation3 + $0x8e4] ss:$16 sps:$4 sm:$0xff]  }
 0x81d   :  { %v16663_v7 = vadd.f32 %v4434_v54, %v16422_v37  ;;  %5328 = vmatmul.mubr.bf16.gmra.mxu0 %v14258_v61  ;;  %v11961_v21 = vpop.f32.mrf.mxu1 }
 0x81e   :  { %v12813_v29 = vpop.f32.mrf.mxu0  ;;  %5335 = vmatprep.mubr.bf16.mxu0 %v14266_v17 }
 0x81f   :  { %v16668_v12 = vadd.f32 %v12813_v29, %v16427_v59  ;;  %v16708_v17 = vpop.f32.mrf.mxu1 }
 0x820   :  { %v16674_v63 = vpop.f32.mrf.mxu0 }
 0x821   :  { %17492 = vst [vmem:[#allocation57_spill] sm:$0xff] %v16674_v63 }
 0x825   :  { %5336 = vmatmul.mubr.bf16.gmra.mxu0 %v14264_v0 }
 0x82a   :  { %v12816_v37 = vpop.f32.mrf.mxu0 }
 0x82b   :  { %v16679_v18 = vadd.f32 %v12816_v37, %v16438_v31  ;;  %v14272_v31 = vld [vmem:[#allocation3 + $0x8c4] ss:$16 sps:$4 sm:$0xff]   ;;  %v14276_v37 = vld [vmem:[#allocation3 + $0x8e0] ss:$16 sps:$4 sm:$0xff]  }
 0x82c   :  { %v4450_v59 = vpop.f32.mrf.mxu0  ;;  %5343 = vmatprep.mubr.bf16.mxu0 %v14272_v31  ;;  %v16710_v31 = vpop.f32.mrf.mxu1 }
 0x82d   :  { %v16682_v30 = vadd.f32 %v4450_v59, %v16441_v38  ;;  %5344 = vmatmul.mubr.bf16.gmra.mxu0 %v14270_v2 }
 0x82e   :  { %v12817_v62 = vpop.f32.mrf.mxu0  ;;  %5351 = vmatprep.mubr.bf16.mxu0 %v14278_v1  ;;  %v11966_v55 = vpop.f32.mrf.mxu1 }
 0x82f   :  { %v16687_v57 = vadd.f32 %v12817_v62, %v16446_v6 }
 0x830   :  { %v16693_v14 = vpop.f32.mrf.mxu0 }
 0x831   :  { %17493 = vst [vmem:[#allocation60_spill] sm:$0xff] %v16693_v14 }
 0x835   :  { %5352 = vmatmul.mubr.bf16.gmra.mxu0 %v14276_v37 }
 0x83a   :  { %v12820_v38 = vpop.f32.mrf.mxu0 }
 0x83b   :  { %v16698_v54 = vadd.f32 %v12820_v38, %v16457_v49  ;;  %v11941_v38 = vadd.f32 %v16636_v35, %v16634_v53  ;;  %v11950_v53 = vadd.f32 %v16665_v3, %v16657_v43 }
 0x83c   :  { %v4466_v6 = vpop.f32.mrf.mxu0 }
 0x83d   :  { %v16701_v29 = vadd.f32 %v4466_v6, %v16460_v11 }
 0x83e   :  { %v12821_v36 = vpop.f32.mrf.mxu0 }
 0x83f   :  { %v16704_v61 = vadd.f32 %v12821_v36, %v16465_v9  ;;  %v11944_v9 = vadd.f32 %v16646_v23, %v16638_v10 }
 0x840   :  { %v16706_v59 = vpop.f32.mrf.mxu0 }
 0x841   :  { %17494 = vst [vmem:[#allocation61_spill] sm:$0xff] %v16706_v59  ;;  %v11967_v59 = vpop.f32.mrf.mxu1 }
 0x842   :  { %v12003_v62 = vpop.f32.mrf.mxu0 }
 0x843   :  { %v16720_v23 = vpop.f32.mrf.mxu1 }
 0x844   :  { %v12004_v49 = vpop.f32.mrf.mxu0 }
 0x845   :  { %v12005_v11 = vadd.f32 %v12004_v49, %v12003_v62  ;;  %v11947_v62 = vadd.f32 %v16653_v25, %v16651_v58  ;;  %v11953_v58 = vadd.f32 %v16672_v13, %v16670_v27  ;;  %v11962_v13 = vadd.f32 %v11961_v21, %v16695_v40 }
 0x846   :  { %v12006_v0 = vpop.f32.mrf.mxu0 }
 0x847   :  { %v4822_v1 = vadd.f32 %v12005_v11, %v11941_v38 }
 0x848   :  { %v12007_v2 = vpop.f32.mrf.mxu0 }
 0x849   :  { %v12008_v6 = vadd.f32 %v12007_v2, %v12006_v0 }
 0x84a   :  { %v12009_v36 = vpop.f32.mrf.mxu0 }
 0x84b   :  { %v4825_v37 = vadd.f32 %v12008_v6, %v11944_v9  ;;  %v11970_v9 = vpop.f32.mrf.mxu1 }
 0x84c   :  { %v12010_v20 = vpop.f32.mrf.mxu0 }
 0x84d   :  { %v4884_v63 = vpack.c.bf16 %v4825_v37, %v4822_v1  ;;  %v12011_v46 = vadd.f32 %v12010_v20, %v12009_v36  ;;  %v11972_v43 = vpop.f32.mrf.mxu1 }
 0x84e   :  { %v12012_v24 = vpop.f32.mrf.mxu0 }
 0x84f   :  { %12838 = vmatprep.mubr.bf16.mxu1 %v4884_v63  ;;  %v4830_v49 = vadd.f32 %v12011_v46, %v11947_v62  ;;  %v11973_v1 = vpop.f32.mrf.mxu1 }
 0x850   :  { %v12013_v14 = vpop.f32.mrf.mxu0 }
 0x851   :  { %v12014_v35 = vadd.f32 %v12013_v14, %v12012_v24  ;;  %v11956_v24 = vadd.f32 %v16684_v52, %v16676_v51 }
 0x852   :  { %v12015_v10 = vpop.f32.mrf.mxu0 }
 0x853   :  { %v4833_v0 = vadd.f32 %v12014_v35, %v11950_v53 }
 0x854   :  { %v12016_v11 = vpop.f32.mrf.mxu0 }
 0x855   :  { %v4885_v2 = vpack.c.bf16 %v4833_v0, %v4830_v49  ;;  %v12017_v6 = vadd.f32 %v12016_v11, %v12015_v10 }
 0x856   :  { %v12018_v38 = vpop.f32.mrf.mxu0 }
 0x857   :  { %12839 = vmatmul.mubr.bf16.vlgmr.msra.gmra.mxu1 %v4885_v2  ;;  %v4838_v3 = vadd.f32 %v12017_v6, %v11953_v58 }
 0x858   :  { %v12019_v20 = vpop.f32.mrf.mxu0  ;;  %12132 = vmatpush3.bf16.msra.mxu1 %v16492_v16 }
 0x859   :  { %v12020_v25 = vadd.f32 %v12019_v20, %v12018_v38  ;;  %12133 = vmatprep.subr.bf16.mxu1 %v16502_v60  ;;  %v11959_v60 = vadd.f32 %v16691_v32, %v16689_v39  ;;  %v11968_v32 = vadd.f32 %v11967_v59, %v11966_v55  ;;  %v11971_v55 = vadd.f32 %v11970_v9, %v16720_v23 }
 0x85a   :  { %v12021_v46 = vpop.f32.mrf.mxu0 }
 0x85b   :  { %v4841_v63 = vadd.f32 %v12020_v25, %v11956_v24 }
 0x85c   :  { %v12022_v14 = vpop.f32.mrf.mxu0  ;;  %12134 = vmatpush3.bf16.msra.mxu1 %v16508_v48  ;;  %v11975_v48 = vpop.f32.mrf.mxu1 }
 0x85d   :  { %v4886_v36 = vpack.c.bf16 %v4841_v63, %v4838_v3  ;;  %12135 = vmatprep.subr.bf16.mxu1 %v16514_v15  ;;  %v12023_v37 = vadd.f32 %v12022_v14, %v12021_v46 }
 0x85e   :  { %v12024_v16 = vpop.f32.mrf.mxu0 }
 0x85f   :  { %12842 = vmatprep.mubr.bf16.mxu1 %v4886_v36  ;;  %v4846_v62 = vadd.f32 %v12023_v37, %v11959_v60 }
 0x860   :  { %v12025_v27 = vpop.f32.mrf.mxu0  ;;  %12136 = vmatpush3.bf16.msra.mxu1 %v16520_v34  ;;  %v11976_v34 = vpop.f32.mrf.mxu1 }
 0x861   :  { %v12026_v51 = vadd.f32 %v12025_v27, %v12024_v16  ;;  %12137 = vmatprep.subr.bf16.mxu1 %v16530_v44  ;;  %v11965_v44 = vadd.f32 %v16710_v31, %v16708_v17 }
 0x862   :  { %v12027_v52 = vpop.f32.mrf.mxu0  ;;  %v11978_v0 = vpop.f32.mrf.mxu1 }
 0x863   :  { %v4849_v53 = vadd.f32 %v12026_v51, %v11962_v13 }
 0x864   :  { %v12028_v15 = vpop.f32.mrf.mxu0  ;;  %12138 = vmatpush3.bf16.msra.mxu1 %v16536_v28  ;;  %v11979_v6 = vpop.f32.mrf.mxu1 }
 0x865   :  { %v4887_v35 = vpack.c.bf16 %v4849_v53, %v4846_v62  ;;  %12139 = vmatprep.subr.bf16.mxu1 %v16542_v33  ;;  %v12029_v49 = vadd.f32 %v12028_v15, %v12027_v52  ;;  %v11980_v14 = vadd.f32 %v11979_v6, %v11978_v0  ;;  %v14239_v15 = vld [vmem:[#allocation3 + $0x80c] ss:$16 sps:$4 sm:$0xff]   ;;  %v14279_v6 = vld [vmem:[#allocation3 + $0x8e8] ss:$16 sps:$4 sm:$0xff]  }
 0x866   :  { %v12030_v10 = vpop.f32.mrf.mxu0  ;;  %v11981_v31 = vpop.f32.mrf.mxu1  ;;  %v14269_v0 = vld [vmem:[#allocation3 + $0x8ac] ss:$16 sps:$4 sm:$0xff]  }
 0x867   :  { %12843 = vmatmul.mubr.bf16.gmra.mxu1 %v4887_v35  ;;  %v4854_v28 = vadd.f32 %v12029_v49, %v11965_v44  ;;  %v14237_v35 = vld [vmem:[#allocation3 + $0x808] ss:$16 sps:$4 sm:$0xff]   ;;  %v14251_v49 = vld [vmem:[#allocation3 + $0x84c] ss:$16 sps:$4 sm:$0xff]  }
 0x868   :  { %v12031_v39 = vpop.f32.mrf.mxu0  ;;  %12140 = vmatpush3.bf16.msra.mxu1 %v16548_v5  ;;  %v11982_v25 = vpop.f32.mrf.mxu1  ;;  %v14257_v44 = vld [vmem:[#allocation3 + $0x86c] ss:$16 sps:$4 sm:$0xff]  }
 0x869   :  { %v12032_v40 = vadd.f32 %v12031_v39, %v12030_v10  ;;  %12141 = vmatprep.subr.bf16.mxu1 %v16558_v22  ;;  %v11974_v22 = vadd.f32 %v11973_v1, %v11972_v43  ;;  %v11983_v13 = vadd.f32 %v11982_v25, %v11981_v31  ;;  %v14245_v10 = vld [vmem:[#allocation3 + $0x82c] ss:$16 sps:$4 sm:$0xff]   ;;  %v14249_v39 = vld [vmem:[#allocation3 + $0x848] ss:$16 sps:$4 sm:$0xff]   ;;  %v14289_v31 = vld [vmem:[#allocation5 + $0x200] sm:$0xff]  }
 0x86a   :  { %v12033_v21 = vpop.f32.mrf.mxu0  ;;  %v11984_v9 = vpop.f32.mrf.mxu1 }
 0x86b   :  { %v4857_v11 = vadd.f32 %v12032_v40, %v11968_v32  ;;  %v14255_v32 = vld [vmem:[#allocation3 + $0x868] ss:$16 sps:$4 sm:$0xff]   ;;  %v14263_v40 = vld [vmem:[#allocation3 + $0x88c] ss:$16 sps:$4 sm:$0xff]  }
 0x86c   :  { %v12034_v2 = vpop.f32.mrf.mxu0  ;;  %12142 = vmatpush3.bf16.msra.mxu1 %v16564_v8  ;;  %v11985_v37 = vpop.f32.mrf.mxu1 }
 0x86d   :  { %v4888_v33 = vpack.c.bf16 %v4857_v11, %v4854_v28  ;;  %12143 = vmatprep.subr.bf16.mxu1 %v16570_v26  ;;  %v12035_v5 = vadd.f32 %v12034_v2, %v12033_v21  ;;  %v11986_v51 = vadd.f32 %v11985_v37, %v11984_v9  ;;  %v14261_v21 = vld [vmem:[#allocation3 + $0x888] ss:$16 sps:$4 sm:$0xff]   ;;  %v14275_v11 = vld [vmem:[#allocation3 + $0x8cc] ss:$16 sps:$4 sm:$0xff]  }
 0x86e   :  { %v12036_v38 = vpop.f32.mrf.mxu0  ;;  %v14267_v28 = vld [vmem:[#allocation3 + $0x8a8] ss:$16 sps:$4 sm:$0xff]  }
 0x86f   :  { %12846 = vmatprep.mubr.bf16.mxu1 %v4888_v33  ;;  %v4862_v58 = vadd.f32 %v12035_v5, %v11971_v55  ;;  %v14273_v2 = vld [vmem:[#allocation3 + $0x8c8] ss:$16 sps:$4 sm:$0xff]   ;;  %v14281_v33 = vld [vmem:[#allocation3 + $0x8ec] ss:$16 sps:$4 sm:$0xff]   ;;  %v14283_v5 = vld [vmem:[#allocation5 + $0x230] sm:$0xff]  }
 0x870   :  { %v12037_v20 = vpop.f32.mrf.mxu0  ;;  %12144 = vmatpush3.bf16.msra.mxu1 %v16576_v56  ;;  %v11977_v56 = vadd.f32 %v11976_v34, %v11975_v48  ;;  %v14243_v34 = vld [vmem:[#allocation3 + $0x828] ss:$16 sps:$4 sm:$0xff]   ;;  %v14285_v55 = vld [vmem:[#allocation5 + $0x220] sm:$0xff]  }
 0x871   :  { %v12038_v59 = vadd.f32 %v12037_v20, %v12036_v38  ;;  %12145 = vmatprep.subr.bf16.mxu1 %v16584_v47  ;;  %v14282_v38 = vld [vmem:[#allocation5 + $0x238] sm:$0xff]   ;;  %v14284_v20 = vld [vmem:[#allocation5 + $0x228] sm:$0xff]  }
 0x872   :  { %v12039_v17 = vpop.f32.mrf.mxu0  ;;  %12854 = vmatprep.subr.bf16.mxu0 %v14282_v38 }
 0x873   :  { %v4865_v8 = vadd.f32 %v12038_v59, %v11974_v22  ;;  %12855 = vmatpush3.bf16.msra.mxu0 %v14282_v38  ;;  %v14286_v22 = vld [vmem:[#allocation5 + $0x218] sm:$0xff]   ;;  %v14287_v59 = vld [vmem:[#allocation5 + $0x210] sm:$0xff]  }
 0x874   :  { %v12040_v24 = vpop.f32.mrf.mxu0  ;;  %12146 = vmatpush3.bf16.msra.mxu1 %v16590_v50  ;;  %12856 = vmatprep.subr.bf16.mxu0 %v14283_v5 }
 0x875   :  { %v4889_v26 = vpack.c.bf16 %v4865_v8, %v4862_v58  ;;  %v12041_v3 = vadd.f32 %v12040_v24, %v12039_v17  ;;  %v14288_v17 = vld [vmem:[#allocation5 + $0x208] sm:$0xff]  }
 0x876   :  { %v12042_v46 = vpop.f32.mrf.mxu0 }
 0x877   :  { %12847 = vmatmul.mubr.bf16.gmra.mxu1 %v4889_v26  ;;  %v4870_v36 = vadd.f32 %v12041_v3, %v11977_v56  ;;  %12857 = vmatpush3.bf16.msra.mxu0 %v14283_v5 }
 0x878   :  { %v12043_v63 = vpop.f32.mrf.mxu0  ;;  %12858 = vmatprep.subr.bf16.mxu0 %v14284_v20 }
 0x879   :  { %v12044_v23 = vadd.f32 %v12043_v63, %v12042_v46 }
 0x87a   :  { %v12045_v43 = vpop.f32.mrf.mxu0 }
 0x87b   :  { %v4873_v47 = vadd.f32 %v12044_v23, %v11980_v14  ;;  %12859 = vmatpush3.bf16.msra.mxu0 %v14284_v20 }
 0x87c   :  { %v12046_v16 = vpop.f32.mrf.mxu0  ;;  %12860 = vmatprep.subr.bf16.mxu0 %v14285_v55 }
 0x87d   :  { %v4890_v1 = vpack.c.bf16 %v4873_v47, %v4870_v36  ;;  %v12047_v60 = vadd.f32 %v12046_v16, %v12045_v43 }
 0x87e   :  { %v12048_v27 = vpop.f32.mrf.mxu0 }
 0x87f   :  { %12850 = vmatprep.mubr.bf16.mxu1 %v4890_v1  ;;  %v4878_v62 = vadd.f32 %v12047_v60, %v11983_v13  ;;  %12861 = vmatpush3.bf16.msra.mxu0 %v14285_v55 }
 0x880   :  { %v12049_v50 = vpop.f32.mrf.mxu0  ;;  %12862 = vmatprep.subr.bf16.mxu0 %v14286_v22 }
 0x881   :  { %v12050_v52 = vadd.f32 %v12049_v50, %v12048_v27 }
 0x882   :  { %v12083_v58 = vpop.f32.mrf.mxu0 }
 0x883   :  { %v4881_v53 = vadd.f32 %v12050_v52, %v11986_v51  ;;  %12863 = vmatpush3.bf16.msra.mxu0 %v14286_v22 }
 0x884   :  { %12864 = vmatprep.subr.bf16.mxu0 %v14287_v59  ;;  %v12084_v8 = vpop.f32.mrf.mxu0 }
 0x885   :  { %v4891_v48 = vpack.c.bf16 %v4881_v53, %v4878_v62 }
 0x886   :  { %v12086_v26 = vpop.f32.mrf.mxu0 }
 0x887   :  { %12851 = vmatmul.mubr.bf16.gmra.mxu1 %v4891_v48  ;;  %12865 = vmatpush3.bf16.msra.mxu0 %v14287_v59 }
 0x888   :  { %5392 = vmatprep.mubr.bf16.mxu1 %v14239_v15  ;;  %12866 = vmatprep.subr.bf16.mxu0 %v14288_v17  ;;  %v12087_v56 = vpop.f32.mrf.mxu0 }
 0x889   :  { %v12088_v38 = vadd.f32 %v12087_v56, %v12086_v26 }
 0x88a   :  { %v12089_v23 = vpop.f32.mrf.mxu0 }
 0x88b   :  { %12867 = vmatpush3.bf16.msra.mxu0 %v14288_v17 }
 0x88c   :  { %12868 = vmatprep.subr.bf16.mxu0 %v14289_v31  ;;  %v12090_v9 = vpop.f32.mrf.mxu0 }
 0x88e   :  { %v12092_v47 = vpop.f32.mrf.mxu0 }
 0x88f   :  { %5393 = vmatmul.mubr.bf16.vlgmr.msra.gmra.mxu1 %v14237_v35  ;;  %12869 = vmatpush3.bf16.msra.mxu0 %v14289_v31 }
 0x890   :  { %5400 = vmatprep.mubr.bf16.mxu1 %v14245_v10  ;;  %v12093_v37 = vpop.f32.mrf.mxu0 }
 0x897   :  { %5401 = vmatmul.mubr.bf16.gmra.mxu1 %v14243_v34 }
 0x898   :  { %5408 = vmatprep.mubr.bf16.mxu1 %v14251_v49 }
 0x89f   :  { %5409 = vmatmul.mubr.bf16.gmra.mxu1 %v14249_v39 }
 0x8a0   :  { %5416 = vmatprep.mubr.bf16.mxu1 %v14257_v44 }
 0x8a7   :  { %5417 = vmatmul.mubr.bf16.gmra.mxu1 %v14255_v32 }
 0x8a8   :  { %5424 = vmatprep.mubr.bf16.mxu1 %v14263_v40 }
 0x8af   :  { %5425 = vmatmul.mubr.bf16.gmra.mxu1 %v14261_v21 }
 0x8b0   :  { %5432 = vmatprep.mubr.bf16.mxu1 %v14269_v0 }
 0x8b7   :  { %5433 = vmatmul.mubr.bf16.gmra.mxu1 %v14267_v28 }
 0x8b8   :  { %5440 = vmatprep.mubr.bf16.mxu1 %v14275_v11 }
 0x8bf   :  { %5441 = vmatmul.mubr.bf16.gmra.mxu1 %v14273_v2 }
 0x8c0   :  { %5448 = vmatprep.mubr.bf16.mxu1 %v14281_v33 }
 0x8c7   :  { %5449 = vmatmul.mubr.bf16.gmra.mxu1 %v14279_v6 }
 0x917   :  { %v12840_v24 = vpop.f32.mrf.mxu1 }
 0x918   :  { %v16748_v25 = vadd.f32 %v12840_v24, %v16641_v41 }
 0x919   :  { %v4991_v46 = vpop.f32.mrf.mxu1 }
 0x91a   :  { %v16751_v3 = vadd.f32 %v4991_v46, %v16644_v45  ;;  %v12091_v46 = vadd.f32 %v12090_v9, %v12089_v23 }
 0x91b   :  { %v12841_v63 = vpop.f32.mrf.mxu1 }
 0x91c   :  { %v16754_v14 = vadd.f32 %v12841_v63, %v16649_v4  ;;  %v12095_v4 = vpop.f32.mrf.mxu0  ;;  %v12094_v63 = vadd.f32 %v12093_v37, %v12092_v47 }
 0x91d   :  { %v16756_v43 = vpop.f32.mrf.mxu1 }
 0x91e   :  { %v12096_v60 = vpop.f32.mrf.mxu0 }
 0x920   :  { %v12098_v51 = vpop.f32.mrf.mxu0 }
 0x922   :  { %v12099_v53 = vpop.f32.mrf.mxu0 }
 0x927   :  { %v12844_v36 = vpop.f32.mrf.mxu1 }
 0x928   :  { %v16759_v16 = vadd.f32 %v12844_v36, %v16660_v42 }
 0x929   :  { %v5007_v41 = vpop.f32.mrf.mxu1 }
 0x92a   :  { %v16762_v1 = vadd.f32 %v5007_v41, %v16663_v7 }
 0x92b   :  { %v12845_v45 = vpop.f32.mrf.mxu1 }
 0x92c   :  { %v16765_v27 = vadd.f32 %v12845_v45, %v16668_v12  ;;  %v12101_v12 = vpop.f32.mrf.mxu0 }
 0x92d   :  { %v16767_v50 = vpop.f32.mrf.mxu1 }
 0x92e   :  { %v12102_v48 = vpop.f32.mrf.mxu0 }
 0x930   :  { %v12104_v34 = vpop.f32.mrf.mxu0 }
 0x932   :  { %v12105_v44 = vpop.f32.mrf.mxu0 }
 0x934   :  { %v12107_v21 = vpop.f32.mrf.mxu0 }
 0x936   :  { %v12108_v11 = vpop.f32.mrf.mxu0 }
 0x937   :  { %v12848_v13 = vpop.f32.mrf.mxu1 }
 0x938   :  { %v16770_v52 = vadd.f32 %v12848_v13, %v16679_v18 }
 0x939   :  { %v5023_v42 = vpop.f32.mrf.mxu1 }
 0x93a   :  { %v16773_v62 = vadd.f32 %v5023_v42, %v16682_v30 }
 0x93b   :  { %v12849_v7 = vpop.f32.mrf.mxu1 }
 0x93c   :  { %v16776_v15 = vadd.f32 %v12849_v7, %v16687_v57 }
 0x93d   :  { %v16778_v35 = vpop.f32.mrf.mxu1 }
 0x947   :  { %v12852_v10 = vpop.f32.mrf.mxu1 }
 0x948   :  { %v16781_v49 = vadd.f32 %v12852_v10, %v16698_v54  ;;  %v12085_v54 = vadd.f32 %v12084_v8, %v12083_v58 }
 0x949   :  { %v5039_v18 = vpop.f32.mrf.mxu1 }
 0x94a   :  { %v16784_v39 = vadd.f32 %v5039_v18, %v16701_v29  ;;  %v12110_v29 = vpop.f32.mrf.mxu0  ;;  %v12097_v18 = vadd.f32 %v12096_v60, %v12095_v4 }
 0x94b   :  { %v12853_v30 = vpop.f32.mrf.mxu1 }
 0x94c   :  { %v16787_v32 = vadd.f32 %v12853_v30, %v16704_v61  ;;  %v12111_v17 = vpop.f32.mrf.mxu0  ;;  %v12100_v30 = vadd.f32 %v12099_v53, %v12098_v51 }
 0x94d   :  { %v16789_v57 = vpop.f32.mrf.mxu1 }
 0x94e   :  { %v12113_v45 = vpop.f32.mrf.mxu0 }
 0x94f   :  { %v12147_v40 = vpop.f32.mrf.mxu1 }
 0x950   :  { %v12114_v42 = vpop.f32.mrf.mxu0 }
 0x951   :  { %v12148_v0 = vpop.f32.mrf.mxu1 }
 0x952   :  { %v12149_v2 = vadd.f32 %v12148_v0, %v12147_v40 }
 0x953   :  { %v12150_v28 = vpop.f32.mrf.mxu1 }
 0x954   :  { %v5395_v20 = vadd.f32 %v12149_v2, %v12085_v54 }
 0x955   :  { %v12151_v33 = vpop.f32.mrf.mxu1 }
 0x956   :  { %v12152_v6 = vadd.f32 %v12151_v33, %v12150_v28  ;;  %v12116_v28 = vpop.f32.mrf.mxu0 }
 0x957   :  { %v12153_v5 = vpop.f32.mrf.mxu1 }
 0x958   :  { %v5398_v55 = vadd.f32 %v12152_v6, %v12088_v38  ;;  %v12117_v33 = vpop.f32.mrf.mxu0  ;;  %v12103_v6 = vadd.f32 %v12102_v48, %v12101_v12 }
 0x959   :  { %v12154_v22 = vpop.f32.mrf.mxu1 }
 0x95a   :  { %v5457_v59 = vpack.c.bf16 %v5398_v55, %v5395_v20  ;;  %v12155_v31 = vadd.f32 %v12154_v22, %v12153_v5  ;;  %v12106_v5 = vadd.f32 %v12105_v44, %v12104_v34  ;;  %v12119_v22 = vpop.f32.mrf.mxu0 }
 0x95b   :  { %v12156_v61 = vpop.f32.mrf.mxu1 }
 0x95c   :  { %12870 = vmatprep.mubr.bf16.mxu0 %v5457_v59  ;;  %v5403_v13 = vadd.f32 %v12155_v31, %v12091_v46  ;;  %v12109_v46 = vadd.f32 %v12108_v11, %v12107_v21 }
 0x95d   :  { %v12157_v24 = vpop.f32.mrf.mxu1 }
 0x95e   :  { %v12158_v36 = vadd.f32 %v12157_v24, %v12156_v61  ;;  %v12120_v61 = vpop.f32.mrf.mxu0 }
 0x95f   :  { %v12159_v41 = vpop.f32.mrf.mxu1 }
 0x960   :  { %v5406_v58 = vadd.f32 %v12158_v36, %v12094_v63  ;;  %v12112_v63 = vadd.f32 %v12111_v17, %v12110_v29 }
 0x961   :  { %v12160_v8 = vpop.f32.mrf.mxu1 }
 0x962   :  { %v5458_v26 = vpack.c.bf16 %v5406_v58, %v5403_v13  ;;  %v12161_v7 = vadd.f32 %v12160_v8, %v12159_v41  ;;  %v12122_v13 = vpop.f32.mrf.mxu0 }
 0x963   :  { %v12162_v56 = vpop.f32.mrf.mxu1 }
 0x964   :  { %12871 = vmatmul.mubr.bf16.vlgmr.msra.gmra.mxu0 %v5458_v26  ;;  %v5411_v2 = vadd.f32 %v12161_v7, %v12097_v18  ;;  %v12123_v8 = vpop.f32.mrf.mxu0  ;;  %v12115_v7 = vadd.f32 %v12114_v42, %v12113_v45 }
 0x965   :  { %v12163_v10 = vpop.f32.mrf.mxu1 }
 0x966   :  { %v12164_v40 = vadd.f32 %v12163_v10, %v12162_v56  ;;  %v12118_v10 = vadd.f32 %v12117_v33, %v12116_v28 }
 0x967   :  { %v12165_v0 = vpop.f32.mrf.mxu1 }
 0x968   :  { %v5414_v23 = vadd.f32 %v12164_v40, %v12100_v30  ;;  %v12125_v40 = vpop.f32.mrf.mxu0 }
 0x969   :  { %v12166_v9 = vpop.f32.mrf.mxu1 }
 0x96a   :  { %v5459_v47 = vpack.c.bf16 %v5414_v23, %v5411_v2  ;;  %v12167_v54 = vadd.f32 %v12166_v9, %v12165_v0  ;;  %v12126_v17 = vpop.f32.mrf.mxu0 }
 0x96b   :  { %v12168_v37 = vpop.f32.mrf.mxu1 }
 0x96c   :  { %12874 = vmatprep.mubr.bf16.mxu0 %v5459_v47  ;;  %v5419_v59 = vadd.f32 %v12167_v54, %v12103_v6  ;;  %v12121_v47 = vadd.f32 %v12120_v61, %v12119_v22  ;;  %v14290_v22 = vld [vmem:[#allocation10] sm:$0xff]   ;;  %v14291_v61 = vld [vmem:[#allocation10 + $0x10] sm:$0xff]  }
 0x96d   :  { %v12169_v38 = vpop.f32.mrf.mxu1  ;;  %12902 = vmatprep.mubr.bf16.mxu1 %v14290_v22  ;;  %v17500_v22 = vld [vmem:[#allocation48_spill] sm:$0xff] }
 0x96e   :  { %v12170_v20 = vadd.f32 %v12169_v38, %v12168_v37  ;;  %v12124_v37 = vadd.f32 %v12123_v8, %v12122_v13  ;;  %v12128_v38 = vpop.f32.mrf.mxu0  ;;  %v16799_v8 = vld [vmem:[#allocation8] ss:$0 sm:$0xff] }
 0x96f   :  { %v12171_v55 = vpop.f32.mrf.mxu1 }
 0x970   :  { %v5422_v4 = vadd.f32 %v12170_v20, %v12106_v5  ;;  %v12129_v33 = vpop.f32.mrf.mxu0 }
 0x971   :  { %v12172_v60 = vpop.f32.mrf.mxu1 }
 0x972   :  { %v5460_v51 = vpack.c.bf16 %v5422_v4, %v5419_v59  ;;  %v12173_v31 = vadd.f32 %v12172_v60, %v12171_v55  ;;  %v12127_v4 = vadd.f32 %v12126_v17, %v12125_v40  ;;  %v12130_v60 = vadd.f32 %v12129_v33, %v12128_v38  ;;  %v17495_v33 = vld [vmem:[#allocation43_spill] sm:$0xff] }
 0x973   :  { %v12174_v53 = vpop.f32.mrf.mxu1 }
 0x974   :  { %12875 = vmatmul.mubr.bf16.gmra.mxu0 %v5460_v51  ;;  %v5427_v58 = vadd.f32 %v12173_v31, %v12109_v46 }
 0x975   :  { %v12175_v24 = vpop.f32.mrf.mxu1 }
 0x976   :  { %v12176_v36 = vadd.f32 %v12175_v24, %v12174_v53 }
 0x977   :  { %v12177_v41 = vpop.f32.mrf.mxu1 }
 0x978   :  { %v5430_v12 = vadd.f32 %v12176_v36, %v12112_v63  ;;  %v16791_v63 = vld [vmem:[#allocation7] ss:$0 sm:$0xff] }
 0x979   :  { %v12178_v48 = vpop.f32.mrf.mxu1 }
 0x97a   :  { %v5461_v34 = vpack.c.bf16 %v5430_v12, %v5427_v58  ;;  %v12179_v26 = vadd.f32 %v12178_v48, %v12177_v41 }
 0x97b   :  { %v12180_v44 = vpop.f32.mrf.mxu1 }
 0x97c   :  { %12878 = vmatprep.mubr.bf16.mxu0 %v5461_v34  ;;  %v5435_v0 = vadd.f32 %v12179_v26, %v12115_v7 }
 0x97d   :  { %v12181_v56 = vpop.f32.mrf.mxu1 }
 0x97e   :  { %v12182_v18 = vadd.f32 %v12181_v56, %v12180_v44 }
 0x97f   :  { %v12183_v30 = vpop.f32.mrf.mxu1 }
 0x980   :  { %v5438_v21 = vadd.f32 %v12182_v18, %v12118_v10 }
 0x981   :  { %v12184_v11 = vpop.f32.mrf.mxu1 }
 0x982   :  { %v5462_v29 = vpack.c.bf16 %v5438_v21, %v5435_v0  ;;  %v12185_v23 = vadd.f32 %v12184_v11, %v12183_v30 }
 0x983   :  { %v12186_v2 = vpop.f32.mrf.mxu1 }
 0x984   :  { %12879 = vmatmul.mubr.bf16.gmra.mxu0 %v5462_v29  ;;  %v5443_v5 = vadd.f32 %v12185_v23, %v12121_v47 }
 0x985   :  { %v12187_v9 = vpop.f32.mrf.mxu1 }
 0x986   :  { %v12188_v54 = vadd.f32 %v12187_v9, %v12186_v2 }
 0x987   :  { %v12189_v6 = vpop.f32.mrf.mxu1 }
 0x988   :  { %v5446_v45 = vadd.f32 %v12188_v54, %v12124_v37 }
 0x989   :  { %v12190_v42 = vpop.f32.mrf.mxu1 }
 0x98a   :  { %v5463_v28 = vpack.c.bf16 %v5446_v45, %v5443_v5  ;;  %v12191_v55 = vadd.f32 %v12190_v42, %v12189_v6 }
 0x98b   :  { %v12192_v20 = vpop.f32.mrf.mxu1 }
 0x98c   :  { %12882 = vmatprep.mubr.bf16.mxu0 %v5463_v28  ;;  %v5451_v53 = vadd.f32 %v12191_v55, %v12127_v4  ;;  %v17497_v4 = vld [vmem:[#allocation55_spill] sm:$0xff] }
 0x98d   :  { %v12193_v59 = vpop.f32.mrf.mxu1 }
 0x98e   :  { %v12194_v51 = vadd.f32 %v12193_v59, %v12192_v20  ;;  %v17496_v20 = vld [vmem:[#allocation39_spill] sm:$0xff] }
 0x98f   :  { %v1605_v55 = vadd.f32 %v17496_v20, %v17495_v33 }
 0x990   :  { %v5454_v31 = vadd.f32 %v12194_v51, %v12130_v60 }
 0x991   :  { %v2198_v60 = vadd.f32 %v17497_v4, %v1605_v55  ;;  %v17513_v55 = vld [vmem:[#allocation47_spill] sm:$0xff]  ;;  %v17514_v4 = vld [vmem:[#allocation58_spill] sm:$0xff] }
 0x992   :  { %v5464_v24 = vpack.c.bf16 %v5454_v31, %v5451_v53  ;;  %v17498_v31 = vld [vmem:[#allocation44_spill] sm:$0xff] }
 0x994   :  { %12883 = vmatmul.mubr.bf16.gmra.mxu0 %v5464_v24 }
 0x995   :  { %12922 = vmatprep.mubr.bf16.mxu0 %v14291_v61  ;;  %v2771_v61 = vadd.f32 %v17500_v22, %v2198_v60 }
 0xa24   :  { %v12872_v46 = vpop.f32.mrf.mxu0 }
 0xa25   :  { %v5629_v36 = vadd.f32 %v12872_v46, %v16748_v25 }
 0xa26   :  { %v16794_v41 = vpop.f32.mrf.mxu0 }
 0xa27   :  { %v5652_v13 = vadd.f32 %v16791_v63, %v5629_v36  ;;  %v17501_v36 = vld [vmem:[#allocation59_spill] sm:$0xff] }
 0xa28   :  { %v12873_v58 = vpop.f32.mrf.mxu0 }
 0xa29   :  { %v5684_v12 = vmul.f32 0.2, %v5652_v13  ;;  %v5630_v48 = vadd.f32 %v12873_v58, %v16754_v14  ;;  %vm5668_vm0 = vcmp.gt.f32.partialorder %v5652_v13, 0.0 }
 0xa2a   :  { %v16805_v18 = vpop.f32.mrf.mxu0 }
 0xa2b   :  { %v5653_v34 = vadd.f32 %v16791_v63, %v5630_v48  ;;  %v5700_v44 = vsel %vm5668_vm0, %v5652_v13, %v5684_v12  ;;  %vm15010_vm0 = vmmov 0  }
 0xa2c   :  { %v5723_v7 = vadd.f32 %v16799_v8, %v5700_v44  ;;  %v17504_v44 = vld [vmem:[#allocation38_spill] sm:$0xff] }
 0xa2d   :  { %vm5669_vm1 = vcmp.gt.f32.partialorder %v5653_v34, 0.0  ;;  %v5685_v26 = vmul.f32 0.2, %v5653_v34 }
 0xa2f   :  { %v5701_v56 = vsel %vm5669_vm1, %v5653_v34, %v5685_v26  ;;  %v17503_v34 = vld [vmem:[#allocation42_spill] sm:$0xff] }
 0xa30   :  { %v5724_v25 = vadd.f32 %v16799_v8, %v5701_v56  ;;  %v1589_v26 = vadd.f32 %v17504_v44, %v17503_v34  ;;  %v17505_v56 = vld [vmem:[#allocation49_spill] sm:$0xff] }
 0xa32   :  { %v16803_v10 = vpack.c.bf16 %v5724_v25, %v5723_v7 }
 0xa34   :  { %v12876_v30 = vpop.f32.mrf.mxu0 }
 0xa35   :  { %v5633_v14 = vadd.f32 %v12876_v30, %v16759_v16 }
 0xa36   :  { %v16808_v40 = vpop.f32.mrf.mxu0 }
 0xa37   :  { %v5656_v0 = vadd.f32 %v16791_v63, %v5633_v14 }
 0xa38   :  { %v12877_v21 = vpop.f32.mrf.mxu0 }
 0xa39   :  { %v5688_v11 = vmul.f32 0.2, %v5656_v0  ;;  %v5634_v29 = vadd.f32 %v12877_v21, %v16765_v27  ;;  %vm5672_vm2 = vcmp.gt.f32.partialorder %v5656_v0, 0.0 }
 0xa3a   :  { %v16817_v54 = vpop.f32.mrf.mxu0 }
 0xa3b   :  { %v5657_v17 = vadd.f32 %v16791_v63, %v5634_v29  ;;  %v5704_v2 = vsel %vm5672_vm2, %v5656_v0, %v5688_v11  ;;  %v17506_v0 = vld [vmem:[#allocation51_spill] sm:$0xff] }
 0xa3c   :  { %v5727_v47 = vadd.f32 %v16799_v8, %v5704_v2  ;;  %v2194_v21 = vadd.f32 %v17506_v0, %v1589_v26  ;;  %v17507_v11 = vld [vmem:[#allocation67_spill] sm:$0xff] }
 0xa3d   :  { %vm5673_vm3 = vcmp.gt.f32.partialorder %v5657_v17, 0.0  ;;  %v5689_v23 = vmul.f32 0.2, %v5657_v17 }
 0xa3f   :  { %v5705_v9 = vsel %vm5673_vm3, %v5657_v17, %v5689_v23  ;;  %v17508_v17 = vld [vmem:[#allocation60_spill] sm:$0xff] }
 0xa40   :  { %v5728_v37 = vadd.f32 %v16799_v8, %v5705_v9 }
 0xa42   :  { %v16815_v16 = vpack.c.bf16 %v5728_v37, %v5727_v47  ;;  %v17509_v47 = vld [vmem:[#allocation41_spill] sm:$0xff] }
 0xa43   :  { %v17510_v37 = vld [vmem:[#allocation37_spill] sm:$0xff] }
 0xa44   :  { %v12880_v38 = vpop.f32.mrf.mxu0 }
 0xa45   :  { %v5637_v6 = vadd.f32 %v12880_v38, %v16770_v52  ;;  %v17499_v52 = vld [vmem:[#allocation40_spill] sm:$0xff]  ;;  %v1573_v38 = vadd.f32 %v17510_v37, %v17509_v47 }
 0xa46   :  { %v5596_v5 = vpop.f32.mrf.mxu0  ;;  %v1621_v24 = vadd.f32 %v17499_v52, %v17498_v31 }
 0xa47   :  { %v5660_v27 = vadd.f32 %v16791_v63, %v5637_v6  ;;  %v17511_v6 = vld [vmem:[#allocation46_spill] sm:$0xff] }
 0xa48   :  { %v12881_v45 = vpop.f32.mrf.mxu0  ;;  %v2202_v13 = vadd.f32 %v17501_v36, %v1621_v24 }
 0xa49   :  { %v5692_v42 = vmul.f32 0.2, %v5660_v27  ;;  %v5638_v28 = vadd.f32 %v12881_v45, %v16776_v15  ;;  %vm5676_vm4 = vcmp.gt.f32.partialorder %v5660_v27, 0.0  ;;  %v17502_v15 = vld [vmem:[#allocation63_spill] sm:$0xff]  ;;  %v17512_v45 = vld [vmem:[#allocation54_spill] sm:$0xff] }
 0xa4a   :  { %v3344_v58 = vadd.f32 %v17502_v15, %v2771_v61  ;;  %v2775_v7 = vadd.f32 %v17505_v56, %v2202_v13  ;;  %v5599_v14 = vpop.f32.mrf.mxu0  ;;  %v5635_v15 = vadd.f32 %v5596_v5, %v16773_v62 }
 0xa4b   :  { %v5661_v59 = vadd.f32 %v16791_v63, %v5638_v28  ;;  %v5708_v51 = vsel %vm5676_vm4, %v5660_v27, %v5692_v42  ;;  %v2767_v27 = vadd.f32 %v17511_v6, %v2194_v21 }
 0xa4c   :  { %v5731_v12 = vadd.f32 %v16799_v8, %v5708_v51  ;;  %v3917_v25 = vadd.f32 %v16452_v19, %v3344_v58  ;;  %v3348_v29 = vadd.f32 %v17507_v11, %v2775_v7  ;;  %v17515_v51 = vld [vmem:[#allocation61_spill] sm:$0xff]  ;;  %v5658_v62 = vadd.f32 %v16791_v63, %v5635_v15 }
 0xa4d   :  { %vm5677_vm5 = vcmp.gt.f32.partialorder %v5661_v59, 0.0  ;;  %v5693_v53 = vmul.f32 0.2, %v5661_v59  ;;  %v3340_v60 = vadd.f32 %v17514_v4, %v2767_v27  ;;  %v17519_v7 = vld [vmem:[#allocation53_spill] sm:$0xff] }
 0xa4e   :  { %v4490_v2 = vadd.f32 %v17508_v17, %v3917_v25  ;;  %v3921_v42 = vadd.f32 %v17512_v45, %v3348_v29  ;;  %v17521_v45 = vld [vmem:[#allocation56_spill] sm:$0xff]  ;;  %vm5674_vm11 = vcmp.gt.f32.partialorder %v5658_v62, 0.0  ;;  %v14292_v15 = vld [vmem:[#allocation10 + $0x8] sm:$0xff]  }
 0xa4f   :  { %v5709_v46 = vsel %vm5677_vm5, %v5661_v59, %v5693_v53  ;;  %v2190_v59 = vadd.f32 %v17513_v55, %v1573_v38  ;;  %v5690_v38 = vmul.f32 0.2, %v5658_v62  ;;  %vm7446_vm5 = vcmask 261120  }
 0xa50   :  { %v5732_v48 = vadd.f32 %v16799_v8, %v5709_v46  ;;  %v5063_v19 = vadd.f32 %v16778_v35, %v4490_v2  ;;  %v17516_v35 = vld [vmem:[#allocation52_spill] sm:$0xff] }
 0xa51   :  { %v3913_v61 = vadd.f32 %v17516_v35, %v3340_v60 }
 0xa52   :  { %v16837_v30 = vpack.c.bf16 %v5732_v48, %v5731_v12  ;;  %v5636_v53 = vadd.f32 %v5599_v14, %v5063_v19  ;;  %v17518_v12 = vld [vmem:[#allocation57_spill] sm:$0xff] }
 0xa53   :  { %v4486_v48 = vadd.f32 %v17518_v12, %v3913_v61  ;;  %v14303_v12 = vld [vmem:[#allocation11 + $0x30] sm:$0xff]  }
 0xa54   :  { %v12884_v23 = vpop.f32.mrf.mxu0  ;;  %v5659_v56 = vadd.f32 %v16791_v63, %v5636_v53 }
 0xa55   :  { %v5641_v9 = vadd.f32 %v12884_v23, %v16781_v49  ;;  %v4494_v49 = vadd.f32 %v17515_v51, %v3921_v42  ;;  %v5059_v14 = vadd.f32 %v16767_v50, %v4486_v48  ;;  %v17520_v23 = vld [vmem:[#allocation50_spill] sm:$0xff]  ;;  %v5631_v50 = vadd.f32 %v16808_v40, %v16762_v1  ;;  %v14296_v48 = vld [vmem:[#allocation11 + $0x68] sm:$0xff]  }
 0xa56   :  { %v5612_v28 = vpop.f32.mrf.mxu0  ;;  %v5691_v2 = vmul.f32 0.2, %v5659_v56  ;;  %vm5675_vm10 = vcmp.gt.f32.partialorder %v5659_v56, 0.0 }
 0xa57   :  { %v5664_v33 = vadd.f32 %v16791_v63, %v5641_v9  ;;  %v5639_v20 = vadd.f32 %v5612_v28, %v16784_v39  ;;  %v5067_v46 = vadd.f32 %v16789_v57, %v4494_v49  ;;  %v17517_v39 = vld [vmem:[#allocation45_spill] sm:$0xff]  ;;  %v5632_v17 = vadd.f32 %v16817_v54, %v5059_v14  ;;  %v14301_v14 = vld [vmem:[#allocation11 + $0x40] sm:$0xff]  }
 0xa58   :  { %v12885_v31 = vpop.f32.mrf.mxu0  ;;  %v2763_v13 = vadd.f32 %v17517_v39, %v2190_v59  ;;  %v5707_v19 = vsel %vm5675_vm10, %v5659_v56, %v5691_v2  ;;  %v5654_v40 = vadd.f32 %v16791_v63, %v5631_v50  ;;  %v14294_v39 = vld [vmem:[#allocation11 + $0x78] sm:$0xff]   ;;  %vm10222_vm10 = vcmask 1041408  }
 0xa59   :  { %vm5680_vm6 = vcmp.gt.f32.partialorder %v5664_v33, 0.0  ;;  %v5696_v52 = vmul.f32 0.2, %v5664_v33  ;;  %v5662_v24 = vadd.f32 %v16791_v63, %v5639_v20  ;;  %v5642_v22 = vadd.f32 %v12885_v31, %v16787_v32  ;;  %v14298_v56 = vld [vmem:[#allocation11 + $0x58] sm:$0xff]  }
 0xa5a   :  { %v5615_v36 = vpop.f32.mrf.mxu0  ;;  %v3336_v25 = vadd.f32 %v17519_v7, %v2763_v13  ;;  %v5655_v54 = vadd.f32 %v16791_v63, %v5632_v17  ;;  %v5730_v20 = vadd.f32 %v16799_v8, %v5707_v19  ;;  %v5686_v60 = vmul.f32 0.2, %v5654_v40  ;;  %v14302_v13 = vld [vmem:[#allocation11 + $0x38] sm:$0xff]   ;;  %v14299_v7 = vld [vmem:[#allocation11 + $0x50] sm:$0xff]  }
 0xa5b   :  { %v5665_v58 = vadd.f32 %v16791_v63, %v5642_v22  ;;  %v5712_v34 = vsel %vm5680_vm6, %v5664_v33, %v5696_v52  ;;  %v5694_v44 = vmul.f32 0.2, %v5662_v24  ;;  %v5640_v26 = vadd.f32 %v5615_v36, %v5067_v46  ;;  %v14314_v19 = vld [vmem:[#allocation10 + $0x40] sm:$0xff]  }
 0xa5c   :  { %vm5678_vm7 = vcmp.gt.f32.partialorder %v5662_v24, 0.0  ;;  %v5735_v5 = vadd.f32 %v16799_v8, %v5712_v34  ;;  %v3909_v9 = vadd.f32 %v17520_v23, %v3336_v25  ;;  %v5706_v33 = vsel %vm5674_vm11, %v5658_v62, %v5690_v38  ;;  %v14304_v34 = vld [vmem:[#allocation11 + $0x28] sm:$0xff]   ;;  %v14307_v25 = vld [vmem:[#allocation11 + $0x10] sm:$0xff]  }
 0xa5d   :  { %vm5681_vm8 = vcmp.gt.f32.partialorder %v5665_v58, 0.0  ;;  %v5697_v32 = vmul.f32 0.2, %v5665_v58  ;;  %v5663_v57 = vadd.f32 %v16791_v63, %v5640_v26  ;;  %v5710_v21 = vsel %vm5678_vm7, %v5662_v24, %v5694_v44  ;;  %v14297_v44 = vld [vmem:[#allocation11 + $0x60] sm:$0xff]   ;;  %v14308_v62 = vld [vmem:[#allocation11 + $0x8] sm:$0xff]  }
 0xa5e   :  { %v5733_v6 = vadd.f32 %v16799_v8, %v5710_v21  ;;  %v4482_v42 = vadd.f32 %v17521_v45, %v3909_v9  ;;  %v5687_v59 = vmul.f32 0.2, %v5655_v54  ;;  %vm5671_vm12 = vcmp.gt.f32.partialorder %v5655_v54, 0.0  ;;  %v14305_v26 = vld [vmem:[#allocation11 + $0x20] sm:$0xff]   ;;  %v14311_v45 = vld [vmem:[#allocation10 + $0x28] sm:$0xff]  }
 0xa5f   :  { %v5713_v0 = vsel %vm5681_vm8, %v5665_v58, %v5697_v32  ;;  %vm5679_vm9 = vcmp.gt.f32.partialorder %v5663_v57, 0.0  ;;  %v5695_v29 = vmul.f32 0.2, %v5663_v57  ;;  %v5729_v4 = vadd.f32 %v16799_v8, %v5706_v33  ;;  %v14293_v58 = vld [vmem:[#allocation10 + $0x18] sm:$0xff]   ;;  %v14306_v32 = vld [vmem:[#allocation11 + $0x18] sm:$0xff]  }
 0xa60   :  { %v5736_v11 = vadd.f32 %v16799_v8, %v5713_v0  ;;  %v5055_v1 = vadd.f32 %v16756_v43, %v4482_v42  ;;  %v5627_v43 = vadd.f32 %v16794_v41, %v16751_v3  ;;  %vm5670_vm13 = vcmp.gt.f32.partialorder %v5654_v40, 0.0  ;;  %v14312_v42 = vld [vmem:[#allocation10 + $0x30] sm:$0xff]   ;;  %v14324_v33 = vld [vmem:[#allocation11 + $0xa8] sm:$0xff]  }
 0xa61   :  { %v5711_v37 = vsel %vm5679_vm9, %v5663_v57, %v5695_v29  ;;  %v16897_v51 = vpack.c.bf16 %v5730_v20, %v5729_v4  ;;  %v5703_v49 = vsel %vm5671_vm12, %v5655_v54, %v5687_v59  ;;  %v5702_v31 = vsel %vm5670_vm13, %v5654_v40, %v5686_v60  ;;  %v14300_v57 = vld [vmem:[#allocation11 + $0x48] sm:$0xff]   ;;  %v14323_v40 = vld [vmem:[#allocation11 + $0xb0] sm:$0xff]   ;;  %v14325_v20 = vld [vmem:[#allocation11 + $0xa0] sm:$0xff]  }
 0xa62   :  { %v16870_v47 = vpack.c.bf16 %v5736_v11, %v5735_v5  ;;  %v5734_v27 = vadd.f32 %v16799_v8, %v5711_v37  ;;  %v5628_v55 = vadd.f32 %v16805_v18, %v5055_v1  ;;  %v5650_v53 = vadd.f32 %v16791_v63, %v5627_v43  ;;  %v14309_v5 = vld [vmem:[#allocation11] sm:$0xff]   ;;  %v14313_v54 = vld [vmem:[#allocation10 + $0x38] sm:$0xff]   ;;  %v14322_v1 = vld [vmem:[#allocation11 + $0xb8] sm:$0xff]  }
 0xa63   :  { %v5726_v3 = vadd.f32 %v16799_v8, %v5703_v49  ;;  %v5725_v52 = vadd.f32 %v16799_v8, %v5702_v31  ;;  %v14315_v59 = vld [vmem:[#allocation10 + $0x48] sm:$0xff]   ;;  %v14327_v4 = vld [vmem:[#allocation11 + $0x90] sm:$0xff]   ;;  %v14316_v43 = vld [vmem:[#allocation10 + $0x50] sm:$0xff]   ;;  %vm8835_vm7 = vcmask 1043456   ;;  %vm8831_vm8 = vcmask 64512  }
 0xa64   :  { %12886 = vmatprep.subr.bf16.mxu1 %v16870_v47  ;;  %12906 = vmatprep.subr.bf16.mxu0 %v16870_v47  ;;  %v16880_v28 = vpack.c.bf16 %v5734_v27, %v5733_v6  ;;  %v5651_v18 = vadd.f32 %v16791_v63, %v5628_v55  ;;  %v5682_v24 = vmul.f32 0.2, %v5650_v53  ;;  %vm5666_vm15 = vcmp.gt.f32.partialorder %v5650_v53, 0.0  ;;  %v14310_v6 = vld [vmem:[#allocation10 + $0x20] sm:$0xff]   ;;  %v14326_v55 = vld [vmem:[#allocation11 + $0x98] sm:$0xff]   ;;  %v14330_v60 = vld [vmem:[#allocation11 + $0x88] sm:$0xff]  }
 0xa65   :  { %12887 = vmatpush3.bf16.msra.mxu1 %v16870_v47  ;;  %12907 = vmatpush3.bf16.msra.mxu0 %v16870_v47  ;;  %v16911_v22 = vpack.c.bf16 %v5726_v3, %v5725_v52  ;;  %v16984_v49 = vld [vmem:[#allocation11 + $0xf8] sm:$0xff]   ;;  %v14318_v31 = vld [vmem:[#allocation10 + $0x60] sm:$0xff]   ;;  %v14321_v52 = vld [vmem:[#allocation10 + $0x78] sm:$0xff]   ;;  %vm10239_vm11 = vcmask 1024  }
 0xa66   :  { %12888 = vmatprep.subr.bf16.mxu1 %v16880_v28  ;;  %12908 = vmatprep.subr.bf16.mxu0 %v16880_v28  ;;  %v5683_v41 = vmul.f32 0.2, %v5651_v18  ;;  %vm5667_vm14 = vcmp.gt.f32.partialorder %v5651_v18, 0.0  ;;  %v5698_v35 = vsel %vm5666_vm15, %v5650_v53, %v5682_v24  ;;  %v14317_v53 = vld [vmem:[#allocation10 + $0x58] sm:$0xff]   ;;  %v14319_v3 = vld [vmem:[#allocation10 + $0x68] sm:$0xff]   ;;  %v14328_v24 = vld [vmem:[#allocation10 + $0x80] sm:$0xff]  }
 0xa67   :  { %v5721_v46 = vadd.f32 %v16799_v8, %v5698_v35 }
 0xa68   :  { %v5699_v63 = vsel %vm5667_vm14, %v5651_v18, %v5683_v41  ;;  %v14331_v18 = vld [vmem:[#allocation11 + $0x80] sm:$0xff]  }
 0xa69   :  { %12889 = vmatpush3.bf16.msra.mxu1 %v16880_v28  ;;  %12909 = vmatpush3.bf16.msra.mxu0 %v16880_v28  ;;  %v5722_v61 = vadd.f32 %v16799_v8, %v5699_v63  ;;  %v14295_v8 = vld [vmem:[#allocation11 + $0x70] sm:$0xff]   ;;  %v14320_v41 = vld [vmem:[#allocation10 + $0x70] sm:$0xff]  }
 0xa6a   :  { %12890 = vmatprep.subr.bf16.mxu1 %v16837_v30  ;;  %12910 = vmatprep.subr.bf16.mxu0 %v16837_v30 }
 0xa6b   :  { %v16923_v36 = vpack.c.bf16 %v5722_v61, %v5721_v46 }
 0xa6d   :  { %12891 = vmatpush3.bf16.msra.mxu1 %v16837_v30  ;;  %12911 = vmatpush3.bf16.msra.mxu0 %v16837_v30 }
 0xa6e   :  { %12892 = vmatprep.subr.bf16.mxu1 %v16897_v51  ;;  %12912 = vmatprep.subr.bf16.mxu0 %v16897_v51 }
 0xa71   :  { %12893 = vmatpush3.bf16.msra.mxu1 %v16897_v51  ;;  %12913 = vmatpush3.bf16.msra.mxu0 %v16897_v51 }
 0xa72   :  { %12894 = vmatprep.subr.bf16.mxu1 %v16815_v16  ;;  %12914 = vmatprep.subr.bf16.mxu0 %v16815_v16 }
 0xa75   :  { %12895 = vmatpush3.bf16.msra.mxu1 %v16815_v16  ;;  %12915 = vmatpush3.bf16.msra.mxu0 %v16815_v16 }
 0xa76   :  { %12896 = vmatprep.subr.bf16.mxu1 %v16911_v22  ;;  %12916 = vmatprep.subr.bf16.mxu0 %v16911_v22 }
 0xa79   :  { %12897 = vmatpush3.bf16.msra.mxu1 %v16911_v22  ;;  %12917 = vmatpush3.bf16.msra.mxu0 %v16911_v22 }
 0xa7a   :  { %12898 = vmatprep.subr.bf16.mxu1 %v16803_v10  ;;  %12918 = vmatprep.subr.bf16.mxu0 %v16803_v10 }
 0xa7d   :  { %12899 = vmatpush3.bf16.msra.mxu1 %v16803_v10  ;;  %12919 = vmatpush3.bf16.msra.mxu0 %v16803_v10 }
 0xa7e   :  { %12900 = vmatprep.subr.bf16.mxu1 %v16923_v36  ;;  %12920 = vmatprep.subr.bf16.mxu0 %v16923_v36 }
 0xa81   :  { %12901 = vmatpush3.bf16.msra.mxu1 %v16923_v36  ;;  %12921 = vmatpush3.bf16.msra.mxu0 %v16923_v36 }
 0xa82   :  { %12926 = vmatprep.subr.bf16.mxu1 %v14294_v39  ;;  %12946 = vmatprep.subr.bf16.mxu0 %v14302_v13 }
 0xa84   :  { %12903 = vmatmul.mubr.bf16.vlgmr.msra.gmra.mxu1 %v14292_v15  ;;  %12923 = vmatmul.mubr.bf16.vlgmr.msra.gmra.mxu0 %v14293_v58  ;;  %v14335_v15 = vld [vmem:[#allocation11 + $0xe0] sm:$0xff]   ;;  %v14337_v58 = vld [vmem:[#allocation11 + $0xd0] sm:$0xff]  }
 0xa85   :  { %12927 = vmatpush3.bf16.msra.mxu1 %v14294_v39  ;;  %12947 = vmatpush3.bf16.msra.mxu0 %v14302_v13  ;;  %v14333_v13 = vld [vmem:[#allocation11 + $0xf0] sm:$0xff]  }
 0xa86   :  { %12928 = vmatprep.subr.bf16.mxu1 %v14295_v8  ;;  %12948 = vmatprep.subr.bf16.mxu0 %v14303_v12 }
 0xa89   :  { %12929 = vmatpush3.bf16.msra.mxu1 %v14295_v8  ;;  %12949 = vmatpush3.bf16.msra.mxu0 %v14303_v12  ;;  %v14338_v8 = vld [vmem:[#allocation11 + $0xc8] sm:$0xff]  }
 0xa8a   :  { %12930 = vmatprep.subr.bf16.mxu1 %v14296_v48  ;;  %12950 = vmatprep.subr.bf16.mxu0 %v14304_v34 }
 0xa8d   :  { %12931 = vmatpush3.bf16.msra.mxu1 %v14296_v48  ;;  %12951 = vmatpush3.bf16.msra.mxu0 %v14304_v34  ;;  %v14339_v48 = vld [vmem:[#allocation11 + $0xc0] sm:$0xff]  }
 0xa8e   :  { %12932 = vmatprep.subr.bf16.mxu1 %v14297_v44  ;;  %12952 = vmatprep.subr.bf16.mxu0 %v14305_v26 }
 0xa91   :  { %12933 = vmatpush3.bf16.msra.mxu1 %v14297_v44  ;;  %12953 = vmatpush3.bf16.msra.mxu0 %v14305_v26  ;;  %v14340_v26 = vld [vmem:[#allocation11 + $0x138] sm:$0xff]  }
 0xa92   :  { %12934 = vmatprep.subr.bf16.mxu1 %v14298_v56  ;;  %12954 = vmatprep.subr.bf16.mxu0 %v14306_v32 }
 0xa95   :  { %12935 = vmatpush3.bf16.msra.mxu1 %v14298_v56  ;;  %12955 = vmatpush3.bf16.msra.mxu0 %v14306_v32 }
 0xa96   :  { %12936 = vmatprep.subr.bf16.mxu1 %v14299_v7  ;;  %12956 = vmatprep.subr.bf16.mxu0 %v14307_v25 }
 0xa99   :  { %12937 = vmatpush3.bf16.msra.mxu1 %v14299_v7  ;;  %12957 = vmatpush3.bf16.msra.mxu0 %v14307_v25  ;;  %v14341_v25 = vld [vmem:[#allocation11 + $0x130] sm:$0xff]  }
 0xa9a   :  { %12938 = vmatprep.subr.bf16.mxu1 %v14300_v57  ;;  %12958 = vmatprep.subr.bf16.mxu0 %v14308_v62 }
 0xa9d   :  { %12939 = vmatpush3.bf16.msra.mxu1 %v14300_v57  ;;  %12959 = vmatpush3.bf16.msra.mxu0 %v14308_v62  ;;  %v14342_v57 = vld [vmem:[#allocation11 + $0x128] sm:$0xff]   ;;  %v14344_v62 = vld [vmem:[#allocation11 + $0x118] sm:$0xff]  }
 0xa9e   :  { %12940 = vmatprep.subr.bf16.mxu1 %v14301_v14  ;;  %12960 = vmatprep.subr.bf16.mxu0 %v14309_v5 }
 0xaa1   :  { %12941 = vmatpush3.bf16.msra.mxu1 %v14301_v14  ;;  %12961 = vmatpush3.bf16.msra.mxu0 %v14309_v5  ;;  %v14343_v14 = vld [vmem:[#allocation11 + $0x120] sm:$0xff]   ;;  %v14345_v5 = vld [vmem:[#allocation11 + $0x110] sm:$0xff]  }
 0xaa2   :  { %12966 = vmatprep.subr.bf16.mxu1 %v16870_v47  ;;  %12986 = vmatprep.subr.bf16.mxu0 %v14322_v1 }
 0xb44   :  { %v12904_v0 = vpop.f32.mrf.mxu1  ;;  %v12924_v21 = vpop.f32.mrf.mxu0 }
 0xb46   :  { %v5795_v11 = vpop.f32.mrf.mxu1  ;;  %v5879_v29 = vpop.f32.mrf.mxu0 }
 0xb48   :  { %v12905_v17 = vpop.f32.mrf.mxu1  ;;  %v12925_v2 = vpop.f32.mrf.mxu0 }
 0xb49   :  { %v5811_v23 = vpack.c.bf16 %v12905_v17, %v12904_v0  ;;  %v5895_v27 = vpack.c.bf16 %v12925_v2, %v12924_v21  ;;  %v14346_v0 = vld [vmem:[#allocation11 + $0x108] sm:$0xff]   ;;  %v14348_v2 = vld [vmem:[#allocation11 + $0x178] sm:$0xff]  }
 0xb4a   :  { %v5798_v9 = vpop.f32.mrf.mxu1  ;;  %v5882_v37 = vpop.f32.mrf.mxu0 }
 0xb4b   :  { %v5810_v50 = vpack.c.bf16 %v5798_v9, %v5795_v11  ;;  %v5894_v38 = vpack.c.bf16 %v5882_v37, %v5879_v29  ;;  %v14347_v11 = vld [vmem:[#allocation11 + $0x100] sm:$0xff]  }
 0xb4d   :  { %12942 = vmatprep.mubr.bf16.mxu1 %v5894_v38  ;;  %12962 = vmatprep.mubr.bf16.mxu0 %v5810_v50  ;;  %v14349_v50 = vld [vmem:[#allocation11 + $0x170] sm:$0xff]   ;;  %v14350_v38 = vld [vmem:[#allocation11 + $0x168] sm:$0xff]  }
 0xb4e   :  { %12943 = vmatmul.mubr.bf16.vlgmr.msra.gmra.mxu1 %v5895_v27  ;;  %12963 = vmatmul.mubr.bf16.vlgmr.msra.gmra.mxu0 %v5811_v23  ;;  %v14352_v27 = vld [vmem:[#allocation11 + $0x158] sm:$0xff]  }
 0xb4f   :  { %12967 = vmatpush3.bf16.msra.mxu1 %v16870_v47  ;;  %12982 = vmatprep.mubr.bf16.mxu1 %v14310_v6  ;;  %v14351_v6 = vld [vmem:[#allocation11 + $0x160] sm:$0xff]  }
 0xb50   :  { %12968 = vmatprep.subr.bf16.mxu1 %v16880_v28  ;;  %12987 = vmatpush3.bf16.msra.mxu0 %v14322_v1 }
 0xb51   :  { %12988 = vmatprep.subr.bf16.mxu0 %v14323_v40 }
 0xb53   :  { %12969 = vmatpush3.bf16.msra.mxu1 %v16880_v28 }
 0xb54   :  { %12970 = vmatprep.subr.bf16.mxu1 %v16837_v30  ;;  %12989 = vmatpush3.bf16.msra.mxu0 %v14323_v40 }
 0xb55   :  { %12990 = vmatprep.subr.bf16.mxu0 %v14324_v33 }
 0xb57   :  { %12971 = vmatpush3.bf16.msra.mxu1 %v16837_v30 }
 0xb58   :  { %12972 = vmatprep.subr.bf16.mxu1 %v16897_v51  ;;  %12991 = vmatpush3.bf16.msra.mxu0 %v14324_v33  ;;  %v14356_v33 = vld [vmem:[#allocation11 + $0x1b8] sm:$0xff]  }
 0xb59   :  { %12992 = vmatprep.subr.bf16.mxu0 %v14325_v20 }
 0xb5b   :  { %12973 = vmatpush3.bf16.msra.mxu1 %v16897_v51 }
 0xb5c   :  { %12974 = vmatprep.subr.bf16.mxu1 %v16815_v16  ;;  %12993 = vmatpush3.bf16.msra.mxu0 %v14325_v20 }
 0xb5d   :  { %12994 = vmatprep.subr.bf16.mxu0 %v14326_v55 }
 0xb5f   :  { %12975 = vmatpush3.bf16.msra.mxu1 %v16815_v16 }
 0xb60   :  { %12976 = vmatprep.subr.bf16.mxu1 %v16911_v22  ;;  %12995 = vmatpush3.bf16.msra.mxu0 %v14326_v55 }
 0xb61   :  { %12996 = vmatprep.subr.bf16.mxu0 %v14327_v4 }
 0xb63   :  { %12977 = vmatpush3.bf16.msra.mxu1 %v16911_v22 }
 0xb64   :  { %12978 = vmatprep.subr.bf16.mxu1 %v16803_v10  ;;  %12997 = vmatpush3.bf16.msra.mxu0 %v14327_v4  ;;  %v14357_v4 = vld [vmem:[#allocation11 + $0x1b0] sm:$0xff]  }
 0xb65   :  { %12998 = vmatprep.subr.bf16.mxu0 %v14330_v60 }
 0xb67   :  { %12979 = vmatpush3.bf16.msra.mxu1 %v16803_v10 }
 0xb68   :  { %12980 = vmatprep.subr.bf16.mxu1 %v16923_v36  ;;  %12999 = vmatpush3.bf16.msra.mxu0 %v14330_v60  ;;  %v14359_v60 = vld [vmem:[#allocation11 + $0x1a0] sm:$0xff]  }
 0xb69   :  { %13000 = vmatprep.subr.bf16.mxu0 %v14331_v18 }
 0xb6b   :  { %12981 = vmatpush3.bf16.msra.mxu1 %v16923_v36 }
 0xb6c   :  { %13006 = vmatprep.subr.bf16.mxu1 %v16870_v47  ;;  %13001 = vmatpush3.bf16.msra.mxu0 %v14331_v18  ;;  %v14360_v18 = vld [vmem:[#allocation11 + $0x198] sm:$0xff]  }
 0xb6d   :  { %13026 = vmatprep.subr.bf16.mxu0 %v16984_v49 }
 0xb6e   :  { %12983 = vmatmul.mubr.bf16.vlgmr.msra.gmra.mxu1 %v14311_v45  ;;  %v14353_v45 = vld [vmem:[#allocation11 + $0x150] sm:$0xff]  }
 0xb6f   :  { %13007 = vmatpush3.bf16.msra.mxu1 %v16870_v47  ;;  %13022 = vmatprep.mubr.bf16.mxu1 %v14312_v42  ;;  %v14354_v42 = vld [vmem:[#allocation11 + $0x148] sm:$0xff]  }
 0xb70   :  { %13008 = vmatprep.subr.bf16.mxu1 %v16880_v28 }
 0xb73   :  { %13009 = vmatpush3.bf16.msra.mxu1 %v16880_v28 }
 0xb74   :  { %13010 = vmatprep.subr.bf16.mxu1 %v16837_v30 }
 0xb77   :  { %13011 = vmatpush3.bf16.msra.mxu1 %v16837_v30 }
 0xb78   :  { %13012 = vmatprep.subr.bf16.mxu1 %v16897_v51 }
 0xb7b   :  { %13013 = vmatpush3.bf16.msra.mxu1 %v16897_v51 }
 0xb7c   :  { %13014 = vmatprep.subr.bf16.mxu1 %v16815_v16 }
 0xb7f   :  { %13015 = vmatpush3.bf16.msra.mxu1 %v16815_v16 }
 0xb80   :  { %13016 = vmatprep.subr.bf16.mxu1 %v16911_v22 }
 0xb83   :  { %13017 = vmatpush3.bf16.msra.mxu1 %v16911_v22 }
 0xb84   :  { %13018 = vmatprep.subr.bf16.mxu1 %v16803_v10 }
 0xb87   :  { %13019 = vmatpush3.bf16.msra.mxu1 %v16803_v10 }
 0xb88   :  { %13020 = vmatprep.subr.bf16.mxu1 %v16923_v36 }
 0xb8b   :  { %13021 = vmatpush3.bf16.msra.mxu1 %v16923_v36 }
 0xb8c   :  { %13046 = vmatprep.subr.bf16.mxu1 %v16870_v47 }
 0xb8e   :  { %13023 = vmatmul.mubr.bf16.vlgmr.msra.gmra.mxu1 %v14313_v54 }
 0xb8f   :  { %13047 = vmatpush3.bf16.msra.mxu1 %v16870_v47  ;;  %13062 = vmatprep.mubr.bf16.mxu1 %v14314_v19  ;;  %v14355_v19 = vld [vmem:[#allocation11 + $0x140] sm:$0xff]  }
 0xb90   :  { %13048 = vmatprep.subr.bf16.mxu1 %v16880_v28 }
 0xb93   :  { %13049 = vmatpush3.bf16.msra.mxu1 %v16880_v28 }
 0xb94   :  { %13050 = vmatprep.subr.bf16.mxu1 %v16837_v30 }
 0xb97   :  { %13051 = vmatpush3.bf16.msra.mxu1 %v16837_v30 }
 0xb98   :  { %13052 = vmatprep.subr.bf16.mxu1 %v16897_v51 }
 0xb9b   :  { %13053 = vmatpush3.bf16.msra.mxu1 %v16897_v51 }
 0xb9c   :  { %13054 = vmatprep.subr.bf16.mxu1 %v16815_v16 }
 0xb9f   :  { %13055 = vmatpush3.bf16.msra.mxu1 %v16815_v16 }
 0xba0   :  { %13056 = vmatprep.subr.bf16.mxu1 %v16911_v22 }
 0xba3   :  { %13057 = vmatpush3.bf16.msra.mxu1 %v16911_v22 }
 0xba4   :  { %13058 = vmatprep.subr.bf16.mxu1 %v16803_v10 }
 0xba7   :  { %13059 = vmatpush3.bf16.msra.mxu1 %v16803_v10 }
 0xba8   :  { %13060 = vmatprep.subr.bf16.mxu1 %v16923_v36 }
 0xbab   :  { %13061 = vmatpush3.bf16.msra.mxu1 %v16923_v36 }
 0xbac   :  { %13086 = vmatprep.subr.bf16.mxu1 %v16870_v47 }
 0xbae   :  { %13063 = vmatmul.mubr.bf16.vlgmr.msra.gmra.mxu1 %v14315_v59 }
 0xbaf   :  { %13087 = vmatpush3.bf16.msra.mxu1 %v16870_v47  ;;  %13102 = vmatprep.mubr.bf16.mxu1 %v14316_v43  ;;  %v14358_v43 = vld [vmem:[#allocation11 + $0x1a8] sm:$0xff]  }
 0xbb0   :  { %13088 = vmatprep.subr.bf16.mxu1 %v16880_v28 }
 0xbb3   :  { %13089 = vmatpush3.bf16.msra.mxu1 %v16880_v28 }
 0xbb4   :  { %13090 = vmatprep.subr.bf16.mxu1 %v16837_v30 }
 0xbb7   :  { %13091 = vmatpush3.bf16.msra.mxu1 %v16837_v30 }
 0xbb8   :  { %13092 = vmatprep.subr.bf16.mxu1 %v16897_v51 }
 0xbbb   :  { %13093 = vmatpush3.bf16.msra.mxu1 %v16897_v51 }
 0xbbc   :  { %13094 = vmatprep.subr.bf16.mxu1 %v16815_v16 }
 0xbbf   :  { %13095 = vmatpush3.bf16.msra.mxu1 %v16815_v16 }
 0xbc0   :  { %13096 = vmatprep.subr.bf16.mxu1 %v16911_v22 }
 0xbc3   :  { %13097 = vmatpush3.bf16.msra.mxu1 %v16911_v22 }
 0xbc4   :  { %13098 = vmatprep.subr.bf16.mxu1 %v16803_v10 }
 0xbc7   :  { %13099 = vmatpush3.bf16.msra.mxu1 %v16803_v10 }
 0xbc8   :  { %13100 = vmatprep.subr.bf16.mxu1 %v16923_v36 }
 0xbcb   :  { %13101 = vmatpush3.bf16.msra.mxu1 %v16923_v36 }
 0xbcc   :  { %13126 = vmatprep.subr.bf16.mxu1 %v16870_v47 }
 0xbce   :  { %13103 = vmatmul.mubr.bf16.vlgmr.msra.gmra.mxu1 %v14317_v53  ;;  %v14362_v53 = vld [vmem:[#allocation11 + $0x188] sm:$0xff]  }
 0xbcf   :  { %13127 = vmatpush3.bf16.msra.mxu1 %v16870_v47  ;;  %13142 = vmatprep.mubr.bf16.mxu1 %v14318_v31 }
 0xbd0   :  { %13128 = vmatprep.subr.bf16.mxu1 %v16880_v28 }
 0xbd3   :  { %13129 = vmatpush3.bf16.msra.mxu1 %v16880_v28 }
 0xbd4   :  { %13130 = vmatprep.subr.bf16.mxu1 %v16837_v30 }
 0xbd7   :  { %13131 = vmatpush3.bf16.msra.mxu1 %v16837_v30 }
 0xbd8   :  { %13132 = vmatprep.subr.bf16.mxu1 %v16897_v51 }
 0xbdb   :  { %13133 = vmatpush3.bf16.msra.mxu1 %v16897_v51 }
 0xbdc   :  { %13134 = vmatprep.subr.bf16.mxu1 %v16815_v16 }
 0xbdf   :  { %13135 = vmatpush3.bf16.msra.mxu1 %v16815_v16 }
 0xbe0   :  { %13136 = vmatprep.subr.bf16.mxu1 %v16911_v22 }
 0xbe3   :  { %13137 = vmatpush3.bf16.msra.mxu1 %v16911_v22 }
 0xbe4   :  { %13138 = vmatprep.subr.bf16.mxu1 %v16803_v10 }
 0xbe7   :  { %13139 = vmatpush3.bf16.msra.mxu1 %v16803_v10 }
 0xbe8   :  { %13140 = vmatprep.subr.bf16.mxu1 %v16923_v36 }
 0xbeb   :  { %13141 = vmatpush3.bf16.msra.mxu1 %v16923_v36 }
 0xbec   :  { %13166 = vmatprep.subr.bf16.mxu1 %v16870_v47 }
 0xbee   :  { %13143 = vmatmul.mubr.bf16.vlgmr.msra.gmra.mxu1 %v14319_v3  ;;  %v14363_v3 = vld [vmem:[#allocation11 + $0x180] sm:$0xff]  }
 0xbef   :  { %13167 = vmatpush3.bf16.msra.mxu1 %v16870_v47  ;;  %13182 = vmatprep.mubr.bf16.mxu1 %v14320_v41 }
 0xbf0   :  { %13168 = vmatprep.subr.bf16.mxu1 %v16880_v28 }
 0xbf3   :  { %13169 = vmatpush3.bf16.msra.mxu1 %v16880_v28 }
 0xbf4   :  { %13170 = vmatprep.subr.bf16.mxu1 %v16837_v30 }
 0xbf7   :  { %13171 = vmatpush3.bf16.msra.mxu1 %v16837_v30 }
 0xbf8   :  { %13172 = vmatprep.subr.bf16.mxu1 %v16897_v51 }
 0xbfb   :  { %13173 = vmatpush3.bf16.msra.mxu1 %v16897_v51 }
 0xbfc   :  { %13174 = vmatprep.subr.bf16.mxu1 %v16815_v16 }
 0xbff   :  { %13175 = vmatpush3.bf16.msra.mxu1 %v16815_v16 }
 0xc00   :  { %13176 = vmatprep.subr.bf16.mxu1 %v16911_v22 }
 0xc03   :  { %13177 = vmatpush3.bf16.msra.mxu1 %v16911_v22 }
 0xc04   :  { %13178 = vmatprep.subr.bf16.mxu1 %v16803_v10 }
 0xc07   :  { %13179 = vmatpush3.bf16.msra.mxu1 %v16803_v10 }
 0xc08   :  { %13180 = vmatprep.subr.bf16.mxu1 %v16923_v36 }
 0xc0b   :  { %13181 = vmatpush3.bf16.msra.mxu1 %v16923_v36 }
 0xc0c   :  { %13206 = vmatprep.subr.bf16.mxu1 %v16870_v47 }
 0xc0e   :  { %13183 = vmatmul.mubr.bf16.vlgmr.msra.gmra.mxu1 %v14321_v52  ;;  %v17040_v63 = vpop.f32.mrf.mxu1 }
 0xc0f   :  { %13207 = vmatpush3.bf16.msra.mxu1 %v16870_v47  ;;  %13222 = vmatprep.mubr.bf16.mxu1 %v14328_v24  ;;  %v14364_v24 = vld [vmem:[#allocation11 + $0x1f8] sm:$0xff]  }
 0xc10   :  { %13208 = vmatprep.subr.bf16.mxu1 %v16880_v28  ;;  %v17044_v47 = vpop.f32.mrf.mxu1 }
 0xc13   :  { %13209 = vmatpush3.bf16.msra.mxu1 %v16880_v28  ;;  %v14329_v28 = vld [vmem:[#allocation10 + $0x88] sm:$0xff]  }
 0xc14   :  { %13210 = vmatprep.subr.bf16.mxu1 %v16837_v30 }
 0xc17   :  { %13211 = vmatpush3.bf16.msra.mxu1 %v16837_v30  ;;  %v17048_v30 = vpop.f32.mrf.mxu1 }
 0xc18   :  { %13212 = vmatprep.subr.bf16.mxu1 %v16897_v51 }
 0xc1b   :  { %13213 = vmatpush3.bf16.msra.mxu1 %v16897_v51 }
 0xc1c   :  { %13214 = vmatprep.subr.bf16.mxu1 %v16815_v16 }
 0xc1f   :  { %13215 = vmatpush3.bf16.msra.mxu1 %v16815_v16  ;;  %v17052_v16 = vpop.f32.mrf.mxu1 }
 0xc20   :  { %13216 = vmatprep.subr.bf16.mxu1 %v16911_v22 }
 0xc23   :  { %13217 = vmatpush3.bf16.msra.mxu1 %v16911_v22 }
 0xc24   :  { %13218 = vmatprep.subr.bf16.mxu1 %v16803_v10 }
 0xc27   :  { %13219 = vmatpush3.bf16.msra.mxu1 %v16803_v10  ;;  %v14334_v10 = vld [vmem:[#allocation11 + $0xe8] sm:$0xff]  }
 0xc28   :  { %13220 = vmatprep.subr.bf16.mxu1 %v16923_v36 }
 0xc2b   :  { %13221 = vmatpush3.bf16.msra.mxu1 %v16923_v36  ;;  %v14336_v36 = vld [vmem:[#allocation11 + $0xd8] sm:$0xff]  }
 0xc2e   :  { %v12984_v51 = vpop.f32.mrf.mxu1  ;;  %13223 = vmatmul.mubr.bf16.vlgmr.msra.gmra.mxu1 %v14329_v28 }
 0xc30   :  { %v6158_v35 = vpop.f32.mrf.mxu1 }
 0xc32   :  { %v12985_v61 = vpop.f32.mrf.mxu1 }
 0xc33   :  { %v6174_v39 = vpack.c.bf16 %v12985_v61, %v12984_v51  ;;  %v14365_v61 = vld [vmem:[#allocation11 + $0x1f0] sm:$0xff]  }
 0xc34   :  { %v6161_v22 = vpop.f32.mrf.mxu1 }
 0xc35   :  { %v6173_v46 = vpack.c.bf16 %v6161_v22, %v6158_v35  ;;  %v14366_v22 = vld [vmem:[#allocation11 + $0x1e8] sm:$0xff]  }
 0xc37   :  { %13002 = vmatprep.mubr.bf16.mxu0 %v6173_v46  ;;  %v14367_v46 = vld [vmem:[#allocation11 + $0x1e0] sm:$0xff]  }
 0xc38   :  { %13003 = vmatmul.mubr.bf16.vlgmr.msra.gmra.mxu0 %v6174_v39  ;;  %v14368_v39 = vld [vmem:[#allocation11 + $0x1d8] sm:$0xff]  }
 0xc39   :  { %13027 = vmatpush3.bf16.msra.mxu0 %v16984_v49  ;;  %v14361_v49 = vld [vmem:[#allocation11 + $0x190] sm:$0xff]  }
 0xc3a   :  { %13028 = vmatprep.subr.bf16.mxu0 %v14333_v13 }
 0xc3d   :  { %13029 = vmatpush3.bf16.msra.mxu0 %v14333_v13  ;;  %v14369_v13 = vld [vmem:[#allocation11 + $0x1d0] sm:$0xff]  }
 0xc3e   :  { %13030 = vmatprep.subr.bf16.mxu0 %v14334_v10 }
 0xc41   :  { %13031 = vmatpush3.bf16.msra.mxu0 %v14334_v10  ;;  %v14370_v10 = vld [vmem:[#allocation11 + $0x1c8] sm:$0xff]  }
 0xc42   :  { %13032 = vmatprep.subr.bf16.mxu0 %v14335_v15 }
 0xc45   :  { %13033 = vmatpush3.bf16.msra.mxu0 %v14335_v15 }
 0xc46   :  { %13034 = vmatprep.subr.bf16.mxu0 %v14336_v36 }
 0xc49   :  { %13035 = vmatpush3.bf16.msra.mxu0 %v14336_v36  ;;  %v14371_v36 = vld [vmem:[#allocation11 + $0x1c0] sm:$0xff]  }
 0xc4a   :  { %13036 = vmatprep.subr.bf16.mxu0 %v14337_v58 }
 0xc4d   :  { %13037 = vmatpush3.bf16.msra.mxu0 %v14337_v58 }
 0xc4e   :  { %v13024_v12 = vpop.f32.mrf.mxu1  ;;  %13038 = vmatprep.subr.bf16.mxu0 %v14338_v8 }
 0xc50   :  { %v6344_v34 = vpop.f32.mrf.mxu1 }
 0xc51   :  { %13039 = vmatpush3.bf16.msra.mxu0 %v14338_v8 }
 0xc52   :  { %v13025_v44 = vpop.f32.mrf.mxu1  ;;  %13040 = vmatprep.subr.bf16.mxu0 %v14339_v48 }
 0xc53   :  { %v6360_v7 = vpack.c.bf16 %v13025_v44, %v13024_v12  ;;  %v14372_v12 = vld [vmem:[#allocation11 + $0x238] sm:$0xff]  }
 0xc54   :  { %v6347_v56 = vpop.f32.mrf.mxu1 }
 0xc55   :  { %v6359_v32 = vpack.c.bf16 %v6347_v56, %v6344_v34  ;;  %13041 = vmatpush3.bf16.msra.mxu0 %v14339_v48  ;;  %v14374_v56 = vld [vmem:[#allocation11 + $0x228] sm:$0xff]  }
 0xc56   :  { %13066 = vmatprep.subr.bf16.mxu0 %v14340_v26 }
 0xc57   :  { %13042 = vmatprep.mubr.bf16.mxu0 %v6359_v32  ;;  %v14375_v32 = vld [vmem:[#allocation11 + $0x220] sm:$0xff]  }
 0xc58   :  { %13043 = vmatmul.mubr.bf16.vlgmr.msra.gmra.mxu0 %v6360_v7  ;;  %v14376_v7 = vld [vmem:[#allocation11 + $0x218] sm:$0xff]  }
 0xc59   :  { %13067 = vmatpush3.bf16.msra.mxu0 %v14340_v26  ;;  %v14373_v26 = vld [vmem:[#allocation11 + $0x230] sm:$0xff]  }
 0xc5a   :  { %13068 = vmatprep.subr.bf16.mxu0 %v14341_v25 }
 0xc5d   :  { %13069 = vmatpush3.bf16.msra.mxu0 %v14341_v25  ;;  %v14377_v25 = vld [vmem:[#allocation11 + $0x210] sm:$0xff]  }
 0xc5e   :  { %13070 = vmatprep.subr.bf16.mxu0 %v14342_v57 }
 0xc61   :  { %13071 = vmatpush3.bf16.msra.mxu0 %v14342_v57  ;;  %v14378_v57 = vld [vmem:[#allocation11 + $0x208] sm:$0xff]  }
 0xc62   :  { %13072 = vmatprep.subr.bf16.mxu0 %v14343_v14 }
 0xc65   :  { %13073 = vmatpush3.bf16.msra.mxu0 %v14343_v14 }
 0xc66   :  { %13074 = vmatprep.subr.bf16.mxu0 %v14344_v62 }
 0xc69   :  { %13075 = vmatpush3.bf16.msra.mxu0 %v14344_v62  ;;  %v14379_v62 = vld [vmem:[#allocation11 + $0x200] sm:$0xff]  }
 0xc6a   :  { %13076 = vmatprep.subr.bf16.mxu0 %v14345_v5 }
 0xc6d   :  { %13077 = vmatpush3.bf16.msra.mxu0 %v14345_v5 }
 0xc6e   :  { %v13064_v21 = vpop.f32.mrf.mxu1  ;;  %13078 = vmatprep.subr.bf16.mxu0 %v14346_v0 }
 0xc70   :  { %v6530_v29 = vpop.f32.mrf.mxu1 }
 0xc71   :  { %13079 = vmatpush3.bf16.msra.mxu0 %v14346_v0 }
 0xc72   :  { %v13065_v17 = vpop.f32.mrf.mxu1  ;;  %13080 = vmatprep.subr.bf16.mxu0 %v14347_v11 }
 0xc73   :  { %v6546_v37 = vpack.c.bf16 %v13065_v17, %v13064_v21  ;;  %v15009_v17 = vmov 0.0  }
 0xc74   :  { %v6533_v23 = vpop.f32.mrf.mxu1  ;;  %13246 = vmatprep.subr.bf16.mxu1 %v15009_v17  ;;  %13250 = vmatprep.mubr.msk.bf16.mxu1 %vm15010_vm0, %v15009_v17 }
 0xc75   :  { %v6545_v9 = vpack.c.bf16 %v6533_v23, %v6530_v29  ;;  %13081 = vmatpush3.bf16.msra.mxu0 %v14347_v11  ;;  %v14380_v23 = vld [vmem:[#allocation17 + $0x38] sm:$0xff]  }
 0xc76   :  { %13106 = vmatprep.subr.bf16.mxu0 %v14348_v2 }
 0xc77   :  { %13082 = vmatprep.mubr.bf16.mxu0 %v6545_v9  ;;  %v14381_v9 = vld [vmem:[#allocation17 + $0x30] sm:$0xff]  }
 0xc78   :  { %13083 = vmatmul.mubr.bf16.vlgmr.msra.gmra.mxu0 %v6546_v37 }
 0xc79   :  { %13107 = vmatpush3.bf16.msra.mxu0 %v14348_v2  ;;  %v12964_v2 = vpop.f32.mrf.mxu0 }
 0xc7a   :  { %13108 = vmatprep.subr.bf16.mxu0 %v14349_v50 }
 0xc7b   :  { %v6092_v37 = vpop.f32.mrf.mxu0 }
 0xc7d   :  { %13109 = vmatpush3.bf16.msra.mxu0 %v14349_v50  ;;  %v14383_v50 = vld [vmem:[#allocation17 + $0x28] sm:$0xff]  }
 0xc7e   :  { %13110 = vmatprep.subr.bf16.mxu0 %v14350_v38 }
 0xc81   :  { %13111 = vmatpush3.bf16.msra.mxu0 %v14350_v38  ;;  %v12965_v38 = vpop.f32.mrf.mxu0 }
 0xc82   :  { %13112 = vmatprep.subr.bf16.mxu0 %v14351_v6 }
 0xc85   :  { %13113 = vmatpush3.bf16.msra.mxu0 %v14351_v6  ;;  %v14385_v6 = vld [vmem:[#allocation17 + $0x20] sm:$0xff]  }
 0xc86   :  { %13114 = vmatprep.subr.bf16.mxu0 %v14352_v27 }
 0xc89   :  { %13115 = vmatpush3.bf16.msra.mxu0 %v14352_v27  ;;  %v6095_v27 = vpop.f32.mrf.mxu0 }
 0xc8a   :  { %13116 = vmatprep.subr.bf16.mxu0 %v14353_v45 }
 0xc8d   :  { %13117 = vmatpush3.bf16.msra.mxu0 %v14353_v45 }
 0xc8e   :  { %v13104_v54 = vpop.f32.mrf.mxu1  ;;  %13118 = vmatprep.subr.bf16.mxu0 %v14354_v42 }
 0xc90   :  { %v6716_v1 = vpop.f32.mrf.mxu1 }
 0xc91   :  { %13119 = vmatpush3.bf16.msra.mxu0 %v14354_v42  ;;  %v14387_v42 = vld [vmem:[#allocation17 + $0x18] sm:$0xff]  }
 0xc92   :  { %v13105_v40 = vpop.f32.mrf.mxu1  ;;  %13120 = vmatprep.subr.bf16.mxu0 %v14355_v19 }
 0xc93   :  { %v6732_v59 = vpack.c.bf16 %v13105_v40, %v13104_v54  ;;  %v14391_v40 = vld [vmem:[#allocation17 + $0x8] sm:$0xff]  }
 0xc94   :  { %v6719_v20 = vpop.f32.mrf.mxu1 }
 0xc95   :  { %v6731_v55 = vpack.c.bf16 %v6719_v20, %v6716_v1  ;;  %13121 = vmatpush3.bf16.msra.mxu0 %v14355_v19  ;;  %v14389_v19 = vld [vmem:[#allocation17 + $0x10] sm:$0xff]  }
 0xc96   :  { %13146 = vmatprep.subr.bf16.mxu0 %v14356_v33 }
 0xc97   :  { %13122 = vmatprep.mubr.bf16.mxu0 %v6731_v55 }
 0xc98   :  { %13123 = vmatmul.mubr.bf16.vlgmr.msra.gmra.mxu0 %v6732_v59 }
 0xc99   :  { %13147 = vmatpush3.bf16.msra.mxu0 %v14356_v33 }
 0xc9a   :  { %13148 = vmatprep.subr.bf16.mxu0 %v14357_v4 }
 0xc9d   :  { %13149 = vmatpush3.bf16.msra.mxu0 %v14357_v4 }
 0xc9e   :  { %13150 = vmatprep.subr.bf16.mxu0 %v14358_v43 }
 0xca1   :  { %13151 = vmatpush3.bf16.msra.mxu0 %v14358_v43 }
 0xca2   :  { %13152 = vmatprep.subr.bf16.mxu0 %v14359_v60 }
 0xca5   :  { %13153 = vmatpush3.bf16.msra.mxu0 %v14359_v60 }
 0xca6   :  { %13154 = vmatprep.subr.bf16.mxu0 %v14360_v18 }
 0xca9   :  { %13155 = vmatpush3.bf16.msra.mxu0 %v14360_v18 }
 0xcaa   :  { %13156 = vmatprep.subr.bf16.mxu0 %v14361_v49 }
 0xcad   :  { %13157 = vmatpush3.bf16.msra.mxu0 %v14361_v49 }
 0xcae   :  { %v13144_v31 = vpop.f32.mrf.mxu1  ;;  %13158 = vmatprep.subr.bf16.mxu0 %v14362_v53 }
 0xcb0   :  { %v6902_v41 = vpop.f32.mrf.mxu1 }
 0xcb1   :  { %13159 = vmatpush3.bf16.msra.mxu0 %v14362_v53 }
 0xcb2   :  { %v13145_v52 = vpop.f32.mrf.mxu1  ;;  %13160 = vmatprep.subr.bf16.mxu0 %v14363_v3 }
 0xcb3   :  { %v6918_v35 = vpack.c.bf16 %v13145_v52, %v13144_v31 }
 0xcb4   :  { %v6905_v28 = vpop.f32.mrf.mxu1 }
 0xcb5   :  { %v6917_v51 = vpack.c.bf16 %v6905_v28, %v6902_v41  ;;  %13161 = vmatpush3.bf16.msra.mxu0 %v14363_v3 }
 0xcb6   :  { %13186 = vmatprep.subr.bf16.mxu0 %v14364_v24 }
 0xcb7   :  { %13162 = vmatprep.mubr.bf16.mxu0 %v6917_v51 }
 0xcb8   :  { %13163 = vmatmul.mubr.bf16.vlgmr.msra.gmra.mxu0 %v6918_v35 }
 0xcb9   :  { %13187 = vmatpush3.bf16.msra.mxu0 %v14364_v24 }
 0xcba   :  { %13188 = vmatprep.subr.bf16.mxu0 %v14365_v61 }
 0xcbd   :  { %13189 = vmatpush3.bf16.msra.mxu0 %v14365_v61  ;;  %v6101_v61 = vadd.f32 %v12964_v2, %v17040_v63 }
 0xcbe   :  { %13190 = vmatprep.subr.bf16.mxu0 %v14366_v22 }
 0xcc1   :  { %13191 = vmatpush3.bf16.msra.mxu0 %v14366_v22  ;;  %v6093_v22 = vadd.f32 %v6092_v37, %v17044_v47 }
 0xcc2   :  { %13192 = vmatprep.subr.bf16.mxu0 %v14367_v46 }
 0xcc5   :  { %13193 = vmatpush3.bf16.msra.mxu0 %v14367_v46 }
 0xcc6   :  { %13194 = vmatprep.subr.bf16.mxu0 %v14368_v39 }
 0xcc9   :  { %13195 = vmatpush3.bf16.msra.mxu0 %v14368_v39 }
 0xcca   :  { %13196 = vmatprep.subr.bf16.mxu0 %v14369_v13 }
 0xccd   :  { %13197 = vmatpush3.bf16.msra.mxu0 %v14369_v13  ;;  %v6104_v13 = vadd.f32 %v12965_v38, %v17048_v30 }
 0xcce   :  { %v13184_v15 = vpop.f32.mrf.mxu1  ;;  %13198 = vmatprep.subr.bf16.mxu0 %v14370_v10 }
 0xcd0   :  { %v7088_v58 = vpop.f32.mrf.mxu1 }
 0xcd1   :  { %13199 = vmatpush3.bf16.msra.mxu0 %v14370_v10 }
 0xcd2   :  { %v13185_v8 = vpop.f32.mrf.mxu1  ;;  %13200 = vmatprep.subr.bf16.mxu0 %v14371_v36 }
 0xcd3   :  { %v7104_v44 = vpack.c.bf16 %v13185_v8, %v13184_v15 }
 0xcd4   :  { %v7091_v48 = vpop.f32.mrf.mxu1 }
 0xcd5   :  { %v7103_v34 = vpack.c.bf16 %v7091_v48, %v7088_v58  ;;  %13201 = vmatpush3.bf16.msra.mxu0 %v14371_v36 }
 0xcd6   :  { %13226 = vmatprep.subr.bf16.mxu0 %v14372_v12 }
 0xcd7   :  { %13202 = vmatprep.mubr.bf16.mxu0 %v7103_v34 }
 0xcd8   :  { %13203 = vmatmul.mubr.bf16.vlgmr.msra.gmra.mxu0 %v7104_v44 }
 0xcd9   :  { %13227 = vmatpush3.bf16.msra.mxu0 %v14372_v12  ;;  %v6096_v12 = vadd.f32 %v6095_v27, %v17052_v16 }
 0xcda   :  { %13228 = vmatprep.subr.bf16.mxu0 %v14373_v26 }
 0xcdd   :  { %13229 = vmatpush3.bf16.msra.mxu0 %v14373_v26 }
 0xcde   :  { %13230 = vmatprep.subr.bf16.mxu0 %v14374_v56 }
 0xce1   :  { %13231 = vmatpush3.bf16.msra.mxu0 %v14374_v56 }
 0xce2   :  { %13232 = vmatprep.subr.bf16.mxu0 %v14375_v32 }
 0xce5   :  { %13233 = vmatpush3.bf16.msra.mxu0 %v14375_v32 }
 0xce6   :  { %13234 = vmatprep.subr.bf16.mxu0 %v14376_v7 }
 0xce9   :  { %13235 = vmatpush3.bf16.msra.mxu0 %v14376_v7 }
 0xcea   :  { %13236 = vmatprep.subr.bf16.mxu0 %v14377_v25 }
 0xced   :  { %13237 = vmatpush3.bf16.msra.mxu0 %v14377_v25 }
 0xcee   :  { %v13224_v14 = vpop.f32.mrf.mxu1  ;;  %13238 = vmatprep.subr.bf16.mxu0 %v14378_v57 }
 0xcf0   :  { %v7274_v5 = vpop.f32.mrf.mxu1 }
 0xcf1   :  { %13239 = vmatpush3.bf16.msra.mxu0 %v14378_v57 }
 0xcf2   :  { %v13225_v0 = vpop.f32.mrf.mxu1  ;;  %13240 = vmatprep.subr.bf16.mxu0 %v14379_v62 }
 0xcf3   :  { %v7290_v29 = vpack.c.bf16 %v13225_v0, %v13224_v14  ;;  %v10738_v0 = vld [vmem:[#allocation13] ss:$0 sm:$0xff] }
 0xcf4   :  { %v7277_v21 = vpop.f32.mrf.mxu1 }
 0xcf5   :  { %v7289_v11 = vpack.c.bf16 %v7277_v21, %v7274_v5  ;;  %13241 = vmatpush3.bf16.msra.mxu0 %v14379_v62 }
 0xcf6   :  { %13282 = vmatprep.subr.bf16.mxu0 %v15009_v17 }
 0xcf7   :  { %13242 = vmatprep.mubr.bf16.mxu0 %v7289_v11 }
 0xcf8   :  { %13243 = vmatmul.mubr.bf16.vlgmr.msra.gmra.mxu0 %v7290_v29  ;;  %v13004_v45 = vpop.f32.mrf.mxu0 }
 0xcf9   :  { %13298 = vmatprep.mubr.msk.bf16.mxu0 %vm15010_vm0, %v15009_v17  ;;  %13283 = vmatpush3.bf16.msra.mxu0 %v14380_v23  ;;  %v6291_v46 = vadd.f32 %v13004_v45, %v6101_v61  ;;  %v14386_v61 = vld [vmem:[#allocation17 + $0x68] sm:$0xff]  }
 0xcfa   :  { %13284 = vmatprep.subr.bf16.mxu0 %v15009_v17  ;;  %v6274_v54 = vpop.f32.mrf.mxu0 }
 0xcfb   :  { %v6289_v10 = vadd.f32 %v6274_v54, %v6093_v22  ;;  %v14388_v22 = vld [vmem:[#allocation17 + $0x60] sm:$0xff]  }
 0xcfc   :  { %v13005_v1 = vpop.f32.mrf.mxu0 }
 0xcfd   :  { %13285 = vmatpush3.bf16.msra.mxu0 %v14381_v9  ;;  %v6292_v36 = vadd.f32 %v13005_v1, %v6104_v13  ;;  %v14393_v13 = vld [vmem:[#allocation17] sm:$0xff]  }
 0xcfe   :  { %13286 = vmatprep.subr.bf16.mxu0 %v15009_v17  ;;  %v6277_v33 = vpop.f32.mrf.mxu0 }
 0xcff   :  { %v6290_v56 = vadd.f32 %v6277_v33, %v6096_v12 }
 0xd01   :  { %13287 = vmatpush3.bf16.msra.mxu0 %v14383_v50 }
 0xd02   :  { %13288 = vmatprep.subr.bf16.mxu0 %v15009_v17 }
 0xd05   :  { %13289 = vmatpush3.bf16.msra.mxu0 %v14385_v6 }
 0xd06   :  { %13290 = vmatprep.subr.bf16.mxu0 %v15009_v17 }
 0xd09   :  { %13291 = vmatpush3.bf16.msra.mxu0 %v14387_v42 }
 0xd0a   :  { %13292 = vmatprep.subr.bf16.mxu0 %v15009_v17 }
 0xd0d   :  { %13293 = vmatpush3.bf16.msra.mxu0 %v14389_v19 }
 0xd0e   :  { %13294 = vmatprep.subr.bf16.mxu0 %v15009_v17 }
 0xd11   :  { %13295 = vmatpush3.bf16.msra.mxu0 %v14391_v40  ;;  %v10739_v40 = vld [vmem:[#allocation14] ss:$0 sm:$0xff] }
 0xd12   :  { %13296 = vmatprep.subr.bf16.mxu0 %v15009_v17 }
 0xd15   :  { %13297 = vmatpush3.bf16.msra.mxu0 %v14393_v13 }
 0xd16   :  { %13338 = vmatprep.subr.bf16.mxu0 %v15009_v17 }
 0xd18   :  { %v13044_v20 = vpop.f32.mrf.mxu0 }
 0xd19   :  { %v6477_v15 = vadd.f32 %v13044_v20, %v6291_v46  ;;  %v14390_v46 = vld [vmem:[#allocation17 + $0x58] sm:$0xff]  }
 0xd1a   :  { %v6460_v55 = vpop.f32.mrf.mxu0 }
 0xd1b   :  { %v6475_v58 = vadd.f32 %v6460_v55, %v6289_v10  ;;  %v14394_v10 = vld [vmem:[#allocation17 + $0x48] sm:$0xff]  }
 0xd1c   :  { %v13045_v59 = vpop.f32.mrf.mxu0 }
 0xd1d   :  { %v6478_v34 = vadd.f32 %v13045_v59, %v6292_v36 }
 0xd1e   :  { %v6463_v4 = vpop.f32.mrf.mxu0 }
 0xd1f   :  { %v6476_v47 = vadd.f32 %v6463_v4, %v6290_v56 }
 0xd38   :  { %v13084_v43 = vpop.f32.mrf.mxu0 }
 0xd39   :  { %v6663_v8 = vadd.f32 %v13084_v43, %v6477_v15  ;;  %v14395_v15 = vld [vmem:[#allocation17 + $0x40] sm:$0xff]  }
 0xd3a   :  { %v6646_v60 = vpop.f32.mrf.mxu0 }
 0xd3b   :  { %v6661_v44 = vadd.f32 %v6646_v60, %v6475_v58 }
 0xd3c   :  { %v13085_v18 = vpop.f32.mrf.mxu0 }
 0xd3d   :  { %v6664_v32 = vadd.f32 %v13085_v18, %v6478_v34 }
 0xd3e   :  { %v6649_v49 = vpop.f32.mrf.mxu0 }
 0xd3f   :  { %v6662_v62 = vadd.f32 %v6649_v49, %v6476_v47  ;;  %v14397_v47 = vld [vmem:[#allocation17 + $0xb0] sm:$0xff]  }
 0xd58   :  { %v13124_v53 = vpop.f32.mrf.mxu0 }
 0xd59   :  { %v6849_v26 = vadd.f32 %v13124_v53, %v6663_v8 }
 0xd5a   :  { %v6832_v31 = vpop.f32.mrf.mxu0 }
 0xd5b   :  { %v6847_v63 = vadd.f32 %v6832_v31, %v6661_v44 }
 0xd5c   :  { %v13125_v3 = vpop.f32.mrf.mxu0 }
 0xd5d   :  { %v6850_v57 = vadd.f32 %v13125_v3, %v6664_v32 }
 0xd5e   :  { %v6835_v41 = vpop.f32.mrf.mxu0 }
 0xd5f   :  { %v6848_v16 = vadd.f32 %v6835_v41, %v6662_v62  ;;  %v14402_v62 = vld [vmem:[#allocation17 + $0x88] sm:$0xff]  }
 0xd78   :  { %v13164_v52 = vpop.f32.mrf.mxu0 }
 0xd79   :  { %v7035_v7 = vadd.f32 %v13164_v52, %v6849_v26 }
 0xd7a   :  { %v7018_v24 = vpop.f32.mrf.mxu0 }
 0xd7b   :  { %v7033_v14 = vadd.f32 %v7018_v24, %v6847_v63  ;;  %v7445_v24 = vld [vmem:[#allocation16] sm:$0xf]  ;;  %v7747_v63 = vld [vmem:[#allocation16 + $0x8] sm:$0xf] }
 0xd7c   :  { %v13165_v28 = vpop.f32.mrf.mxu0 }
 0xd7d   :  { %v7036_v21 = vadd.f32 %v13165_v28, %v6850_v57  ;;  %v7508_v28 = vld [vmem:[#allocation16 + $0x4] sm:$0xf] }
 0xd7e   :  { %v7021_v51 = vpop.f32.mrf.mxu0  ;;  %v14399_v57 = vld [vmem:[#allocation17 + $0xa0] sm:$0xff]  }
 0xd7f   :  { %v7034_v50 = vadd.f32 %v7021_v51, %v6848_v16  ;;  %v14382_v51 = vld [vmem:[#allocation17 + $0x78] sm:$0xff]  }
 0xd80   :  { %v14411_v16 = vld [vmem:[#allocation17 + $0xd8] sm:$0xff]  }
 0xd98   :  { %v13204_v35 = vpop.f32.mrf.mxu0 }
 0xd99   :  { %v7221_v30 = vadd.f32 %v13204_v35, %v7035_v7  ;;  %v14384_v35 = vld [vmem:[#allocation17 + $0x70] sm:$0xff]   ;;  %v14396_v7 = vld [vmem:[#allocation17 + $0xb8] sm:$0xff]  }
 0xd9a   :  { %v7204_v39 = vpop.f32.mrf.mxu0 }
 0xd9b   :  { %v7219_v11 = vadd.f32 %v7204_v39, %v7033_v14  ;;  %v14392_v39 = vld [vmem:[#allocation17 + $0x50] sm:$0xff]   ;;  %v14400_v14 = vld [vmem:[#allocation17 + $0x98] sm:$0xff]  }
 0xd9c   :  { %v13205_v48 = vpop.f32.mrf.mxu0 }
 0xd9d   :  { %v7222_v23 = vadd.f32 %v13205_v48, %v7036_v21  ;;  %v14405_v21 = vld [vmem:[#allocation17 + $0xf0] sm:$0xff]  }
 0xd9e   :  { %v7207_v25 = vpop.f32.mrf.mxu0 }
 0xd9f   :  { %v7220_v42 = vadd.f32 %v7207_v25, %v7034_v50  ;;  %v14398_v25 = vld [vmem:[#allocation17 + $0xa8] sm:$0xff]  }
 0xdb8   :  { %v13244_v5 = vpop.f32.mrf.mxu0 }
 0xdb9   :  { %v7407_v29 = vadd.f32 %v13244_v5, %v7221_v30  ;;  %v14401_v30 = vld [vmem:[#allocation17 + $0x90] sm:$0xff]   ;;  %v14403_v5 = vld [vmem:[#allocation17 + $0x80] sm:$0xff]  }
 0xdba   :  { %v7390_v2 = vpop.f32.mrf.mxu0 }
 0xdbb   :  { %v7418_v9 = vadd.f32 %v10738_v0, %v7407_v29  ;;  %v7405_v37 = vadd.f32 %v7390_v2, %v7219_v11  ;;  %v14407_v11 = vld [vmem:[#allocation17 + $0xe8] sm:$0xff]   ;;  %v14409_v29 = vld [vmem:[#allocation17 + $0xe0] sm:$0xff]  }
 0xdbc   :  { %v13245_v38 = vpop.f32.mrf.mxu0 }
 0xdbd   :  { %vm7422_vm1 = vcmp.gt.f32.partialorder %v7418_v9, 0.0  ;;  %v7426_v6 = vmul.f32 0.2, %v7418_v9  ;;  %v7416_v27 = vadd.f32 %v10738_v0, %v7405_v37  ;;  %v7408_v45 = vadd.f32 %v13245_v38, %v7222_v23 }
 0xdbe   :  { %v7393_v54 = vpop.f32.mrf.mxu0 }
 0xdbf   :  { %v7419_v19 = vadd.f32 %v10738_v0, %v7408_v45  ;;  %v7430_v1 = vsel %vm7422_vm1, %v7418_v9, %v7426_v6  ;;  %v7424_v33 = vmul.f32 0.2, %v7416_v27  ;;  %v7406_v20 = vadd.f32 %v7393_v54, %v7220_v42 }
 0xdc0   :  { %vm7420_vm2 = vcmp.gt.f32.partialorder %v7416_v27, 0.0  ;;  %v7441_v4 = vadd.f32 %v10739_v40, %v7430_v1 }
 0xdc1   :  { %vm7423_vm3 = vcmp.gt.f32.partialorder %v7419_v19, 0.0  ;;  %v7427_v55 = vmul.f32 0.2, %v7419_v19  ;;  %v7417_v59 = vadd.f32 %v10738_v0, %v7406_v20  ;;  %v7428_v60 = vsel %vm7420_vm2, %v7416_v27, %v7424_v33  ;;  %v14404_v0 = vld [vmem:[#allocation17 + $0xf8] sm:$0xff]   ;;  %v7899_v33 = vld [vmem:[#allocation16 + $0xc] sm:$0xf] }
 0xdc2   :  { %v7439_v3 = vadd.f32 %v10739_v40, %v7428_v60  ;;  %v8051_v20 = vld [vmem:[#allocation16 + $0x10] sm:$0xf]  ;;  %v14413_v60 = vld [vmem:[#allocation17 + $0xd0] sm:$0xff]  }
 0xdc3   :  { %v7431_v43 = vsel %vm7423_vm3, %v7419_v19, %v7427_v55  ;;  %vm7421_vm4 = vcmp.gt.f32.partialorder %v7417_v59, 0.0  ;;  %v7425_v49 = vmul.f32 0.2, %v7417_v59  ;;  %v14406_v55 = vld [vmem:[#allocation17 + $0x138] sm:$0xff]  }
 0xdc4   :  { %v7442_v18 = vadd.f32 %v10739_v40, %v7431_v43  ;;  %v14412_v43 = vld [vmem:[#allocation17 + $0x120] sm:$0xff]  }
 0xdc5   :  { %v7429_v31 = vsel %vm7421_vm4, %v7417_v59, %v7425_v49  ;;  %v14408_v59 = vld [vmem:[#allocation17 + $0x130] sm:$0xff]   ;;  %v14415_v49 = vld [vmem:[#allocation17 + $0xc8] sm:$0xff]  }
 0xdc6   :  { %v17072_v53 = vpack.c.bf16 %v7442_v18, %v7441_v4  ;;  %v7440_v41 = vadd.f32 %v10739_v40, %v7429_v31  ;;  %v14410_v4 = vld [vmem:[#allocation17 + $0x128] sm:$0xff]   ;;  %v14414_v18 = vld [vmem:[#allocation17 + $0x118] sm:$0xff]   ;;  %v14416_v31 = vld [vmem:[#allocation17 + $0x110] sm:$0xff]  }
 0xdc8   :  { %13247 = vmatpush3.bf16.msra.mxu1 %v17072_v53  ;;  %v17075_v52 = vpack.c.bf16 %v7440_v41, %v7439_v3  ;;  %v14417_v3 = vld [vmem:[#allocation17 + $0xc0] sm:$0xff]   ;;  %v14418_v41 = vld [vmem:[#allocation17 + $0x108] sm:$0xff]  }
 0xdc9   :  { %13248 = vmatprep.subr.bf16.mxu1 %v15009_v17 }
 0xdcc   :  { %13249 = vmatpush3.bf16.msra.mxu1 %v17075_v52 }
 0xdcd   :  { %13254 = vmatprep.subr.bf16.mxu1 %v15009_v17 }
 0xdcf   :  { %13251 = vmatmul.mubr.msk.bf16.vlgmr.msra.gmra.mxu1 %vm7446_vm5, %v7445_v24  ;;  %v14419_v24 = vld [vmem:[#allocation17 + $0x100] sm:$0xff]  }
 0xdd0   :  { %13255 = vmatpush3.bf16.msra.mxu1 %v17072_v53  ;;  %13258 = vmatprep.mubr.msk.bf16.mxu1 %vm15010_vm0, %v15009_v17 }
 0xdd1   :  { %13256 = vmatprep.subr.bf16.mxu1 %v15009_v17 }
 0xdd4   :  { %13257 = vmatpush3.bf16.msra.mxu1 %v17075_v52 }
 0xdd5   :  { %13262 = vmatprep.subr.bf16.mxu1 %v15009_v17 }
 0xdd7   :  { %13259 = vmatmul.mubr.msk.bf16.vlgmr.msra.gmra.mxu1 %vm7446_vm5, %v7508_v28 }
 0xdd8   :  { %13263 = vmatpush3.bf16.msra.mxu1 %v14382_v51  ;;  %13278 = vmatprep.mubr.msk.bf16.mxu1 %vm15010_vm0, %v15009_v17 }
 0xdd9   :  { %13264 = vmatprep.subr.bf16.mxu1 %v15009_v17 }
 0xddc   :  { %13265 = vmatpush3.bf16.msra.mxu1 %v14384_v35 }
 0xddd   :  { %13266 = vmatprep.subr.bf16.mxu1 %v15009_v17 }
 0xde0   :  { %13267 = vmatpush3.bf16.msra.mxu1 %v14386_v61 }
 0xde1   :  { %13268 = vmatprep.subr.bf16.mxu1 %v15009_v17 }
 0xde4   :  { %13269 = vmatpush3.bf16.msra.mxu1 %v14388_v22 }
 0xde5   :  { %13270 = vmatprep.subr.bf16.mxu1 %v15009_v17 }
 0xde8   :  { %13271 = vmatpush3.bf16.msra.mxu1 %v14390_v46 }
 0xde9   :  { %13272 = vmatprep.subr.bf16.mxu1 %v15009_v17 }
 0xdec   :  { %13273 = vmatpush3.bf16.msra.mxu1 %v14392_v39  ;;  %v14420_v39 = vld [vmem:[#allocation17 + $0x178] sm:$0xff]  }
 0xded   :  { %13274 = vmatprep.subr.bf16.mxu1 %v15009_v17 }
 0xdf0   :  { %13275 = vmatpush3.bf16.msra.mxu1 %v14394_v10 }
 0xdf1   :  { %13276 = vmatprep.subr.bf16.mxu1 %v15009_v17 }
 0xdf4   :  { %13277 = vmatpush3.bf16.msra.mxu1 %v14395_v15 }
 0xdf5   :  { %13302 = vmatprep.subr.bf16.mxu1 %v15009_v17 }
 0xe8f   :  { %v7484_v36 = vpop.f32.mrf.mxu1 }
 0xe90   :  { %v7490_v58 = vpack.c.bf16 %v7484_v36, %v7484_v36  ;;  %v14421_v36 = vld [vmem:[#allocation17 + $0x170] sm:$0xff]  }
 0xe91   :  { %v13252_v8 = vpop.f32.mrf.mxu1 }
 0xe92   :  { %13299 = vmatmul.mubr.bf16.vlgmr.msra.gmra.mxu0 %v7490_v58 }
 0xe93   :  { %v7487_v12 = vpop.f32.mrf.mxu1  ;;  %13354 = vmatprep.mubr.msk.bf16.mxu0 %vm15010_vm0, %v15009_v17  ;;  %13339 = vmatpush3.bf16.msra.mxu0 %v14404_v0  ;;  %v14432_v0 = vld [vmem:[#allocation17 + $0x140] sm:$0xff]  }
 0xe94   :  { %13340 = vmatprep.subr.bf16.mxu0 %v15009_v17 }
 0xe95   :  { %v13253_v48 = vpop.f32.mrf.mxu1 }
 0xe96   :  { %v14422_v48 = vld [vmem:[#allocation17 + $0x168] sm:$0xff]  }
 0xe97   :  { %v7546_v34 = vpop.f32.mrf.mxu1  ;;  %13341 = vmatpush3.bf16.msra.mxu0 %v14405_v21  ;;  %v14433_v21 = vld [vmem:[#allocation17 + $0x190] sm:$0xff]  }
 0xe98   :  { %v7552_v44 = vpack.c.bf16 %v7546_v34, %v7546_v34  ;;  %13342 = vmatprep.subr.bf16.mxu0 %v15009_v17 }
 0xe99   :  { %v13260_v26 = vpop.f32.mrf.mxu1 }
 0xe9a   :  { %13279 = vmatmul.mubr.bf16.vlgmr.msra.gmra.mxu1 %v7552_v44  ;;  %v14424_v26 = vld [vmem:[#allocation17 + $0x160] sm:$0xff]  }
 0xe9b   :  { %13303 = vmatpush3.bf16.msra.mxu1 %v17072_v53  ;;  %v7549_v56 = vpop.f32.mrf.mxu1  ;;  %13306 = vmatprep.mubr.msk.bf16.mxu1 %vm15010_vm0, %v15009_v17 }
 0xe9c   :  { %13304 = vmatprep.subr.bf16.mxu1 %v15009_v17  ;;  %13343 = vmatpush3.bf16.msra.mxu0 %v14407_v11  ;;  %v14434_v11 = vld [vmem:[#allocation17 + $0x188] sm:$0xff]  }
 0xe9d   :  { %v13261_v32 = vpop.f32.mrf.mxu1  ;;  %13344 = vmatprep.subr.bf16.mxu0 %v15009_v17 }
 0xe9e   :  { %v8203_v32 = vld [vmem:[#allocation16 + $0x14] sm:$0xf] }
 0xe9f   :  { %13305 = vmatpush3.bf16.msra.mxu1 %v17075_v52 }
 0xea0   :  { %13310 = vmatprep.subr.bf16.mxu1 %v15009_v17  ;;  %13345 = vmatpush3.bf16.msra.mxu0 %v14409_v29  ;;  %v14435_v29 = vld [vmem:[#allocation17 + $0x180] sm:$0xff]  }
 0xea1   :  { %13346 = vmatprep.subr.bf16.mxu0 %v15009_v17 }
 0xea2   :  { %13307 = vmatmul.mubr.msk.bf16.vlgmr.msra.gmra.mxu1 %vm7446_vm5, %v7747_v63  ;;  %v8355_v63 = vld [vmem:[#allocation16 + $0x18] sm:$0xf] }
 0xea3   :  { %13311 = vmatpush3.bf16.msra.mxu1 %v14396_v7  ;;  %13326 = vmatprep.mubr.msk.bf16.mxu1 %vm15010_vm0, %v15009_v17  ;;  %v14423_v7 = vld [vmem:[#allocation17 + $0x1b8] sm:$0xff]  }
 0xea4   :  { %13312 = vmatprep.subr.bf16.mxu1 %v15009_v17  ;;  %13347 = vmatpush3.bf16.msra.mxu0 %v14411_v16 }
 0xea5   :  { %13348 = vmatprep.subr.bf16.mxu0 %v15009_v17 }
 0xea7   :  { %13313 = vmatpush3.bf16.msra.mxu1 %v14397_v47  ;;  %v14425_v47 = vld [vmem:[#allocation17 + $0x1b0] sm:$0xff]  }
 0xea8   :  { %13314 = vmatprep.subr.bf16.mxu1 %v15009_v17  ;;  %13349 = vmatpush3.bf16.msra.mxu0 %v14413_v60  ;;  %v14437_v60 = vld [vmem:[#allocation17 + $0x1f0] sm:$0xff]  }
 0xea9   :  { %13350 = vmatprep.subr.bf16.mxu0 %v15009_v17 }
 0xeab   :  { %13315 = vmatpush3.bf16.msra.mxu1 %v14398_v25  ;;  %v14426_v25 = vld [vmem:[#allocation17 + $0x158] sm:$0xff]  }
 0xeac   :  { %13316 = vmatprep.subr.bf16.mxu1 %v15009_v17  ;;  %13351 = vmatpush3.bf16.msra.mxu0 %v14415_v49  ;;  %v8659_v49 = vld [vmem:[#allocation16 + $0x20] sm:$0xf] }
 0xead   :  { %13352 = vmatprep.subr.bf16.mxu0 %v15009_v17 }
 0xeaf   :  { %13317 = vmatpush3.bf16.msra.mxu1 %v14399_v57  ;;  %v14427_v57 = vld [vmem:[#allocation17 + $0x1a8] sm:$0xff]  }
 0xeb0   :  { %13318 = vmatprep.subr.bf16.mxu1 %v15009_v17  ;;  %13353 = vmatpush3.bf16.msra.mxu0 %v14417_v3  ;;  %v14441_v3 = vld [vmem:[#allocation17 + $0x230] sm:$0xff]  }
 0xeb1   :  { %13394 = vmatprep.subr.bf16.mxu0 %v15009_v17 }
 0xeb3   :  { %13319 = vmatpush3.bf16.msra.mxu1 %v14400_v14  ;;  %v14428_v14 = vld [vmem:[#allocation17 + $0x150] sm:$0xff]  }
 0xeb4   :  { %13320 = vmatprep.subr.bf16.mxu1 %v15009_v17 }
 0xeb7   :  { %13321 = vmatpush3.bf16.msra.mxu1 %v14401_v30  ;;  %v14429_v30 = vld [vmem:[#allocation17 + $0x1a0] sm:$0xff]  }
 0xeb8   :  { %13322 = vmatprep.subr.bf16.mxu1 %v15009_v17 }
 0xebb   :  { %13323 = vmatpush3.bf16.msra.mxu1 %v14402_v62  ;;  %v14430_v62 = vld [vmem:[#allocation17 + $0x148] sm:$0xff]  }
 0xebc   :  { %13324 = vmatprep.subr.bf16.mxu1 %v15009_v17 }
 0xebf   :  { %13325 = vmatpush3.bf16.msra.mxu1 %v14403_v5  ;;  %v14431_v5 = vld [vmem:[#allocation17 + $0x198] sm:$0xff]  }
 0xec0   :  { %13330 = vmatprep.subr.bf16.mxu1 %v15009_v17 }
 0xf52   :  { %v7740_v2 = vpop.f32.mrf.mxu0 }
 0xf54   :  { %v13300_v23 = vpop.f32.mrf.mxu0 }
 0xf56   :  { %v7743_v9 = vpop.f32.mrf.mxu0 }
 0xf58   :  { %v13301_v37 = vpop.f32.mrf.mxu0 }
 0xf5a   :  { %v7652_v50 = vpop.f32.mrf.mxu1 }
 0xf5b   :  { %v7741_v38 = vadd.f32 %v7740_v2, %v7652_v50 }
 0xf5c   :  { %v13280_v6 = vpop.f32.mrf.mxu1 }
 0xf5e   :  { %v7655_v27 = vpop.f32.mrf.mxu1 }
 0xf60   :  { %v13281_v45 = vpop.f32.mrf.mxu1 }
 0xf62   :  { %v7785_v42 = vpop.f32.mrf.mxu1 }
 0xf63   :  { %v7791_v54 = vpack.c.bf16 %v7785_v42, %v7785_v42 }
 0xf64   :  { %v13308_v19 = vpop.f32.mrf.mxu1 }
 0xf65   :  { %13327 = vmatmul.mubr.bf16.vlgmr.msra.gmra.mxu1 %v7791_v54 }
 0xf66   :  { %13331 = vmatpush3.bf16.msra.mxu1 %v17072_v53  ;;  %v7788_v1 = vpop.f32.mrf.mxu1  ;;  %13334 = vmatprep.mubr.msk.bf16.mxu1 %vm15010_vm0, %v15009_v17 }
 0xf67   :  { %13332 = vmatprep.subr.bf16.mxu1 %v15009_v17 }
 0xf68   :  { %v13309_v40 = vpop.f32.mrf.mxu1 }
 0xf6a   :  { %13333 = vmatpush3.bf16.msra.mxu1 %v17075_v52 }
 0xf6b   :  { %13358 = vmatprep.subr.bf16.mxu1 %v15009_v17 }
 0xf6d   :  { %13335 = vmatmul.mubr.msk.bf16.vlgmr.msra.gmra.mxu1 %vm7446_vm5, %v7899_v33 }
 0xf6e   :  { %13359 = vmatpush3.bf16.msra.mxu1 %v17072_v53  ;;  %13362 = vmatprep.mubr.msk.bf16.mxu1 %vm15010_vm0, %v15009_v17 }
 0xf6f   :  { %13360 = vmatprep.subr.bf16.mxu1 %v15009_v17 }
 0xf72   :  { %13361 = vmatpush3.bf16.msra.mxu1 %v17075_v52 }
 0xf73   :  { %13366 = vmatprep.subr.bf16.mxu1 %v15009_v17 }
 0xf75   :  { %13363 = vmatmul.mubr.msk.bf16.vlgmr.msra.gmra.mxu1 %vm7446_vm5, %v8051_v20  ;;  %v8507_v20 = vld [vmem:[#allocation16 + $0x1c] sm:$0xf] }
 0xf76   :  { %13367 = vmatpush3.bf16.msra.mxu1 %v14406_v55  ;;  %13382 = vmatprep.mubr.msk.bf16.mxu1 %vm15010_vm0, %v15009_v17 }
 0xf77   :  { %13368 = vmatprep.subr.bf16.mxu1 %v15009_v17 }
 0xf7a   :  { %13369 = vmatpush3.bf16.msra.mxu1 %v14408_v59  ;;  %v14436_v59 = vld [vmem:[#allocation17 + $0x1f8] sm:$0xff]  }
 0xf7b   :  { %13370 = vmatprep.subr.bf16.mxu1 %v15009_v17 }
 0xf7e   :  { %13371 = vmatpush3.bf16.msra.mxu1 %v14410_v4 }
 0xf7f   :  { %13372 = vmatprep.subr.bf16.mxu1 %v15009_v17 }
 0xf82   :  { %13373 = vmatpush3.bf16.msra.mxu1 %v14412_v43 }
 0xf83   :  { %13374 = vmatprep.subr.bf16.mxu1 %v15009_v17 }
 0xf86   :  { %13375 = vmatpush3.bf16.msra.mxu1 %v14414_v18 }
 0xf87   :  { %13376 = vmatprep.subr.bf16.mxu1 %v15009_v17 }
 0xf8a   :  { %13377 = vmatpush3.bf16.msra.mxu1 %v14416_v31  ;;  %v14439_v31 = vld [vmem:[#allocation17 + $0x238] sm:$0xff]  }
 0xf8b   :  { %13378 = vmatprep.subr.bf16.mxu1 %v15009_v17 }
 0xf8e   :  { %13379 = vmatpush3.bf16.msra.mxu1 %v14418_v41  ;;  %v14440_v41 = vld [vmem:[#allocation17 + $0x1e0] sm:$0xff]  }
 0xf8f   :  { %13380 = vmatprep.subr.bf16.mxu1 %v15009_v17 }
 0xf92   :  { %13381 = vmatpush3.bf16.msra.mxu1 %v14419_v24  ;;  %v14442_v24 = vld [vmem:[#allocation17 + $0x1d8] sm:$0xff]  }
 0xf93   :  { %13386 = vmatprep.subr.bf16.mxu1 %v15009_v17 }
0x1025   :  { %v7891_v28 = vpop.f32.mrf.mxu1 }
0x1026   :  { %v17150_v51 = vadd.f32 %v7891_v28, %v7741_v38  ;;  %v14444_v28 = vld [vmem:[#allocation17 + $0x1d0] sm:$0xff]  }
0x1027   :  { %v13328_v35 = vpop.f32.mrf.mxu1 }
0x1028   :  { %v14446_v35 = vld [vmem:[#allocation17 + $0x1c8] sm:$0xff]  }
0x1029   :  { %v7894_v61 = vpop.f32.mrf.mxu1 }
0x102a   :  { %v14447_v61 = vld [vmem:[#allocation17 + $0x218] sm:$0xff]  }
0x102b   :  { %v13329_v22 = vpop.f32.mrf.mxu1 }
0x102c   :  { %v14448_v22 = vld [vmem:[#allocation17 + $0x1c0] sm:$0xff]  }
0x102d   :  { %v7937_v46 = vpop.f32.mrf.mxu1 }
0x102e   :  { %v7943_v13 = vpack.c.bf16 %v7937_v46, %v7937_v46  ;;  %v14449_v46 = vld [vmem:[#allocation17 + $0x210] sm:$0xff]  }
0x102f   :  { %v13336_v10 = vpop.f32.mrf.mxu1 }
0x1030   :  { %13355 = vmatmul.mubr.bf16.vlgmr.msra.gmra.mxu0 %v7943_v13  ;;  %v14451_v13 = vld [vmem:[#allocation17 + $0x200] sm:$0xff]  }
0x1031   :  { %v7940_v15 = vpop.f32.mrf.mxu1  ;;  %13395 = vmatpush3.bf16.msra.mxu0 %v14420_v39  ;;  %13410 = vmatprep.mubr.msk.bf16.mxu0 %vm15010_vm0, %v15009_v17  ;;  %v14450_v39 = vld [vmem:[#allocation17 + $0x208] sm:$0xff]  }
0x1032   :  { %13396 = vmatprep.subr.bf16.mxu0 %v15009_v17 }
0x1033   :  { %v13337_v58 = vpop.f32.mrf.mxu1 }
0x1035   :  { %v8089_v8 = vpop.f32.mrf.mxu1  ;;  %13397 = vmatpush3.bf16.msra.mxu0 %v14421_v36 }
0x1036   :  { %v8095_v12 = vpack.c.bf16 %v8089_v8, %v8089_v8  ;;  %13398 = vmatprep.subr.bf16.mxu0 %v15009_v17 }
0x1037   :  { %v13364_v34 = vpop.f32.mrf.mxu1 }
0x1038   :  { %13383 = vmatmul.mubr.bf16.vlgmr.msra.gmra.mxu1 %v8095_v12 }
0x1039   :  { %13387 = vmatpush3.bf16.msra.mxu1 %v17072_v53  ;;  %v8092_v44 = vpop.f32.mrf.mxu1  ;;  %13390 = vmatprep.mubr.msk.bf16.mxu1 %vm15010_vm0, %v15009_v17 }
0x103a   :  { %13388 = vmatprep.subr.bf16.mxu1 %v15009_v17  ;;  %13399 = vmatpush3.bf16.msra.mxu0 %v14422_v48 }
0x103b   :  { %v13365_v56 = vpop.f32.mrf.mxu1  ;;  %13400 = vmatprep.subr.bf16.mxu0 %v15009_v17 }
0x103d   :  { %13389 = vmatpush3.bf16.msra.mxu1 %v17075_v52 }
0x103e   :  { %13414 = vmatprep.subr.bf16.mxu1 %v15009_v17  ;;  %13401 = vmatpush3.bf16.msra.mxu0 %v14424_v26 }
0x103f   :  { %13402 = vmatprep.subr.bf16.mxu0 %v15009_v17 }
0x1040   :  { %13391 = vmatmul.mubr.msk.bf16.vlgmr.msra.gmra.mxu1 %vm7446_vm5, %v8203_v32 }
0x1041   :  { %13415 = vmatpush3.bf16.msra.mxu1 %v17072_v53  ;;  %13418 = vmatprep.mubr.msk.bf16.mxu1 %vm15010_vm0, %v15009_v17 }
0x1042   :  { %13416 = vmatprep.subr.bf16.mxu1 %v15009_v17  ;;  %13403 = vmatpush3.bf16.msra.mxu0 %v14426_v25 }
0x1043   :  { %13404 = vmatprep.subr.bf16.mxu0 %v15009_v17 }
0x1045   :  { %13417 = vmatpush3.bf16.msra.mxu1 %v17075_v52 }
0x1046   :  { %13422 = vmatprep.subr.bf16.mxu1 %v15009_v17  ;;  %13405 = vmatpush3.bf16.msra.mxu0 %v14428_v14 }
0x1047   :  { %13406 = vmatprep.subr.bf16.mxu0 %v15009_v17 }
0x1048   :  { %13419 = vmatmul.mubr.msk.bf16.vlgmr.msra.gmra.mxu1 %vm7446_vm5, %v8355_v63 }
0x1049   :  { %13423 = vmatpush3.bf16.msra.mxu1 %v14423_v7  ;;  %13438 = vmatprep.mubr.msk.bf16.mxu1 %vm15010_vm0, %v15009_v17 }
0x104a   :  { %13424 = vmatprep.subr.bf16.mxu1 %v15009_v17  ;;  %13407 = vmatpush3.bf16.msra.mxu0 %v14430_v62 }
0x104b   :  { %13408 = vmatprep.subr.bf16.mxu0 %v15009_v17 }
0x104d   :  { %13425 = vmatpush3.bf16.msra.mxu1 %v14425_v47 }
0x104e   :  { %13426 = vmatprep.subr.bf16.mxu1 %v15009_v17  ;;  %13409 = vmatpush3.bf16.msra.mxu0 %v14432_v0  ;;  %v14453_v0 = vld [vmem:[#allocation22 + $0x30] sm:$0xff]  }
0x104f   :  { %13442 = vmatprep.subr.bf16.mxu0 %v15009_v17 }
0x1051   :  { %13427 = vmatpush3.bf16.msra.mxu1 %v14427_v57 }
0x1052   :  { %13428 = vmatprep.subr.bf16.mxu1 %v15009_v17 }
0x1055   :  { %13429 = vmatpush3.bf16.msra.mxu1 %v14429_v30 }
0x1056   :  { %13430 = vmatprep.subr.bf16.mxu1 %v15009_v17 }
0x1059   :  { %13431 = vmatpush3.bf16.msra.mxu1 %v14431_v5  ;;  %v14452_v5 = vld [vmem:[#allocation22 + $0x38] sm:$0xff]  }
0x105a   :  { %13432 = vmatprep.subr.bf16.mxu1 %v15009_v17 }
0x105d   :  { %13433 = vmatpush3.bf16.msra.mxu1 %v14433_v21  ;;  %v14455_v21 = vld [vmem:[#allocation22 + $0x28] sm:$0xff]  }
0x105e   :  { %13434 = vmatprep.subr.bf16.mxu1 %v15009_v17 }
0x1061   :  { %13435 = vmatpush3.bf16.msra.mxu1 %v14434_v11  ;;  %v14457_v11 = vld [vmem:[#allocation22 + $0x20] sm:$0xff]  }
0x1062   :  { %13436 = vmatprep.subr.bf16.mxu1 %v15009_v17 }
0x1065   :  { %13437 = vmatpush3.bf16.msra.mxu1 %v14435_v29  ;;  %v14459_v29 = vld [vmem:[#allocation22 + $0x18] sm:$0xff]  }
0x1066   :  { %13470 = vmatprep.subr.bf16.mxu1 %v15009_v17 }
0x10f0   :  { %v8043_v16 = vpop.f32.mrf.mxu0 }
0x10f1   :  { %v8049_v2 = vadd.f32 %v8043_v16, %v17150_v51  ;;  %v14445_v51 = vld [vmem:[#allocation17 + $0x220] sm:$0xff]   ;;  %v14461_v16 = vld [vmem:[#allocation22 + $0x10] sm:$0xff]  }
0x10f2   :  { %v13356_v23 = vpop.f32.mrf.mxu0 }
0x10f3   :  { %v14465_v23 = vld [vmem:[#allocation22] sm:$0xff]  }
0x10f4   :  { %v8046_v9 = vpop.f32.mrf.mxu0 }
0x10f6   :  { %v13357_v37 = vpop.f32.mrf.mxu0 }
0x10f8   :  { %v8195_v50 = vpop.f32.mrf.mxu1 }
0x10f9   :  { %v17187_v38 = vadd.f32 %v8195_v50, %v8049_v2  ;;  %v14463_v2 = vld [vmem:[#allocation22 + $0x8] sm:$0xff]  }
0x10fa   :  { %v13384_v6 = vpop.f32.mrf.mxu1 }
0x10fc   :  { %v8198_v27 = vpop.f32.mrf.mxu1 }
0x10fe   :  { %v13385_v45 = vpop.f32.mrf.mxu1 }
0x10ff   :  { %v10821_v45 = vld [vmem:[#allocation19] ss:$0 sm:$0xff] }
0x1100   :  { %v8241_v42 = vpop.f32.mrf.mxu1 }
0x1101   :  { %v8247_v54 = vpack.c.bf16 %v8241_v42, %v8241_v42 }
0x1102   :  { %v13392_v19 = vpop.f32.mrf.mxu1 }
0x1103   :  { %13411 = vmatmul.mubr.bf16.vlgmr.msra.gmra.mxu0 %v8247_v54 }
0x1104   :  { %13443 = vmatpush3.bf16.msra.mxu0 %v17072_v53  ;;  %v8244_v1 = vpop.f32.mrf.mxu1  ;;  %13446 = vmatprep.mubr.msk.bf16.mxu0 %vm15010_vm0, %v15009_v17 }
0x1105   :  { %13444 = vmatprep.subr.bf16.mxu0 %v15009_v17 }
0x1106   :  { %v13393_v40 = vpop.f32.mrf.mxu1 }
0x1108   :  { %13445 = vmatpush3.bf16.msra.mxu0 %v17075_v52  ;;  %v8393_v33 = vpop.f32.mrf.mxu1 }
0x1109   :  { %v8399_v55 = vpack.c.bf16 %v8393_v33, %v8393_v33  ;;  %13450 = vmatprep.subr.bf16.mxu0 %v15009_v17  ;;  %v10822_v33 = vld [vmem:[#allocation20] ss:$0 sm:$0xff] }
0x110a   :  { %v13420_v4 = vpop.f32.mrf.mxu1 }
0x110b   :  { %13439 = vmatmul.mubr.bf16.vlgmr.msra.gmra.mxu1 %v8399_v55  ;;  %13447 = vmatmul.mubr.msk.bf16.vlgmr.msra.gmra.mxu0 %vm7446_vm5, %v8507_v20 }
0x110c   :  { %13471 = vmatpush3.bf16.msra.mxu1 %v17072_v53  ;;  %v8396_v43 = vpop.f32.mrf.mxu1  ;;  %13474 = vmatprep.mubr.msk.bf16.mxu1 %vm15010_vm0, %v15009_v17  ;;  %v14438_v53 = vld [vmem:[#allocation17 + $0x1e8] sm:$0xff]  }
0x110d   :  { %13472 = vmatprep.subr.bf16.mxu1 %v15009_v17  ;;  %13451 = vmatpush3.bf16.msra.mxu0 %v14436_v59 }
0x110e   :  { %v13421_v18 = vpop.f32.mrf.mxu1  ;;  %13452 = vmatprep.subr.bf16.mxu0 %v15009_v17  ;;  %13466 = vmatprep.mubr.msk.bf16.mxu0 %vm15010_vm0, %v15009_v17 }
0x110f   :  { %v10824_v18 = vld [vmem:[%s17408_s13 + $0x1] sm:$0x1] }
0x1110   :  { %13473 = vmatpush3.bf16.msra.mxu1 %v17075_v52  ;;  %v14443_v52 = vld [vmem:[#allocation17 + $0x228] sm:$0xff]  }
0x1111   :  { %13453 = vmatpush3.bf16.msra.mxu0 %v14437_v60  ;;  %13478 = vmatprep.subr.bf16.mxu1 %v15009_v17  ;;  %v8830_v60 = vld [vmem:[%s17408_s13] sm:$0x1] }
0x1112   :  { %13454 = vmatprep.subr.bf16.mxu0 %v15009_v17 }
0x1113   :  { %13475 = vmatmul.mubr.msk.bf16.vlgmr.msra.gmra.mxu1 %vm7446_vm5, %v8659_v49  ;;  %v14454_v49 = vld [vmem:[#allocation22 + $0x78] sm:$0xff]  }
0x1114   :  { %13479 = vmatpush3.bf16.msra.mxu1 %v14439_v31  ;;  %13494 = vmatprep.mubr.msk.bf16.mxu1 %vm15010_vm0, %v15009_v17  ;;  %v14456_v31 = vld [vmem:[#allocation22 + $0x70] sm:$0xff]  }
0x1115   :  { %13455 = vmatpush3.bf16.msra.mxu0 %v14438_v53  ;;  %13480 = vmatprep.subr.bf16.mxu1 %v15009_v17  ;;  %v14458_v53 = vld [vmem:[#allocation22 + $0x68] sm:$0xff]  }
0x1116   :  { %13456 = vmatprep.subr.bf16.mxu0 %v15009_v17 }
0x1118   :  { %13481 = vmatpush3.bf16.msra.mxu1 %v14441_v3  ;;  %v14460_v3 = vld [vmem:[#allocation22 + $0x60] sm:$0xff]  }
0x1119   :  { %13457 = vmatpush3.bf16.msra.mxu0 %v14440_v41  ;;  %13482 = vmatprep.subr.bf16.mxu1 %v15009_v17  ;;  %v14462_v41 = vld [vmem:[#allocation22 + $0x58] sm:$0xff]  }
0x111a   :  { %13458 = vmatprep.subr.bf16.mxu0 %v15009_v17 }
0x111c   :  { %13483 = vmatpush3.bf16.msra.mxu1 %v14443_v52  ;;  %v14464_v52 = vld [vmem:[#allocation22 + $0x50] sm:$0xff]  }
0x111d   :  { %13459 = vmatpush3.bf16.msra.mxu0 %v14442_v24  ;;  %13484 = vmatprep.subr.bf16.mxu1 %v15009_v17  ;;  %v14466_v24 = vld [vmem:[#allocation22 + $0x48] sm:$0xff]  }
0x111e   :  { %13460 = vmatprep.subr.bf16.mxu0 %v15009_v17 }
0x1120   :  { %13485 = vmatpush3.bf16.msra.mxu1 %v14445_v51 }
0x1121   :  { %13461 = vmatpush3.bf16.msra.mxu0 %v14444_v28  ;;  %13486 = vmatprep.subr.bf16.mxu1 %v15009_v17  ;;  %v14467_v28 = vld [vmem:[#allocation22 + $0x40] sm:$0xff]  }
0x1122   :  { %13462 = vmatprep.subr.bf16.mxu0 %v15009_v17 }
0x1124   :  { %13487 = vmatpush3.bf16.msra.mxu1 %v14447_v61 }
0x1125   :  { %13463 = vmatpush3.bf16.msra.mxu0 %v14446_v35  ;;  %13488 = vmatprep.subr.bf16.mxu1 %v15009_v17 }
0x1126   :  { %13464 = vmatprep.subr.bf16.mxu0 %v15009_v17 }
0x1128   :  { %13489 = vmatpush3.bf16.msra.mxu1 %v14449_v46 }
0x1129   :  { %13465 = vmatpush3.bf16.msra.mxu0 %v14448_v22  ;;  %13490 = vmatprep.subr.bf16.mxu1 %v15009_v17 }
0x112a   :  { %13498 = vmatprep.subr.bf16.mxu0 %v15009_v17 }
0x112c   :  { %13491 = vmatpush3.bf16.msra.mxu1 %v14450_v39 }
0x112d   :  { %13492 = vmatprep.subr.bf16.mxu1 %v15009_v17 }
0x1130   :  { %13493 = vmatpush3.bf16.msra.mxu1 %v14451_v13  ;;  %v10852_v13 = vld [vmem:[%s17408_s13 + $0x3] sm:$0x1] }
0x1131   :  { %13530 = vmatprep.subr.bf16.mxu1 %v15009_v17 }
0x11c3   :  { %v8347_v10 = vpop.f32.mrf.mxu0 }
0x11c4   :  { %v8353_v15 = vadd.f32 %v8347_v10, %v17187_v38 }
0x11c5   :  { %v13412_v36 = vpop.f32.mrf.mxu0 }
0x11c7   :  { %v8350_v58 = vpop.f32.mrf.mxu0 }
0x11c9   :  { %v13413_v8 = vpop.f32.mrf.mxu0 }
0x11ca   :  { %v14469_v8 = vld [vmem:[#allocation22 + $0xf0] sm:$0xff]  }
0x11cb   :  { %v8499_v12 = vpop.f32.mrf.mxu1  ;;  %v8545_v48 = vpop.f32.mrf.mxu0 }
0x11cc   :  { %v8505_v34 = vadd.f32 %v8499_v12, %v8353_v15  ;;  %v8551_v44 = vpack.c.bf16 %v8545_v48, %v8545_v48  ;;  %v14468_v15 = vld [vmem:[#allocation22 + $0xf8] sm:$0xff]   ;;  %v10842_v48 = vld [vmem:[%s17408_s13 + $0x2] sm:$0x1] }
0x11cd   :  { %v13440_v26 = vpop.f32.mrf.mxu1  ;;  %v13448_v56 = vpop.f32.mrf.mxu0 }
0x11ce   :  { %13467 = vmatmul.mubr.bf16.vlgmr.msra.gmra.mxu0 %v8551_v44  ;;  %v14471_v44 = vld [vmem:[#allocation22 + $0xe8] sm:$0xff]   ;;  %v14472_v26 = vld [vmem:[#allocation22 + $0xb0] sm:$0xff]   ;;  %v14473_v56 = vld [vmem:[#allocation22 + $0xe0] sm:$0xff]  }
0x11cf   :  { %v8502_v32 = vpop.f32.mrf.mxu1  ;;  %v8548_v63 = vpop.f32.mrf.mxu0  ;;  %13500 = vmatprep.mubr.msk.bf16.mxu0 %vm15010_vm0, %v15009_v17 }
0x11d0   :  { %v14474_v32 = vld [vmem:[#allocation22 + $0xa8] sm:$0xff]   ;;  %v14475_v63 = vld [vmem:[#allocation22 + $0xd8] sm:$0xff]  }
0x11d1   :  { %v13441_v7 = vpop.f32.mrf.mxu1  ;;  %v13449_v47 = vpop.f32.mrf.mxu0 }
0x11d2   :  { %v14476_v7 = vld [vmem:[#allocation22 + $0xa0] sm:$0xff]   ;;  %v14477_v47 = vld [vmem:[#allocation22 + $0xd0] sm:$0xff]  }
0x11d3   :  { %v8697_v25 = vpop.f32.mrf.mxu1 }
0x11d4   :  { %v8703_v57 = vpack.c.bf16 %v8697_v25, %v8697_v25  ;;  %v14478_v25 = vld [vmem:[#allocation22 + $0x98] sm:$0xff]  }
0x11d5   :  { %v13476_v14 = vpop.f32.mrf.mxu1 }
0x11d6   :  { %13495 = vmatmul.mubr.bf16.vlgmr.msra.gmra.mxu1 %v8703_v57  ;;  %v14479_v57 = vld [vmem:[#allocation22 + $0xc8] sm:$0xff]   ;;  %v14480_v14 = vld [vmem:[#allocation22 + $0x90] sm:$0xff]  }
0x11d7   :  { %v8700_v30 = vpop.f32.mrf.mxu1  ;;  %13546 = vmatprep.mubr.msk.bf16.mxu1 %vm15010_vm0, %v15009_v17  ;;  %13531 = vmatpush3.bf16.msra.mxu1 %v14452_v5  ;;  %v14483_v5 = vld [vmem:[#allocation22 + $0x80] sm:$0xff]  }
0x11d8   :  { %13532 = vmatprep.subr.bf16.mxu1 %v15009_v17  ;;  %v14481_v30 = vld [vmem:[#allocation22 + $0xc0] sm:$0xff]  }
0x11d9   :  { %v13477_v62 = vpop.f32.mrf.mxu1 }
0x11da   :  { %v14482_v62 = vld [vmem:[#allocation22 + $0x88] sm:$0xff]  }
0x11db   :  { %13533 = vmatpush3.bf16.msra.mxu1 %v14453_v0 }
0x11dc   :  { %13534 = vmatprep.subr.bf16.mxu1 %v15009_v17 }
0x11df   :  { %13535 = vmatpush3.bf16.msra.mxu1 %v14455_v21 }
0x11e0   :  { %13536 = vmatprep.subr.bf16.mxu1 %v15009_v17 }
0x11e3   :  { %13537 = vmatpush3.bf16.msra.mxu1 %v14457_v11 }
0x11e4   :  { %13538 = vmatprep.subr.bf16.mxu1 %v15009_v17 }
0x11e7   :  { %13539 = vmatpush3.bf16.msra.mxu1 %v14459_v29 }
0x11e8   :  { %13540 = vmatprep.subr.bf16.mxu1 %v15009_v17 }
0x11eb   :  { %13541 = vmatpush3.bf16.msra.mxu1 %v14461_v16 }
0x11ec   :  { %13542 = vmatprep.subr.bf16.mxu1 %v15009_v17 }
0x11ef   :  { %13543 = vmatpush3.bf16.msra.mxu1 %v14463_v2 }
0x11f0   :  { %13544 = vmatprep.subr.bf16.mxu1 %v15009_v17 }
0x11f3   :  { %13545 = vmatpush3.bf16.msra.mxu1 %v14465_v23 }
0x11f4   :  { %13576 = vmatprep.subr.bf16.mxu1 %v15009_v17 }
0x128e   :  { %v8651_v9 = vpop.f32.mrf.mxu0 }
0x128f   :  { %v8657_v6 = vadd.f32 %v8651_v9, %v8505_v34  ;;  %v14470_v34 = vld [vmem:[#allocation22 + $0xb8] sm:$0xff]  }
0x1290   :  { %v13468_v37 = vpop.f32.mrf.mxu0 }
0x1292   :  { %v8654_v50 = vpop.f32.mrf.mxu0 }
0x1294   :  { %v13469_v38 = vpop.f32.mrf.mxu0 }
0x1296   :  { %v8803_v27 = vpop.f32.mrf.mxu1 }
0x1297   :  { %v8809_v42 = vadd.f32 %v8803_v27, %v8657_v6 }
0x1298   :  { %v13496_v54 = vpop.f32.mrf.mxu1 }
0x1299   :  { %v8817_v19 = vadd.f32 %v10821_v45, %v8809_v42  ;;  %v10872_v54 = vld [vmem:[%s17408_s13 + $0x5] sm:$0x1] }
0x129a   :  { %v8806_v1 = vpop.f32.mrf.mxu1 }
0x129b   :  { %vm8818_vm6 = vcmp.gt.f32.partialorder %v8817_v19, 0.0  ;;  %v8819_v40 = vmul.f32 0.2, %v8817_v19  ;;  %v14484_v1 = vld [vmem:[#allocation22 + $0x178] sm:$0xff]  }
0x129c   :  { %v13497_v20 = vpop.f32.mrf.mxu1 }
0x129d   :  { %v8820_v55 = vsel %vm8818_vm6, %v8817_v19, %v8819_v40  ;;  %v14485_v20 = vld [vmem:[#allocation22 + $0x170] sm:$0xff]  }
0x129e   :  { %v8828_v59 = vadd.f32 %v10822_v33, %v8820_v55 }
0x12a0   :  { %v8829_v4 = vpack.c.bf16 %v8828_v59, %v8828_v59  ;;  %v10862_v59 = vld [vmem:[%s17408_s13 + $0x4] sm:$0x1] }
0x12a2   :  { %v17236_v43 = vsel %vm8835_vm7, %v8829_v4, 0  ;;  %v14486_v4 = vld [vmem:[#allocation22 + $0x138] sm:$0xff]  }
0x12a3   :  { %13499 = vmatpush3.bf16.msra.mxu0 %v17236_v43 }
0x12a4   :  { %13504 = vmatprep.subr.bf16.mxu0 %v15009_v17 }
0x12a6   :  { %13501 = vmatmul.mubr.msk.bf16.vlgmr.msra.gmra.mxu0 %vm8831_vm8, %v8830_v60  ;;  %v14487_v60 = vld [vmem:[#allocation22 + $0x168] sm:$0xff]  }
0x12a7   :  { %13505 = vmatpush3.bf16.msra.mxu0 %v17236_v43  ;;  %13506 = vmatprep.mubr.msk.bf16.mxu0 %vm15010_vm0, %v15009_v17 }
0x12a8   :  { %13510 = vmatprep.subr.bf16.mxu0 %v15009_v17 }
0x12ae   :  { %13507 = vmatmul.mubr.msk.bf16.vlgmr.msra.gmra.mxu0 %vm8831_vm8, %v10824_v18  ;;  %v14488_v18 = vld [vmem:[#allocation22 + $0x130] sm:$0xff]  }
0x12af   :  { %13511 = vmatpush3.bf16.msra.mxu0 %v14454_v49  ;;  %13526 = vmatprep.mubr.msk.bf16.mxu0 %vm15010_vm0, %v15009_v17  ;;  %v14489_v49 = vld [vmem:[#allocation22 + $0x160] sm:$0xff]  }
0x12b0   :  { %13512 = vmatprep.subr.bf16.mxu0 %v15009_v17 }
0x12b3   :  { %13513 = vmatpush3.bf16.msra.mxu0 %v14456_v31  ;;  %v14490_v31 = vld [vmem:[#allocation22 + $0x128] sm:$0xff]  }
0x12b4   :  { %13514 = vmatprep.subr.bf16.mxu0 %v15009_v17 }
0x12b7   :  { %13515 = vmatpush3.bf16.msra.mxu0 %v14458_v53  ;;  %v14491_v53 = vld [vmem:[#allocation22 + $0x158] sm:$0xff]  }
0x12b8   :  { %13516 = vmatprep.subr.bf16.mxu0 %v15009_v17 }
0x12bb   :  { %13517 = vmatpush3.bf16.msra.mxu0 %v14460_v3  ;;  %v14492_v3 = vld [vmem:[#allocation22 + $0x120] sm:$0xff]  }
0x12bc   :  { %13518 = vmatprep.subr.bf16.mxu0 %v15009_v17 }
0x12bf   :  { %13519 = vmatpush3.bf16.msra.mxu0 %v14462_v41  ;;  %v14493_v41 = vld [vmem:[#allocation22 + $0x150] sm:$0xff]  }
0x12c0   :  { %13520 = vmatprep.subr.bf16.mxu0 %v15009_v17 }
0x12c3   :  { %13521 = vmatpush3.bf16.msra.mxu0 %v14464_v52  ;;  %v14494_v52 = vld [vmem:[#allocation22 + $0x118] sm:$0xff]  }
0x12c4   :  { %13522 = vmatprep.subr.bf16.mxu0 %v15009_v17 }
0x12c7   :  { %13523 = vmatpush3.bf16.msra.mxu0 %v14466_v24  ;;  %v14495_v24 = vld [vmem:[#allocation22 + $0x148] sm:$0xff]  }
0x12c8   :  { %13524 = vmatprep.subr.bf16.mxu0 %v15009_v17 }
0x12cb   :  { %13525 = vmatpush3.bf16.msra.mxu0 %v14467_v28  ;;  %v14496_v28 = vld [vmem:[#allocation22 + $0x110] sm:$0xff]  }
0x12cc   :  { %13550 = vmatprep.subr.bf16.mxu0 %v15009_v17 }
0x1366   :  { %v8873_v51 = vpop.f32.mrf.mxu0 }
0x1367   :  { %v8879_v35 = vpack.c.bf16 %v8873_v51, %v8873_v51  ;;  %v14497_v51 = vld [vmem:[#allocation22 + $0x140] sm:$0xff]  }
0x1368   :  { %v13502_v61 = vpop.f32.mrf.mxu0 }
0x1369   :  { %13547 = vmatmul.mubr.bf16.vlgmr.msra.gmra.mxu1 %v8879_v35  ;;  %v14498_v35 = vld [vmem:[#allocation22 + $0x108] sm:$0xff]   ;;  %v14499_v61 = vld [vmem:[#allocation22 + $0x100] sm:$0xff]  }
0x136a   :  { %13577 = vmatpush3.bf16.msra.mxu1 %v17236_v43  ;;  %v8876_v22 = vpop.f32.mrf.mxu0  ;;  %13578 = vmatprep.mubr.msk.bf16.mxu1 %vm15010_vm0, %v15009_v17 }
0x136b   :  { %13582 = vmatprep.subr.bf16.mxu1 %v15009_v17 }
0x136c   :  { %v13503_v46 = vpop.f32.mrf.mxu0 }
0x136e   :  { %v8935_v39 = vpop.f32.mrf.mxu0 }
0x136f   :  { %v8941_v10 = vpack.c.bf16 %v8935_v39, %v8935_v39 }
0x1370   :  { %v13508_v36 = vpop.f32.mrf.mxu0 }
0x1371   :  { %13527 = vmatmul.mubr.bf16.vlgmr.msra.gmra.mxu0 %v8941_v10  ;;  %13579 = vmatmul.mubr.msk.bf16.vlgmr.msra.gmra.mxu1 %vm8831_vm8, %v10852_v13 }
0x1372   :  { %13551 = vmatpush3.bf16.msra.mxu0 %v17236_v43  ;;  %v8938_v58 = vpop.f32.mrf.mxu0  ;;  %13552 = vmatprep.mubr.msk.bf16.mxu0 %vm15010_vm0, %v15009_v17 }
0x1373   :  { %13583 = vmatpush3.bf16.msra.mxu1 %v14468_v15  ;;  %13556 = vmatprep.subr.bf16.mxu0 %v15009_v17 }
0x1374   :  { %v13509_v12 = vpop.f32.mrf.mxu0  ;;  %13584 = vmatprep.subr.bf16.mxu1 %v15009_v17  ;;  %13598 = vmatprep.mubr.msk.bf16.mxu1 %vm15010_vm0, %v15009_v17 }
0x1377   :  { %13585 = vmatpush3.bf16.msra.mxu1 %v14469_v8 }
0x1378   :  { %13586 = vmatprep.subr.bf16.mxu1 %v15009_v17 }
0x1379   :  { %13553 = vmatmul.mubr.msk.bf16.vlgmr.msra.gmra.mxu0 %vm8831_vm8, %v10842_v48 }
0x137a   :  { %13557 = vmatpush3.bf16.msra.mxu0 %v14470_v34  ;;  %13572 = vmatprep.mubr.msk.bf16.mxu0 %vm15010_vm0, %v15009_v17 }
0x137b   :  { %13587 = vmatpush3.bf16.msra.mxu1 %v14471_v44  ;;  %13558 = vmatprep.subr.bf16.mxu0 %v15009_v17 }
0x137c   :  { %13588 = vmatprep.subr.bf16.mxu1 %v15009_v17 }
0x137e   :  { %13559 = vmatpush3.bf16.msra.mxu0 %v14472_v26 }
0x137f   :  { %13589 = vmatpush3.bf16.msra.mxu1 %v14473_v56  ;;  %13560 = vmatprep.subr.bf16.mxu0 %v15009_v17 }
0x1380   :  { %13590 = vmatprep.subr.bf16.mxu1 %v15009_v17 }
0x1382   :  { %13561 = vmatpush3.bf16.msra.mxu0 %v14474_v32 }
0x1383   :  { %13591 = vmatpush3.bf16.msra.mxu1 %v14475_v63  ;;  %13562 = vmatprep.subr.bf16.mxu0 %v15009_v17  ;;  %v10892_v63 = vld [vmem:[%s17408_s13 + $0x7] sm:$0x1] }
0x1384   :  { %13592 = vmatprep.subr.bf16.mxu1 %v15009_v17 }
0x1386   :  { %13563 = vmatpush3.bf16.msra.mxu0 %v14476_v7 }
0x1387   :  { %13593 = vmatpush3.bf16.msra.mxu1 %v14477_v47  ;;  %13564 = vmatprep.subr.bf16.mxu0 %v15009_v17  ;;  %v14501_v47 = vld [vmem:[#allocation22 + $0x1f8] sm:$0xff]  }
0x1388   :  { %13594 = vmatprep.subr.bf16.mxu1 %v15009_v17 }
0x138a   :  { %13565 = vmatpush3.bf16.msra.mxu0 %v14478_v25 }
0x138b   :  { %13595 = vmatpush3.bf16.msra.mxu1 %v14479_v57  ;;  %13566 = vmatprep.subr.bf16.mxu0 %v15009_v17 }
0x138c   :  { %13596 = vmatprep.subr.bf16.mxu1 %v15009_v17 }
0x138e   :  { %13567 = vmatpush3.bf16.msra.mxu0 %v14480_v14  ;;  %v14503_v14 = vld [vmem:[#allocation22 + $0x1f0] sm:$0xff]  }
0x138f   :  { %13597 = vmatpush3.bf16.msra.mxu1 %v14481_v30  ;;  %13568 = vmatprep.subr.bf16.mxu0 %v15009_v17 }
0x1390   :  { %13628 = vmatprep.subr.bf16.mxu1 %v15009_v17 }
0x1392   :  { %13569 = vmatpush3.bf16.msra.mxu0 %v14482_v62  ;;  %v10882_v62 = vld [vmem:[%s17408_s13 + $0x6] sm:$0x1] }
0x1393   :  { %13570 = vmatprep.subr.bf16.mxu0 %v15009_v17 }
0x1396   :  { %13571 = vmatpush3.bf16.msra.mxu0 %v14483_v5  ;;  %v14500_v5 = vld [vmem:[#allocation22 + $0x1b8] sm:$0xff]  }
0x1397   :  { %13602 = vmatprep.subr.bf16.mxu0 %v15009_v17 }
0x1429   :  { %v9129_v0 = vpop.f32.mrf.mxu1 }
0x142b   :  { %v13548_v21 = vpop.f32.mrf.mxu1 }
0x142c   :  { %v14502_v21 = vld [vmem:[#allocation22 + $0x1b0] sm:$0xff]  }
0x142d   :  { %v9132_v11 = vpop.f32.mrf.mxu1 }
0x142e   :  { %v14507_v11 = vld [vmem:[#allocation22 + $0x1e0] sm:$0xff]  }
0x142f   :  { %v13549_v29 = vpop.f32.mrf.mxu1 }
0x1430   :  { %v14504_v29 = vld [vmem:[#allocation22 + $0x1a8] sm:$0xff]  }
0x1431   :  { %v9041_v16 = vpop.f32.mrf.mxu0  ;;  %v9326_v2 = vpop.f32.mrf.mxu1 }
0x1432   :  { %v17298_v23 = vadd.f32 %v9129_v0, %v9041_v16  ;;  %v9332_v9 = vpack.c.bf16 %v9326_v2, %v9326_v2  ;;  %v14505_v0 = vld [vmem:[#allocation22 + $0x1e8] sm:$0xff]   ;;  %v14509_v16 = vld [vmem:[#allocation22 + $0x1d8] sm:$0xff]   ;;  %v14506_v2 = vld [vmem:[#allocation22 + $0x1a0] sm:$0xff]  }
0x1433   :  { %v13528_v37 = vpop.f32.mrf.mxu0  ;;  %v13580_v50 = vpop.f32.mrf.mxu1 }
0x1434   :  { %13599 = vmatmul.mubr.bf16.vlgmr.msra.gmra.mxu1 %v9332_v9  ;;  %v14510_v9 = vld [vmem:[#allocation22 + $0x190] sm:$0xff]   ;;  %v14512_v50 = vld [vmem:[#allocation22 + $0x188] sm:$0xff]  }
0x1435   :  { %13629 = vmatpush3.bf16.msra.mxu1 %v17236_v43  ;;  %v9044_v38 = vpop.f32.mrf.mxu0  ;;  %13630 = vmatprep.mubr.msk.bf16.mxu1 %vm15010_vm0, %v15009_v17  ;;  %v9329_v6 = vpop.f32.mrf.mxu1  ;;  %v14511_v37 = vld [vmem:[#allocation22 + $0x1d0] sm:$0xff]  }
0x1436   :  { %13634 = vmatprep.subr.bf16.mxu1 %v15009_v17  ;;  %v14513_v38 = vld [vmem:[#allocation22 + $0x1c8] sm:$0xff]   ;;  %v14514_v6 = vld [vmem:[#allocation22 + $0x180] sm:$0xff]  }
0x1437   :  { %v13529_v27 = vpop.f32.mrf.mxu0  ;;  %v13581_v45 = vpop.f32.mrf.mxu1 }
0x1438   :  { %v14515_v27 = vld [vmem:[#allocation22 + $0x1c0] sm:$0xff]  }
0x1439   :  { %v9174_v42 = vpop.f32.mrf.mxu0 }
0x143a   :  { %v9180_v19 = vpack.c.bf16 %v9174_v42, %v9174_v42 }
0x143b   :  { %v13554_v40 = vpop.f32.mrf.mxu0 }
0x143c   :  { %13573 = vmatmul.mubr.bf16.vlgmr.msra.gmra.mxu0 %v9180_v19  ;;  %13631 = vmatmul.mubr.msk.bf16.vlgmr.msra.gmra.mxu1 %vm8831_vm8, %v10872_v54 }
0x143d   :  { %13603 = vmatpush3.bf16.msra.mxu0 %v17236_v43  ;;  %v9177_v33 = vpop.f32.mrf.mxu0  ;;  %13604 = vmatprep.mubr.msk.bf16.mxu0 %vm15010_vm0, %v15009_v17 }
0x143e   :  { %13635 = vmatpush3.bf16.msra.mxu1 %v14484_v1  ;;  %13608 = vmatprep.subr.bf16.mxu0 %v15009_v17 }
0x143f   :  { %v13555_v55 = vpop.f32.mrf.mxu0  ;;  %13636 = vmatprep.subr.bf16.mxu1 %v15009_v17  ;;  %13650 = vmatprep.mubr.msk.bf16.mxu1 %vm15010_vm0, %v15009_v17 }
0x1442   :  { %13637 = vmatpush3.bf16.msra.mxu1 %v14485_v20 }
0x1443   :  { %13638 = vmatprep.subr.bf16.mxu1 %v15009_v17 }
0x1444   :  { %13605 = vmatmul.mubr.msk.bf16.vlgmr.msra.gmra.mxu0 %vm8831_vm8, %v10862_v59 }
0x1445   :  { %13609 = vmatpush3.bf16.msra.mxu0 %v14486_v4  ;;  %13624 = vmatprep.mubr.msk.bf16.mxu0 %vm15010_vm0, %v15009_v17 }
0x1446   :  { %13639 = vmatpush3.bf16.msra.mxu1 %v14487_v60  ;;  %13610 = vmatprep.subr.bf16.mxu0 %v15009_v17 }
0x1447   :  { %13640 = vmatprep.subr.bf16.mxu1 %v15009_v17 }
0x1449   :  { %13611 = vmatpush3.bf16.msra.mxu0 %v14488_v18 }
0x144a   :  { %13641 = vmatpush3.bf16.msra.mxu1 %v14489_v49  ;;  %13612 = vmatprep.subr.bf16.mxu0 %v15009_v17 }
0x144b   :  { %13642 = vmatprep.subr.bf16.mxu1 %v15009_v17 }
0x144d   :  { %13613 = vmatpush3.bf16.msra.mxu0 %v14490_v31 }
0x144e   :  { %13643 = vmatpush3.bf16.msra.mxu1 %v14491_v53  ;;  %13614 = vmatprep.subr.bf16.mxu0 %v15009_v17 }
0x144f   :  { %13644 = vmatprep.subr.bf16.mxu1 %v15009_v17 }
0x1451   :  { %13615 = vmatpush3.bf16.msra.mxu0 %v14492_v3 }
0x1452   :  { %13645 = vmatpush3.bf16.msra.mxu1 %v14493_v41  ;;  %13616 = vmatprep.subr.bf16.mxu0 %v15009_v17 }
0x1453   :  { %13646 = vmatprep.subr.bf16.mxu1 %v15009_v17 }
0x1455   :  { %13617 = vmatpush3.bf16.msra.mxu0 %v14494_v52 }
0x1456   :  { %13647 = vmatpush3.bf16.msra.mxu1 %v14495_v24  ;;  %13618 = vmatprep.subr.bf16.mxu0 %v15009_v17 }
0x1457   :  { %13648 = vmatprep.subr.bf16.mxu1 %v15009_v17 }
0x1459   :  { %13619 = vmatpush3.bf16.msra.mxu0 %v14496_v28  ;;  %v10902_v28 = vld [vmem:[%s17408_s13 + $0x8] sm:$0x1] }
0x145a   :  { %13649 = vmatpush3.bf16.msra.mxu1 %v14497_v51  ;;  %13620 = vmatprep.subr.bf16.mxu0 %v15009_v17  ;;  %v14516_v51 = vld [vmem:[#allocation22 + $0x238] sm:$0xff]  }
0x145b   :  { %13680 = vmatprep.subr.bf16.mxu1 %v15009_v17 }
0x145d   :  { %13621 = vmatpush3.bf16.msra.mxu0 %v14498_v35  ;;  %v14517_v35 = vld [vmem:[#allocation22 + $0x230] sm:$0xff]  }
0x145e   :  { %13622 = vmatprep.subr.bf16.mxu0 %v15009_v17 }
0x1461   :  { %13623 = vmatpush3.bf16.msra.mxu0 %v14499_v61  ;;  %v14519_v61 = vld [vmem:[#allocation22 + $0x220] sm:$0xff]  }
0x1462   :  { %13654 = vmatprep.subr.bf16.mxu0 %v15009_v17 }
0x14f4   :  { %v9432_v22 = vpop.f32.mrf.mxu1 }
0x14f6   :  { %v13600_v46 = vpop.f32.mrf.mxu1 }
0x14f7   :  { %v14521_v46 = vld [vmem:[#allocation22 + $0x210] sm:$0xff]  }
0x14f8   :  { %v9435_v39 = vpop.f32.mrf.mxu1 }
0x14f9   :  { %v14522_v39 = vld [vmem:[#allocation22 + $0x208] sm:$0xff]  }
0x14fa   :  { %v13601_v13 = vpop.f32.mrf.mxu1 }
0x14fb   :  { %v14523_v13 = vld [vmem:[#allocation22 + $0x200] sm:$0xff]  }
0x14fc   :  { %v9280_v10 = vpop.f32.mrf.mxu0  ;;  %v9630_v15 = vpop.f32.mrf.mxu1 }
0x14fd   :  { %v9286_v36 = vadd.f32 %v9280_v10, %v17298_v23  ;;  %v9636_v58 = vpack.c.bf16 %v9630_v15, %v9630_v15  ;;  %v14508_v23 = vld [vmem:[#allocation22 + $0x198] sm:$0xff]  }
0x14fe   :  { %v13574_v8 = vpop.f32.mrf.mxu0  ;;  %v13632_v12 = vpop.f32.mrf.mxu1 }
0x14ff   :  { %13651 = vmatmul.mubr.bf16.vlgmr.msra.gmra.mxu1 %v9636_v58  ;;  %v17337_v48 = vadd.f32 %v9432_v22, %v9286_v36  ;;  %v14520_v22 = vld [vmem:[#allocation22 + $0x218] sm:$0xff]  }
0x1500   :  { %13681 = vmatpush3.bf16.msra.mxu1 %v17236_v43  ;;  %v9283_v34 = vpop.f32.mrf.mxu0  ;;  %13682 = vmatprep.mubr.msk.bf16.mxu1 %vm15010_vm0, %v15009_v17  ;;  %v9633_v44 = vpop.f32.mrf.mxu1 }
0x1501   :  { %13686 = vmatprep.subr.bf16.mxu1 %v15009_v17 }
0x1502   :  { %v13575_v26 = vpop.f32.mrf.mxu0  ;;  %v13633_v56 = vpop.f32.mrf.mxu1 }
0x1504   :  { %v9478_v32 = vpop.f32.mrf.mxu0 }
0x1505   :  { %v9484_v7 = vpack.c.bf16 %v9478_v32, %v9478_v32 }
0x1506   :  { %v13606_v25 = vpop.f32.mrf.mxu0 }
0x1507   :  { %13625 = vmatmul.mubr.bf16.vlgmr.msra.gmra.mxu0 %v9484_v7  ;;  %13683 = vmatmul.mubr.msk.bf16.vlgmr.msra.gmra.mxu1 %vm8831_vm8, %v10892_v63 }
0x1508   :  { %13655 = vmatpush3.bf16.msra.mxu0 %v17236_v43  ;;  %v9481_v57 = vpop.f32.mrf.mxu0  ;;  %13656 = vmatprep.mubr.msk.bf16.mxu0 %vm15010_vm0, %v15009_v17 }
0x1509   :  { %13660 = vmatprep.subr.bf16.mxu0 %v15009_v17  ;;  %13687 = vmatpush3.bf16.msra.mxu1 %v14501_v47 }
0x150a   :  { %v13607_v30 = vpop.f32.mrf.mxu0  ;;  %13688 = vmatprep.subr.bf16.mxu1 %v15009_v17  ;;  %13702 = vmatprep.mubr.msk.bf16.mxu1 %vm15010_vm0, %v15009_v17 }
0x150d   :  { %13689 = vmatpush3.bf16.msra.mxu1 %v14503_v14 }
0x150e   :  { %13690 = vmatprep.subr.bf16.mxu1 %v15009_v17 }
0x150f   :  { %13657 = vmatmul.mubr.msk.bf16.vlgmr.msra.gmra.mxu0 %vm8831_vm8, %v10882_v62 }
0x1510   :  { %13661 = vmatpush3.bf16.msra.mxu0 %v14500_v5  ;;  %13676 = vmatprep.mubr.msk.bf16.mxu0 %vm15010_vm0, %v15009_v17 }
0x1511   :  { %13662 = vmatprep.subr.bf16.mxu0 %v15009_v17  ;;  %13691 = vmatpush3.bf16.msra.mxu1 %v14505_v0  ;;  %v10913_v0 = vld [vmem:[#allocation25] ss:$0 sm:$0xff] }
0x1512   :  { %13692 = vmatprep.subr.bf16.mxu1 %v15009_v17 }
0x1514   :  { %13663 = vmatpush3.bf16.msra.mxu0 %v14502_v21 }
0x1515   :  { %13664 = vmatprep.subr.bf16.mxu0 %v15009_v17  ;;  %13693 = vmatpush3.bf16.msra.mxu1 %v14507_v11 }
0x1516   :  { %13694 = vmatprep.subr.bf16.mxu1 %v15009_v17 }
0x1518   :  { %13665 = vmatpush3.bf16.msra.mxu0 %v14504_v29 }
0x1519   :  { %13666 = vmatprep.subr.bf16.mxu0 %v15009_v17  ;;  %13695 = vmatpush3.bf16.msra.mxu1 %v14509_v16 }
0x151a   :  { %13696 = vmatprep.subr.bf16.mxu1 %v15009_v17 }
0x151c   :  { %13667 = vmatpush3.bf16.msra.mxu0 %v14506_v2  ;;  %v10220_v2 = vld [vmem:[#allocation26] sm:$0x3] }
0x151d   :  { %13668 = vmatprep.subr.bf16.mxu0 %v15009_v17  ;;  %13697 = vmatpush3.bf16.msra.mxu1 %v14511_v37 }
0x151e   :  { %13698 = vmatprep.subr.bf16.mxu1 %v15009_v17 }
0x1520   :  { %13669 = vmatpush3.bf16.msra.mxu0 %v14508_v23 }
0x1521   :  { %13670 = vmatprep.subr.bf16.mxu0 %v15009_v17  ;;  %13699 = vmatpush3.bf16.msra.mxu1 %v14513_v38 }
0x1522   :  { %13700 = vmatprep.subr.bf16.mxu1 %v15009_v17 }
0x1524   :  { %13671 = vmatpush3.bf16.msra.mxu0 %v14510_v9 }
0x1525   :  { %13672 = vmatprep.subr.bf16.mxu0 %v15009_v17  ;;  %13701 = vmatpush3.bf16.msra.mxu1 %v14515_v27 }
0x1528   :  { %13673 = vmatpush3.bf16.msra.mxu0 %v14512_v50  ;;  %v10914_v50 = vld [vmem:[#allocation2] ss:$0 sm:$0xff] }
0x1529   :  { %13674 = vmatprep.subr.bf16.mxu0 %v15009_v17 }
0x152c   :  { %13675 = vmatpush3.bf16.msra.mxu0 %v14514_v6 }
0x152d   :  { %13706 = vmatprep.subr.bf16.mxu0 %v15009_v17 }
0x15bf   :  { %v9736_v45 = vpop.f32.mrf.mxu1 }
0x15c1   :  { %v13652_v42 = vpop.f32.mrf.mxu1 }
0x15c3   :  { %v9739_v54 = vpop.f32.mrf.mxu1 }
0x15c5   :  { %v13653_v19 = vpop.f32.mrf.mxu1 }
0x15c7   :  { %v9584_v1 = vpop.f32.mrf.mxu0  ;;  %v9934_v40 = vpop.f32.mrf.mxu1 }
0x15c8   :  { %v9590_v33 = vadd.f32 %v9584_v1, %v17337_v48  ;;  %v9940_v20 = vpack.c.bf16 %v9934_v40, %v9934_v40 }
0x15c9   :  { %v13626_v55 = vpop.f32.mrf.mxu0  ;;  %v13684_v59 = vpop.f32.mrf.mxu1 }
0x15ca   :  { %v9742_v4 = vadd.f32 %v9736_v45, %v9590_v33  ;;  %13703 = vmatmul.mubr.bf16.vlgmr.msra.gmra.mxu1 %v9940_v20 }
0x15cb   :  { %v9587_v60 = vpop.f32.mrf.mxu0  ;;  %v9937_v18 = vpop.f32.mrf.mxu1 }
0x15cd   :  { %v13627_v49 = vpop.f32.mrf.mxu0  ;;  %v13685_v31 = vpop.f32.mrf.mxu1 }
0x15cf   :  { %v9782_v53 = vpop.f32.mrf.mxu0 }
0x15d0   :  { %v9788_v3 = vpack.c.bf16 %v9782_v53, %v9782_v53 }
0x15d1   :  { %v13658_v41 = vpop.f32.mrf.mxu0 }
0x15d2   :  { %13677 = vmatmul.mubr.bf16.vlgmr.msra.gmra.mxu0 %v9788_v3 }
0x15d3   :  { %13707 = vmatpush3.bf16.msra.mxu0 %v17236_v43  ;;  %v9785_v52 = vpop.f32.mrf.mxu0  ;;  %13708 = vmatprep.mubr.msk.bf16.mxu0 %vm15010_vm0, %v15009_v17  ;;  %v14518_v43 = vld [vmem:[#allocation22 + $0x228] sm:$0xff]  }
0x15d4   :  { %13712 = vmatprep.subr.bf16.mxu0 %v15009_v17 }
0x15d5   :  { %v13659_v24 = vpop.f32.mrf.mxu0 }
0x15da   :  { %13709 = vmatmul.mubr.msk.bf16.vlgmr.msra.gmra.mxu0 %vm8831_vm8, %v10902_v28 }
0x15db   :  { %13713 = vmatpush3.bf16.msra.mxu0 %v14516_v51  ;;  %13728 = vmatprep.mubr.msk.bf16.mxu0 %vm15010_vm0, %v15009_v17 }
0x15dc   :  { %13714 = vmatprep.subr.bf16.mxu0 %v15009_v17 }
0x15df   :  { %13715 = vmatpush3.bf16.msra.mxu0 %v14517_v35 }
0x15e0   :  { %13716 = vmatprep.subr.bf16.mxu0 %v15009_v17 }
0x15e3   :  { %13717 = vmatpush3.bf16.msra.mxu0 %v14518_v43 }
0x15e4   :  { %13718 = vmatprep.subr.bf16.mxu0 %v15009_v17 }
0x15e7   :  { %13719 = vmatpush3.bf16.msra.mxu0 %v14519_v61 }
0x15e8   :  { %13720 = vmatprep.subr.bf16.mxu0 %v15009_v17 }
0x15eb   :  { %13721 = vmatpush3.bf16.msra.mxu0 %v14520_v22 }
0x15ec   :  { %13722 = vmatprep.subr.bf16.mxu0 %v15009_v17 }
0x15ef   :  { %13723 = vmatpush3.bf16.msra.mxu0 %v14521_v46 }
0x15f0   :  { %13724 = vmatprep.subr.bf16.mxu0 %v15009_v17 }
0x15f3   :  { %13725 = vmatpush3.bf16.msra.mxu0 %v14522_v39 }
0x15f4   :  { %13726 = vmatprep.subr.bf16.mxu0 %v15009_v17  ;;  %v10912_v17 = vld [vmem:[#allocation23] ss:$0 sm:$0xff] }
0x15f7   :  { %13727 = vmatpush3.bf16.msra.mxu0 %v14523_v13 }
0x168a   :  { %v10040_v10 = vpop.f32.mrf.mxu1 }
0x168c   :  { %v13704_v15 = vpop.f32.mrf.mxu1 }
0x168e   :  { %v10043_v36 = vpop.f32.mrf.mxu1 }
0x1690   :  { %v13705_v58 = vpop.f32.mrf.mxu1 }
0x1692   :  { %v9888_v8 = vpop.f32.mrf.mxu0 }
0x1693   :  { %v9894_v12 = vadd.f32 %v9888_v8, %v9742_v4 }
0x1694   :  { %v13678_v48 = vpop.f32.mrf.mxu0 }
0x1695   :  { %v10046_v34 = vadd.f32 %v10040_v10, %v9894_v12 }
0x1696   :  { %v9891_v44 = vpop.f32.mrf.mxu0 }
0x1698   :  { %v13679_v26 = vpop.f32.mrf.mxu0 }
0x169a   :  { %v10086_v56 = vpop.f32.mrf.mxu0 }
0x169b   :  { %v10092_v32 = vpack.c.bf16 %v10086_v56, %v10086_v56 }
0x169c   :  { %v13710_v63 = vpop.f32.mrf.mxu0 }
0x169d   :  { %13729 = vmatmul.mubr.bf16.vlgmr.msra.gmra.mxu0 %v10092_v32 }
0x169e   :  { %v10089_v7 = vpop.f32.mrf.mxu0 }
0x16a0   :  { %v13711_v47 = vpop.f32.mrf.mxu0 }
0x175d   :  { %v10192_v25 = vpop.f32.mrf.mxu0 }
0x175e   :  { %v10198_v57 = vadd.f32 %v10192_v25, %v10046_v34 }
0x175f   :  { %v13730_v14 = vpop.f32.mrf.mxu0 }
0x1760   :  { %v10206_v30 = vadd.f32 %v10912_v17, %v10198_v57 }
0x1761   :  { %v10195_v62 = vpop.f32.mrf.mxu0 }
0x1762   :  { %vm10207_vm9 = vcmp.gt.f32.partialorder %v10206_v30, 0.0  ;;  %v10208_v5 = vmul.f32 0.2, %v10206_v30 }
0x1763   :  { %v13731_v21 = vpop.f32.mrf.mxu0 }
0x1764   :  { %v10209_v11 = vsel %vm10207_vm9, %v10206_v30, %v10208_v5 }
0x1765   :  { %v10217_v29 = vadd.f32 %v10913_v0, %v10209_v11 }
0x1767   :  { %v10218_v16 = vpack.c.bf16 %v10217_v29, %v10217_v29 }
0x1769   :  { %v10219_v23 = vunpack.c.l.bf16 %v10218_v16 }
0x176b   :  { %v10221_v9 = vmul.f32 %v10220_v2, %v10219_v23 }
0x176d   :  { %v10223_v37 = vsel %vm10222_vm10, %v10221_v9, 0.0 }
0x176e   :  { %10224 = vadd.xlane.f32.xlu0 %v10223_v37 }
0x17f7   :  { %v10225_v38 = vpop.xlane.xlu0 %10224 }
0x17f8   :  { %v10233_v6 = vadd.f32 %v10914_v50, %v10225_v38 }
0x17fa   :  { %v10234_v27 = vsub.f32 0.0, %v10233_v6 }
0x17fc   :  { %v10235_v45 = vmul.f32 1.442695, %v10234_v27 }
0x17fe   :  { %14524 = vpow2.f32 %v10235_v45 }
0x180b   :  { %v14525_v42 = vpop.eup %14524 }
0x180c   :  { %v10237_v54 = vadd.f32 1.0, %v14525_v42 }
0x180e   :  { %14526 = vrcp.f32 %v10237_v54 }
0x181b   :  { %v14527_v19 = vpop.eup %14526 }
0x181c   :  { %10240 = vst.msk [vmem:[%s17414_s19] sm:$0x3] %vm10239_vm11, %v14527_v19 }
0x181d   :  { %10245 = vsyncpa [#allocation4], 1 }
0x181e   :  { %10246 = vsyncpa [#allocation6], 1 }
0x181f   :  { %10247 = vsyncpa [#allocation9], 1 }
0x1820   :  { %10248 = vsyncpa [#allocation12], 1 }
0x1821   :  { %10249 = vsyncpa [#allocation15], 1 }
0x1822   :  { %10250 = vsyncpa [#allocation18], 1 }
0x1823   :  { %10251 = vsyncpa [#allocation21], 1 }
0x1824   :  { %10252 = vsyncpa [#allocation24], 1 }
0x1825   :  { %10253 = vsyncpa [#allocation27], 1 }

</bundles_post_ra>
